<compile_context>
chip_gen: v6e
topology: v6e:2x2x1
jax: 0.10.0
libtpu: 0.0.40
codegen_flags: <defaults>
</compile_context>

<pallas_src>
import jax
import jax.numpy as jnp
from jax.experimental import pallas as pl
from jax.experimental.pallas import tpu as pltpu


def _round_up(x, m):
    return ((x + m - 1) // m) * m


# --------------------------------------------------------------------------
# Fused kernel: one grid step = tile_n images through the whole network.
# Every op is a 2-D bf16 matmul (f32 accumulation) or an f32 elementwise
# epilogue; activations never leave VMEM/vregs.
# --------------------------------------------------------------------------
def _lenet5_kernel(x_ref,
                   w1_ref, b1_ref, p1_ref,
                   w2_ref, b2_ref, p2_ref,
                   w3_ref, b3_ref,
                   wf1_ref, bf1_ref, wf2_ref, bf2_ref,
                   o_ref):
    f32, bf16 = jnp.float32, jnp.bfloat16

    def mm(a, w_ref):
        return jnp.dot(a, w_ref[...], preferred_element_type=f32)

    # C1 + tanh, then S2 (both pool directions folded into one matmul).
    # Input slab row r holds image rows 4r..4r+3 (channels-last); conv slab
    # row r holds conv rows 4r..4r+3; pooled slab row r holds rows 2r, 2r+1.
    s1 = []
    for r in range(7):
        lhs = jnp.concatenate([x_ref[r], x_ref[r + 1]], axis=-1)      # (M, 8*W*C)
        a1 = jnp.tanh(mm(lhs, w1_ref) + b1_ref[...]).astype(bf16)     # (M, 4*28*6)
        s1.append(mm(a1, p1_ref).astype(bf16))                        # (M, 256)

    # C3 + tanh, then S4 — same scheme at fold 2.
    s2 = []
    for r in range(5):
        lhs = jnp.concatenate([s1[r], s1[r + 1], s1[r + 2]], axis=-1)  # (M, 768)
        a2 = jnp.tanh(mm(lhs, w2_ref) + b2_ref[...]).astype(bf16)      # (M, 2*10*16)
        s2.append(mm(a2, p2_ref).astype(bf16))                         # (M, 128)

    # C5 + tanh (1x1 spatial output -> 120 features per image).
    h = jnp.tanh(mm(jnp.concatenate(s2, axis=-1), w3_ref)
                 + b3_ref[...]).astype(bf16)                            # (M, 120)
    # F6 + tanh.
    h = jnp.tanh(mm(h, wf1_ref) + bf1_ref[...]).astype(bf16)            # (M, 84)
    # Output layer (no activation); logits padded to 128 lanes -> dense store.
    o_ref[...] = (mm(h, wf2_ref) + bf2_ref[...]).astype(o_ref.dtype)


# --------------------------------------------------------------------------
# One-time parameter preparation.  The conv / pool linear maps for the folded
# row layout are materialized by pushing basis vectors through the reference
# ops (exact, and immune to indexing mistakes), then cast to bf16.
# --------------------------------------------------------------------------
def prepare_lenet5_params(params, *, input_hw=(32, 32)):
    w1, b1 = params["conv1"]
    w2, b2 = params["conv2"]
    w3, b3 = params["conv3"]
    fw1, fb1 = params["fc1"]
    fw2, fb2 = params["fc2"]

    h0, w0 = input_hw
    if (h0, w0) != (32, 32):
        raise ValueError("LeNet-5 kernel expects 32x32 inputs.")
    cin = w1.shape[1]
    c1, c2 = w1.shape[0], w2.shape[0]

    def conv_nhwc(x, w):  # x: (h, w, cin) channels-last, w: torch (oc, ic, k, k)
        y = jax.lax.conv_general_dilated(
            x[None], jnp.transpose(w, (2, 3, 1, 0)), (1, 1), "VALID",
            dimension_numbers=("NHWC", "HWIO", "NHWC"))
        return y[0]

    def avgpool(x):  # (h, w, c) -> (h//2, w//2, c)
        hh, ww, c = x.shape
        return x.reshape(hh // 2, 2, ww // 2, 2, c).mean(axis=(1, 3))

    def linmat(fn, in_dim):  # materialize a linear map as (in_dim, out_dim)
        eye = jnp.eye(in_dim, dtype=jnp.float32)
        return jax.vmap(lambda v: fn(v).reshape(-1))(eye)

    s1_w = _round_up(2 * 14 * c1, 128)   # pooled fold-2 slab width (256)
    s2_w = _round_up(5 * c2, 128)        # pooled fold-1 slab width (128)

    # C1: [image rows 4r..4r+7] -> conv1 rows 4r..4r+3 (all 5x5 taps in K).
    W1 = linmat(lambda v: conv_nhwc(v.reshape(8, w0, cin), w1), 8 * w0 * cin)
    # S2: conv1 rows 4r..4r+3 -> pooled rows 2r, 2r+1 (2x2 avg in one matmul).
    P1 = linmat(lambda v: avgpool(v.reshape(4, 28, c1)), 4 * 28 * c1)
    P1 = jnp.pad(P1, ((0, 0), (0, s1_w - 2 * 14 * c1)))

    # C3: [pooled rows 2r..2r+5] -> conv2 rows 2r, 2r+1.
    def s1_window(v):
        return v.reshape(3, s1_w)[:, :2 * 14 * c1].reshape(6, 14, c1)
    W2 = linmat(lambda v: conv_nhwc(s1_window(v), w2), 3 * s1_w)
    # S4: conv2 rows 2r, 2r+1 -> pooled row r.
    P2 = linmat(lambda v: avgpool(v.reshape(2, 10, c2)), 2 * 10 * c2)
    P2 = jnp.pad(P2, ((0, 0), (0, s2_w - 5 * c2)))

    # C5: the full pooled 5x5 map -> 120 features.
    def s2_window(v):
        return v.reshape(5, s2_w)[:, :5 * c2].reshape(5, 5, c2)
    W3 = linmat(lambda v: conv_nhwc(s2_window(v), w3), 5 * s2_w)

    nc = fw2.shape[0]
    nc_pad = _round_up(max(nc, 128), 128)          # lane-dense output store
    Wf2 = jnp.pad(fw2.T, ((0, 0), (0, nc_pad - nc)))
    Bf2 = jnp.pad(fb2, (0, nc_pad - nc))

    bf16, f32 = jnp.bfloat16, jnp.float32
    return {
        "w1": W1.astype(bf16),
        "b1": jnp.tile(b1, 4 * 28).reshape(1, -1).astype(f32),
        "p1": P1.astype(bf16),
        "w2": W2.astype(bf16),
        "b2": jnp.tile(b2, 2 * 10).reshape(1, -1).astype(f32),
        "p2": P2.astype(bf16),
        "w3": W3.astype(bf16),
        "b3": b3.reshape(1, -1).astype(f32),
        "wf1": fw1.T.astype(bf16),
        "bf1": fb1.reshape(1, -1).astype(f32),
        "wf2": Wf2.astype(bf16),
        "bf2": Bf2.reshape(1, -1).astype(f32),
    }


_WEIGHT_ORDER = ("w1", "b1", "p1", "w2", "b2", "p2",
                 "w3", "b3", "wf1", "bf1", "wf2", "bf2")


# --------------------------------------------------------------------------
# Forward: one pallas_call for the whole network, gridded over batch tiles.
# --------------------------------------------------------------------------
def lenet5_forward(prep, x, num_classes=10):
    """x: (N, C, 32, 32) float32 -> logits (N, num_classes)."""
    n, c, h, w = x.shape
    if (h, w) != (32, 32):
        raise ValueError("LeNet-5 kernel expects 32x32 inputs.")

    # bf16 channels-last slab, 4 image rows folded per slab row, slab-row-major
    # layout (8, N, 4*W*C) so the kernel reads dense (tile_n, 4*W*C) blocks.
    slab_w = 4 * w * c
    x_slab = jnp.transpose(x, (0, 2, 3, 1)).astype(jnp.bfloat16)
    x_slab = x_slab.reshape(n, 8, slab_w)
    x_slab = jnp.transpose(x_slab, (1, 0, 2))

    tile_n = min(128, _round_up(max(n, 1), 8))    # >= 2 grid steps once N >= 256
    n_pad = _round_up(n, tile_n)
    if n_pad != n:
        x_slab = jnp.pad(x_slab, ((0, 0), (0, n_pad - n), (0, 0)))

    weights = [prep[k] for k in _WEIGHT_ORDER]
    out_w = prep["wf2"].shape[1]

    def resident(a):  # whole array stays VMEM-resident across the grid
        nd = a.ndim
        return pl.BlockSpec(a.shape, lambda i, _nd=nd: (0,) * _nd)

    out = pl.pallas_call(
        _lenet5_kernel,
        grid=(n_pad // tile_n,),
        in_specs=[pl.BlockSpec((8, tile_n, slab_w), lambda i: (0, i, 0))]
                + [resident(a) for a in weights],
        out_specs=pl.BlockSpec((tile_n, out_w), lambda i: (i, 0)),
        out_shape=jax.ShapeDtypeStruct((n_pad, out_w), jnp.float32),
        compiler_params=pltpu.CompilerParams(
            dimension_semantics=("parallel",)),
    )(x_slab, *weights)
    return out[:n, :num_classes]


# --------------------------------------------------------------------------
# Init (matches PyTorch default Conv2d/Linear init) and plain-JAX reference.
# --------------------------------------------------------------------------
def init_lenet5_params(key, in_channels=1, num_classes=10):
    def conv_init(k, outc, inc, ksz):
        k1, k2 = jax.random.split(k)
        bound = 1.0 / float(inc * ksz * ksz) ** 0.5
        w = jax.random.uniform(k1, (outc, inc, ksz, ksz), jnp.float32, -bound, bound)
        b = jax.random.uniform(k2, (outc,), jnp.float32, -bound, bound)
        return w, b

    def fc_init(k, infeat, outfeat):
        k1, k2 = jax.random.split(k)
        bound = 1.0 / float(infeat) ** 0.5
        w = jax.random.uniform(k1, (outfeat, infeat), jnp.float32, -bound, bound)
        b = jax.random.uniform(k2, (outfeat,), jnp.float32, -bound, bound)
        return w, b

    ks = jax.random.split(key, 5)
    return {
        "conv1": conv_init(ks[0], 6, in_channels, 5),
        "conv2": conv_init(ks[1], 16, 6, 5),
        "conv3": conv_init(ks[2], 120, 16, 5),
        "fc1": fc_init(ks[3], 120, 84),
        "fc2": fc_init(ks[4], 84, num_classes),
    }


def _lenet5_reference(params, x):
    def conv_tanh(h, w, b):
        y = jax.lax.conv_general_dilated(
            h, w, window_strides=(1, 1), padding="VALID",
            dimension_numbers=("NCHW", "OIHW", "NCHW"))
        return jnp.tanh(y + b[None, :, None, None])

    def pool(h):
        n, c, hh, ww = h.shape
        return h.reshape(n, c, hh // 2, 2, ww // 2, 2).mean(axis=(3, 5))

    w1, b1 = params["conv1"]; w2, b2 = params["conv2"]; w3, b3 = params["conv3"]
    fw1, fb1 = params["fc1"]; fw2, fb2 = params["fc2"]
    h = pool(conv_tanh(x, w1, b1))
    h = pool(conv_tanh(h, w2, b2))
    h = conv_tanh(h, w3, b3).reshape(x.shape[0], -1)
    h = jnp.tanh(h @ fw1.T + fb1)
    return h @ fw2.T + fb2


if __name__ == "__main__":
    key = jax.random.PRNGKey(0)
    pkey, xkey = jax.random.split(key)
    params = init_lenet5_params(pkey, in_channels=1, num_classes=10)
    # LeNet-5 requires 32x32 inputs so conv3's output is 1x1 (flatten -> 120).
    x = jax.random.normal(xkey, (2, 1, 32, 32), jnp.float32)

    prep = prepare_lenet5_params(params, input_hw=(32, 32))
    fwd = jax.jit(lenet5_forward, static_argnames=("num_classes",))
    out = jax.block_until_ready(fwd(prep, x, num_classes=10))
    assert out.shape == (2, 10), out.shape

    # Sanity check vs. plain-JAX f32 reference (kernel uses bf16 matmul
    # operands with f32 accumulation -> loose tolerance).
    ref = _lenet5_reference(params, x)
    max_err = float(jnp.max(jnp.abs(out - ref)))
    assert max_err < 2e-1, f"max |err| = {max_err}"
    print("KERNEL_OK")
</pallas_src>

<mosaic_0001>
module attributes {stable_mosaic.version = 11 : i64} {
  func.func @_lenet5_kernel(%arg0: i32, %arg1: memref<8x8x128xbf16, #tpu.memory_space<vmem>>, %arg2: memref<256x672xbf16, #tpu.memory_space<vmem>>, %arg3: memref<1x672xf32, #tpu.memory_space<vmem>>, %arg4: memref<672x256xbf16, #tpu.memory_space<vmem>>, %arg5: memref<768x320xbf16, #tpu.memory_space<vmem>>, %arg6: memref<1x320xf32, #tpu.memory_space<vmem>>, %arg7: memref<320x128xbf16, #tpu.memory_space<vmem>>, %arg8: memref<640x120xbf16, #tpu.memory_space<vmem>>, %arg9: memref<1x120xf32, #tpu.memory_space<vmem>>, %arg10: memref<120x84xbf16, #tpu.memory_space<vmem>>, %arg11: memref<1x84xf32, #tpu.memory_space<vmem>>, %arg12: memref<84x128xbf16, #tpu.memory_space<vmem>>, %arg13: memref<1x128xf32, #tpu.memory_space<vmem>>, %arg14: memref<8x128xf32, #tpu.memory_space<vmem>>) attributes {dimension_semantics = [#tpu.dimension_semantics<parallel>], iteration_bounds = array<i64: 1>, scalar_prefetch = 0 : i64, scratch_operands = 0 : i64, tpu.core_type = #tpu.core_type<tc>, window_params = [{transform_indices = @transform_0, window_bounds = array<i64: 8, 8, 128>}, {pipeline_mode = #tpu.pipeline_mode<synchronous>, transform_indices = @transform_1, window_bounds = array<i64: 256, 672>}, {pipeline_mode = #tpu.pipeline_mode<synchronous>, transform_indices = @transform_2, window_bounds = array<i64: 1, 672>}, {pipeline_mode = #tpu.pipeline_mode<synchronous>, transform_indices = @transform_3, window_bounds = array<i64: 672, 256>}, {pipeline_mode = #tpu.pipeline_mode<synchronous>, transform_indices = @transform_4, window_bounds = array<i64: 768, 320>}, {pipeline_mode = #tpu.pipeline_mode<synchronous>, transform_indices = @transform_5, window_bounds = array<i64: 1, 320>}, {pipeline_mode = #tpu.pipeline_mode<synchronous>, transform_indices = @transform_6, window_bounds = array<i64: 320, 128>}, {pipeline_mode = #tpu.pipeline_mode<synchronous>, transform_indices = @transform_7, window_bounds = array<i64: 640, 120>}, {pipeline_mode = #tpu.pipeline_mode<synchronous>, transform_indices = @transform_8, window_bounds = array<i64: 1, 120>}, {pipeline_mode = #tpu.pipeline_mode<synchronous>, transform_indices = @transform_9, window_bounds = array<i64: 120, 84>}, {pipeline_mode = #tpu.pipeline_mode<synchronous>, transform_indices = @transform_10, window_bounds = array<i64: 1, 84>}, {pipeline_mode = #tpu.pipeline_mode<synchronous>, transform_indices = @transform_11, window_bounds = array<i64: 84, 128>}, {pipeline_mode = #tpu.pipeline_mode<synchronous>, transform_indices = @transform_12, window_bounds = array<i64: 1, 128>}, {transform_indices = @transform_13, window_bounds = array<i64: 8, 128>}]} {
    %c0 = arith.constant 0 : index
    %c0_0 = arith.constant 0 : index
    %c0_1 = arith.constant 0 : index
    %0 = vector.load %arg1[%c0, %c0_0, %c0_1] : memref<8x8x128xbf16, #tpu.memory_space<vmem>>, vector<1x8x128xbf16>
    %1 = vector.shape_cast %0 : vector<1x8x128xbf16> to vector<8x128xbf16>
    %c1 = arith.constant 1 : index
    %c0_2 = arith.constant 0 : index
    %c0_3 = arith.constant 0 : index
    %2 = vector.load %arg1[%c1, %c0_2, %c0_3] : memref<8x8x128xbf16, #tpu.memory_space<vmem>>, vector<1x8x128xbf16>
    %3 = vector.shape_cast %2 : vector<1x8x128xbf16> to vector<8x128xbf16>
    %4 = tpu.concatenate %1, %3 in 1 : vector<8x128xbf16>, vector<8x128xbf16> -> vector<8x256xbf16>
    %c0_4 = arith.constant 0 : index
    %c0_5 = arith.constant 0 : index
    %5 = vector.load %arg2[%c0_4, %c0_5] : memref<256x672xbf16, #tpu.memory_space<vmem>>, vector<256x672xbf16>
    %cst = arith.constant dense<0.000000e+00> : vector<8x672xf32>
    %6 = tpu.matmul %4, %5, %cst {dimension_numbers = #tpu.dot_dimension_numbers<[1], [0], [0], [1], [0, 0, 1, 1], [], []>} : vector<8x256xbf16>, vector<256x672xbf16>, vector<8x672xf32> -> vector<8x672xf32>
    %c0_6 = arith.constant 0 : index
    %c0_7 = arith.constant 0 : index
    %7 = vector.load %arg3[%c0_6, %c0_7] : memref<1x672xf32, #tpu.memory_space<vmem>>, vector<1x672xf32>
    %8 = vector.broadcast %7 : vector<1x672xf32> to vector<8x672xf32>
    %9 = arith.addf %6, %8 : vector<8x672xf32>
    %10 = math.tanh %9 : vector<8x672xf32>
    %11 = arith.truncf %10 : vector<8x672xf32> to vector<8x672xbf16>
    %c0_8 = arith.constant 0 : index
    %c0_9 = arith.constant 0 : index
    %12 = vector.load %arg4[%c0_8, %c0_9] : memref<672x256xbf16, #tpu.memory_space<vmem>>, vector<672x256xbf16>
    %cst_10 = arith.constant dense<0.000000e+00> : vector<8x256xf32>
    %13 = tpu.matmul %11, %12, %cst_10 {dimension_numbers = #tpu.dot_dimension_numbers<[1], [0], [0], [1], [0, 0, 1, 1], [], []>} : vector<8x672xbf16>, vector<672x256xbf16>, vector<8x256xf32> -> vector<8x256xf32>
    %14 = arith.truncf %13 : vector<8x256xf32> to vector<8x256xbf16>
    %c1_11 = arith.constant 1 : index
    %c0_12 = arith.constant 0 : index
    %c0_13 = arith.constant 0 : index
    %15 = vector.load %arg1[%c1_11, %c0_12, %c0_13] : memref<8x8x128xbf16, #tpu.memory_space<vmem>>, vector<1x8x128xbf16>
    %16 = vector.shape_cast %15 : vector<1x8x128xbf16> to vector<8x128xbf16>
    %c2 = arith.constant 2 : index
    %c0_14 = arith.constant 0 : index
    %c0_15 = arith.constant 0 : index
    %17 = vector.load %arg1[%c2, %c0_14, %c0_15] : memref<8x8x128xbf16, #tpu.memory_space<vmem>>, vector<1x8x128xbf16>
    %18 = vector.shape_cast %17 : vector<1x8x128xbf16> to vector<8x128xbf16>
    %19 = tpu.concatenate %16, %18 in 1 : vector<8x128xbf16>, vector<8x128xbf16> -> vector<8x256xbf16>
    %c0_16 = arith.constant 0 : index
    %c0_17 = arith.constant 0 : index
    %20 = vector.load %arg2[%c0_16, %c0_17] : memref<256x672xbf16, #tpu.memory_space<vmem>>, vector<256x672xbf16>
    %cst_18 = arith.constant dense<0.000000e+00> : vector<8x672xf32>
    %21 = tpu.matmul %19, %20, %cst_18 {dimension_numbers = #tpu.dot_dimension_numbers<[1], [0], [0], [1], [0, 0, 1, 1], [], []>} : vector<8x256xbf16>, vector<256x672xbf16>, vector<8x672xf32> -> vector<8x672xf32>
    %c0_19 = arith.constant 0 : index
    %c0_20 = arith.constant 0 : index
    %22 = vector.load %arg3[%c0_19, %c0_20] : memref<1x672xf32, #tpu.memory_space<vmem>>, vector<1x672xf32>
    %23 = vector.broadcast %22 : vector<1x672xf32> to vector<8x672xf32>
    %24 = arith.addf %21, %23 : vector<8x672xf32>
    %25 = math.tanh %24 : vector<8x672xf32>
    %26 = arith.truncf %25 : vector<8x672xf32> to vector<8x672xbf16>
    %c0_21 = arith.constant 0 : index
    %c0_22 = arith.constant 0 : index
    %27 = vector.load %arg4[%c0_21, %c0_22] : memref<672x256xbf16, #tpu.memory_space<vmem>>, vector<672x256xbf16>
    %cst_23 = arith.constant dense<0.000000e+00> : vector<8x256xf32>
    %28 = tpu.matmul %26, %27, %cst_23 {dimension_numbers = #tpu.dot_dimension_numbers<[1], [0], [0], [1], [0, 0, 1, 1], [], []>} : vector<8x672xbf16>, vector<672x256xbf16>, vector<8x256xf32> -> vector<8x256xf32>
    %29 = arith.truncf %28 : vector<8x256xf32> to vector<8x256xbf16>
    %c2_24 = arith.constant 2 : index
    %c0_25 = arith.constant 0 : index
    %c0_26 = arith.constant 0 : index
    %30 = vector.load %arg1[%c2_24, %c0_25, %c0_26] : memref<8x8x128xbf16, #tpu.memory_space<vmem>>, vector<1x8x128xbf16>
    %31 = vector.shape_cast %30 : vector<1x8x128xbf16> to vector<8x128xbf16>
    %c3 = arith.constant 3 : index
    %c0_27 = arith.constant 0 : index
    %c0_28 = arith.constant 0 : index
    %32 = vector.load %arg1[%c3, %c0_27, %c0_28] : memref<8x8x128xbf16, #tpu.memory_space<vmem>>, vector<1x8x128xbf16>
    %33 = vector.shape_cast %32 : vector<1x8x128xbf16> to vector<8x128xbf16>
    %34 = tpu.concatenate %31, %33 in 1 : vector<8x128xbf16>, vector<8x128xbf16> -> vector<8x256xbf16>
    %c0_29 = arith.constant 0 : index
    %c0_30 = arith.constant 0 : index
    %35 = vector.load %arg2[%c0_29, %c0_30] : memref<256x672xbf16, #tpu.memory_space<vmem>>, vector<256x672xbf16>
    %cst_31 = arith.constant dense<0.000000e+00> : vector<8x672xf32>
    %36 = tpu.matmul %34, %35, %cst_31 {dimension_numbers = #tpu.dot_dimension_numbers<[1], [0], [0], [1], [0, 0, 1, 1], [], []>} : vector<8x256xbf16>, vector<256x672xbf16>, vector<8x672xf32> -> vector<8x672xf32>
    %c0_32 = arith.constant 0 : index
    %c0_33 = arith.constant 0 : index
    %37 = vector.load %arg3[%c0_32, %c0_33] : memref<1x672xf32, #tpu.memory_space<vmem>>, vector<1x672xf32>
    %38 = vector.broadcast %37 : vector<1x672xf32> to vector<8x672xf32>
    %39 = arith.addf %36, %38 : vector<8x672xf32>
    %40 = math.tanh %39 : vector<8x672xf32>
    %41 = arith.truncf %40 : vector<8x672xf32> to vector<8x672xbf16>
    %c0_34 = arith.constant 0 : index
    %c0_35 = arith.constant 0 : index
    %42 = vector.load %arg4[%c0_34, %c0_35] : memref<672x256xbf16, #tpu.memory_space<vmem>>, vector<672x256xbf16>
    %cst_36 = arith.constant dense<0.000000e+00> : vector<8x256xf32>
    %43 = tpu.matmul %41, %42, %cst_36 {dimension_numbers = #tpu.dot_dimension_numbers<[1], [0], [0], [1], [0, 0, 1, 1], [], []>} : vector<8x672xbf16>, vector<672x256xbf16>, vector<8x256xf32> -> vector<8x256xf32>
    %44 = arith.truncf %43 : vector<8x256xf32> to vector<8x256xbf16>
    %c3_37 = arith.constant 3 : index
    %c0_38 = arith.constant 0 : index
    %c0_39 = arith.constant 0 : index
    %45 = vector.load %arg1[%c3_37, %c0_38, %c0_39] : memref<8x8x128xbf16, #tpu.memory_space<vmem>>, vector<1x8x128xbf16>
    %46 = vector.shape_cast %45 : vector<1x8x128xbf16> to vector<8x128xbf16>
    %c4 = arith.constant 4 : index
    %c0_40 = arith.constant 0 : index
    %c0_41 = arith.constant 0 : index
    %47 = vector.load %arg1[%c4, %c0_40, %c0_41] : memref<8x8x128xbf16, #tpu.memory_space<vmem>>, vector<1x8x128xbf16>
    %48 = vector.shape_cast %47 : vector<1x8x128xbf16> to vector<8x128xbf16>
    %49 = tpu.concatenate %46, %48 in 1 : vector<8x128xbf16>, vector<8x128xbf16> -> vector<8x256xbf16>
    %c0_42 = arith.constant 0 : index
    %c0_43 = arith.constant 0 : index
    %50 = vector.load %arg2[%c0_42, %c0_43] : memref<256x672xbf16, #tpu.memory_space<vmem>>, vector<256x672xbf16>
    %cst_44 = arith.constant dense<0.000000e+00> : vector<8x672xf32>
    %51 = tpu.matmul %49, %50, %cst_44 {dimension_numbers = #tpu.dot_dimension_numbers<[1], [0], [0], [1], [0, 0, 1, 1], [], []>} : vector<8x256xbf16>, vector<256x672xbf16>, vector<8x672xf32> -> vector<8x672xf32>
    %c0_45 = arith.constant 0 : index
    %c0_46 = arith.constant 0 : index
    %52 = vector.load %arg3[%c0_45, %c0_46] : memref<1x672xf32, #tpu.memory_space<vmem>>, vector<1x672xf32>
    %53 = vector.broadcast %52 : vector<1x672xf32> to vector<8x672xf32>
    %54 = arith.addf %51, %53 : vector<8x672xf32>
    %55 = math.tanh %54 : vector<8x672xf32>
    %56 = arith.truncf %55 : vector<8x672xf32> to vector<8x672xbf16>
    %c0_47 = arith.constant 0 : index
    %c0_48 = arith.constant 0 : index
    %57 = vector.load %arg4[%c0_47, %c0_48] : memref<672x256xbf16, #tpu.memory_space<vmem>>, vector<672x256xbf16>
    %cst_49 = arith.constant dense<0.000000e+00> : vector<8x256xf32>
    %58 = tpu.matmul %56, %57, %cst_49 {dimension_numbers = #tpu.dot_dimension_numbers<[1], [0], [0], [1], [0, 0, 1, 1], [], []>} : vector<8x672xbf16>, vector<672x256xbf16>, vector<8x256xf32> -> vector<8x256xf32>
    %59 = arith.truncf %58 : vector<8x256xf32> to vector<8x256xbf16>
    %c4_50 = arith.constant 4 : index
    %c0_51 = arith.constant 0 : index
    %c0_52 = arith.constant 0 : index
    %60 = vector.load %arg1[%c4_50, %c0_51, %c0_52] : memref<8x8x128xbf16, #tpu.memory_space<vmem>>, vector<1x8x128xbf16>
    %61 = vector.shape_cast %60 : vector<1x8x128xbf16> to vector<8x128xbf16>
    %c5 = arith.constant 5 : index
    %c0_53 = arith.constant 0 : index
    %c0_54 = arith.constant 0 : index
    %62 = vector.load %arg1[%c5, %c0_53, %c0_54] : memref<8x8x128xbf16, #tpu.memory_space<vmem>>, vector<1x8x128xbf16>
    %63 = vector.shape_cast %62 : vector<1x8x128xbf16> to vector<8x128xbf16>
    %64 = tpu.concatenate %61, %63 in 1 : vector<8x128xbf16>, vector<8x128xbf16> -> vector<8x256xbf16>
    %c0_55 = arith.constant 0 : index
    %c0_56 = arith.constant 0 : index
    %65 = vector.load %arg2[%c0_55, %c0_56] : memref<256x672xbf16, #tpu.memory_space<vmem>>, vector<256x672xbf16>
    %cst_57 = arith.constant dense<0.000000e+00> : vector<8x672xf32>
    %66 = tpu.matmul %64, %65, %cst_57 {dimension_numbers = #tpu.dot_dimension_numbers<[1], [0], [0], [1], [0, 0, 1, 1], [], []>} : vector<8x256xbf16>, vector<256x672xbf16>, vector<8x672xf32> -> vector<8x672xf32>
    %c0_58 = arith.constant 0 : index
    %c0_59 = arith.constant 0 : index
    %67 = vector.load %arg3[%c0_58, %c0_59] : memref<1x672xf32, #tpu.memory_space<vmem>>, vector<1x672xf32>
    %68 = vector.broadcast %67 : vector<1x672xf32> to vector<8x672xf32>
    %69 = arith.addf %66, %68 : vector<8x672xf32>
    %70 = math.tanh %69 : vector<8x672xf32>
    %71 = arith.truncf %70 : vector<8x672xf32> to vector<8x672xbf16>
    %c0_60 = arith.constant 0 : index
    %c0_61 = arith.constant 0 : index
    %72 = vector.load %arg4[%c0_60, %c0_61] : memref<672x256xbf16, #tpu.memory_space<vmem>>, vector<672x256xbf16>
    %cst_62 = arith.constant dense<0.000000e+00> : vector<8x256xf32>
    %73 = tpu.matmul %71, %72, %cst_62 {dimension_numbers = #tpu.dot_dimension_numbers<[1], [0], [0], [1], [0, 0, 1, 1], [], []>} : vector<8x672xbf16>, vector<672x256xbf16>, vector<8x256xf32> -> vector<8x256xf32>
    %74 = arith.truncf %73 : vector<8x256xf32> to vector<8x256xbf16>
    %c5_63 = arith.constant 5 : index
    %c0_64 = arith.constant 0 : index
    %c0_65 = arith.constant 0 : index
    %75 = vector.load %arg1[%c5_63, %c0_64, %c0_65] : memref<8x8x128xbf16, #tpu.memory_space<vmem>>, vector<1x8x128xbf16>
    %76 = vector.shape_cast %75 : vector<1x8x128xbf16> to vector<8x128xbf16>
    %c6 = arith.constant 6 : index
    %c0_66 = arith.constant 0 : index
    %c0_67 = arith.constant 0 : index
    %77 = vector.load %arg1[%c6, %c0_66, %c0_67] : memref<8x8x128xbf16, #tpu.memory_space<vmem>>, vector<1x8x128xbf16>
    %78 = vector.shape_cast %77 : vector<1x8x128xbf16> to vector<8x128xbf16>
    %79 = tpu.concatenate %76, %78 in 1 : vector<8x128xbf16>, vector<8x128xbf16> -> vector<8x256xbf16>
    %c0_68 = arith.constant 0 : index
    %c0_69 = arith.constant 0 : index
    %80 = vector.load %arg2[%c0_68, %c0_69] : memref<256x672xbf16, #tpu.memory_space<vmem>>, vector<256x672xbf16>
    %cst_70 = arith.constant dense<0.000000e+00> : vector<8x672xf32>
    %81 = tpu.matmul %79, %80, %cst_70 {dimension_numbers = #tpu.dot_dimension_numbers<[1], [0], [0], [1], [0, 0, 1, 1], [], []>} : vector<8x256xbf16>, vector<256x672xbf16>, vector<8x672xf32> -> vector<8x672xf32>
    %c0_71 = arith.constant 0 : index
    %c0_72 = arith.constant 0 : index
    %82 = vector.load %arg3[%c0_71, %c0_72] : memref<1x672xf32, #tpu.memory_space<vmem>>, vector<1x672xf32>
    %83 = vector.broadcast %82 : vector<1x672xf32> to vector<8x672xf32>
    %84 = arith.addf %81, %83 : vector<8x672xf32>
    %85 = math.tanh %84 : vector<8x672xf32>
    %86 = arith.truncf %85 : vector<8x672xf32> to vector<8x672xbf16>
    %c0_73 = arith.constant 0 : index
    %c0_74 = arith.constant 0 : index
    %87 = vector.load %arg4[%c0_73, %c0_74] : memref<672x256xbf16, #tpu.memory_space<vmem>>, vector<672x256xbf16>
    %cst_75 = arith.constant dense<0.000000e+00> : vector<8x256xf32>
    %88 = tpu.matmul %86, %87, %cst_75 {dimension_numbers = #tpu.dot_dimension_numbers<[1], [0], [0], [1], [0, 0, 1, 1], [], []>} : vector<8x672xbf16>, vector<672x256xbf16>, vector<8x256xf32> -> vector<8x256xf32>
    %89 = arith.truncf %88 : vector<8x256xf32> to vector<8x256xbf16>
    %c6_76 = arith.constant 6 : index
    %c0_77 = arith.constant 0 : index
    %c0_78 = arith.constant 0 : index
    %90 = vector.load %arg1[%c6_76, %c0_77, %c0_78] : memref<8x8x128xbf16, #tpu.memory_space<vmem>>, vector<1x8x128xbf16>
    %91 = vector.shape_cast %90 : vector<1x8x128xbf16> to vector<8x128xbf16>
    %c7 = arith.constant 7 : index
    %c0_79 = arith.constant 0 : index
    %c0_80 = arith.constant 0 : index
    %92 = vector.load %arg1[%c7, %c0_79, %c0_80] : memref<8x8x128xbf16, #tpu.memory_space<vmem>>, vector<1x8x128xbf16>
    %93 = vector.shape_cast %92 : vector<1x8x128xbf16> to vector<8x128xbf16>
    %94 = tpu.concatenate %91, %93 in 1 : vector<8x128xbf16>, vector<8x128xbf16> -> vector<8x256xbf16>
    %c0_81 = arith.constant 0 : index
    %c0_82 = arith.constant 0 : index
    %95 = vector.load %arg2[%c0_81, %c0_82] : memref<256x672xbf16, #tpu.memory_space<vmem>>, vector<256x672xbf16>
    %cst_83 = arith.constant dense<0.000000e+00> : vector<8x672xf32>
    %96 = tpu.matmul %94, %95, %cst_83 {dimension_numbers = #tpu.dot_dimension_numbers<[1], [0], [0], [1], [0, 0, 1, 1], [], []>} : vector<8x256xbf16>, vector<256x672xbf16>, vector<8x672xf32> -> vector<8x672xf32>
    %c0_84 = arith.constant 0 : index
    %c0_85 = arith.constant 0 : index
    %97 = vector.load %arg3[%c0_84, %c0_85] : memref<1x672xf32, #tpu.memory_space<vmem>>, vector<1x672xf32>
    %98 = vector.broadcast %97 : vector<1x672xf32> to vector<8x672xf32>
    %99 = arith.addf %96, %98 : vector<8x672xf32>
    %100 = math.tanh %99 : vector<8x672xf32>
    %101 = arith.truncf %100 : vector<8x672xf32> to vector<8x672xbf16>
    %c0_86 = arith.constant 0 : index
    %c0_87 = arith.constant 0 : index
    %102 = vector.load %arg4[%c0_86, %c0_87] : memref<672x256xbf16, #tpu.memory_space<vmem>>, vector<672x256xbf16>
    %cst_88 = arith.constant dense<0.000000e+00> : vector<8x256xf32>
    %103 = tpu.matmul %101, %102, %cst_88 {dimension_numbers = #tpu.dot_dimension_numbers<[1], [0], [0], [1], [0, 0, 1, 1], [], []>} : vector<8x672xbf16>, vector<672x256xbf16>, vector<8x256xf32> -> vector<8x256xf32>
    %104 = arith.truncf %103 : vector<8x256xf32> to vector<8x256xbf16>
    %105 = tpu.concatenate %14, %29, %44 in 1 : vector<8x256xbf16>, vector<8x256xbf16>, vector<8x256xbf16> -> vector<8x768xbf16>
    %c0_89 = arith.constant 0 : index
    %c0_90 = arith.constant 0 : index
    %106 = vector.load %arg5[%c0_89, %c0_90] : memref<768x320xbf16, #tpu.memory_space<vmem>>, vector<768x320xbf16>
    %cst_91 = arith.constant dense<0.000000e+00> : vector<8x320xf32>
    %107 = tpu.matmul %105, %106, %cst_91 {dimension_numbers = #tpu.dot_dimension_numbers<[1], [0], [0], [1], [0, 0, 1, 1], [], []>} : vector<8x768xbf16>, vector<768x320xbf16>, vector<8x320xf32> -> vector<8x320xf32>
    %c0_92 = arith.constant 0 : index
    %c0_93 = arith.constant 0 : index
    %108 = vector.load %arg6[%c0_92, %c0_93] : memref<1x320xf32, #tpu.memory_space<vmem>>, vector<1x320xf32>
    %109 = vector.broadcast %108 : vector<1x320xf32> to vector<8x320xf32>
    %110 = arith.addf %107, %109 : vector<8x320xf32>
    %111 = math.tanh %110 : vector<8x320xf32>
    %112 = arith.truncf %111 : vector<8x320xf32> to vector<8x320xbf16>
    %c0_94 = arith.constant 0 : index
    %c0_95 = arith.constant 0 : index
    %113 = vector.load %arg7[%c0_94, %c0_95] : memref<320x128xbf16, #tpu.memory_space<vmem>>, vector<320x128xbf16>
    %cst_96 = arith.constant dense<0.000000e+00> : vector<8x128xf32>
    %114 = tpu.matmul %112, %113, %cst_96 {dimension_numbers = #tpu.dot_dimension_numbers<[1], [0], [0], [1], [0, 0, 1, 1], [], []>} : vector<8x320xbf16>, vector<320x128xbf16>, vector<8x128xf32> -> vector<8x128xf32>
    %115 = arith.truncf %114 : vector<8x128xf32> to vector<8x128xbf16>
    %116 = tpu.concatenate %29, %44, %59 in 1 : vector<8x256xbf16>, vector<8x256xbf16>, vector<8x256xbf16> -> vector<8x768xbf16>
    %c0_97 = arith.constant 0 : index
    %c0_98 = arith.constant 0 : index
    %117 = vector.load %arg5[%c0_97, %c0_98] : memref<768x320xbf16, #tpu.memory_space<vmem>>, vector<768x320xbf16>
    %cst_99 = arith.constant dense<0.000000e+00> : vector<8x320xf32>
    %118 = tpu.matmul %116, %117, %cst_99 {dimension_numbers = #tpu.dot_dimension_numbers<[1], [0], [0], [1], [0, 0, 1, 1], [], []>} : vector<8x768xbf16>, vector<768x320xbf16>, vector<8x320xf32> -> vector<8x320xf32>
    %c0_100 = arith.constant 0 : index
    %c0_101 = arith.constant 0 : index
    %119 = vector.load %arg6[%c0_100, %c0_101] : memref<1x320xf32, #tpu.memory_space<vmem>>, vector<1x320xf32>
    %120 = vector.broadcast %119 : vector<1x320xf32> to vector<8x320xf32>
    %121 = arith.addf %118, %120 : vector<8x320xf32>
    %122 = math.tanh %121 : vector<8x320xf32>
    %123 = arith.truncf %122 : vector<8x320xf32> to vector<8x320xbf16>
    %c0_102 = arith.constant 0 : index
    %c0_103 = arith.constant 0 : index
    %124 = vector.load %arg7[%c0_102, %c0_103] : memref<320x128xbf16, #tpu.memory_space<vmem>>, vector<320x128xbf16>
    %cst_104 = arith.constant dense<0.000000e+00> : vector<8x128xf32>
    %125 = tpu.matmul %123, %124, %cst_104 {dimension_numbers = #tpu.dot_dimension_numbers<[1], [0], [0], [1], [0, 0, 1, 1], [], []>} : vector<8x320xbf16>, vector<320x128xbf16>, vector<8x128xf32> -> vector<8x128xf32>
    %126 = arith.truncf %125 : vector<8x128xf32> to vector<8x128xbf16>
    %127 = tpu.concatenate %44, %59, %74 in 1 : vector<8x256xbf16>, vector<8x256xbf16>, vector<8x256xbf16> -> vector<8x768xbf16>
    %c0_105 = arith.constant 0 : index
    %c0_106 = arith.constant 0 : index
    %128 = vector.load %arg5[%c0_105, %c0_106] : memref<768x320xbf16, #tpu.memory_space<vmem>>, vector<768x320xbf16>
    %cst_107 = arith.constant dense<0.000000e+00> : vector<8x320xf32>
    %129 = tpu.matmul %127, %128, %cst_107 {dimension_numbers = #tpu.dot_dimension_numbers<[1], [0], [0], [1], [0, 0, 1, 1], [], []>} : vector<8x768xbf16>, vector<768x320xbf16>, vector<8x320xf32> -> vector<8x320xf32>
    %c0_108 = arith.constant 0 : index
    %c0_109 = arith.constant 0 : index
    %130 = vector.load %arg6[%c0_108, %c0_109] : memref<1x320xf32, #tpu.memory_space<vmem>>, vector<1x320xf32>
    %131 = vector.broadcast %130 : vector<1x320xf32> to vector<8x320xf32>
    %132 = arith.addf %129, %131 : vector<8x320xf32>
    %133 = math.tanh %132 : vector<8x320xf32>
    %134 = arith.truncf %133 : vector<8x320xf32> to vector<8x320xbf16>
    %c0_110 = arith.constant 0 : index
    %c0_111 = arith.constant 0 : index
    %135 = vector.load %arg7[%c0_110, %c0_111] : memref<320x128xbf16, #tpu.memory_space<vmem>>, vector<320x128xbf16>
    %cst_112 = arith.constant dense<0.000000e+00> : vector<8x128xf32>
    %136 = tpu.matmul %134, %135, %cst_112 {dimension_numbers = #tpu.dot_dimension_numbers<[1], [0], [0], [1], [0, 0, 1, 1], [], []>} : vector<8x320xbf16>, vector<320x128xbf16>, vector<8x128xf32> -> vector<8x128xf32>
    %137 = arith.truncf %136 : vector<8x128xf32> to vector<8x128xbf16>
    %138 = tpu.concatenate %59, %74, %89 in 1 : vector<8x256xbf16>, vector<8x256xbf16>, vector<8x256xbf16> -> vector<8x768xbf16>
    %c0_113 = arith.constant 0 : index
    %c0_114 = arith.constant 0 : index
    %139 = vector.load %arg5[%c0_113, %c0_114] : memref<768x320xbf16, #tpu.memory_space<vmem>>, vector<768x320xbf16>
    %cst_115 = arith.constant dense<0.000000e+00> : vector<8x320xf32>
    %140 = tpu.matmul %138, %139, %cst_115 {dimension_numbers = #tpu.dot_dimension_numbers<[1], [0], [0], [1], [0, 0, 1, 1], [], []>} : vector<8x768xbf16>, vector<768x320xbf16>, vector<8x320xf32> -> vector<8x320xf32>
    %c0_116 = arith.constant 0 : index
    %c0_117 = arith.constant 0 : index
    %141 = vector.load %arg6[%c0_116, %c0_117] : memref<1x320xf32, #tpu.memory_space<vmem>>, vector<1x320xf32>
    %142 = vector.broadcast %141 : vector<1x320xf32> to vector<8x320xf32>
    %143 = arith.addf %140, %142 : vector<8x320xf32>
    %144 = math.tanh %143 : vector<8x320xf32>
    %145 = arith.truncf %144 : vector<8x320xf32> to vector<8x320xbf16>
    %c0_118 = arith.constant 0 : index
    %c0_119 = arith.constant 0 : index
    %146 = vector.load %arg7[%c0_118, %c0_119] : memref<320x128xbf16, #tpu.memory_space<vmem>>, vector<320x128xbf16>
    %cst_120 = arith.constant dense<0.000000e+00> : vector<8x128xf32>
    %147 = tpu.matmul %145, %146, %cst_120 {dimension_numbers = #tpu.dot_dimension_numbers<[1], [0], [0], [1], [0, 0, 1, 1], [], []>} : vector<8x320xbf16>, vector<320x128xbf16>, vector<8x128xf32> -> vector<8x128xf32>
    %148 = arith.truncf %147 : vector<8x128xf32> to vector<8x128xbf16>
    %149 = tpu.concatenate %74, %89, %104 in 1 : vector<8x256xbf16>, vector<8x256xbf16>, vector<8x256xbf16> -> vector<8x768xbf16>
    %c0_121 = arith.constant 0 : index
    %c0_122 = arith.constant 0 : index
    %150 = vector.load %arg5[%c0_121, %c0_122] : memref<768x320xbf16, #tpu.memory_space<vmem>>, vector<768x320xbf16>
    %cst_123 = arith.constant dense<0.000000e+00> : vector<8x320xf32>
    %151 = tpu.matmul %149, %150, %cst_123 {dimension_numbers = #tpu.dot_dimension_numbers<[1], [0], [0], [1], [0, 0, 1, 1], [], []>} : vector<8x768xbf16>, vector<768x320xbf16>, vector<8x320xf32> -> vector<8x320xf32>
    %c0_124 = arith.constant 0 : index
    %c0_125 = arith.constant 0 : index
    %152 = vector.load %arg6[%c0_124, %c0_125] : memref<1x320xf32, #tpu.memory_space<vmem>>, vector<1x320xf32>
    %153 = vector.broadcast %152 : vector<1x320xf32> to vector<8x320xf32>
    %154 = arith.addf %151, %153 : vector<8x320xf32>
    %155 = math.tanh %154 : vector<8x320xf32>
    %156 = arith.truncf %155 : vector<8x320xf32> to vector<8x320xbf16>
    %c0_126 = arith.constant 0 : index
    %c0_127 = arith.constant 0 : index
    %157 = vector.load %arg7[%c0_126, %c0_127] : memref<320x128xbf16, #tpu.memory_space<vmem>>, vector<320x128xbf16>
    %cst_128 = arith.constant dense<0.000000e+00> : vector<8x128xf32>
    %158 = tpu.matmul %156, %157, %cst_128 {dimension_numbers = #tpu.dot_dimension_numbers<[1], [0], [0], [1], [0, 0, 1, 1], [], []>} : vector<8x320xbf16>, vector<320x128xbf16>, vector<8x128xf32> -> vector<8x128xf32>
    %159 = arith.truncf %158 : vector<8x128xf32> to vector<8x128xbf16>
    %160 = tpu.concatenate %115, %126, %137, %148, %159 in 1 : vector<8x128xbf16>, vector<8x128xbf16>, vector<8x128xbf16>, vector<8x128xbf16>, vector<8x128xbf16> -> vector<8x640xbf16>
    %c0_129 = arith.constant 0 : index
    %c0_130 = arith.constant 0 : index
    %161 = vector.load %arg8[%c0_129, %c0_130] : memref<640x120xbf16, #tpu.memory_space<vmem>>, vector<640x120xbf16>
    %cst_131 = arith.constant dense<0.000000e+00> : vector<8x120xf32>
    %162 = tpu.matmul %160, %161, %cst_131 {dimension_numbers = #tpu.dot_dimension_numbers<[1], [0], [0], [1], [0, 0, 1, 1], [], []>} : vector<8x640xbf16>, vector<640x120xbf16>, vector<8x120xf32> -> vector<8x120xf32>
    %c0_132 = arith.constant 0 : index
    %c0_133 = arith.constant 0 : index
    %163 = vector.load %arg9[%c0_132, %c0_133] : memref<1x120xf32, #tpu.memory_space<vmem>>, vector<1x120xf32>
    %164 = vector.broadcast %163 : vector<1x120xf32> to vector<8x120xf32>
    %165 = arith.addf %162, %164 : vector<8x120xf32>
    %166 = math.tanh %165 : vector<8x120xf32>
    %167 = arith.truncf %166 : vector<8x120xf32> to vector<8x120xbf16>
    %c0_134 = arith.constant 0 : index
    %c0_135 = arith.constant 0 : index
    %168 = vector.load %arg10[%c0_134, %c0_135] : memref<120x84xbf16, #tpu.memory_space<vmem>>, vector<120x84xbf16>
    %cst_136 = arith.constant dense<0.000000e+00> : vector<8x84xf32>
    %169 = tpu.matmul %167, %168, %cst_136 {dimension_numbers = #tpu.dot_dimension_numbers<[1], [0], [0], [1], [0, 0, 1, 1], [], []>} : vector<8x120xbf16>, vector<120x84xbf16>, vector<8x84xf32> -> vector<8x84xf32>
    %c0_137 = arith.constant 0 : index
    %c0_138 = arith.constant 0 : index
    %170 = vector.load %arg11[%c0_137, %c0_138] : memref<1x84xf32, #tpu.memory_space<vmem>>, vector<1x84xf32>
    %171 = vector.broadcast %170 : vector<1x84xf32> to vector<8x84xf32>
    %172 = arith.addf %169, %171 : vector<8x84xf32>
    %173 = math.tanh %172 : vector<8x84xf32>
    %174 = arith.truncf %173 : vector<8x84xf32> to vector<8x84xbf16>
    %c0_139 = arith.constant 0 : index
    %c0_140 = arith.constant 0 : index
    %175 = vector.load %arg12[%c0_139, %c0_140] : memref<84x128xbf16, #tpu.memory_space<vmem>>, vector<84x128xbf16>
    %cst_141 = arith.constant dense<0.000000e+00> : vector<8x128xf32>
    %176 = tpu.matmul %174, %175, %cst_141 {dimension_numbers = #tpu.dot_dimension_numbers<[1], [0], [0], [1], [0, 0, 1, 1], [], []>} : vector<8x84xbf16>, vector<84x128xbf16>, vector<8x128xf32> -> vector<8x128xf32>
    %c0_142 = arith.constant 0 : index
    %c0_143 = arith.constant 0 : index
    %177 = vector.load %arg13[%c0_142, %c0_143] : memref<1x128xf32, #tpu.memory_space<vmem>>, vector<1x128xf32>
    %178 = vector.broadcast %177 : vector<1x128xf32> to vector<8x128xf32>
    %179 = arith.addf %176, %178 : vector<8x128xf32>
    %c0_144 = arith.constant 0 : index
    %c0_145 = arith.constant 0 : index
    %180 = vector.load %arg14[%c0_144, %c0_145] : memref<8x128xf32, #tpu.memory_space<vmem>>, vector<8x128xf32>
    tpu.vector_store %arg14[%c0_144, %c0_145], %179 {strides = array<i32>} : memref<8x128xf32, #tpu.memory_space<vmem>>, vector<8x128xf32>,
    return
  }
  func.func @transform_0(%arg0: i32) -> (i32, i32, i32) {
    %c0_i32 = arith.constant 0 : i32
    %c0_i32_0 = arith.constant 0 : i32
    %c0_i32_1 = arith.constant 0 : i32
    return %c0_i32, %arg0, %c0_i32_0 : i32, i32, i32
  }
  func.func @transform_1(%arg0: i32) -> (i32, i32) {
    %c0_i32 = arith.constant 0 : i32
    %c0_i32_0 = arith.constant 0 : i32
    %c0_i32_1 = arith.constant 0 : i32
    return %c0_i32, %c0_i32_0 : i32, i32
  }
  func.func @transform_2(%arg0: i32) -> (i32, i32) {
    %c0_i32 = arith.constant 0 : i32
    %c0_i32_0 = arith.constant 0 : i32
    %c0_i32_1 = arith.constant 0 : i32
    return %c0_i32, %c0_i32_0 : i32, i32
  }
  func.func @transform_3(%arg0: i32) -> (i32, i32) {
    %c0_i32 = arith.constant 0 : i32
    %c0_i32_0 = arith.constant 0 : i32
    %c0_i32_1 = arith.constant 0 : i32
    return %c0_i32, %c0_i32_0 : i32, i32
  }
  func.func @transform_4(%arg0: i32) -> (i32, i32) {
    %c0_i32 = arith.constant 0 : i32
    %c0_i32_0 = arith.constant 0 : i32
    %c0_i32_1 = arith.constant 0 : i32
    return %c0_i32, %c0_i32_0 : i32, i32
  }
  func.func @transform_5(%arg0: i32) -> (i32, i32) {
    %c0_i32 = arith.constant 0 : i32
    %c0_i32_0 = arith.constant 0 : i32
    %c0_i32_1 = arith.constant 0 : i32
    return %c0_i32, %c0_i32_0 : i32, i32
  }
  func.func @transform_6(%arg0: i32) -> (i32, i32) {
    %c0_i32 = arith.constant 0 : i32
    %c0_i32_0 = arith.constant 0 : i32
    %c0_i32_1 = arith.constant 0 : i32
    return %c0_i32, %c0_i32_0 : i32, i32
  }
  func.func @transform_7(%arg0: i32) -> (i32, i32) {
    %c0_i32 = arith.constant 0 : i32
    %c0_i32_0 = arith.constant 0 : i32
    %c0_i32_1 = arith.constant 0 : i32
    return %c0_i32, %c0_i32_0 : i32, i32
  }
  func.func @transform_8(%arg0: i32) -> (i32, i32) {
    %c0_i32 = arith.constant 0 : i32
    %c0_i32_0 = arith.constant 0 : i32
    %c0_i32_1 = arith.constant 0 : i32
    return %c0_i32, %c0_i32_0 : i32, i32
  }
  func.func @transform_9(%arg0: i32) -> (i32, i32) {
    %c0_i32 = arith.constant 0 : i32
    %c0_i32_0 = arith.constant 0 : i32
    %c0_i32_1 = arith.constant 0 : i32
    return %c0_i32, %c0_i32_0 : i32, i32
  }
  func.func @transform_10(%arg0: i32) -> (i32, i32) {
    %c0_i32 = arith.constant 0 : i32
    %c0_i32_0 = arith.constant 0 : i32
    %c0_i32_1 = arith.constant 0 : i32
    return %c0_i32, %c0_i32_0 : i32, i32
  }
  func.func @transform_11(%arg0: i32) -> (i32, i32) {
    %c0_i32 = arith.constant 0 : i32
    %c0_i32_0 = arith.constant 0 : i32
    %c0_i32_1 = arith.constant 0 : i32
    return %c0_i32, %c0_i32_0 : i32, i32
  }
  func.func @transform_12(%arg0: i32) -> (i32, i32) {
    %c0_i32 = arith.constant 0 : i32
    %c0_i32_0 = arith.constant 0 : i32
    %c0_i32_1 = arith.constant 0 : i32
    return %c0_i32, %c0_i32_0 : i32, i32
  }
  func.func @transform_13(%arg0: i32) -> (i32, i32) {
    %c0_i32 = arith.constant 0 : i32
    %c0_i32_0 = arith.constant 0 : i32
    return %arg0, %c0_i32 : i32, i32
  }
}

</mosaic_0001>

<bundles_post_ra>
// kernel: lenet5_forward.1
= control target key start
LH: loop header
LB: loop body
LE: loop exit
PB: predicated region body
PF: predicated region fallthrough
CT: control target
= control target key end

     0   :  { %vm1295_vm0 = vcmask 261120   ;;  %vm8755_vm1 = vmmov 0   ;;  %vm4400_vm2 = vcmask 523264   ;;  %vm6337_vm3 = vcmask 1043456   ;;  %s15770_s1 = inlined_call_operand.vmem [shape: bf16[256,672], index: 1, kind: input, shape index: {}]   ;;  %s15771_s0 = inlined_call_operand.vmem [shape: bf16[8,8,128], index: 0, kind: input, shape index: {}]   ;;  %s15772_s3 = inlined_call_operand.vmem [shape: bf16[672,256], index: 3, kind: input, shape index: {}]   ;;  %s15773_s2 = inlined_call_operand.vmem [shape: f32[1,672], index: 2, kind: input, shape index: {}]   ;;  %s15774_s4 = inlined_call_operand.vmem [shape: bf16[768,320], index: 4, kind: input, shape index: {}]   ;;  %s15775_s6 = inlined_call_operand.vmem [shape: bf16[320,128], index: 6, kind: input, shape index: {}]   ;;  %s15776_s5 = inlined_call_operand.vmem [shape: f32[1,320], index: 5, kind: input, shape index: {}]   ;;  %s15777_s7 = inlined_call_operand.vmem [shape: bf16[640,120], index: 7, kind: input, shape index: {}]   ;;  %s15778_s9 = inlined_call_operand.vmem [shape: bf16[120,84], index: 9, kind: input, shape index: {}]   ;;  %s15779_s8 = inlined_call_operand.vmem [shape: f32[1,120], index: 8, kind: input, shape index: {}]   ;;  %s15780_s11 = inlined_call_operand.vmem [shape: bf16[84,128], index: 11, kind: input, shape index: {}]   ;;  %s15781_s10 = inlined_call_operand.vmem [shape: f32[1,84], index: 10, kind: input, shape index: {}]   ;;  %s15782_s12 = inlined_call_operand.vmem [shape: f32[1,128], index: 12, kind: input, shape index: {}]   ;;  %s15783_s13 = inlined_call_operand.vmem [shape: f32[8,128], index: 13, kind: output, shape index: {}]  }
   0x1   :  { %v7561_v0 = vld [vmem:[%s15770_s1 + $0x154] ss:$24 sps:$4 sm:$0xff]   ;;  %v7565_v2 = vld [vmem:[%s15770_s1 + $0x150] ss:$24 sps:$4 sm:$0xff]   ;;  %v7567_v4 = vld [vmem:[%s15770_s1 + $0x124] ss:$24 sps:$4 sm:$0xff]  }
   0x2   :  { %v8832_v1 = vld [vmem:[%s15770_s1 + $0x15c] ss:$24 sps:$4 sm:$0xff]   ;;  %656 = vmatprep.subr.bf16.mxu0 %v7561_v0  ;;  %v7566_v3 = vld [vmem:[%s15770_s1 + $0x158] ss:$24 sps:$4 sm:$0xff]   ;;  %v7569_v5 = vld [vmem:[%s15770_s1 + $0x12c] ss:$24 sps:$4 sm:$0xff]  }
   0x3   :  { %697 = vmatprep.subr.bf16.mxu1 %v8832_v1  ;;  %657 = vmatpush1.bf16.msra.mxu0 %v7565_v2  ;;  %v7571_v6 = vld [vmem:[%s15770_s1 + $0x120] ss:$24 sps:$4 sm:$0xff]   ;;  %v7573_v8 = vld [vmem:[%s15770_s1 + $0xf4] ss:$24 sps:$4 sm:$0xff]   ;;  %v7577_v10 = vld [vmem:[%s15770_s1 + $0xf0] ss:$24 sps:$4 sm:$0xff]  }
   0x4   :  { %698 = vmatpush1.bf16.msra.mxu1 %v7566_v3  ;;  %658 = vmatprep.subr.bf16.mxu0 %v7567_v4  ;;  %v7572_v7 = vld [vmem:[%s15770_s1 + $0x128] ss:$24 sps:$4 sm:$0xff]   ;;  %v7575_v9 = vld [vmem:[%s15770_s1 + $0xfc] ss:$24 sps:$4 sm:$0xff]   ;;  %v7578_v11 = vld [vmem:[%s15770_s1 + $0xf8] ss:$24 sps:$4 sm:$0xff]  }
   0x5   :  { %699 = vmatprep.subr.bf16.mxu1 %v7569_v5  ;;  %v7579_v12 = vld [vmem:[%s15770_s1 + $0xc4] ss:$24 sps:$4 sm:$0xff]   ;;  %v7583_v14 = vld [vmem:[%s15770_s1 + $0xc0] ss:$24 sps:$4 sm:$0xff]   ;;  %v7585_v16 = vld [vmem:[%s15770_s1 + $0x94] ss:$24 sps:$4 sm:$0xff]  }
   0x6   :  { %v7581_v13 = vld [vmem:[%s15770_s1 + $0xcc] ss:$24 sps:$4 sm:$0xff]   ;;  %v7584_v15 = vld [vmem:[%s15770_s1 + $0xc8] ss:$24 sps:$4 sm:$0xff]   ;;  %v7587_v17 = vld [vmem:[%s15770_s1 + $0x9c] ss:$24 sps:$4 sm:$0xff]  }
   0x7   :  { %659 = vmatpush1.bf16.msra.mxu0 %v7571_v6  ;;  %v7589_v18 = vld [vmem:[%s15770_s1 + $0x90] ss:$24 sps:$4 sm:$0xff]   ;;  %v7591_v20 = vld [vmem:[%s15770_s1 + $0x64] ss:$24 sps:$4 sm:$0xff]   ;;  %v7595_v22 = vld [vmem:[%s15770_s1 + $0x60] ss:$24 sps:$4 sm:$0xff]  }
   0x8   :  { %700 = vmatpush1.bf16.msra.mxu1 %v7572_v7  ;;  %660 = vmatprep.subr.bf16.mxu0 %v7573_v8  ;;  %v7590_v19 = vld [vmem:[%s15770_s1 + $0x98] ss:$24 sps:$4 sm:$0xff]   ;;  %v7593_v21 = vld [vmem:[%s15770_s1 + $0x6c] ss:$24 sps:$4 sm:$0xff]   ;;  %v7596_v23 = vld [vmem:[%s15770_s1 + $0x68] ss:$24 sps:$4 sm:$0xff]  }
   0x9   :  { %701 = vmatprep.subr.bf16.mxu1 %v7575_v9  ;;  %v7597_v24 = vld [vmem:[%s15770_s1 + $0x34] ss:$24 sps:$4 sm:$0xff]   ;;  %v7601_v26 = vld [vmem:[%s15770_s1 + $0x30] ss:$24 sps:$4 sm:$0xff]   ;;  %v7603_v28 = vld [vmem:[%s15770_s1 + $0x4] ss:$24 sps:$4 sm:$0xff]  }
   0xa   :  { %v7599_v25 = vld [vmem:[%s15770_s1 + $0x3c] ss:$24 sps:$4 sm:$0xff]   ;;  %v7602_v27 = vld [vmem:[%s15770_s1 + $0x38] ss:$24 sps:$4 sm:$0xff]   ;;  %v8919_v29 = vld [vmem:[%s15770_s1 + $0xc] ss:$24 sps:$4 sm:$0xff]  }
   0xb   :  { %661 = vmatpush1.bf16.msra.mxu0 %v7577_v10  ;;  %v7607_v30 = vld [vmem:[%s15770_s1] ss:$24 sps:$4 sm:$0xff]   ;;  %v7609_v32 = vld [vmem:[%s15770_s1 + $0x2d4] ss:$24 sps:$4 sm:$0xff]   ;;  %v7613_v34 = vld [vmem:[%s15770_s1 + $0x2d0] ss:$24 sps:$4 sm:$0xff]  }
   0xc   :  { %702 = vmatpush1.bf16.msra.mxu1 %v7578_v11  ;;  %662 = vmatprep.subr.bf16.mxu0 %v7579_v12  ;;  %v8927_v31 = vld [vmem:[%s15770_s1 + $0x8] ss:$24 sps:$4 sm:$0xff]   ;;  %v8936_v33 = vld [vmem:[%s15770_s1 + $0x2dc] ss:$24 sps:$4 sm:$0xff]   ;;  %v8944_v35 = vld [vmem:[%s15770_s1 + $0x2d8] ss:$24 sps:$4 sm:$0xff]  }
   0xd   :  { %703 = vmatprep.subr.bf16.mxu1 %v7581_v13  ;;  %v7615_v36 = vld [vmem:[%s15770_s1 + $0x2a4] ss:$24 sps:$4 sm:$0xff]   ;;  %v7619_v38 = vld [vmem:[%s15770_s1 + $0x2a0] ss:$24 sps:$4 sm:$0xff]   ;;  %v7621_v40 = vld [vmem:[%s15770_s1 + $0x274] ss:$24 sps:$4 sm:$0xff]  }
   0xe   :  { %v8954_v37 = vld [vmem:[%s15770_s1 + $0x2ac] ss:$24 sps:$4 sm:$0xff]   ;;  %v8963_v39 = vld [vmem:[%s15770_s1 + $0x2a8] ss:$24 sps:$4 sm:$0xff]   ;;  %v8972_v41 = vld [vmem:[%s15770_s1 + $0x27c] ss:$24 sps:$4 sm:$0xff]  }
   0xf   :  { %663 = vmatpush1.bf16.msra.mxu0 %v7583_v14  ;;  %v7625_v42 = vld [vmem:[%s15770_s1 + $0x270] ss:$24 sps:$4 sm:$0xff]   ;;  %v7627_v44 = vld [vmem:[%s15770_s1 + $0x244] ss:$24 sps:$4 sm:$0xff]   ;;  %v7631_v47 = vld [vmem:[%s15770_s1 + $0x240] ss:$24 sps:$4 sm:$0xff]  }
  0x10   :  { %704 = vmatpush1.bf16.msra.mxu1 %v7584_v15  ;;  %664 = vmatprep.subr.bf16.mxu0 %v7585_v16  ;;  %v8980_v43 = vld [vmem:[%s15770_s1 + $0x278] ss:$24 sps:$4 sm:$0xff]   ;;  %v8990_v45 = vld [vmem:[%s15770_s1 + $0x24c] ss:$24 sps:$4 sm:$0xff]   ;;  %v9006_v48 = vld [vmem:[%s15770_s1 + $0x248] ss:$24 sps:$4 sm:$0xff]  }
  0x11   :  { %705 = vmatprep.subr.bf16.mxu1 %v7587_v17  ;;  %v8995_v46 = vld [vmem:[%s15771_s0 + $0x4] sm:$0xf]  ;;  %v7633_v49 = vld [vmem:[%s15770_s1 + $0x214] ss:$24 sps:$4 sm:$0xff]   ;;  %v7637_v51 = vld [vmem:[%s15770_s1 + $0x210] ss:$24 sps:$4 sm:$0xff]  }
  0x12   :  { %688 = vmatprep.mubr.bf16.mxu0 %v8995_v46  ;;  %729 = vmatprep.mubr.bf16.mxu1 %v8995_v46  ;;  %v9015_v50 = vld [vmem:[%s15770_s1 + $0x21c] ss:$24 sps:$4 sm:$0xff]   ;;  %v9024_v52 = vld [vmem:[%s15770_s1 + $0x218] ss:$24 sps:$4 sm:$0xff]   ;;  %v9033_v54 = vld [vmem:[%s15770_s1 + $0x1ec] ss:$24 sps:$4 sm:$0xff]  }
  0x13   :  { %665 = vmatpush1.bf16.msra.mxu0 %v7589_v18  ;;  %v7639_v53 = vld [vmem:[%s15770_s1 + $0x1e4] ss:$24 sps:$4 sm:$0xff]   ;;  %v9039_v55 = vld [vmem:[%s15770_s1 + $0x1e0] ss:$24 sps:$4 sm:$0xff]   ;;  %v9050_v57 = vld [vmem:[%s15770_s1 + $0x1b4] ss:$24 sps:$4 sm:$0xff]  }
  0x14   :  { %706 = vmatpush1.bf16.msra.mxu1 %v7590_v19  ;;  %666 = vmatprep.subr.bf16.mxu0 %v7591_v20  ;;  %16684 = vst [vmem:[#allocation2_spill] sm:$0xff] %v9039_v55  ;;  %v9044_v56 = vld [vmem:[%s15770_s1 + $0x1e8] ss:$24 sps:$4 sm:$0xff]   ;;  %16685 = vst [vmem:[#allocation3_spill] sm:$0xff] %v9050_v57  ;;  %v9055_v58 = vld [vmem:[%s15770_s1 + $0x1bc] ss:$24 sps:$4 sm:$0xff]  }
  0x15   :  { %707 = vmatprep.subr.bf16.mxu1 %v7593_v21  ;;  %v9062_v59 = vld [vmem:[%s15770_s1 + $0x1b0] ss:$24 sps:$4 sm:$0xff]   ;;  %v9074_v61 = vld [vmem:[%s15770_s1 + $0x184] ss:$24 sps:$4 sm:$0xff]   ;;  %v9086_v63 = vld [vmem:[%s15770_s1 + $0x180] ss:$24 sps:$4 sm:$0xff]  }
  0x16   :  { %16686 = vst [vmem:[#allocation4_spill] sm:$0xff] %v9062_v59  ;;  %v9067_v60 = vld [vmem:[%s15770_s1 + $0x1b8] ss:$24 sps:$4 sm:$0xff]   ;;  %16687 = vst [vmem:[#allocation5_spill] sm:$0xff] %v9074_v61  ;;  %v9079_v62 = vld [vmem:[%s15770_s1 + $0x18c] ss:$24 sps:$4 sm:$0xff]  }
  0x17   :  { %667 = vmatpush1.bf16.msra.mxu0 %v7595_v22  ;;  %16688 = vst [vmem:[#allocation6_spill] sm:$0xff] %v9086_v63  ;;  %v9091_v0 = vld [vmem:[%s15770_s1 + $0x188] ss:$24 sps:$4 sm:$0xff]   ;;  %v9098_v2 = vld [vmem:[%s15770_s1 + $0x164] ss:$24 sps:$4 sm:$0xff]   ;;  %vm6438_vm4 = vcmask 1041408  }
  0x18   :  { %708 = vmatpush1.bf16.msra.mxu1 %v7596_v23  ;;  %668 = vmatprep.subr.bf16.mxu0 %v7597_v24  ;;  %16689 = vst [vmem:[#allocation7_spill] sm:$0xff] %v9098_v2  ;;  %v9103_v3 = vld [vmem:[%s15771_s0] sm:$0xf]  ;;  %v9115_v5 = vld [vmem:[%s15770_s1 + $0x134] ss:$24 sps:$4 sm:$0xff]   ;;  %vm6333_vm5 = vcmask 982016  }
  0x19   :  { %709 = vmatprep.subr.bf16.mxu1 %v7599_v25  ;;  %v9110_v4 = vld [vmem:[%s15770_s1 + $0x160] ss:$24 sps:$4 sm:$0xff]   ;;  %16691 = vst [vmem:[#allocation9_spill] sm:$0xff] %v9115_v5  ;;  %v9121_v6 = vld [vmem:[%s15772_s3 + $0x74] ss:$8 sps:$4 sm:$0xff]   ;;  %vm6434_vm6 = vcmask 687104  }
  0x1a   :  { %16690 = vst [vmem:[#allocation8_spill] sm:$0xff] %v9110_v4  ;;  %v9126_v7 = vld [vmem:[%s15772_s3 + $0x70] ss:$8 sps:$4 sm:$0xff]   ;;  %v9140_v9 = vld [vmem:[%s15772_s3 + $0x64] ss:$8 sps:$4 sm:$0xff]  }
  0x1b   :  { %669 = vmatpush1.bf16.msra.mxu0 %v7601_v26  ;;  %v9133_v8 = vld [vmem:[%s15770_s1 + $0x130] ss:$24 sps:$4 sm:$0xff]   ;;  %v9146_v10 = vld [vmem:[%s15770_s1 + $0x104] ss:$24 sps:$4 sm:$0xff]   ;;  %v9165_v13 = vld [vmem:[%s15770_s1 + $0x100] ss:$24 sps:$4 sm:$0xff]  }
  0x1c   :  { %710 = vmatpush1.bf16.msra.mxu1 %v7602_v27  ;;  %670 = vmatprep.subr.bf16.mxu0 %v7603_v28  ;;  %16692 = vst [vmem:[#allocation10_spill] sm:$0xff] %v9133_v8  ;;  %16693 = vst [vmem:[#allocation11_spill] sm:$0xff] %v9146_v10  ;;  %v9153_v11 = vld [vmem:[%s15772_s3 + $0x60] ss:$8 sps:$4 sm:$0xff]   ;;  %v9159_v12 = vld [vmem:[%s15772_s3 + $0x54] ss:$8 sps:$4 sm:$0xff]  }
  0x1d   :  { %711 = vmatprep.subr.bf16.mxu1 %v8919_v29  ;;  %16694 = vst [vmem:[#allocation12_spill] sm:$0xff] %v9165_v13  ;;  %v9171_v14 = vld [vmem:[%s15770_s1 + $0xd4] ss:$24 sps:$4 sm:$0xff]   ;;  %v9177_v15 = vld [vmem:[%s15772_s3 + $0x50] ss:$8 sps:$4 sm:$0xff]  }
  0x1e   :  { %16695 = vst [vmem:[#allocation13_spill] sm:$0xff] %v9171_v14  ;;  %v9183_v16 = vld [vmem:[%s15772_s3 + $0x44] ss:$8 sps:$4 sm:$0xff]   ;;  %v9189_v17 = vld [vmem:[%s15770_s1 + $0xd0] ss:$24 sps:$4 sm:$0xff]  }
  0x1f   :  { %671 = vmatpush1.bf16.msra.mxu0 %v7607_v30  ;;  %16696 = vst [vmem:[#allocation14_spill] sm:$0xff] %v9189_v17  ;;  %v9195_v18 = vld [vmem:[%s15770_s1 + $0xa4] ss:$24 sps:$4 sm:$0xff]   ;;  %v9201_v19 = vld [vmem:[%s15772_s3 + $0x40] ss:$8 sps:$4 sm:$0xff]  }
  0x20   :  { %712 = vmatpush1.bf16.msra.mxu1 %v8927_v31  ;;  %672 = vmatprep.subr.bf16.mxu0 %v7609_v32  ;;  %16697 = vst [vmem:[#allocation15_spill] sm:$0xff] %v9195_v18  ;;  %v9207_v20 = vld [vmem:[%s15772_s3 + $0x34] ss:$8 sps:$4 sm:$0xff]   ;;  %v9213_v21 = vld [vmem:[%s15770_s1 + $0xa0] ss:$24 sps:$4 sm:$0xff]  }
  0x21   :  { %713 = vmatprep.subr.bf16.mxu1 %v8936_v33  ;;  %16698 = vst [vmem:[#allocation16_spill] sm:$0xff] %v9213_v21  ;;  %v9219_v22 = vld [vmem:[%s15770_s1 + $0x74] ss:$24 sps:$4 sm:$0xff]   ;;  %v9225_v23 = vld [vmem:[%s15772_s3 + $0x30] ss:$8 sps:$4 sm:$0xff]  }
  0x22   :  { %16699 = vst [vmem:[#allocation17_spill] sm:$0xff] %v9219_v22  ;;  %v9231_v24 = vld [vmem:[%s15772_s3 + $0x24] ss:$8 sps:$4 sm:$0xff]   ;;  %v9237_v25 = vld [vmem:[%s15770_s1 + $0x70] ss:$24 sps:$4 sm:$0xff]  }
  0x23   :  { %673 = vmatpush2.bf16.msra.mxu0 %v7613_v34  ;;  %16700 = vst [vmem:[#allocation18_spill] sm:$0xff] %v9237_v25  ;;  %v9243_v26 = vld [vmem:[%s15770_s1 + $0x44] ss:$24 sps:$4 sm:$0xff]   ;;  %v9249_v27 = vld [vmem:[%s15772_s3 + $0x20] ss:$8 sps:$4 sm:$0xff]  }
  0x24   :  { %714 = vmatpush2.bf16.msra.mxu1 %v8944_v35  ;;  %674 = vmatprep.subr.bf16.mxu0 %v7615_v36  ;;  %16701 = vst [vmem:[#allocation19_spill] sm:$0xff] %v9243_v26  ;;  %v9255_v28 = vld [vmem:[%s15772_s3 + $0x14] ss:$8 sps:$4 sm:$0xff]   ;;  %v9261_v30 = vld [vmem:[%s15770_s1 + $0x40] ss:$24 sps:$4 sm:$0xff]  }
  0x25   :  { %715 = vmatprep.subr.bf16.mxu1 %v8954_v37  ;;  %16702 = vst [vmem:[#allocation20_spill] sm:$0xff] %v9261_v30  ;;  %v9267_v32 = vld [vmem:[%s15770_s1 + $0x14] ss:$24 sps:$4 sm:$0xff]   ;;  %v9273_v34 = vld [vmem:[%s15772_s3 + $0x10] ss:$8 sps:$4 sm:$0xff]  }
  0x26   :  { %16703 = vst [vmem:[#allocation21_spill] sm:$0xff] %v9267_v32  ;;  %v9279_v36 = vld [vmem:[%s15772_s3 + $0x4] ss:$8 sps:$4 sm:$0xff]  }
  0x27   :  { %675 = vmatpush2.bf16.msra.mxu0 %v7619_v38  ;;  %v9285_v38 = vld [vmem:[%s15770_s1 + $0x10] ss:$24 sps:$4 sm:$0xff]  }
  0x28   :  { %716 = vmatpush2.bf16.msra.mxu1 %v8963_v39  ;;  %676 = vmatprep.subr.bf16.mxu0 %v7621_v40  ;;  %16704 = vst [vmem:[#allocation22_spill] sm:$0xff] %v9285_v38  ;;  %v9291_v40 = vld [vmem:[%s15770_s1 + $0x2e4] ss:$24 sps:$4 sm:$0xff]  }
  0x29   :  { %717 = vmatprep.subr.bf16.mxu1 %v8972_v41  ;;  %16705 = vst [vmem:[#allocation23_spill] sm:$0xff] %v9291_v40 }
  0x2b   :  { %677 = vmatpush2.bf16.msra.mxu0 %v7625_v42  ;;  %v9296_v42 = vld [vmem:[%s15772_s3] ss:$8 sps:$4 sm:$0xff]  }
  0x2c   :  { %718 = vmatpush2.bf16.msra.mxu1 %v8980_v43  ;;  %678 = vmatprep.subr.bf16.mxu0 %v7627_v44  ;;  %v9301_v44 = vld [vmem:[%s15770_s1 + $0x2e0] ss:$24 sps:$4 sm:$0xff]  }
  0x2d   :  { %719 = vmatprep.subr.bf16.mxu1 %v8990_v45  ;;  %16706 = vst [vmem:[#allocation24_spill] sm:$0xff] %v9301_v44 }
  0x2f   :  { %679 = vmatpush2.bf16.msra.mxu0 %v7631_v47  ;;  %v9307_v47 = vld [vmem:[%s15772_s3 + $0xf4] ss:$8 sps:$4 sm:$0xff]  }
  0x30   :  { %720 = vmatpush2.bf16.msra.mxu1 %v9006_v48  ;;  %680 = vmatprep.subr.bf16.mxu0 %v7633_v49  ;;  %v9312_v49 = vld [vmem:[%s15770_s1 + $0x2b4] ss:$24 sps:$4 sm:$0xff]  }
  0x31   :  { %721 = vmatprep.subr.bf16.mxu1 %v9015_v50  ;;  %16707 = vst [vmem:[#allocation25_spill] sm:$0xff] %v9312_v49 }
  0x33   :  { %681 = vmatpush2.bf16.msra.mxu0 %v7637_v51  ;;  %v9319_v51 = vld [vmem:[%s15772_s3 + $0xf0] ss:$8 sps:$4 sm:$0xff]  }
  0x34   :  { %722 = vmatpush2.bf16.msra.mxu1 %v9024_v52  ;;  %682 = vmatprep.subr.bf16.mxu0 %v7639_v53  ;;  %v9325_v53 = vld [vmem:[%s15772_s3 + $0xe4] ss:$8 sps:$4 sm:$0xff]  }
  0x35   :  { %723 = vmatprep.subr.bf16.mxu1 %v9033_v54 }
  0x37   :  { %683 = vmatpush2.bf16.msra.mxu0 %v9039_v55 }
  0x38   :  { %724 = vmatpush2.bf16.msra.mxu1 %v9044_v56  ;;  %684 = vmatprep.subr.bf16.mxu0 %v9050_v57 }
  0x39   :  { %725 = vmatprep.subr.bf16.mxu1 %v9055_v58 }
  0x3b   :  { %685 = vmatpush2.bf16.msra.mxu0 %v9062_v59 }
  0x3c   :  { %726 = vmatpush2.bf16.msra.mxu1 %v9067_v60  ;;  %686 = vmatprep.subr.bf16.mxu0 %v9074_v61 }
  0x3d   :  { %727 = vmatprep.subr.bf16.mxu1 %v9079_v62 }
  0x3f   :  { %687 = vmatpush2.bf16.msra.mxu0 %v9086_v63 }
  0x40   :  { %728 = vmatpush2.bf16.msra.mxu1 %v9091_v0  ;;  %738 = vmatprep.subr.bf16.mxu0 %v9098_v2 }
  0x41   :  { %1299 = vmatprep.subr.bf16.mxu1 %v9121_v6 }
  0x42   :  { %689 = vmatmul.mubr.bf16.vlgmr.msra.gmra.mxu0 %v9103_v3 }
  0x43   :  { %730 = vmatmul.mubr.bf16.vlgmr.msra.gmra.mxu1 %v9103_v3  ;;  %739 = vmatpush1.bf16.msra.mxu0 %v9110_v4  ;;  %v9606_v4 = vld [vmem:[%s15772_s3 + $0x1e4] ss:$8 sps:$4 sm:$0xff]  }
  0x44   :  { %770 = vmatprep.mubr.bf16.mxu0 %v8995_v46  ;;  %740 = vmatprep.subr.bf16.mxu0 %v9115_v5  ;;  %v9581_v5 = vld [vmem:[%s15772_s3 + $0x274] ss:$8 sps:$4 sm:$0xff]   ;;  %16748 = vst [vmem:[#allocation66_spill] sm:$0xff] %v9606_v4 }
  0x45   :  { %1300 = vmatpush1.bf16.msra.mxu1 %v9126_v7  ;;  %16744 = vst [vmem:[#allocation62_spill] sm:$0xff] %v9581_v5 }
  0x46   :  { %1301 = vmatprep.subr.bf16.mxu1 %v9140_v9 }
  0x47   :  { %741 = vmatpush1.bf16.msra.mxu0 %v9133_v8  ;;  %v9576_v8 = vld [vmem:[%s15772_s3 + $0x104] ss:$8 sps:$4 sm:$0xff]  }
  0x48   :  { %742 = vmatprep.subr.bf16.mxu0 %v9146_v10  ;;  %v9557_v10 = vld [vmem:[%s15772_s3 + $0x114] ss:$8 sps:$4 sm:$0xff]   ;;  %16743 = vst [vmem:[#allocation61_spill] sm:$0xff] %v9576_v8 }
  0x49   :  { %1302 = vmatpush1.bf16.msra.mxu1 %v9153_v11  ;;  %16740 = vst [vmem:[#allocation58_spill] sm:$0xff] %v9557_v10 }
  0x4a   :  { %1303 = vmatprep.subr.bf16.mxu1 %v9159_v12 }
  0x4b   :  { %743 = vmatpush1.bf16.msra.mxu0 %v9165_v13  ;;  %v9551_v13 = vld [vmem:[%s15772_s3 + $0x84] ss:$8 sps:$4 sm:$0xff]  }
  0x4c   :  { %744 = vmatprep.subr.bf16.mxu0 %v9171_v14  ;;  %v9533_v14 = vld [vmem:[%s15772_s3 + $0x124] ss:$8 sps:$4 sm:$0xff]   ;;  %16739 = vst [vmem:[#allocation57_spill] sm:$0xff] %v9551_v13 }
  0x4d   :  { %1304 = vmatpush1.bf16.msra.mxu1 %v9177_v15  ;;  %16736 = vst [vmem:[#allocation54_spill] sm:$0xff] %v9533_v14 }
  0x4e   :  { %1305 = vmatprep.subr.bf16.mxu1 %v9183_v16 }
  0x4f   :  { %745 = vmatpush1.bf16.msra.mxu0 %v9189_v17  ;;  %v9527_v17 = vld [vmem:[%s15772_s3 + $0x94] ss:$8 sps:$4 sm:$0xff]  }
  0x50   :  { %746 = vmatprep.subr.bf16.mxu0 %v9195_v18  ;;  %v9509_v18 = vld [vmem:[%s15772_s3 + $0x134] ss:$8 sps:$4 sm:$0xff]   ;;  %16735 = vst [vmem:[#allocation53_spill] sm:$0xff] %v9527_v17 }
  0x51   :  { %1306 = vmatpush1.bf16.msra.mxu1 %v9201_v19  ;;  %16732 = vst [vmem:[#allocation50_spill] sm:$0xff] %v9509_v18 }
  0x52   :  { %1307 = vmatprep.subr.bf16.mxu1 %v9207_v20 }
  0x53   :  { %747 = vmatpush1.bf16.msra.mxu0 %v9213_v21  ;;  %v9503_v21 = vld [vmem:[%s15772_s3 + $0xa4] ss:$8 sps:$4 sm:$0xff]  }
  0x54   :  { %748 = vmatprep.subr.bf16.mxu0 %v9219_v22  ;;  %v9485_v22 = vld [vmem:[%s15772_s3 + $0x144] ss:$8 sps:$4 sm:$0xff]   ;;  %16731 = vst [vmem:[#allocation49_spill] sm:$0xff] %v9503_v21 }
  0x55   :  { %1308 = vmatpush1.bf16.msra.mxu1 %v9225_v23  ;;  %16728 = vst [vmem:[#allocation46_spill] sm:$0xff] %v9485_v22 }
  0x56   :  { %1309 = vmatprep.subr.bf16.mxu1 %v9231_v24 }
  0x57   :  { %749 = vmatpush1.bf16.msra.mxu0 %v9237_v25  ;;  %v9376_v25 = vld [vmem:[%s15770_s1 + $0x250] ss:$24 sps:$4 sm:$0xff]  }
  0x58   :  { %750 = vmatprep.subr.bf16.mxu0 %v9243_v26  ;;  %v9354_v26 = vld [vmem:[%s15770_s1 + $0x280] ss:$24 sps:$4 sm:$0xff]   ;;  %16712 = vst [vmem:[#allocation30_spill] sm:$0xff] %v9376_v25 }
  0x59   :  { %1310 = vmatpush1.bf16.msra.mxu1 %v9249_v27  ;;  %16710 = vst [vmem:[#allocation28_spill] sm:$0xff] %v9354_v26 }
  0x5a   :  { %1311 = vmatprep.subr.bf16.mxu1 %v9255_v28 }
  0x5b   :  { %751 = vmatpush1.bf16.msra.mxu0 %v9261_v30  ;;  %v9349_v30 = vld [vmem:[%s15772_s3 + $0xd4] ss:$8 sps:$4 sm:$0xff]  }
  0x5c   :  { %752 = vmatprep.subr.bf16.mxu0 %v9267_v32  ;;  %v9330_v32 = vld [vmem:[%s15770_s1 + $0x2b0] ss:$24 sps:$4 sm:$0xff]  }
  0x5d   :  { %1312 = vmatpush1.bf16.msra.mxu1 %v9273_v34  ;;  %16708 = vst [vmem:[#allocation26_spill] sm:$0xff] %v9330_v32 }
  0x5e   :  { %1313 = vmatprep.subr.bf16.mxu1 %v9279_v36 }
  0x5f   :  { %753 = vmatpush1.bf16.msra.mxu0 %v9285_v38  ;;  %v9336_v38 = vld [vmem:[%s15770_s1 + $0x284] ss:$24 sps:$4 sm:$0xff]  }
  0x60   :  { %754 = vmatprep.subr.bf16.mxu0 %v9291_v40  ;;  %16709 = vst [vmem:[#allocation27_spill] sm:$0xff] %v9336_v38  ;;  %v9343_v40 = vld [vmem:[%s15772_s3 + $0xe0] ss:$8 sps:$4 sm:$0xff]  }
  0x61   :  { %1314 = vmatpush1.bf16.msra.mxu1 %v9296_v42 }
  0x62   :  { %1315 = vmatprep.subr.bf16.mxu1 %v9307_v47 }
  0x63   :  { %755 = vmatpush2.bf16.msra.mxu0 %v9301_v44  ;;  %v9360_v44 = vld [vmem:[%s15770_s1 + $0x254] ss:$24 sps:$4 sm:$0xff]  }
  0x64   :  { %756 = vmatprep.subr.bf16.mxu0 %v9312_v49  ;;  %16711 = vst [vmem:[#allocation29_spill] sm:$0xff] %v9360_v44  ;;  %v9367_v49 = vld [vmem:[%s15772_s3 + $0xd0] ss:$8 sps:$4 sm:$0xff]  }
  0x65   :  { %1316 = vmatpush2.bf16.msra.mxu1 %v9319_v51 }
  0x66   :  { %1317 = vmatprep.subr.bf16.mxu1 %v9325_v53 }
  0x67   :  { %757 = vmatpush2.bf16.msra.mxu0 %v9330_v32  ;;  %v9382_v32 = vld [vmem:[%s15770_s1 + $0x224] ss:$24 sps:$4 sm:$0xff]  }
  0x68   :  { %758 = vmatprep.subr.bf16.mxu0 %v9336_v38  ;;  %16713 = vst [vmem:[#allocation31_spill] sm:$0xff] %v9382_v32  ;;  %v9401_v38 = vld [vmem:[%s15770_s1 + $0x1f0] ss:$24 sps:$4 sm:$0xff]  }
  0x69   :  { %1318 = vmatpush2.bf16.msra.mxu1 %v9343_v40  ;;  %16716 = vst [vmem:[#allocation34_spill] sm:$0xff] %v9401_v38 }
  0x6a   :  { %1319 = vmatprep.subr.bf16.mxu1 %v9349_v30 }
  0x6b   :  { %759 = vmatpush2.bf16.msra.mxu0 %v9354_v26  ;;  %v9389_v26 = vld [vmem:[%s15770_s1 + $0x220] ss:$24 sps:$4 sm:$0xff]  }
  0x6c   :  { %760 = vmatprep.subr.bf16.mxu0 %v9360_v44  ;;  %16714 = vst [vmem:[#allocation32_spill] sm:$0xff] %v9389_v26  ;;  %v9395_v44 = vld [vmem:[%s15770_s1 + $0x1f4] ss:$24 sps:$4 sm:$0xff]  }
  0x6d   :  { %1320 = vmatpush2.bf16.msra.mxu1 %v9367_v49  ;;  %16715 = vst [vmem:[#allocation33_spill] sm:$0xff] %v9395_v44 }
  0x6f   :  { %761 = vmatpush2.bf16.msra.mxu0 %v9376_v25  ;;  %v9407_v25 = vld [vmem:[%s15770_s1 + $0x1c4] ss:$24 sps:$4 sm:$0xff]  }
  0x70   :  { %762 = vmatprep.subr.bf16.mxu0 %v9382_v32  ;;  %16717 = vst [vmem:[#allocation35_spill] sm:$0xff] %v9407_v25  ;;  %v9413_v32 = vld [vmem:[%s15770_s1 + $0x1c0] ss:$24 sps:$4 sm:$0xff]  }
  0x71   :  { %16718 = vst [vmem:[#allocation36_spill] sm:$0xff] %v9413_v32 }
  0x73   :  { %763 = vmatpush2.bf16.msra.mxu0 %v9389_v26  ;;  %v9419_v26 = vld [vmem:[%s15770_s1 + $0x194] ss:$24 sps:$4 sm:$0xff]  }
  0x74   :  { %764 = vmatprep.subr.bf16.mxu0 %v9395_v44  ;;  %16719 = vst [vmem:[#allocation37_spill] sm:$0xff] %v9419_v26  ;;  %v9425_v44 = vld [vmem:[%s15770_s1 + $0x190] ss:$24 sps:$4 sm:$0xff]  }
  0x75   :  { %16720 = vst [vmem:[#allocation38_spill] sm:$0xff] %v9425_v44 }
  0x77   :  { %765 = vmatpush2.bf16.msra.mxu0 %v9401_v38  ;;  %v9431_v38 = vld [vmem:[%s15772_s3 + $0x174] ss:$8 sps:$4 sm:$0xff]  }
  0x78   :  { %766 = vmatprep.subr.bf16.mxu0 %v9407_v25  ;;  %16721 = vst [vmem:[#allocation39_spill] sm:$0xff] %v9431_v38  ;;  %v9437_v25 = vld [vmem:[%s15772_s3 + $0x170] ss:$8 sps:$4 sm:$0xff]  }
  0x79   :  { %16722 = vst [vmem:[#allocation40_spill] sm:$0xff] %v9437_v25 }
  0x7b   :  { %767 = vmatpush2.bf16.msra.mxu0 %v9413_v32  ;;  %v9443_v32 = vld [vmem:[%s15772_s3 + $0x164] ss:$8 sps:$4 sm:$0xff]  }
  0x7c   :  { %768 = vmatprep.subr.bf16.mxu0 %v9419_v26  ;;  %16723 = vst [vmem:[#allocation41_spill] sm:$0xff] %v9443_v32  ;;  %v9455_v26 = vld [vmem:[%s15772_s3 + $0xc4] ss:$8 sps:$4 sm:$0xff]  }
  0x7d   :  { %1321 = vmatprep.subr.bf16.mxu1 %v9455_v26 }
  0x7f   :  { %769 = vmatpush2.bf16.msra.mxu0 %v9425_v44  ;;  %v9450_v44 = vld [vmem:[%s15772_s3 + $0x160] ss:$8 sps:$4 sm:$0xff]  }
  0x80   :  { %1340 = vmatprep.subr.bf16.mxu0 %v9431_v38  ;;  %16724 = vst [vmem:[#allocation42_spill] sm:$0xff] %v9450_v44  ;;  %v9461_v38 = vld [vmem:[%s15772_s3 + $0x154] ss:$8 sps:$4 sm:$0xff]  }
  0x81   :  { %16725 = vst [vmem:[#allocation43_spill] sm:$0xff] %v9461_v38 }
  0x82   :  { %771 = vmatmul.mubr.bf16.vlgmr.msra.gmra.mxu0 %v9103_v3  ;;  %v9466_v3 = vld [vmem:[%s15772_s3 + $0xc0] ss:$8 sps:$4 sm:$0xff]  }
  0x83   :  { %1341 = vmatpush1.bf16.msra.mxu0 %v9437_v25  ;;  %1322 = vmatpush2.bf16.msra.mxu1 %v9466_v3  ;;  %v9479_v25 = vld [vmem:[%s15772_s3 + $0xb4] ss:$8 sps:$4 sm:$0xff]  }
  0x84   :  { %1342 = vmatprep.subr.bf16.mxu0 %v9443_v32  ;;  %v9474_v32 = vld [vmem:[%s15772_s3 + $0x150] ss:$8 sps:$4 sm:$0xff]   ;;  %16727 = vst [vmem:[#allocation45_spill] sm:$0xff] %v9479_v25  ;;  %1323 = vmatprep.subr.bf16.mxu1 %v9479_v25 }
  0x85   :  { %16726 = vst [vmem:[#allocation44_spill] sm:$0xff] %v9474_v32 }
  0x87   :  { %1343 = vmatpush1.bf16.msra.mxu0 %v9450_v44  ;;  %v9490_v44 = vld [vmem:[%s15772_s3 + $0xb0] ss:$8 sps:$4 sm:$0xff]  }
  0x88   :  { %1344 = vmatprep.subr.bf16.mxu0 %v9461_v38  ;;  %16729 = vst [vmem:[#allocation47_spill] sm:$0xff] %v9490_v44  ;;  %1324 = vmatpush2.bf16.msra.mxu1 %v9490_v44  ;;  %v9498_v38 = vld [vmem:[%s15772_s3 + $0x140] ss:$8 sps:$4 sm:$0xff]  }
  0x89   :  { %16730 = vst [vmem:[#allocation48_spill] sm:$0xff] %v9498_v38  ;;  %1325 = vmatprep.subr.bf16.mxu1 %v9503_v21 }
  0x8b   :  { %1345 = vmatpush1.bf16.msra.mxu0 %v9474_v32  ;;  %v9514_v32 = vld [vmem:[%s15772_s3 + $0xa0] ss:$8 sps:$4 sm:$0xff]  }
  0x8c   :  { %1346 = vmatprep.subr.bf16.mxu0 %v9485_v22  ;;  %16733 = vst [vmem:[#allocation51_spill] sm:$0xff] %v9514_v32  ;;  %1326 = vmatpush2.bf16.msra.mxu1 %v9514_v32  ;;  %v9522_v22 = vld [vmem:[%s15772_s3 + $0x130] ss:$8 sps:$4 sm:$0xff]  }
  0x8d   :  { %16734 = vst [vmem:[#allocation52_spill] sm:$0xff] %v9522_v22  ;;  %1327 = vmatprep.subr.bf16.mxu1 %v9527_v17 }
  0x8f   :  { %1347 = vmatpush1.bf16.msra.mxu0 %v9498_v38  ;;  %v9538_v38 = vld [vmem:[%s15772_s3 + $0x90] ss:$8 sps:$4 sm:$0xff]  }
  0x90   :  { %1348 = vmatprep.subr.bf16.mxu0 %v9509_v18  ;;  %16737 = vst [vmem:[#allocation55_spill] sm:$0xff] %v9538_v38  ;;  %1328 = vmatpush2.bf16.msra.mxu1 %v9538_v38  ;;  %v9546_v18 = vld [vmem:[%s15772_s3 + $0x120] ss:$8 sps:$4 sm:$0xff]  }
  0x91   :  { %16738 = vst [vmem:[#allocation56_spill] sm:$0xff] %v9546_v18  ;;  %1329 = vmatprep.subr.bf16.mxu1 %v9551_v13 }
  0x93   :  { %1349 = vmatpush1.bf16.msra.mxu0 %v9522_v22  ;;  %v9562_v22 = vld [vmem:[%s15772_s3 + $0x80] ss:$8 sps:$4 sm:$0xff]  }
  0x94   :  { %1350 = vmatprep.subr.bf16.mxu0 %v9533_v14  ;;  %16741 = vst [vmem:[#allocation59_spill] sm:$0xff] %v9562_v22  ;;  %1330 = vmatpush2.bf16.msra.mxu1 %v9562_v22  ;;  %v9570_v14 = vld [vmem:[%s15772_s3 + $0x110] ss:$8 sps:$4 sm:$0xff]  }
  0x95   :  { %16742 = vst [vmem:[#allocation60_spill] sm:$0xff] %v9570_v14  ;;  %1381 = vmatprep.subr.bf16.mxu1 %v9581_v5 }
  0x97   :  { %1351 = vmatpush1.bf16.msra.mxu0 %v9546_v18  ;;  %v9587_v18 = vld [vmem:[%s15772_s3 + $0x100] ss:$8 sps:$4 sm:$0xff]  }
  0x98   :  { %1352 = vmatprep.subr.bf16.mxu0 %v9557_v10  ;;  %16745 = vst [vmem:[#allocation63_spill] sm:$0xff] %v9587_v18  ;;  %v9594_v10 = vld [vmem:[%s15772_s3 + $0x1f4] ss:$8 sps:$4 sm:$0xff]  }
  0x99   :  { %16746 = vst [vmem:[#allocation64_spill] sm:$0xff] %v9594_v10 }
  0x9b   :  { %1353 = vmatpush1.bf16.msra.mxu0 %v9570_v14  ;;  %v9600_v14 = vld [vmem:[%s15772_s3 + $0x1f0] ss:$8 sps:$4 sm:$0xff]  }
  0x9c   :  { %1354 = vmatprep.subr.bf16.mxu0 %v9576_v8  ;;  %16747 = vst [vmem:[#allocation65_spill] sm:$0xff] %v9600_v14  ;;  %v9612_v8 = vld [vmem:[%s15772_s3 + $0x1e0] ss:$8 sps:$4 sm:$0xff]  }
  0x9d   :  { %16749 = vst [vmem:[#allocation67_spill] sm:$0xff] %v9612_v8 }
  0x9f   :  { %1355 = vmatpush1.bf16.msra.mxu0 %v9587_v18  ;;  %v9618_v18 = vld [vmem:[%s15772_s3 + $0x1d4] ss:$8 sps:$4 sm:$0xff]  }
  0xa0   :  { %1356 = vmatprep.subr.bf16.mxu0 %v9594_v10  ;;  %16750 = vst [vmem:[#allocation68_spill] sm:$0xff] %v9618_v18  ;;  %v9624_v10 = vld [vmem:[%s15772_s3 + $0x1d0] ss:$8 sps:$4 sm:$0xff]  }
  0xa1   :  { %16751 = vst [vmem:[#allocation69_spill] sm:$0xff] %v9624_v10 }
  0xa3   :  { %1357 = vmatpush2.bf16.msra.mxu0 %v9600_v14  ;;  %v9630_v14 = vld [vmem:[%s15772_s3 + $0x1c4] ss:$8 sps:$4 sm:$0xff]  }
  0xa4   :  { %1358 = vmatprep.subr.bf16.mxu0 %v9606_v4  ;;  %16752 = vst [vmem:[#allocation70_spill] sm:$0xff] %v9630_v14  ;;  %v9636_v4 = vld [vmem:[%s15772_s3 + $0x1c0] ss:$8 sps:$4 sm:$0xff]  }
  0xa5   :  { %16753 = vst [vmem:[#allocation71_spill] sm:$0xff] %v9636_v4 }
  0xa7   :  { %1359 = vmatpush2.bf16.msra.mxu0 %v9612_v8  ;;  %v9642_v8 = vld [vmem:[%s15772_s3 + $0x1b4] ss:$8 sps:$4 sm:$0xff]  }
  0xa8   :  { %1360 = vmatprep.subr.bf16.mxu0 %v9618_v18  ;;  %16754 = vst [vmem:[#allocation72_spill] sm:$0xff] %v9642_v8  ;;  %v9648_v18 = vld [vmem:[%s15772_s3 + $0x1b0] ss:$8 sps:$4 sm:$0xff]  }
  0xa9   :  { %16755 = vst [vmem:[#allocation73_spill] sm:$0xff] %v9648_v18 }
  0xab   :  { %1361 = vmatpush2.bf16.msra.mxu0 %v9624_v10  ;;  %v9654_v10 = vld [vmem:[%s15772_s3 + $0x1a4] ss:$8 sps:$4 sm:$0xff]  }
  0xac   :  { %1362 = vmatprep.subr.bf16.mxu0 %v9630_v14  ;;  %16756 = vst [vmem:[#allocation74_spill] sm:$0xff] %v9654_v10  ;;  %v9660_v14 = vld [vmem:[%s15772_s3 + $0x1a0] ss:$8 sps:$4 sm:$0xff]  }
  0xad   :  { %16757 = vst [vmem:[#allocation75_spill] sm:$0xff] %v9660_v14 }
  0xaf   :  { %1363 = vmatpush2.bf16.msra.mxu0 %v9636_v4  ;;  %v9666_v4 = vld [vmem:[%s15772_s3 + $0x194] ss:$8 sps:$4 sm:$0xff]  }
  0xb0   :  { %1364 = vmatprep.subr.bf16.mxu0 %v9642_v8  ;;  %16758 = vst [vmem:[#allocation76_spill] sm:$0xff] %v9666_v4  ;;  %v9672_v8 = vld [vmem:[%s15772_s3 + $0x190] ss:$8 sps:$4 sm:$0xff]  }
  0xb1   :  { %16759 = vst [vmem:[#allocation77_spill] sm:$0xff] %v9672_v8 }
  0xb3   :  { %1365 = vmatpush2.bf16.msra.mxu0 %v9648_v18  ;;  %v9678_v18 = vld [vmem:[%s15772_s3 + $0x184] ss:$8 sps:$4 sm:$0xff]  }
  0xb4   :  { %1366 = vmatprep.subr.bf16.mxu0 %v9654_v10  ;;  %16760 = vst [vmem:[#allocation78_spill] sm:$0xff] %v9678_v18  ;;  %v9684_v10 = vld [vmem:[%s15772_s3 + $0x180] ss:$8 sps:$4 sm:$0xff]  }
  0xb5   :  { %16761 = vst [vmem:[#allocation79_spill] sm:$0xff] %v9684_v10 }
  0xb7   :  { %1367 = vmatpush2.bf16.msra.mxu0 %v9660_v14  ;;  %v146_v14 = vlaneseq }
  0xb8   :  { %1368 = vmatprep.subr.bf16.mxu0 %v9666_v4 }
  0xb9   :  { %v9689_v4 = vshrl.u32 %v146_v14, 7 }
  0xbb   :  { %1369 = vmatpush2.bf16.msra.mxu0 %v9672_v8  ;;  %16762 = vst [vmem:[#allocation80_spill] sm:$0xff] %v9689_v4  ;;  %v15858_v5 = vsub.s32 0, %v9689_v4  ;;  %v15862_v22 = vsub.s32 2, %v9689_v4  ;;  %v9696_v8 = vld [vmem:[%s15773_s2] sm:$0x3f]  ;;  %v15866_v2 = vsub.s32 1, %v9689_v4 }
  0xbc   :  { %1370 = vmatprep.subr.bf16.mxu0 %v9678_v18  ;;  %v160_v18 = vsub.s32 3, %v9689_v4 }
  0xbd   :  { %v9708_v14 = vrot.slane %v9696_v8, %v15862_v22 }
  0xbe   :  { %v9716_v63 = vrot.slane %v9696_v8, %v160_v18 }
  0xbf   :  { %1371 = vmatpush2.bf16.msra.mxu0 %v9684_v10  ;;  %16764 = vst [vmem:[#allocation82_spill] sm:$0xff] %v9708_v14  ;;  %v9713_v10 = vrot.slane %v9696_v8, %v15866_v2 }
  0xc0   :  { %1467 = vmatprep.subr.bf16.mxu0 %v8832_v1  ;;  %v9703_v1 = vrot.slane %v9696_v8, %v15858_v5  ;;  %16766 = vst [vmem:[#allocation84_spill] sm:$0xff] %v9716_v63 }
  0xc1   :  { %16765 = vst [vmem:[#allocation83_spill] sm:$0xff] %v9713_v10 }
  0xc2   :  { %16763 = vst [vmem:[#allocation81_spill] sm:$0xff] %v9703_v1 }
 0x102   :  { %v690_v13 = vpop.f32.mrf.mxu0 }
 0x103   :  { %v731_v38 = vpop.f32.mrf.mxu1  ;;  %v691_v61 = vadd.f32 %v690_v13, %v9703_v1 }
 0x104   :  { %v732_v5 = vadd.f32 %v731_v38, %v9708_v14  ;;  %v692_v59 = vpop.f32.mrf.mxu0 }
 0x105   :  { %v733_v17 = vpop.f32.mrf.mxu1  ;;  %8097 = vtanh.f32 %v691_v61  ;;  %v693_v22 = vadd.f32 %v692_v59, %v9713_v10  ;;  %v9725_v61 = vld [vmem:[%s15772_s3 + $0x270] ss:$8 sps:$4 sm:$0xff]   ;;  %v9892_v10 = vld [vmem:[%s15772_s3 + $0x294] ss:$8 sps:$4 sm:$0xff]  }
 0x106   :  { %v734_v32 = vadd.f32 %v733_v17, %v9716_v63  ;;  %8099 = vtanh.f32 %v732_v5  ;;  %v694_v57 = vpop.f32.mrf.mxu0  ;;  %16767 = vst [vmem:[#allocation85_spill] sm:$0xff] %v9725_v61  ;;  %v9747_v5 = vld [vmem:[%s15772_s3 + $0x254] ss:$8 sps:$4 sm:$0xff]   ;;  %16783 = vst [vmem:[#allocation101_spill] sm:$0xff] %v9892_v10 }
 0x107   :  { %v735_v2 = vpop.f32.mrf.mxu1  ;;  %8101 = vtanh.f32 %v693_v22  ;;  %v9730_v57 = vld [vmem:[%s15772_s3 + $0x264] ss:$8 sps:$4 sm:$0xff]   ;;  %16770 = vst [vmem:[#allocation88_spill] sm:$0xff] %v9747_v5 }
 0x108   :  { %8103 = vtanh.f32 %v734_v32  ;;  %v695_v18 = vpop.f32.mrf.mxu0  ;;  %16768 = vst [vmem:[#allocation86_spill] sm:$0xff] %v9730_v57  ;;  %v9741_v2 = vld [vmem:[%s15772_s3 + $0x260] ss:$8 sps:$4 sm:$0xff]   ;;  %v9758_v22 = vld [vmem:[%s15770_s1 + $0x12c] ss:$24 sps:$4 sm:$0xff]  }
 0x109   :  { %v736_v55 = vpop.f32.mrf.mxu1  ;;  %16769 = vst [vmem:[#allocation87_spill] sm:$0xff] %v9741_v2  ;;  %v9772_v32 = vld [vmem:[%s15772_s3 + $0x244] ss:$8 sps:$4 sm:$0xff]   ;;  %v9790_v18 = vld [vmem:[%s15772_s3 + $0x240] ss:$8 sps:$4 sm:$0xff]  }
 0x10a   :  { %v9735_v55 = vld [vmem:[%s15771_s0 + $0x8] sm:$0xf]  ;;  %16772 = vst [vmem:[#allocation90_spill] sm:$0xff] %v9772_v32  ;;  %16773 = vst [vmem:[#allocation91_spill] sm:$0xff] %v9790_v18 }
 0x112   :  { %v8098_v21 = vpop.eup %8097 }
 0x113   :  { %v8100_v44 = vpop.eup %8099  ;;  %v785_v59 = vpack.c.bf16 %v8098_v21, %v8098_v21  ;;  %v9752_v21 = vld [vmem:[%s15770_s1 + $0x158] ss:$24 sps:$4 sm:$0xff]  }
 0x114   :  { %v8102_v25 = vpop.eup %8101  ;;  %v787_v1 = vpack.c.bf16 %v8100_v44, %v8100_v44  ;;  %v9777_v44 = vld [vmem:[%s15770_s1 + $0x128] ss:$24 sps:$4 sm:$0xff]  }
 0x115   :  { %v8104_v13 = vpop.eup %8103  ;;  %v786_v38 = vpack.c.bf16 %v8102_v25, %v8102_v25  ;;  %v9766_v25 = vld [vmem:[%s15772_s3 + $0x250] ss:$8 sps:$4 sm:$0xff]  }
 0x116   :  { %v788_v17 = vpack.c.bf16 %v8104_v13, %v8104_v13  ;;  %16771 = vst [vmem:[#allocation89_spill] sm:$0xff] %v9766_v25  ;;  %v9796_v13 = vld [vmem:[%s15772_s3 + $0x234] ss:$8 sps:$4 sm:$0xff]  }
 0x117   :  { %1331 = vmatprep.mubr.bf16.mxu1 %v786_v38  ;;  %16774 = vst [vmem:[#allocation92_spill] sm:$0xff] %v9796_v13  ;;  %v9801_v38 = vld [vmem:[%s15770_s1 + $0xf8] ss:$24 sps:$4 sm:$0xff]  }
 0x118   :  { %1372 = vmatprep.mubr.bf16.mxu0 %v788_v17  ;;  %1332 = vmatmul.mubr.bf16.vlgmr.msra.gmra.mxu1 %v785_v59  ;;  %v9807_v59 = vld [vmem:[%s15770_s1 + $0xcc] ss:$24 sps:$4 sm:$0xff]   ;;  %v9814_v17 = vld [vmem:[%s15772_s3 + $0x230] ss:$8 sps:$4 sm:$0xff]  }
 0x119   :  { %1373 = vmatmul.mubr.bf16.vlgmr.msra.gmra.mxu0 %v787_v1  ;;  %1382 = vmatpush1.bf16.msra.mxu1 %v9725_v61  ;;  %v9783_v1 = vld [vmem:[%s15770_s1 + $0xfc] ss:$24 sps:$4 sm:$0xff]   ;;  %16775 = vst [vmem:[#allocation93_spill] sm:$0xff] %v9814_v17  ;;  %v9873_v61 = vld [vmem:[%s15770_s1 + $0x68] ss:$24 sps:$4 sm:$0xff]  }
 0x11a   :  { %1383 = vmatprep.subr.bf16.mxu1 %v9730_v57  ;;  %1468 = vmatpush1.bf16.msra.mxu0 %v9752_v21  ;;  %v9868_v57 = vld [vmem:[%s15772_s3 + $0x204] ss:$8 sps:$4 sm:$0xff]   ;;  %16781 = vst [vmem:[#allocation99_spill] sm:$0xff] %v9873_v61 }
 0x11b   :  { %1469 = vmatprep.subr.bf16.mxu0 %v9758_v22  ;;  %1499 = vmatprep.mubr.bf16.mxu0 %v9735_v55  ;;  %16780 = vst [vmem:[#allocation98_spill] sm:$0xff] %v9868_v57 }
 0x11d   :  { %1384 = vmatpush1.bf16.msra.mxu1 %v9741_v2  ;;  %v9849_v2 = vld [vmem:[%s15770_s1 + $0x98] ss:$24 sps:$4 sm:$0xff]  }
 0x11e   :  { %1385 = vmatprep.subr.bf16.mxu1 %v9747_v5  ;;  %1470 = vmatpush1.bf16.msra.mxu0 %v9777_v44  ;;  %v9844_v5 = vld [vmem:[%s15772_s3 + $0x214] ss:$8 sps:$4 sm:$0xff]  }
 0x11f   :  { %1471 = vmatprep.subr.bf16.mxu0 %v9783_v1  ;;  %16778 = vst [vmem:[#allocation96_spill] sm:$0xff] %v9844_v5 }
 0x121   :  { %1386 = vmatpush1.bf16.msra.mxu1 %v9766_v25  ;;  %v9825_v25 = vld [vmem:[%s15770_s1 + $0xc8] ss:$24 sps:$4 sm:$0xff]  }
 0x122   :  { %1387 = vmatprep.subr.bf16.mxu1 %v9772_v32  ;;  %1472 = vmatpush1.bf16.msra.mxu0 %v9801_v38  ;;  %v9820_v32 = vld [vmem:[%s15772_s3 + $0x224] ss:$8 sps:$4 sm:$0xff]  }
 0x123   :  { %1473 = vmatprep.subr.bf16.mxu0 %v9807_v59  ;;  %16776 = vst [vmem:[#allocation94_spill] sm:$0xff] %v9820_v32 }
 0x125   :  { %1388 = vmatpush1.bf16.msra.mxu1 %v9790_v18  ;;  %v9831_v18 = vld [vmem:[%s15770_s1 + $0x9c] ss:$24 sps:$4 sm:$0xff]  }
 0x126   :  { %1389 = vmatprep.subr.bf16.mxu1 %v9796_v13  ;;  %1474 = vmatpush1.bf16.msra.mxu0 %v9825_v25  ;;  %v9838_v13 = vld [vmem:[%s15772_s3 + $0x220] ss:$8 sps:$4 sm:$0xff]  }
 0x127   :  { %1475 = vmatprep.subr.bf16.mxu0 %v9831_v18  ;;  %16777 = vst [vmem:[#allocation95_spill] sm:$0xff] %v9838_v13 }
 0x129   :  { %1390 = vmatpush1.bf16.msra.mxu1 %v9814_v17  ;;  %v9855_v17 = vld [vmem:[%s15770_s1 + $0x6c] ss:$24 sps:$4 sm:$0xff]  }
 0x12a   :  { %1391 = vmatprep.subr.bf16.mxu1 %v9820_v32  ;;  %1476 = vmatpush1.bf16.msra.mxu0 %v9849_v2  ;;  %v9862_v32 = vld [vmem:[%s15772_s3 + $0x210] ss:$8 sps:$4 sm:$0xff]  }
 0x12b   :  { %1477 = vmatprep.subr.bf16.mxu0 %v9855_v17  ;;  %16779 = vst [vmem:[#allocation97_spill] sm:$0xff] %v9862_v32 }
 0x12d   :  { %1392 = vmatpush1.bf16.msra.mxu1 %v9838_v13  ;;  %v9879_v13 = vld [vmem:[%s15770_s1 + $0x3c] ss:$24 sps:$4 sm:$0xff]  }
 0x12e   :  { %1393 = vmatprep.subr.bf16.mxu1 %v9844_v5  ;;  %1478 = vmatpush1.bf16.msra.mxu0 %v9873_v61  ;;  %v9886_v5 = vld [vmem:[%s15772_s3 + $0x200] ss:$8 sps:$4 sm:$0xff]   ;;  %v9897_v61 = vld [vmem:[%s15770_s1 + $0x38] ss:$24 sps:$4 sm:$0xff]  }
 0x12f   :  { %1479 = vmatprep.subr.bf16.mxu0 %v9879_v13  ;;  %16782 = vst [vmem:[#allocation100_spill] sm:$0xff] %v9886_v5 }
 0x131   :  { %1394 = vmatpush1.bf16.msra.mxu1 %v9862_v32  ;;  %v9911_v32 = vld [vmem:[%s15772_s3 + $0x284] ss:$8 sps:$4 sm:$0xff]  }
 0x132   :  { %1395 = vmatprep.subr.bf16.mxu1 %v9868_v57  ;;  %1480 = vmatpush1.bf16.msra.mxu0 %v9897_v61  ;;  %v9905_v57 = vld [vmem:[%s15772_s3 + $0x290] ss:$8 sps:$4 sm:$0xff]  }
 0x133   :  { %1481 = vmatprep.subr.bf16.mxu0 %v8919_v29  ;;  %v9919_v29 = vld [vmem:[%s15772_s3 + $0x280] ss:$8 sps:$4 sm:$0xff]  }
 0x134   :  { %16784 = vst [vmem:[#allocation102_spill] sm:$0xff] %v9919_v29 }
 0x135   :  { %1396 = vmatpush1.bf16.msra.mxu1 %v9886_v5  ;;  %v168_v5 = vsub.s32 5, %v9689_v4 }
 0x136   :  { %1409 = vmatprep.subr.bf16.mxu1 %v9892_v10  ;;  %1482 = vmatpush1.bf16.msra.mxu0 %v8927_v31  ;;  %v164_v10 = vsub.s32 4, %v9689_v4  ;;  %v9930_v31 = vld [vmem:[%s15770_s1 + $0x154] ss:$24 sps:$4 sm:$0xff]  }
 0x137   :  { %1483 = vmatprep.subr.bf16.mxu0 %v8936_v33  ;;  %16785 = vst [vmem:[#allocation103_spill] sm:$0xff] %v9930_v31 }
 0x138   :  { %v9935_v33 = vrot.slane %v9696_v8, %v164_v10  ;;  %v10051_v10 = vld [vmem:[%s15770_s1 + $0x4] ss:$24 sps:$4 sm:$0xff]  }
 0x139   :  { %1410 = vmatpush2.bf16.msra.mxu1 %v9905_v57 }
 0x13a   :  { %1411 = vmatprep.subr.bf16.mxu1 %v9911_v32  ;;  %1484 = vmatpush2.bf16.msra.mxu0 %v8944_v35  ;;  %16786 = vst [vmem:[#allocation104_spill] sm:$0xff] %v9935_v33  ;;  %v9939_v35 = vrot.slane %v9696_v8, %v168_v5  ;;  %v10037_v8 = vld [vmem:[%s15770_s1 + $0x34] ss:$24 sps:$4 sm:$0xff]   ;;  %v16804_v5 = vld [vmem:[#allocation53_spill] sm:$0xff] }
 0x13b   :  { %1485 = vmatprep.subr.bf16.mxu0 %v8954_v37 }
 0x13c   :  { %16787 = vst [vmem:[#allocation105_spill] sm:$0xff] %v9939_v35 }
 0x13d   :  { %1412 = vmatpush2.bf16.msra.mxu1 %v9919_v29 }
 0x13e   :  { %1426 = vmatprep.subr.bf16.mxu1 %v9930_v31  ;;  %1486 = vmatpush2.bf16.msra.mxu0 %v8963_v39 }
 0x13f   :  { %1487 = vmatprep.subr.bf16.mxu0 %v8972_v41 }
 0x142   :  { %v772_v37 = vpop.f32.mrf.mxu0  ;;  %1488 = vmatpush2.bf16.msra.mxu0 %v8980_v43 }
 0x143   :  { %v773_v4 = vadd.f32 %v772_v37, %v9935_v33  ;;  %1489 = vmatprep.subr.bf16.mxu0 %v8990_v45  ;;  %v16807_v37 = vld [vmem:[#allocation55_spill] sm:$0xff] }
 0x144   :  { %v774_v29 = vpop.f32.mrf.mxu0 }
 0x145   :  { %v775_v31 = vadd.f32 %v774_v29, %v9939_v35  ;;  %8105 = vtanh.f32 %v773_v4  ;;  %v16805_v29 = vld [vmem:[#allocation4_spill] sm:$0xff] }
 0x146   :  { %v776_v39 = vpop.f32.mrf.mxu0  ;;  %1490 = vmatpush2.bf16.msra.mxu0 %v9006_v48 }
 0x147   :  { %8107 = vtanh.f32 %v775_v31  ;;  %1491 = vmatprep.subr.bf16.mxu0 %v9015_v50  ;;  %v9959_v50 = vld [vmem:[%s15770_s1 + $0x150] ss:$24 sps:$4 sm:$0xff]   ;;  %v16806_v31 = vld [vmem:[#allocation5_spill] sm:$0xff] }
 0x148   :  { %v777_v41 = vpop.f32.mrf.mxu0  ;;  %v16808_v39 = vld [vmem:[#allocation57_spill] sm:$0xff] }
 0x149   :  { %v16809_v41 = vld [vmem:[#allocation6_spill] sm:$0xff] }
 0x14a   :  { %1492 = vmatpush2.bf16.msra.mxu0 %v9024_v52  ;;  %v9966_v52 = vld [vmem:[%s15770_s1 + $0x124] ss:$24 sps:$4 sm:$0xff]  }
 0x14b   :  { %1493 = vmatprep.subr.bf16.mxu0 %v9033_v54  ;;  %v9975_v54 = vld [vmem:[%s15770_s1 + $0x120] ss:$24 sps:$4 sm:$0xff]  }
 0x14e   :  { %1494 = vmatpush2.bf16.msra.mxu0 %v9044_v56  ;;  %v9981_v56 = vld [vmem:[%s15770_s1 + $0xf4] ss:$24 sps:$4 sm:$0xff]  }
 0x14f   :  { %1495 = vmatprep.subr.bf16.mxu0 %v9055_v58  ;;  %v9995_v58 = vld [vmem:[%s15770_s1 + $0xc4] ss:$24 sps:$4 sm:$0xff]  }
 0x152   :  { %1496 = vmatpush2.bf16.msra.mxu0 %v9067_v60  ;;  %v8106_v43 = vpop.eup %8105  ;;  %v10003_v60 = vld [vmem:[%s15770_s1 + $0xc0] ss:$24 sps:$4 sm:$0xff]  }
 0x153   :  { %1497 = vmatprep.subr.bf16.mxu0 %v9079_v62  ;;  %v789_v4 = vpack.c.bf16 %v8106_v43, %v8106_v43  ;;  %v10009_v62 = vld [vmem:[%s15770_s1 + $0x94] ss:$24 sps:$4 sm:$0xff]  }
 0x154   :  { %v8108_v45 = vpop.eup %8107  ;;  %v16810_v43 = vld [vmem:[#allocation7_spill] sm:$0xff] }
 0x155   :  { %v790_v48 = vpack.c.bf16 %v8108_v45, %v8108_v45  ;;  %v16811_v45 = vld [vmem:[#allocation59_spill] sm:$0xff] }
 0x156   :  { %1498 = vmatpush2.bf16.msra.mxu0 %v9091_v0  ;;  %v10017_v0 = vld [vmem:[%s15770_s1 + $0x90] ss:$24 sps:$4 sm:$0xff]  }
 0x157   :  { %6668 = vmatprep.mubr.msk.bf16.mxu1 %vm1295_vm0, %v790_v48  ;;  %1564 = vmatprep.subr.bf16.mxu0 %v9121_v6  ;;  %v10023_v6 = vld [vmem:[%s15770_s1 + $0x64] ss:$24 sps:$4 sm:$0xff]  }
 0x158   :  { %1414 = vmatmul.mubr.bf16.vlgmr.msra.gmra.mxu1 %v789_v4  ;;  %v8255_v48 = vld [vmem:[%s15771_s0 + $0x4] sm:$0xf] }
 0x159   :  { %1427 = vmatpush1.bf16.msra.mxu1 %v9959_v50  ;;  %1458 = vmatprep.mubr.bf16.mxu1 %v9735_v55  ;;  %v16812_v4 = vld [vmem:[#allocation62_spill] sm:$0xff] }
 0x15a   :  { %1428 = vmatprep.subr.bf16.mxu1 %v9966_v52  ;;  %1500 = vmatmul.mubr.bf16.vlgmr.msra.gmra.mxu0 %v8995_v46  ;;  %v9989_v46 = vld [vmem:[%s15770_s1 + $0xf0] ss:$24 sps:$4 sm:$0xff]  }
 0x15b   :  { %1565 = vmatpush1.bf16.msra.mxu0 %v9126_v7  ;;  %v10031_v7 = vld [vmem:[%s15770_s1 + $0x60] ss:$24 sps:$4 sm:$0xff]  }
 0x15c   :  { %1566 = vmatprep.subr.bf16.mxu0 %v9140_v9  ;;  %v10045_v9 = vld [vmem:[%s15770_s1 + $0x30] ss:$24 sps:$4 sm:$0xff]  }
 0x15d   :  { %1429 = vmatpush1.bf16.msra.mxu1 %v9975_v54 }
 0x15e   :  { %1430 = vmatprep.subr.bf16.mxu1 %v9981_v56 }
 0x15f   :  { %1567 = vmatpush1.bf16.msra.mxu0 %v9153_v11  ;;  %v10059_v11 = vld [vmem:[%s15770_s1] ss:$24 sps:$4 sm:$0xff]  }
 0x160   :  { %1568 = vmatprep.subr.bf16.mxu0 %v9159_v12  ;;  %v10065_v12 = vld [vmem:[%s15770_s1 + $0x2d4] ss:$24 sps:$4 sm:$0xff]  }
 0x161   :  { %1431 = vmatpush1.bf16.msra.mxu1 %v9989_v46 }
 0x162   :  { %1432 = vmatprep.subr.bf16.mxu1 %v9995_v58 }
 0x163   :  { %1569 = vmatpush1.bf16.msra.mxu0 %v9177_v15  ;;  %v10073_v15 = vld [vmem:[%s15770_s1 + $0x2d0] ss:$24 sps:$4 sm:$0xff]  }
 0x164   :  { %1570 = vmatprep.subr.bf16.mxu0 %v9183_v16  ;;  %16788 = vst [vmem:[#allocation106_spill] sm:$0xff] %v10073_v15  ;;  %v10079_v16 = vld [vmem:[%s15770_s1 + $0x2a4] ss:$24 sps:$4 sm:$0xff]  }
 0x165   :  { %1433 = vmatpush1.bf16.msra.mxu1 %v10003_v60  ;;  %16789 = vst [vmem:[#allocation107_spill] sm:$0xff] %v10079_v16 }
 0x166   :  { %1434 = vmatprep.subr.bf16.mxu1 %v10009_v62 }
 0x167   :  { %1571 = vmatpush1.bf16.msra.mxu0 %v9201_v19  ;;  %v10087_v19 = vld [vmem:[%s15770_s1 + $0x2a0] ss:$24 sps:$4 sm:$0xff]  }
 0x168   :  { %1572 = vmatprep.subr.bf16.mxu0 %v9207_v20  ;;  %16790 = vst [vmem:[#allocation108_spill] sm:$0xff] %v10087_v19  ;;  %v10093_v20 = vld [vmem:[%s15770_s1 + $0x274] ss:$24 sps:$4 sm:$0xff]  }
 0x169   :  { %1435 = vmatpush1.bf16.msra.mxu1 %v10017_v0  ;;  %16791 = vst [vmem:[#allocation109_spill] sm:$0xff] %v10093_v20 }
 0x16a   :  { %1436 = vmatprep.subr.bf16.mxu1 %v10023_v6 }
 0x16b   :  { %1573 = vmatpush1.bf16.msra.mxu0 %v9225_v23  ;;  %v10101_v23 = vld [vmem:[%s15770_s1 + $0x270] ss:$24 sps:$4 sm:$0xff]  }
 0x16c   :  { %1574 = vmatprep.subr.bf16.mxu0 %v9231_v24  ;;  %16792 = vst [vmem:[#allocation110_spill] sm:$0xff] %v10101_v23  ;;  %v10107_v24 = vld [vmem:[%s15770_s1 + $0x244] ss:$24 sps:$4 sm:$0xff]  }
 0x16d   :  { %1437 = vmatpush1.bf16.msra.mxu1 %v10031_v7  ;;  %16793 = vst [vmem:[#allocation111_spill] sm:$0xff] %v10107_v24 }
 0x16e   :  { %1438 = vmatprep.subr.bf16.mxu1 %v10037_v8 }
 0x16f   :  { %1575 = vmatpush1.bf16.msra.mxu0 %v9249_v27  ;;  %v10115_v27 = vld [vmem:[%s15770_s1 + $0x240] ss:$24 sps:$4 sm:$0xff]  }
 0x170   :  { %1576 = vmatprep.subr.bf16.mxu0 %v9255_v28  ;;  %16794 = vst [vmem:[#allocation112_spill] sm:$0xff] %v10115_v27  ;;  %v10121_v28 = vld [vmem:[%s15770_s1 + $0x214] ss:$24 sps:$4 sm:$0xff]  }
 0x171   :  { %1439 = vmatpush1.bf16.msra.mxu1 %v10045_v9  ;;  %16795 = vst [vmem:[#allocation113_spill] sm:$0xff] %v10121_v28 }
 0x172   :  { %1440 = vmatprep.subr.bf16.mxu1 %v10051_v10 }
 0x173   :  { %1577 = vmatpush1.bf16.msra.mxu0 %v9273_v34  ;;  %v10129_v34 = vld [vmem:[%s15770_s1 + $0x210] ss:$24 sps:$4 sm:$0xff]  }
 0x174   :  { %1578 = vmatprep.subr.bf16.mxu0 %v9279_v36  ;;  %v10135_v36 = vld [vmem:[%s15770_s1 + $0x1e4] ss:$24 sps:$4 sm:$0xff]  }
 0x175   :  { %1441 = vmatpush1.bf16.msra.mxu1 %v10059_v11  ;;  %16798 = vst [vmem:[#allocation114_spill] sm:$0xff] %v10135_v36 }
 0x176   :  { %1442 = vmatprep.subr.bf16.mxu1 %v10065_v12 }
 0x177   :  { %1579 = vmatpush1.bf16.msra.mxu0 %v9296_v42  ;;  %v16800_v42 = vld [vmem:[#allocation49_spill] sm:$0xff] }
 0x178   :  { %1580 = vmatprep.subr.bf16.mxu0 %v9307_v47  ;;  %v16801_v47 = vld [vmem:[#allocation2_spill] sm:$0xff] }
 0x179   :  { %1443 = vmatpush2.bf16.msra.mxu1 %v10073_v15  ;;  %v16851_v15 = vld [vmem:[#allocation48_spill] sm:$0xff] }
 0x17a   :  { %1444 = vmatprep.subr.bf16.mxu1 %v10079_v16  ;;  %v16848_v16 = vld [vmem:[#allocation43_spill] sm:$0xff] }
 0x17b   :  { %1581 = vmatpush2.bf16.msra.mxu0 %v9319_v51  ;;  %v16802_v51 = vld [vmem:[#allocation3_spill] sm:$0xff] }
 0x17c   :  { %1582 = vmatprep.subr.bf16.mxu0 %v9325_v53  ;;  %v16803_v53 = vld [vmem:[#allocation51_spill] sm:$0xff] }
 0x17d   :  { %1445 = vmatpush2.bf16.msra.mxu1 %v10087_v19  ;;  %v16847_v19 = vld [vmem:[#allocation42_spill] sm:$0xff] }
 0x17e   :  { %1446 = vmatprep.subr.bf16.mxu1 %v10093_v20 }
 0x17f   :  { %1583 = vmatpush2.bf16.msra.mxu0 %v9343_v40  ;;  %v16799_v40 = vld [vmem:[#allocation47_spill] sm:$0xff] }
 0x180   :  { %1584 = vmatprep.subr.bf16.mxu0 %v9349_v30  ;;  %v16796_v30 = vld [vmem:[#allocation45_spill] sm:$0xff] }
 0x181   :  { %1447 = vmatpush2.bf16.msra.mxu1 %v10101_v23  ;;  %16797 = vst [vmem:[#allocation45_spill] sm:$0xff] %v10129_v34 }
 0x182   :  { %1448 = vmatprep.subr.bf16.mxu1 %v10107_v24  ;;  %v16824_v24 = vld [vmem:[#allocation19_spill] sm:$0xff] }
 0x183   :  { %1585 = vmatpush2.bf16.msra.mxu0 %v9367_v49 }
 0x184   :  { %1586 = vmatprep.subr.bf16.mxu0 %v9455_v26 }
 0x185   :  { %1449 = vmatpush2.bf16.msra.mxu1 %v10115_v27  ;;  %v16822_v27 = vld [vmem:[#allocation17_spill] sm:$0xff] }
 0x186   :  { %1450 = vmatprep.subr.bf16.mxu1 %v10121_v28  ;;  %v16821_v28 = vld [vmem:[#allocation16_spill] sm:$0xff] }
 0x187   :  { %1587 = vmatpush2.bf16.msra.mxu0 %v9466_v3 }
 0x188   :  { %1588 = vmatprep.subr.bf16.mxu0 %v16796_v30 }
 0x189   :  { %1451 = vmatpush2.bf16.msra.mxu1 %v10129_v34  ;;  %v16820_v34 = vld [vmem:[#allocation15_spill] sm:$0xff] }
 0x18a   :  { %1452 = vmatprep.subr.bf16.mxu1 %v10135_v36  ;;  %v16819_v36 = vld [vmem:[#allocation14_spill] sm:$0xff] }
 0x18b   :  { %1589 = vmatpush2.bf16.msra.mxu0 %v16799_v40 }
 0x18c   :  { %1590 = vmatprep.subr.bf16.mxu0 %v16800_v42 }
 0x18d   :  { %1453 = vmatpush2.bf16.msra.mxu1 %v16801_v47  ;;  %v16813_v47 = vld [vmem:[#allocation8_spill] sm:$0xff] }
 0x18e   :  { %1454 = vmatprep.subr.bf16.mxu1 %v16802_v51  ;;  %v16814_v51 = vld [vmem:[#allocation9_spill] sm:$0xff] }
 0x18f   :  { %1591 = vmatpush2.bf16.msra.mxu0 %v16803_v53 }
 0x190   :  { %1592 = vmatprep.subr.bf16.mxu0 %v16804_v5 }
 0x191   :  { %1455 = vmatpush2.bf16.msra.mxu1 %v16805_v29  ;;  %v16815_v29 = vld [vmem:[#allocation10_spill] sm:$0xff] }
 0x192   :  { %1456 = vmatprep.subr.bf16.mxu1 %v16806_v31  ;;  %v16816_v31 = vld [vmem:[#allocation11_spill] sm:$0xff] }
 0x193   :  { %1593 = vmatpush2.bf16.msra.mxu0 %v16807_v37 }
 0x194   :  { %1594 = vmatprep.subr.bf16.mxu0 %v16808_v39 }
 0x195   :  { %1457 = vmatpush2.bf16.msra.mxu1 %v16809_v41  ;;  %v16817_v41 = vld [vmem:[#allocation12_spill] sm:$0xff] }
 0x196   :  { %1508 = vmatprep.subr.bf16.mxu1 %v16810_v43  ;;  %v16818_v43 = vld [vmem:[#allocation13_spill] sm:$0xff] }
 0x197   :  { %1595 = vmatpush2.bf16.msra.mxu0 %v16811_v45 }
 0x198   :  { %1459 = vmatmul.mubr.bf16.vlgmr.msra.gmra.mxu1 %v8255_v48  ;;  %1646 = vmatprep.subr.bf16.mxu0 %v16812_v4 }
 0x199   :  { %1509 = vmatpush1.bf16.msra.mxu1 %v16813_v47  ;;  %1540 = vmatprep.mubr.bf16.mxu1 %v9735_v55  ;;  %v16823_v47 = vld [vmem:[#allocation18_spill] sm:$0xff] }
 0x19a   :  { %1510 = vmatprep.subr.bf16.mxu1 %v16814_v51  ;;  %v16825_v51 = vld [vmem:[#allocation20_spill] sm:$0xff] }
 0x19d   :  { %1511 = vmatpush1.bf16.msra.mxu1 %v16815_v29  ;;  %v16826_v29 = vld [vmem:[#allocation21_spill] sm:$0xff] }
 0x19e   :  { %1512 = vmatprep.subr.bf16.mxu1 %v16816_v31  ;;  %v16827_v31 = vld [vmem:[#allocation22_spill] sm:$0xff] }
 0x1a1   :  { %1513 = vmatpush1.bf16.msra.mxu1 %v16817_v41  ;;  %v16828_v41 = vld [vmem:[#allocation23_spill] sm:$0xff] }
 0x1a2   :  { %1514 = vmatprep.subr.bf16.mxu1 %v16818_v43  ;;  %v16829_v43 = vld [vmem:[#allocation24_spill] sm:$0xff] }
 0x1a5   :  { %1515 = vmatpush1.bf16.msra.mxu1 %v16819_v36  ;;  %v16830_v36 = vld [vmem:[#allocation25_spill] sm:$0xff] }
 0x1a6   :  { %1516 = vmatprep.subr.bf16.mxu1 %v16820_v34  ;;  %v16831_v34 = vld [vmem:[#allocation26_spill] sm:$0xff] }
 0x1a9   :  { %1517 = vmatpush1.bf16.msra.mxu1 %v16821_v28  ;;  %v16832_v28 = vld [vmem:[#allocation27_spill] sm:$0xff] }
 0x1aa   :  { %1518 = vmatprep.subr.bf16.mxu1 %v16822_v27  ;;  %v16833_v27 = vld [vmem:[#allocation28_spill] sm:$0xff] }
 0x1ad   :  { %1519 = vmatpush1.bf16.msra.mxu1 %v16823_v47  ;;  %v16834_v47 = vld [vmem:[#allocation29_spill] sm:$0xff] }
 0x1ae   :  { %1520 = vmatprep.subr.bf16.mxu1 %v16824_v24  ;;  %v16835_v24 = vld [vmem:[#allocation30_spill] sm:$0xff] }
 0x1b1   :  { %1521 = vmatpush1.bf16.msra.mxu1 %v16825_v51  ;;  %v16836_v51 = vld [vmem:[#allocation31_spill] sm:$0xff] }
 0x1b2   :  { %1522 = vmatprep.subr.bf16.mxu1 %v16826_v29  ;;  %v16837_v29 = vld [vmem:[#allocation32_spill] sm:$0xff] }
 0x1b5   :  { %1523 = vmatpush1.bf16.msra.mxu1 %v16827_v31  ;;  %v16838_v31 = vld [vmem:[#allocation33_spill] sm:$0xff] }
 0x1b6   :  { %1524 = vmatprep.subr.bf16.mxu1 %v16828_v41  ;;  %v16839_v41 = vld [vmem:[#allocation34_spill] sm:$0xff] }
 0x1b9   :  { %1525 = vmatpush2.bf16.msra.mxu1 %v16829_v43  ;;  %v16840_v43 = vld [vmem:[#allocation35_spill] sm:$0xff] }
 0x1ba   :  { %1526 = vmatprep.subr.bf16.mxu1 %v16830_v36  ;;  %v16841_v36 = vld [vmem:[#allocation36_spill] sm:$0xff] }
 0x1bd   :  { %1527 = vmatpush2.bf16.msra.mxu1 %v16831_v34  ;;  %v16842_v34 = vld [vmem:[#allocation37_spill] sm:$0xff] }
 0x1be   :  { %1528 = vmatprep.subr.bf16.mxu1 %v16832_v28  ;;  %v16843_v28 = vld [vmem:[#allocation38_spill] sm:$0xff] }
 0x1c1   :  { %1529 = vmatpush2.bf16.msra.mxu1 %v16833_v27  ;;  %v16844_v27 = vld [vmem:[#allocation39_spill] sm:$0xff] }
 0x1c2   :  { %1530 = vmatprep.subr.bf16.mxu1 %v16834_v47 }
 0x1c5   :  { %1531 = vmatpush2.bf16.msra.mxu1 %v16835_v24 }
 0x1c6   :  { %1532 = vmatprep.subr.bf16.mxu1 %v16836_v51  ;;  %v16845_v51 = vld [vmem:[#allocation40_spill] sm:$0xff] }
 0x1c9   :  { %1533 = vmatpush2.bf16.msra.mxu1 %v16837_v29 }
 0x1ca   :  { %1534 = vmatprep.subr.bf16.mxu1 %v16838_v31  ;;  %v16846_v31 = vld [vmem:[#allocation41_spill] sm:$0xff] }
 0x1cd   :  { %1535 = vmatpush2.bf16.msra.mxu1 %v16839_v41 }
 0x1ce   :  { %1536 = vmatprep.subr.bf16.mxu1 %v16840_v43 }
 0x1d1   :  { %1537 = vmatpush2.bf16.msra.mxu1 %v16841_v36 }
 0x1d2   :  { %1538 = vmatprep.subr.bf16.mxu1 %v16842_v34 }
 0x1d5   :  { %1539 = vmatpush2.bf16.msra.mxu1 %v16843_v28 }
 0x1d6   :  { %1605 = vmatprep.subr.bf16.mxu1 %v16844_v27  ;;  %v16849_v27 = vld [vmem:[#allocation44_spill] sm:$0xff] }
 0x1d8   :  { %1541 = vmatmul.mubr.bf16.vlgmr.msra.gmra.mxu1 %v8255_v48  ;;  %v1333_v47 = vpop.f32.mrf.mxu1  ;;  %v16850_v48 = vld [vmem:[#allocation46_spill] sm:$0xff] }
 0x1d9   :  { %v1374_v24 = vpop.f32.mrf.mxu0  ;;  %1606 = vmatpush1.bf16.msra.mxu1 %v16845_v51  ;;  %v16854_v51 = vld [vmem:[#allocation54_spill] sm:$0xff] }
 0x1da   :  { %v1375_v29 = vadd.f32 %v1374_v24, %v1333_v47  ;;  %v1335_v23 = vpop.f32.mrf.mxu1  ;;  %1607 = vmatprep.subr.bf16.mxu1 %v16846_v31  ;;  %v16852_v47 = vld [vmem:[#allocation50_spill] sm:$0xff]  ;;  %v16853_v24 = vld [vmem:[#allocation52_spill] sm:$0xff] }
 0x1db   :  { %v1376_v41 = vpop.f32.mrf.mxu0  ;;  %v16857_v31 = vld [vmem:[#allocation60_spill] sm:$0xff] }
 0x1dc   :  { %v1377_v20 = vadd.f32 %v1376_v41, %v1335_v23  ;;  %v1337_v43 = vpop.f32.mrf.mxu1  ;;  %v16855_v23 = vld [vmem:[#allocation56_spill] sm:$0xff]  ;;  %v16859_v41 = vld [vmem:[#allocation63_spill] sm:$0xff] }
 0x1dd   :  { %1608 = vmatpush1.bf16.msra.mxu1 %v16847_v19  ;;  %v1378_v36 = vpop.f32.mrf.mxu0  ;;  %v16856_v19 = vld [vmem:[#allocation58_spill] sm:$0xff]  ;;  %v16860_v43 = vld [vmem:[#allocation64_spill] sm:$0xff] }
 0x1de   :  { %v1338_v34 = vpop.f32.mrf.mxu1  ;;  %1609 = vmatprep.subr.bf16.mxu1 %v16848_v16  ;;  %v16858_v16 = vld [vmem:[#allocation61_spill] sm:$0xff] }
 0x1df   :  { %v1379_v28 = vpop.f32.mrf.mxu0  ;;  %v16861_v36 = vld [vmem:[#allocation65_spill] sm:$0xff]  ;;  %v16863_v34 = vld [vmem:[#allocation67_spill] sm:$0xff] }
 0x1e0   :  { %v16864_v28 = vld [vmem:[#allocation68_spill] sm:$0xff] }
 0x1e1   :  { %1610 = vmatpush1.bf16.msra.mxu1 %v16849_v27  ;;  %v16865_v27 = vld [vmem:[#allocation69_spill] sm:$0xff] }
 0x1e2   :  { %1611 = vmatprep.subr.bf16.mxu1 %v16850_v48  ;;  %v16866_v48 = vld [vmem:[#allocation70_spill] sm:$0xff] }
 0x1e5   :  { %1612 = vmatpush1.bf16.msra.mxu1 %v16851_v15  ;;  %v16862_v15 = vld [vmem:[#allocation66_spill] sm:$0xff] }
 0x1e6   :  { %1613 = vmatprep.subr.bf16.mxu1 %v16852_v47  ;;  %v16867_v47 = vld [vmem:[#allocation71_spill] sm:$0xff] }
 0x1e9   :  { %1614 = vmatpush1.bf16.msra.mxu1 %v16853_v24  ;;  %v16868_v24 = vld [vmem:[#allocation72_spill] sm:$0xff] }
 0x1ea   :  { %1615 = vmatprep.subr.bf16.mxu1 %v16854_v51  ;;  %v16869_v51 = vld [vmem:[#allocation73_spill] sm:$0xff] }
 0x1ed   :  { %1616 = vmatpush1.bf16.msra.mxu1 %v16855_v23  ;;  %v16870_v23 = vld [vmem:[#allocation74_spill] sm:$0xff] }
 0x1ee   :  { %1617 = vmatprep.subr.bf16.mxu1 %v16856_v19  ;;  %v16871_v19 = vld [vmem:[#allocation75_spill] sm:$0xff] }
 0x1f1   :  { %1618 = vmatpush1.bf16.msra.mxu1 %v16857_v31  ;;  %v16872_v31 = vld [vmem:[#allocation76_spill] sm:$0xff] }
 0x1f2   :  { %1619 = vmatprep.subr.bf16.mxu1 %v16858_v16  ;;  %v16873_v16 = vld [vmem:[#allocation77_spill] sm:$0xff] }
 0x1f5   :  { %1620 = vmatpush1.bf16.msra.mxu1 %v16859_v41  ;;  %v16874_v41 = vld [vmem:[#allocation78_spill] sm:$0xff] }
 0x1f6   :  { %1621 = vmatprep.subr.bf16.mxu1 %v16860_v43  ;;  %v16875_v43 = vld [vmem:[#allocation79_spill] sm:$0xff] }
 0x1f9   :  { %1622 = vmatpush2.bf16.msra.mxu1 %v16861_v36  ;;  %v10222_v36 = vld [vmem:[%s15770_s1 + $0x15c] ss:$24 sps:$4 sm:$0xff]  }
 0x1fa   :  { %1623 = vmatprep.subr.bf16.mxu1 %v16862_v15  ;;  %16876 = vst [vmem:[#allocation47_spill] sm:$0xff] %v10222_v36 }
 0x1fd   :  { %1624 = vmatpush2.bf16.msra.mxu1 %v16863_v34 }
 0x1fe   :  { %1625 = vmatprep.subr.bf16.mxu1 %v16864_v28 }
 0x201   :  { %1626 = vmatpush2.bf16.msra.mxu1 %v16865_v27 }
 0x202   :  { %1627 = vmatprep.subr.bf16.mxu1 %v16866_v48 }
 0x205   :  { %1628 = vmatpush2.bf16.msra.mxu1 %v16867_v47 }
 0x206   :  { %1629 = vmatprep.subr.bf16.mxu1 %v16868_v24 }
 0x209   :  { %1630 = vmatpush2.bf16.msra.mxu1 %v16869_v51 }
 0x20a   :  { %1631 = vmatprep.subr.bf16.mxu1 %v16870_v23 }
 0x20d   :  { %1632 = vmatpush2.bf16.msra.mxu1 %v16871_v19 }
 0x20e   :  { %1633 = vmatprep.subr.bf16.mxu1 %v16872_v31 }
 0x211   :  { %1634 = vmatpush2.bf16.msra.mxu1 %v16873_v16 }
 0x212   :  { %1635 = vmatprep.subr.bf16.mxu1 %v16874_v41 }
 0x215   :  { %1636 = vmatpush2.bf16.msra.mxu1 %v16875_v43 }
 0x216   :  { %1732 = vmatprep.subr.bf16.mxu1 %v10222_v36 }
 0x218   :  { %v1415_v15 = vpop.f32.mrf.mxu1 }
 0x219   :  { %v10225_v34 = vadd.f32 %v1415_v15, %v1375_v29  ;;  %v10253_v15 = vld [vmem:[%s15770_s1 + $0x8] ss:$24 sps:$4 sm:$0xff]  }
 0x21a   :  { %v1417_v28 = vpop.f32.mrf.mxu1  ;;  %v1501_v27 = vpop.f32.mrf.mxu0 }
 0x21b   :  { %16877 = vst [vmem:[#allocation49_spill] sm:$0xff] %v10225_v34  ;;  %v10227_v48 = vadd.f32 %v1417_v28, %v1377_v20  ;;  %v1502_v47 = vadd.f32 %v1501_v27, %v9708_v14  ;;  %v16879_v20 = vld [vmem:[#allocation99_spill] sm:$0xff]  ;;  %v10259_v28 = vld [vmem:[%s15770_s1 + $0x2dc] ss:$24 sps:$4 sm:$0xff]   ;;  %v10265_v27 = vld [vmem:[%s15770_s1 + $0x2d8] ss:$24 sps:$4 sm:$0xff]  }
 0x21c   :  { %v1419_v24 = vpop.f32.mrf.mxu1  ;;  %v1503_v51 = vpop.f32.mrf.mxu0 }
 0x21d   :  { %16878 = vst [vmem:[#allocation2_spill] sm:$0xff] %v10227_v48  ;;  %8109 = vtanh.f32 %v1502_v47  ;;  %v1504_v23 = vadd.f32 %v1503_v51, %v9716_v63  ;;  %v10271_v47 = vld [vmem:[%s15770_s1 + $0x2ac] ss:$24 sps:$4 sm:$0xff]   ;;  %v10277_v24 = vld [vmem:[%s15770_s1 + $0x2a8] ss:$24 sps:$4 sm:$0xff]  }
 0x21e   :  { %v1420_v19 = vpop.f32.mrf.mxu1  ;;  %v1505_v31 = vpop.f32.mrf.mxu0  ;;  %v10283_v51 = vld [vmem:[%s15770_s1 + $0x27c] ss:$24 sps:$4 sm:$0xff]  }
 0x21f   :  { %8111 = vtanh.f32 %v1504_v23  ;;  %v16880_v19 = vld [vmem:[#allocation81_spill] sm:$0xff] }
 0x220   :  { %v1506_v16 = vpop.f32.mrf.mxu0 }
 0x221   :  { %v10290_v16 = vld [vmem:[%s15770_s1 + $0x278] ss:$24 sps:$4 sm:$0xff]  }
 0x222   :  { %16881 = vst [vmem:[#allocation3_spill] sm:$0xff] %v10290_v16 }
 0x22a   :  { %v8110_v41 = vpop.eup %8109 }
 0x22b   :  { %v1557_v36 = vpack.c.bf16 %v8110_v41, %v8110_v41 }
 0x22c   :  { %v8112_v43 = vpop.eup %8111 }
 0x22d   :  { %v1558_v29 = vpack.c.bf16 %v8112_v43, %v8112_v43  ;;  %v10296_v43 = vld [vmem:[%s15770_s1 + $0x24c] ss:$24 sps:$4 sm:$0xff]  }
 0x22f   :  { %1637 = vmatprep.mubr.bf16.mxu1 %v1558_v29  ;;  %v16882_v29 = vld [vmem:[#allocation83_spill] sm:$0xff] }
 0x230   :  { %1638 = vmatmul.mubr.bf16.vlgmr.msra.gmra.mxu1 %v1557_v36  ;;  %v10247_v36 = vld [vmem:[%s15770_s1 + $0xc] ss:$24 sps:$4 sm:$0xff]  }
 0x231   :  { %1733 = vmatpush1.bf16.msra.mxu1 %v9752_v21 }
 0x232   :  { %1734 = vmatprep.subr.bf16.mxu1 %v9758_v22 }
 0x235   :  { %1735 = vmatpush1.bf16.msra.mxu1 %v9777_v44 }
 0x236   :  { %1736 = vmatprep.subr.bf16.mxu1 %v9783_v1 }
 0x239   :  { %1737 = vmatpush1.bf16.msra.mxu1 %v9801_v38 }
 0x23a   :  { %1738 = vmatprep.subr.bf16.mxu1 %v9807_v59 }
 0x23d   :  { %1739 = vmatpush1.bf16.msra.mxu1 %v9825_v25 }
 0x23e   :  { %1740 = vmatprep.subr.bf16.mxu1 %v9831_v18 }
 0x241   :  { %1741 = vmatpush1.bf16.msra.mxu1 %v9849_v2 }
 0x242   :  { %1742 = vmatprep.subr.bf16.mxu1 %v9855_v17 }
 0x245   :  { %1743 = vmatpush1.bf16.msra.mxu1 %v16879_v20 }
 0x246   :  { %1744 = vmatprep.subr.bf16.mxu1 %v9879_v13 }
 0x249   :  { %1745 = vmatpush1.bf16.msra.mxu1 %v9897_v61 }
 0x24a   :  { %1746 = vmatprep.subr.bf16.mxu1 %v10247_v36 }
 0x24d   :  { %1747 = vmatpush1.bf16.msra.mxu1 %v10253_v15 }
 0x24e   :  { %1748 = vmatprep.subr.bf16.mxu1 %v10259_v28 }
 0x251   :  { %1749 = vmatpush2.bf16.msra.mxu1 %v10265_v27 }
 0x252   :  { %1750 = vmatprep.subr.bf16.mxu1 %v10271_v47 }
 0x255   :  { %1751 = vmatpush2.bf16.msra.mxu1 %v10277_v24 }
 0x256   :  { %1752 = vmatprep.subr.bf16.mxu1 %v10283_v51 }
 0x258   :  { %v1460_v23 = vpop.f32.mrf.mxu1 }
 0x259   :  { %v1461_v31 = vadd.f32 %v1460_v23, %v16880_v19  ;;  %1753 = vmatpush2.bf16.msra.mxu1 %v10290_v16  ;;  %v10303_v23 = vld [vmem:[%s15770_s1 + $0x248] ss:$24 sps:$4 sm:$0xff]   ;;  %v10309_v16 = vld [vmem:[%s15770_s1 + $0x21c] ss:$24 sps:$4 sm:$0xff]  }
 0x25a   :  { %v1462_v41 = vpop.f32.mrf.mxu1  ;;  %1754 = vmatprep.subr.bf16.mxu1 %v10296_v43  ;;  %16883 = vst [vmem:[#allocation51_spill] sm:$0xff] %v10309_v16 }
 0x25b   :  { %v1463_v34 = vadd.f32 %v1462_v41, %v16882_v29  ;;  %8113 = vtanh.f32 %v1461_v31  ;;  %v10333_v31 = vld [vmem:[%s15770_s1 + $0x1bc] ss:$24 sps:$4 sm:$0xff]   ;;  %v10339_v29 = vld [vmem:[%s15770_s1 + $0x1b8] ss:$24 sps:$4 sm:$0xff]  }
 0x25c   :  { %v1464_v48 = vpop.f32.mrf.mxu1  ;;  %16887 = vst [vmem:[#allocation55_spill] sm:$0xff] %v10333_v31  ;;  %16888 = vst [vmem:[#allocation57_spill] sm:$0xff] %v10339_v29 }
 0x25d   :  { %8115 = vtanh.f32 %v1463_v34  ;;  %1755 = vmatpush2.bf16.msra.mxu1 %v10303_v23  ;;  %v10315_v48 = vld [vmem:[%s15770_s1 + $0x218] ss:$24 sps:$4 sm:$0xff]   ;;  %v10321_v34 = vld [vmem:[%s15770_s1 + $0x1ec] ss:$24 sps:$4 sm:$0xff]  }
 0x25e   :  { %v1465_v19 = vpop.f32.mrf.mxu1  ;;  %1756 = vmatprep.subr.bf16.mxu1 %v10309_v16  ;;  %16884 = vst [vmem:[#allocation53_spill] sm:$0xff] %v10315_v48  ;;  %16885 = vst [vmem:[#allocation4_spill] sm:$0xff] %v10321_v34 }
 0x25f   :  { %v10327_v19 = vld [vmem:[%s15770_s1 + $0x1e8] ss:$24 sps:$4 sm:$0xff]  }
 0x260   :  { %16886 = vst [vmem:[#allocation5_spill] sm:$0xff] %v10327_v19 }
 0x261   :  { %1757 = vmatpush2.bf16.msra.mxu1 %v10315_v48 }
 0x262   :  { %1758 = vmatprep.subr.bf16.mxu1 %v10321_v34 }
 0x265   :  { %1759 = vmatpush2.bf16.msra.mxu1 %v10327_v19  ;;  %v10345_v19 = vld [vmem:[%s15770_s1 + $0x18c] ss:$24 sps:$4 sm:$0xff]  }
 0x266   :  { %1760 = vmatprep.subr.bf16.mxu1 %v10333_v31  ;;  %16889 = vst [vmem:[#allocation6_spill] sm:$0xff] %v10345_v19  ;;  %v10351_v31 = vld [vmem:[%s15771_s0 + $0xc] sm:$0xf] }
 0x267   :  { %1764 = vmatprep.mubr.bf16.mxu1 %v10351_v31 }
 0x268   :  { %v8114_v41 = vpop.eup %8113 }
 0x269   :  { %1761 = vmatpush2.bf16.msra.mxu1 %v10339_v29  ;;  %v1555_v16 = vpack.c.bf16 %v8114_v41, %v8114_v41  ;;  %v10357_v29 = vld [vmem:[%s15770_s1 + $0x188] ss:$24 sps:$4 sm:$0xff]  }
 0x26a   :  { %v8116_v34 = vpop.eup %8115  ;;  %1762 = vmatprep.subr.bf16.mxu1 %v10345_v19  ;;  %16890 = vst [vmem:[#allocation7_spill] sm:$0xff] %v10357_v29  ;;  %v16892_v19 = vld [vmem:[#allocation85_spill] sm:$0xff]  ;;  %v16893_v41 = vld [vmem:[#allocation86_spill] sm:$0xff] }
 0x26b   :  { %v1556_v48 = vpack.c.bf16 %v8116_v34, %v8116_v34  ;;  %v10363_v34 = vld [vmem:[%s15772_s3 + $0x74] ss:$8 sps:$4 sm:$0xff]  }
 0x26c   :  { %16891 = vst [vmem:[#allocation59_spill] sm:$0xff] %v10363_v34 }
 0x26d   :  { %1596 = vmatprep.mubr.bf16.mxu0 %v1556_v48  ;;  %1763 = vmatpush2.bf16.msra.mxu1 %v10357_v29  ;;  %v10372_v48 = vld [vmem:[%s15772_s3 + $0x70] ss:$8 sps:$4 sm:$0xff]  }
 0x26e   :  { %1597 = vmatmul.mubr.bf16.vlgmr.msra.gmra.mxu0 %v1555_v16  ;;  %1829 = vmatprep.subr.bf16.mxu1 %v10363_v34  ;;  %16894 = vst [vmem:[#allocation62_spill] sm:$0xff] %v10372_v48  ;;  %v10378_v16 = vld [vmem:[%s15772_s3 + $0x64] ss:$8 sps:$4 sm:$0xff]   ;;  %v16900_v29 = vld [vmem:[#allocation89_spill] sm:$0xff] }
 0x26f   :  { %1647 = vmatpush1.bf16.msra.mxu0 %v16892_v19  ;;  %16895 = vst [vmem:[#allocation8_spill] sm:$0xff] %v10378_v16  ;;  %v16896_v34 = vld [vmem:[#allocation87_spill] sm:$0xff]  ;;  %v16897_v19 = vld [vmem:[#allocation88_spill] sm:$0xff] }
 0x270   :  { %1648 = vmatprep.subr.bf16.mxu0 %v16893_v41  ;;  %1765 = vmatmul.mubr.bf16.vlgmr.msra.gmra.mxu1 %v9735_v55  ;;  %v10386_v41 = vld [vmem:[%s15772_s3 + $0x60] ss:$8 sps:$4 sm:$0xff]  }
 0x271   :  { %1830 = vmatpush1.bf16.msra.mxu1 %v10372_v48  ;;  %16898 = vst [vmem:[#allocation9_spill] sm:$0xff] %v10386_v41  ;;  %v10392_v48 = vld [vmem:[%s15772_s3 + $0x54] ss:$8 sps:$4 sm:$0xff]  }
 0x272   :  { %1831 = vmatprep.subr.bf16.mxu1 %v10378_v16  ;;  %16899 = vst [vmem:[#allocation10_spill] sm:$0xff] %v10392_v48  ;;  %v16901_v16 = vld [vmem:[#allocation90_spill] sm:$0xff] }
 0x273   :  { %1649 = vmatpush1.bf16.msra.mxu0 %v16896_v34  ;;  %v10400_v34 = vld [vmem:[%s15772_s3 + $0x50] ss:$8 sps:$4 sm:$0xff]  }
 0x274   :  { %1650 = vmatprep.subr.bf16.mxu0 %v16897_v19  ;;  %16902 = vst [vmem:[#allocation11_spill] sm:$0xff] %v10400_v34  ;;  %v10406_v19 = vld [vmem:[%s15772_s3 + $0x44] ss:$8 sps:$4 sm:$0xff]  }
 0x275   :  { %1832 = vmatpush1.bf16.msra.mxu1 %v10386_v41  ;;  %16903 = vst [vmem:[#allocation12_spill] sm:$0xff] %v10406_v19  ;;  %v16904_v41 = vld [vmem:[#allocation91_spill] sm:$0xff] }
 0x276   :  { %1833 = vmatprep.subr.bf16.mxu1 %v10392_v48  ;;  %v16905_v48 = vld [vmem:[#allocation92_spill] sm:$0xff] }
 0x277   :  { %1651 = vmatpush1.bf16.msra.mxu0 %v16900_v29  ;;  %v10414_v29 = vld [vmem:[%s15772_s3 + $0x40] ss:$8 sps:$4 sm:$0xff]  }
 0x278   :  { %1652 = vmatprep.subr.bf16.mxu0 %v16901_v16  ;;  %16906 = vst [vmem:[#allocation13_spill] sm:$0xff] %v10414_v29  ;;  %v10420_v16 = vld [vmem:[%s15772_s3 + $0x34] ss:$8 sps:$4 sm:$0xff]  }
 0x279   :  { %1834 = vmatpush1.bf16.msra.mxu1 %v10400_v34  ;;  %16907 = vst [vmem:[#allocation14_spill] sm:$0xff] %v10420_v16  ;;  %v16908_v34 = vld [vmem:[#allocation93_spill] sm:$0xff] }
 0x27a   :  { %1835 = vmatprep.subr.bf16.mxu1 %v10406_v19  ;;  %v16909_v19 = vld [vmem:[#allocation94_spill] sm:$0xff] }
 0x27b   :  { %1653 = vmatpush1.bf16.msra.mxu0 %v16904_v41  ;;  %v10434_v41 = vld [vmem:[%s15772_s3 + $0x24] ss:$8 sps:$4 sm:$0xff]  }
 0x27c   :  { %1654 = vmatprep.subr.bf16.mxu0 %v16905_v48  ;;  %v10428_v48 = vld [vmem:[%s15772_s3 + $0x30] ss:$8 sps:$4 sm:$0xff]   ;;  %16911 = vst [vmem:[#allocation16_spill] sm:$0xff] %v10434_v41 }
 0x27d   :  { %1836 = vmatpush1.bf16.msra.mxu1 %v10414_v29  ;;  %16910 = vst [vmem:[#allocation15_spill] sm:$0xff] %v10428_v48  ;;  %v16912_v29 = vld [vmem:[#allocation95_spill] sm:$0xff] }
 0x27e   :  { %1837 = vmatprep.subr.bf16.mxu1 %v10420_v16  ;;  %v16913_v16 = vld [vmem:[#allocation96_spill] sm:$0xff] }
 0x27f   :  { %1655 = vmatpush1.bf16.msra.mxu0 %v16908_v34  ;;  %v10442_v34 = vld [vmem:[%s15772_s3 + $0x20] ss:$8 sps:$4 sm:$0xff]  }
 0x280   :  { %1656 = vmatprep.subr.bf16.mxu0 %v16909_v19  ;;  %16914 = vst [vmem:[#allocation17_spill] sm:$0xff] %v10442_v34  ;;  %v10448_v19 = vld [vmem:[%s15772_s3 + $0x14] ss:$8 sps:$4 sm:$0xff]  }
 0x281   :  { %1838 = vmatpush1.bf16.msra.mxu1 %v10428_v48  ;;  %16915 = vst [vmem:[#allocation18_spill] sm:$0xff] %v10448_v19  ;;  %v16916_v48 = vld [vmem:[#allocation97_spill] sm:$0xff] }
 0x282   :  { %1839 = vmatprep.subr.bf16.mxu1 %v10434_v41  ;;  %v16917_v41 = vld [vmem:[#allocation98_spill] sm:$0xff] }
 0x283   :  { %1657 = vmatpush1.bf16.msra.mxu0 %v16912_v29  ;;  %v10456_v29 = vld [vmem:[%s15772_s3 + $0x10] ss:$8 sps:$4 sm:$0xff]  }
 0x284   :  { %1658 = vmatprep.subr.bf16.mxu0 %v16913_v16  ;;  %16918 = vst [vmem:[#allocation19_spill] sm:$0xff] %v10456_v29  ;;  %v10462_v16 = vld [vmem:[%s15772_s3 + $0x4] ss:$8 sps:$4 sm:$0xff]  }
 0x285   :  { %1840 = vmatpush1.bf16.msra.mxu1 %v10442_v34  ;;  %16919 = vst [vmem:[#allocation20_spill] sm:$0xff] %v10462_v16  ;;  %v16920_v34 = vld [vmem:[#allocation100_spill] sm:$0xff] }
 0x286   :  { %1841 = vmatprep.subr.bf16.mxu1 %v10448_v19  ;;  %v16921_v19 = vld [vmem:[#allocation101_spill] sm:$0xff] }
 0x287   :  { %1659 = vmatpush1.bf16.msra.mxu0 %v16916_v48  ;;  %v10470_v48 = vld [vmem:[%s15772_s3] ss:$8 sps:$4 sm:$0xff]  }
 0x288   :  { %1660 = vmatprep.subr.bf16.mxu0 %v16917_v41  ;;  %16922 = vst [vmem:[#allocation21_spill] sm:$0xff] %v10470_v48  ;;  %v10476_v41 = vld [vmem:[%s15772_s3 + $0xf4] ss:$8 sps:$4 sm:$0xff]  }
 0x289   :  { %1842 = vmatpush1.bf16.msra.mxu1 %v10456_v29  ;;  %16923 = vst [vmem:[#allocation22_spill] sm:$0xff] %v10476_v41 }
 0x28a   :  { %1843 = vmatprep.subr.bf16.mxu1 %v10462_v16 }
 0x28b   :  { %1661 = vmatpush1.bf16.msra.mxu0 %v16920_v34  ;;  %v10484_v34 = vld [vmem:[%s15772_s3 + $0xf0] ss:$8 sps:$4 sm:$0xff]  }
 0x28c   :  { %1674 = vmatprep.subr.bf16.mxu0 %v16921_v19  ;;  %16924 = vst [vmem:[#allocation23_spill] sm:$0xff] %v10484_v34  ;;  %v10490_v19 = vld [vmem:[%s15772_s3 + $0xe4] ss:$8 sps:$4 sm:$0xff]  }
 0x28d   :  { %1844 = vmatpush1.bf16.msra.mxu1 %v10470_v48  ;;  %16925 = vst [vmem:[#allocation24_spill] sm:$0xff] %v10490_v19  ;;  %v16926_v48 = vld [vmem:[#allocation102_spill] sm:$0xff] }
 0x28e   :  { %1845 = vmatprep.subr.bf16.mxu1 %v10476_v41  ;;  %v16927_v41 = vld [vmem:[#allocation103_spill] sm:$0xff] }
 0x28f   :  { %1675 = vmatpush2.bf16.msra.mxu0 %v9905_v57  ;;  %v10498_v57 = vld [vmem:[%s15772_s3 + $0xe0] ss:$8 sps:$4 sm:$0xff]  }
 0x290   :  { %1676 = vmatprep.subr.bf16.mxu0 %v9911_v32  ;;  %16928 = vst [vmem:[#allocation25_spill] sm:$0xff] %v10498_v57  ;;  %v10504_v32 = vld [vmem:[%s15772_s3 + $0xd4] ss:$8 sps:$4 sm:$0xff]  }
 0x291   :  { %1846 = vmatpush2.bf16.msra.mxu1 %v10484_v34  ;;  %16929 = vst [vmem:[#allocation26_spill] sm:$0xff] %v10504_v32 }
 0x292   :  { %1847 = vmatprep.subr.bf16.mxu1 %v10490_v19 }
 0x293   :  { %1677 = vmatpush2.bf16.msra.mxu0 %v16926_v48 }
 0x294   :  { %1691 = vmatprep.subr.bf16.mxu0 %v16927_v41 }
 0x295   :  { %1848 = vmatpush2.bf16.msra.mxu1 %v10498_v57 }
 0x296   :  { %1849 = vmatprep.subr.bf16.mxu1 %v10504_v32 }
 0x298   :  { %v1542_v34 = vpop.f32.mrf.mxu1 }
 0x299   :  { %v1543_v19 = vadd.f32 %v1542_v34, %v9935_v33  ;;  %1850 = vmatpush2.bf16.msra.mxu1 %v9367_v49 }
 0x29a   :  { %v1544_v48 = vpop.f32.mrf.mxu1  ;;  %1851 = vmatprep.subr.bf16.mxu1 %v9455_v26 }
 0x29b   :  { %v1545_v41 = vadd.f32 %v1544_v48, %v9939_v35  ;;  %8117 = vtanh.f32 %v1543_v19  ;;  %v10618_v48 = vld [vmem:[%s15770_s1 + $0x100] ss:$24 sps:$4 sm:$0xff]  }
 0x29c   :  { %v1546_v16 = vpop.f32.mrf.mxu1  ;;  %16941 = vst [vmem:[#allocation28_spill] sm:$0xff] %v10618_v48 }
 0x29d   :  { %8119 = vtanh.f32 %v1545_v41  ;;  %1852 = vmatpush2.bf16.msra.mxu1 %v9466_v3  ;;  %v16930_v3 = vld [vmem:[#allocation106_spill] sm:$0xff]  ;;  %v10624_v41 = vld [vmem:[%s15770_s1 + $0xd4] ss:$24 sps:$4 sm:$0xff]  }
 0x29e   :  { %v1547_v57 = vpop.f32.mrf.mxu1  ;;  %1853 = vmatprep.subr.bf16.mxu1 %v16796_v30  ;;  %v10570_v30 = vld [vmem:[%s15770_s1 + $0x184] ss:$24 sps:$4 sm:$0xff]   ;;  %16942 = vst [vmem:[#allocation29_spill] sm:$0xff] %v10624_v41 }
 0x2a1   :  { %1854 = vmatpush2.bf16.msra.mxu1 %v16799_v40  ;;  %v10576_v40 = vld [vmem:[%s15770_s1 + $0x180] ss:$24 sps:$4 sm:$0xff]  }
 0x2a2   :  { %1855 = vmatprep.subr.bf16.mxu1 %v16800_v42  ;;  %v10582_v42 = vld [vmem:[%s15770_s1 + $0x164] ss:$24 sps:$4 sm:$0xff]  }
 0x2a5   :  { %1856 = vmatpush2.bf16.msra.mxu1 %v16803_v53  ;;  %v10589_v53 = vld [vmem:[%s15770_s1 + $0x160] ss:$24 sps:$4 sm:$0xff]  }
 0x2a6   :  { %1857 = vmatprep.subr.bf16.mxu1 %v16804_v5  ;;  %v10596_v5 = vld [vmem:[%s15770_s1 + $0x134] ss:$24 sps:$4 sm:$0xff]  }
 0x2a8   :  { %v8118_v49 = vpop.eup %8117 }
 0x2a9   :  { %1858 = vmatpush2.bf16.msra.mxu1 %v16807_v37  ;;  %v1559_v34 = vpack.c.bf16 %v8118_v49, %v8118_v49  ;;  %v10630_v49 = vld [vmem:[%s15770_s1 + $0xd0] ss:$24 sps:$4 sm:$0xff]  }
 0x2aa   :  { %v8120_v26 = vpop.eup %8119  ;;  %1859 = vmatprep.subr.bf16.mxu1 %v16808_v39  ;;  %16943 = vst [vmem:[#allocation30_spill] sm:$0xff] %v10630_v49 }
 0x2ab   :  { %v1560_v16 = vpack.c.bf16 %v8120_v26, %v8120_v26  ;;  %v10636_v26 = vld [vmem:[%s15770_s1 + $0xa4] ss:$24 sps:$4 sm:$0xff]  }
 0x2ac   :  { %16944 = vst [vmem:[#allocation31_spill] sm:$0xff] %v10636_v26 }
 0x2ad   :  { %6670 = vmatprep.mubr.msk.bf16.mxu0 %vm1295_vm0, %v1560_v16  ;;  %1860 = vmatpush2.bf16.msra.mxu1 %v16811_v45  ;;  %v10606_v45 = vld [vmem:[%s15770_s1 + $0x130] ss:$24 sps:$4 sm:$0xff]   ;;  %v10642_v16 = vld [vmem:[%s15770_s1 + $0xa0] ss:$24 sps:$4 sm:$0xff]  }
 0x2ae   :  { %1679 = vmatmul.mubr.bf16.vlgmr.msra.gmra.mxu0 %v1559_v34  ;;  %1911 = vmatprep.subr.bf16.mxu1 %v16812_v4  ;;  %v10612_v4 = vld [vmem:[%s15770_s1 + $0x104] ss:$24 sps:$4 sm:$0xff]   ;;  %16945 = vst [vmem:[#allocation32_spill] sm:$0xff] %v10642_v16  ;;  %v10648_v34 = vld [vmem:[%s15770_s1 + $0x74] ss:$24 sps:$4 sm:$0xff]  }
 0x2af   :  { %1692 = vmatpush1.bf16.msra.mxu0 %v9959_v50  ;;  %1723 = vmatprep.mubr.bf16.mxu0 %v10351_v31  ;;  %v16931_v50 = vld [vmem:[#allocation107_spill] sm:$0xff]  ;;  %16940 = vst [vmem:[#allocation27_spill] sm:$0xff] %v10612_v4  ;;  %16946 = vst [vmem:[#allocation33_spill] sm:$0xff] %v10648_v34 }
 0x2b0   :  { %1693 = vmatprep.subr.bf16.mxu0 %v9966_v52  ;;  %v16932_v52 = vld [vmem:[#allocation108_spill] sm:$0xff] }
 0x2b3   :  { %1694 = vmatpush1.bf16.msra.mxu0 %v9975_v54  ;;  %v16933_v54 = vld [vmem:[#allocation109_spill] sm:$0xff] }
 0x2b4   :  { %1695 = vmatprep.subr.bf16.mxu0 %v9981_v56  ;;  %v16934_v56 = vld [vmem:[#allocation110_spill] sm:$0xff] }
 0x2b7   :  { %1696 = vmatpush1.bf16.msra.mxu0 %v9989_v46  ;;  %v16935_v46 = vld [vmem:[#allocation111_spill] sm:$0xff] }
 0x2b8   :  { %1697 = vmatprep.subr.bf16.mxu0 %v9995_v58  ;;  %v16936_v58 = vld [vmem:[#allocation112_spill] sm:$0xff] }
 0x2bb   :  { %1698 = vmatpush1.bf16.msra.mxu0 %v10003_v60  ;;  %v16937_v60 = vld [vmem:[#allocation113_spill] sm:$0xff] }
 0x2bc   :  { %1699 = vmatprep.subr.bf16.mxu0 %v10009_v62  ;;  %v16938_v62 = vld [vmem:[#allocation45_spill] sm:$0xff] }
 0x2bf   :  { %1700 = vmatpush1.bf16.msra.mxu0 %v10017_v0  ;;  %v16939_v0 = vld [vmem:[#allocation114_spill] sm:$0xff] }
 0x2c0   :  { %1701 = vmatprep.subr.bf16.mxu0 %v10023_v6  ;;  %v10552_v6 = vld [vmem:[%s15770_s1 + $0x1e0] ss:$24 sps:$4 sm:$0xff]  }
 0x2c3   :  { %1702 = vmatpush1.bf16.msra.mxu0 %v10031_v7  ;;  %v10558_v7 = vld [vmem:[%s15770_s1 + $0x1b4] ss:$24 sps:$4 sm:$0xff]  }
 0x2c4   :  { %1703 = vmatprep.subr.bf16.mxu0 %v10037_v8  ;;  %v10564_v8 = vld [vmem:[%s15770_s1 + $0x1b0] ss:$24 sps:$4 sm:$0xff]  }
 0x2c7   :  { %1704 = vmatpush1.bf16.msra.mxu0 %v10045_v9 }
 0x2c8   :  { %1705 = vmatprep.subr.bf16.mxu0 %v10051_v10 }
 0x2cb   :  { %1706 = vmatpush1.bf16.msra.mxu0 %v10059_v11 }
 0x2cc   :  { %1707 = vmatprep.subr.bf16.mxu0 %v10065_v12 }
 0x2cf   :  { %1708 = vmatpush2.bf16.msra.mxu0 %v16930_v3 }
 0x2d0   :  { %1709 = vmatprep.subr.bf16.mxu0 %v16931_v50 }
 0x2d3   :  { %1710 = vmatpush2.bf16.msra.mxu0 %v16932_v52 }
 0x2d4   :  { %1711 = vmatprep.subr.bf16.mxu0 %v16933_v54 }
 0x2d7   :  { %1712 = vmatpush2.bf16.msra.mxu0 %v16934_v56 }
 0x2d8   :  { %1713 = vmatprep.subr.bf16.mxu0 %v16935_v46 }
 0x2db   :  { %1714 = vmatpush2.bf16.msra.mxu0 %v16936_v58 }
 0x2dc   :  { %1715 = vmatprep.subr.bf16.mxu0 %v16937_v60 }
 0x2df   :  { %1716 = vmatpush2.bf16.msra.mxu0 %v16938_v62 }
 0x2e0   :  { %1717 = vmatprep.subr.bf16.mxu0 %v16939_v0 }
 0x2e3   :  { %1718 = vmatpush2.bf16.msra.mxu0 %v10552_v6 }
 0x2e4   :  { %1719 = vmatprep.subr.bf16.mxu0 %v10558_v7 }
 0x2e7   :  { %1720 = vmatpush2.bf16.msra.mxu0 %v10564_v8 }
 0x2e8   :  { %1721 = vmatprep.subr.bf16.mxu0 %v10570_v30 }
 0x2eb   :  { %1722 = vmatpush2.bf16.msra.mxu0 %v10576_v40 }
 0x2ec   :  { %1773 = vmatprep.subr.bf16.mxu0 %v10582_v42 }
 0x2ee   :  { %1724 = vmatmul.mubr.bf16.vlgmr.msra.gmra.mxu0 %v9735_v55 }
 0x2ef   :  { %1774 = vmatpush1.bf16.msra.mxu0 %v10589_v53  ;;  %1805 = vmatprep.mubr.bf16.mxu0 %v10351_v31 }
 0x2f0   :  { %1775 = vmatprep.subr.bf16.mxu0 %v10596_v5  ;;  %v10599_v37 = vpop.f32.mrf.mxu1 }
 0x2f2   :  { %v10601_v39 = vpop.f32.mrf.mxu1 }
 0x2f3   :  { %1776 = vmatpush1.bf16.msra.mxu0 %v10606_v45 }
 0x2f4   :  { %1777 = vmatprep.subr.bf16.mxu0 %v10612_v4  ;;  %v1643_v19 = vpop.f32.mrf.mxu1 }
 0x2f5   :  { %v10654_v19 = vld [vmem:[%s15770_s1 + $0x70] ss:$24 sps:$4 sm:$0xff]  }
 0x2f6   :  { %v1644_v57 = vpop.f32.mrf.mxu1  ;;  %16947 = vst [vmem:[#allocation34_spill] sm:$0xff] %v10654_v19 }
 0x2f7   :  { %1778 = vmatpush1.bf16.msra.mxu0 %v10618_v48  ;;  %v10660_v57 = vld [vmem:[%s15770_s1 + $0x44] ss:$24 sps:$4 sm:$0xff]  }
 0x2f8   :  { %1779 = vmatprep.subr.bf16.mxu0 %v10624_v41  ;;  %16948 = vst [vmem:[#allocation35_spill] sm:$0xff] %v10660_v57  ;;  %v10805_v41 = vld [vmem:[%s15772_s3 + $0x160] ss:$8 sps:$4 sm:$0xff]  }
 0x2f9   :  { %16971 = vst [vmem:[#allocation67_spill] sm:$0xff] %v10805_v41 }
 0x2fb   :  { %1780 = vmatpush1.bf16.msra.mxu0 %v10630_v49  ;;  %v10796_v49 = vld [vmem:[%s15772_s3 + $0x164] ss:$8 sps:$4 sm:$0xff]  }
 0x2fc   :  { %1781 = vmatprep.subr.bf16.mxu0 %v10636_v26  ;;  %16970 = vst [vmem:[#allocation66_spill] sm:$0xff] %v10796_v49 }
 0x2ff   :  { %1782 = vmatpush1.bf16.msra.mxu0 %v10642_v16  ;;  %v10666_v16 = vld [vmem:[%s15770_s1 + $0x40] ss:$24 sps:$4 sm:$0xff]  }
 0x300   :  { %1783 = vmatprep.subr.bf16.mxu0 %v10648_v34  ;;  %16949 = vst [vmem:[#allocation36_spill] sm:$0xff] %v10666_v16  ;;  %v10672_v34 = vld [vmem:[%s15770_s1 + $0x14] ss:$24 sps:$4 sm:$0xff]  }
 0x301   :  { %16950 = vst [vmem:[#allocation37_spill] sm:$0xff] %v10672_v34 }
 0x303   :  { %1784 = vmatpush1.bf16.msra.mxu0 %v10654_v19  ;;  %v10678_v19 = vld [vmem:[%s15770_s1 + $0x10] ss:$24 sps:$4 sm:$0xff]  }
 0x304   :  { %1785 = vmatprep.subr.bf16.mxu0 %v10660_v57  ;;  %16951 = vst [vmem:[#allocation38_spill] sm:$0xff] %v10678_v19  ;;  %v10684_v57 = vld [vmem:[%s15770_s1 + $0x2e4] ss:$24 sps:$4 sm:$0xff]  }
 0x305   :  { %16952 = vst [vmem:[#allocation39_spill] sm:$0xff] %v10684_v57 }
 0x307   :  { %1786 = vmatpush1.bf16.msra.mxu0 %v10666_v16  ;;  %v10690_v16 = vld [vmem:[%s15770_s1 + $0x2e0] ss:$24 sps:$4 sm:$0xff]  }
 0x308   :  { %1787 = vmatprep.subr.bf16.mxu0 %v10672_v34  ;;  %16953 = vst [vmem:[#allocation40_spill] sm:$0xff] %v10690_v16  ;;  %v10696_v34 = vld [vmem:[%s15770_s1 + $0x2b4] ss:$24 sps:$4 sm:$0xff]  }
 0x309   :  { %16954 = vst [vmem:[#allocation41_spill] sm:$0xff] %v10696_v34 }
 0x30b   :  { %1788 = vmatpush1.bf16.msra.mxu0 %v10678_v19  ;;  %v10702_v19 = vld [vmem:[%s15770_s1 + $0x2b0] ss:$24 sps:$4 sm:$0xff]  }
 0x30c   :  { %1789 = vmatprep.subr.bf16.mxu0 %v10684_v57  ;;  %16955 = vst [vmem:[#allocation42_spill] sm:$0xff] %v10702_v19  ;;  %v10708_v57 = vld [vmem:[%s15770_s1 + $0x284] ss:$24 sps:$4 sm:$0xff]  }
 0x30d   :  { %16956 = vst [vmem:[#allocation43_spill] sm:$0xff] %v10708_v57 }
 0x30f   :  { %1790 = vmatpush2.bf16.msra.mxu0 %v10690_v16  ;;  %v10714_v16 = vld [vmem:[%s15770_s1 + $0x280] ss:$24 sps:$4 sm:$0xff]  }
 0x310   :  { %1791 = vmatprep.subr.bf16.mxu0 %v10696_v34  ;;  %16957 = vst [vmem:[#allocation44_spill] sm:$0xff] %v10714_v16  ;;  %v10720_v34 = vld [vmem:[%s15770_s1 + $0x254] ss:$24 sps:$4 sm:$0xff]  }
 0x311   :  { %16958 = vst [vmem:[#allocation46_spill] sm:$0xff] %v10720_v34 }
 0x313   :  { %1792 = vmatpush2.bf16.msra.mxu0 %v10702_v19  ;;  %v10726_v19 = vld [vmem:[%s15770_s1 + $0x250] ss:$24 sps:$4 sm:$0xff]  }
 0x314   :  { %1793 = vmatprep.subr.bf16.mxu0 %v10708_v57  ;;  %16959 = vst [vmem:[#allocation48_spill] sm:$0xff] %v10726_v19  ;;  %v10732_v57 = vld [vmem:[%s15770_s1 + $0x224] ss:$24 sps:$4 sm:$0xff]  }
 0x315   :  { %16960 = vst [vmem:[#allocation50_spill] sm:$0xff] %v10732_v57 }
 0x317   :  { %1794 = vmatpush2.bf16.msra.mxu0 %v10714_v16  ;;  %v10738_v16 = vld [vmem:[%s15770_s1 + $0x220] ss:$24 sps:$4 sm:$0xff]  }
 0x318   :  { %1795 = vmatprep.subr.bf16.mxu0 %v10720_v34  ;;  %16961 = vst [vmem:[#allocation52_spill] sm:$0xff] %v10738_v16  ;;  %v10744_v34 = vld [vmem:[%s15770_s1 + $0x1f4] ss:$24 sps:$4 sm:$0xff]  }
 0x319   :  { %16962 = vst [vmem:[#allocation54_spill] sm:$0xff] %v10744_v34 }
 0x31b   :  { %1796 = vmatpush2.bf16.msra.mxu0 %v10726_v19  ;;  %v10750_v19 = vld [vmem:[%s15770_s1 + $0x1f0] ss:$24 sps:$4 sm:$0xff]  }
 0x31c   :  { %1797 = vmatprep.subr.bf16.mxu0 %v10732_v57  ;;  %16963 = vst [vmem:[#allocation56_spill] sm:$0xff] %v10750_v19  ;;  %v10756_v57 = vld [vmem:[%s15770_s1 + $0x1c4] ss:$24 sps:$4 sm:$0xff]  }
 0x31d   :  { %16964 = vst [vmem:[#allocation58_spill] sm:$0xff] %v10756_v57 }
 0x31f   :  { %1798 = vmatpush2.bf16.msra.mxu0 %v10738_v16  ;;  %v10762_v16 = vld [vmem:[%s15770_s1 + $0x1c0] ss:$24 sps:$4 sm:$0xff]  }
 0x320   :  { %1799 = vmatprep.subr.bf16.mxu0 %v10744_v34  ;;  %16965 = vst [vmem:[#allocation60_spill] sm:$0xff] %v10762_v16  ;;  %v10768_v34 = vld [vmem:[%s15770_s1 + $0x194] ss:$24 sps:$4 sm:$0xff]  }
 0x321   :  { %16966 = vst [vmem:[#allocation61_spill] sm:$0xff] %v10768_v34 }
 0x323   :  { %1800 = vmatpush2.bf16.msra.mxu0 %v10750_v19  ;;  %v10774_v19 = vld [vmem:[%s15770_s1 + $0x190] ss:$24 sps:$4 sm:$0xff]  }
 0x324   :  { %1801 = vmatprep.subr.bf16.mxu0 %v10756_v57  ;;  %16967 = vst [vmem:[#allocation63_spill] sm:$0xff] %v10774_v19  ;;  %v10780_v57 = vld [vmem:[%s15772_s3 + $0x174] ss:$8 sps:$4 sm:$0xff]  }
 0x325   :  { %16968 = vst [vmem:[#allocation64_spill] sm:$0xff] %v10780_v57 }
 0x327   :  { %1802 = vmatpush2.bf16.msra.mxu0 %v10762_v16 }
 0x328   :  { %1803 = vmatprep.subr.bf16.mxu0 %v10768_v34  ;;  %v10790_v34 = vld [vmem:[%s15772_s3 + $0x170] ss:$8 sps:$4 sm:$0xff]  }
 0x329   :  { %16969 = vst [vmem:[#allocation65_spill] sm:$0xff] %v10790_v34 }
 0x32b   :  { %1804 = vmatpush2.bf16.msra.mxu0 %v10774_v19 }
 0x32c   :  { %1870 = vmatprep.subr.bf16.mxu0 %v10780_v57 }
 0x32e   :  { %1806 = vmatmul.mubr.bf16.vlgmr.msra.gmra.mxu0 %v9735_v55  ;;  %v1598_v16 = vpop.f32.mrf.mxu0 }
 0x32f   :  { %v10785_v26 = vadd.f32 %v10599_v37, %v1598_v16  ;;  %1871 = vmatpush1.bf16.msra.mxu0 %v10790_v34 }
 0x330   :  { %v1600_v19 = vpop.f32.mrf.mxu0  ;;  %1872 = vmatprep.subr.bf16.mxu0 %v10796_v49  ;;  %v1766_v55 = vpop.f32.mrf.mxu1  ;;  %v10812_v49 = vld [vmem:[%s15772_s3 + $0x154] ss:$8 sps:$4 sm:$0xff]  }
 0x331   :  { %v10800_v57 = vadd.f32 %v10601_v39, %v1600_v19  ;;  %16972 = vst [vmem:[#allocation68_spill] sm:$0xff] %v10812_v49 }
 0x332   :  { %v1602_v37 = vpop.f32.mrf.mxu0  ;;  %v1768_v16 = vpop.f32.mrf.mxu1 }
 0x333   :  { %1873 = vmatpush1.bf16.msra.mxu0 %v10805_v41  ;;  %v1769_v34 = vadd.f32 %v1768_v16, %v9716_v63  ;;  %v10818_v37 = vld [vmem:[%s15772_s3 + $0x150] ss:$8 sps:$4 sm:$0xff]   ;;  %v10830_v16 = vld [vmem:[%s15772_s3 + $0x140] ss:$8 sps:$4 sm:$0xff]  }
 0x334   :  { %v1603_v48 = vpop.f32.mrf.mxu0  ;;  %1874 = vmatprep.subr.bf16.mxu0 %v10812_v49  ;;  %v1770_v39 = vpop.f32.mrf.mxu1  ;;  %16973 = vst [vmem:[#allocation69_spill] sm:$0xff] %v10818_v37  ;;  %16975 = vst [vmem:[#allocation71_spill] sm:$0xff] %v10830_v16 }
 0x335   :  { %8121 = vtanh.f32 %v1769_v34  ;;  %v10824_v48 = vld [vmem:[%s15772_s3 + $0x144] ss:$8 sps:$4 sm:$0xff]   ;;  %v10836_v34 = vld [vmem:[%s15772_s3 + $0x134] ss:$8 sps:$4 sm:$0xff]   ;;  %v10842_v39 = vld [vmem:[%s15772_s3 + $0x130] ss:$8 sps:$4 sm:$0xff]  }
 0x336   :  { %v1771_v19 = vpop.f32.mrf.mxu1  ;;  %16974 = vst [vmem:[#allocation70_spill] sm:$0xff] %v10824_v48  ;;  %16976 = vst [vmem:[#allocation72_spill] sm:$0xff] %v10836_v34 }
 0x337   :  { %1875 = vmatpush1.bf16.msra.mxu0 %v10818_v37  ;;  %16977 = vst [vmem:[#allocation73_spill] sm:$0xff] %v10842_v39  ;;  %v10848_v19 = vld [vmem:[%s15772_s3 + $0x124] ss:$8 sps:$4 sm:$0xff]  }
 0x338   :  { %1876 = vmatprep.subr.bf16.mxu0 %v10824_v48  ;;  %16978 = vst [vmem:[#allocation74_spill] sm:$0xff] %v10848_v19  ;;  %v10854_v48 = vld [vmem:[%s15772_s3 + $0x120] ss:$8 sps:$4 sm:$0xff]  }
 0x339   :  { %16979 = vst [vmem:[#allocation75_spill] sm:$0xff] %v10854_v48 }
 0x33b   :  { %1877 = vmatpush1.bf16.msra.mxu0 %v10830_v16 }
 0x33c   :  { %1878 = vmatprep.subr.bf16.mxu0 %v10836_v34 }
 0x33f   :  { %1879 = vmatpush1.bf16.msra.mxu0 %v10842_v39  ;;  %v10860_v39 = vld [vmem:[%s15772_s3 + $0x114] ss:$8 sps:$4 sm:$0xff]  }
 0x340   :  { %1880 = vmatprep.subr.bf16.mxu0 %v10848_v19  ;;  %16980 = vst [vmem:[#allocation76_spill] sm:$0xff] %v10860_v39  ;;  %v10866_v19 = vld [vmem:[%s15772_s3 + $0x110] ss:$8 sps:$4 sm:$0xff]  }
 0x341   :  { %16981 = vst [vmem:[#allocation77_spill] sm:$0xff] %v10866_v19 }
 0x342   :  { %v8122_v16 = vpop.eup %8121 }
 0x343   :  { %1881 = vmatpush1.bf16.msra.mxu0 %v10854_v48  ;;  %v1823_v34 = vpack.c.bf16 %v8122_v16, %v8122_v16  ;;  %v10872_v48 = vld [vmem:[%s15772_s3 + $0x104] ss:$8 sps:$4 sm:$0xff]   ;;  %v10878_v16 = vld [vmem:[%s15772_s3 + $0x100] ss:$8 sps:$4 sm:$0xff]  }
 0x344   :  { %1882 = vmatprep.subr.bf16.mxu0 %v10860_v39  ;;  %16982 = vst [vmem:[#allocation78_spill] sm:$0xff] %v10872_v48  ;;  %16983 = vst [vmem:[#allocation79_spill] sm:$0xff] %v10878_v16 }
 0x345   :  { %1902 = vmatprep.mubr.bf16.mxu0 %v1823_v34  ;;  %v10884_v34 = vld [vmem:[%s15772_s3 + $0x1f4] ss:$8 sps:$4 sm:$0xff]  }
 0x346   :  { %16984 = vst [vmem:[#allocation99_spill] sm:$0xff] %v10884_v34 }
 0x347   :  { %1883 = vmatpush1.bf16.msra.mxu0 %v10866_v19  ;;  %v10890_v19 = vld [vmem:[%s15772_s3 + $0x1f0] ss:$8 sps:$4 sm:$0xff]  }
 0x348   :  { %1884 = vmatprep.subr.bf16.mxu0 %v10872_v48  ;;  %16985 = vst [vmem:[#allocation85_spill] sm:$0xff] %v10890_v19  ;;  %v10896_v48 = vld [vmem:[%s15772_s3 + $0x1e4] ss:$8 sps:$4 sm:$0xff]  }
 0x349   :  { %16986 = vst [vmem:[#allocation86_spill] sm:$0xff] %v10896_v48 }
 0x34b   :  { %1885 = vmatpush1.bf16.msra.mxu0 %v10878_v16  ;;  %v10902_v16 = vld [vmem:[%s15772_s3 + $0x1e0] ss:$8 sps:$4 sm:$0xff]  }
 0x34c   :  { %1886 = vmatprep.subr.bf16.mxu0 %v10884_v34  ;;  %16987 = vst [vmem:[#allocation87_spill] sm:$0xff] %v10902_v16  ;;  %v10908_v34 = vld [vmem:[%s15772_s3 + $0x1d4] ss:$8 sps:$4 sm:$0xff]  }
 0x34d   :  { %16988 = vst [vmem:[#allocation88_spill] sm:$0xff] %v10908_v34 }
 0x34f   :  { %1887 = vmatpush2.bf16.msra.mxu0 %v10890_v19  ;;  %v1767_v19 = vadd.f32 %v1766_v55, %v9708_v14  ;;  %v10933_v55 = vld [vmem:[%s15772_s3 + $0x1b4] ss:$8 sps:$4 sm:$0xff]   ;;  %v16999_v14 = vld [vmem:[#allocation47_spill] sm:$0xff] }
 0x350   :  { %1888 = vmatprep.subr.bf16.mxu0 %v10896_v48  ;;  %v10915_v48 = vld [vmem:[%s15772_s3 + $0x1d0] ss:$8 sps:$4 sm:$0xff]   ;;  %16992 = vst [vmem:[#allocation92_spill] sm:$0xff] %v10933_v55 }
 0x351   :  { %16989 = vst [vmem:[#allocation89_spill] sm:$0xff] %v10915_v48  ;;  %8123 = vtanh.f32 %v1767_v19  ;;  %v10945_v19 = vld [vmem:[%s15772_s3 + $0x1a4] ss:$8 sps:$4 sm:$0xff]  }
 0x352   :  { %16994 = vst [vmem:[#allocation94_spill] sm:$0xff] %v10945_v19 }
 0x353   :  { %1889 = vmatpush2.bf16.msra.mxu0 %v10902_v16  ;;  %v10921_v16 = vld [vmem:[%s15772_s3 + $0x1c4] ss:$8 sps:$4 sm:$0xff]  }
 0x354   :  { %1890 = vmatprep.subr.bf16.mxu0 %v10908_v34  ;;  %16990 = vst [vmem:[#allocation90_spill] sm:$0xff] %v10921_v16  ;;  %v10927_v34 = vld [vmem:[%s15772_s3 + $0x1c0] ss:$8 sps:$4 sm:$0xff]  }
 0x355   :  { %16991 = vst [vmem:[#allocation91_spill] sm:$0xff] %v10927_v34 }
 0x357   :  { %1891 = vmatpush2.bf16.msra.mxu0 %v10915_v48  ;;  %v10939_v48 = vld [vmem:[%s15772_s3 + $0x1b0] ss:$8 sps:$4 sm:$0xff]  }
 0x358   :  { %1892 = vmatprep.subr.bf16.mxu0 %v10921_v16  ;;  %16993 = vst [vmem:[#allocation93_spill] sm:$0xff] %v10939_v48  ;;  %v10963_v16 = vld [vmem:[%s15772_s3 + $0x190] ss:$8 sps:$4 sm:$0xff]  }
 0x359   :  { %16997 = vst [vmem:[#allocation97_spill] sm:$0xff] %v10963_v16 }
 0x35b   :  { %1893 = vmatpush2.bf16.msra.mxu0 %v10927_v34  ;;  %v10951_v34 = vld [vmem:[%s15772_s3 + $0x1a0] ss:$8 sps:$4 sm:$0xff]  }
 0x35c   :  { %1894 = vmatprep.subr.bf16.mxu0 %v10933_v55  ;;  %16995 = vst [vmem:[#allocation95_spill] sm:$0xff] %v10951_v34  ;;  %v10957_v55 = vld [vmem:[%s15772_s3 + $0x194] ss:$8 sps:$4 sm:$0xff]  }
 0x35d   :  { %16996 = vst [vmem:[#allocation96_spill] sm:$0xff] %v10957_v55 }
 0x35f   :  { %1895 = vmatpush2.bf16.msra.mxu0 %v10939_v48  ;;  %v8124_v48 = vpop.eup %8123 }
 0x360   :  { %1896 = vmatprep.subr.bf16.mxu0 %v10945_v19  ;;  %v10969_v19 = vld [vmem:[%s15772_s3 + $0x184] ss:$8 sps:$4 sm:$0xff]  }
 0x361   :  { %16998 = vst [vmem:[#allocation98_spill] sm:$0xff] %v10969_v19 }
 0x363   :  { %1897 = vmatpush2.bf16.msra.mxu0 %v10951_v34  ;;  %v1822_v34 = vpack.c.bf16 %v8124_v48, %v8124_v48 }
 0x364   :  { %1898 = vmatprep.subr.bf16.mxu0 %v10957_v55  ;;  %v10975_v55 = vld [vmem:[%s15772_s3 + $0x180] ss:$8 sps:$4 sm:$0xff]  }
 0x367   :  { %1899 = vmatpush2.bf16.msra.mxu0 %v10963_v16 }
 0x368   :  { %1900 = vmatprep.subr.bf16.mxu0 %v10969_v19 }
 0x36b   :  { %1901 = vmatpush2.bf16.msra.mxu0 %v10975_v55 }
 0x36c   :  { %1997 = vmatprep.subr.bf16.mxu0 %v16999_v14 }
 0x36e   :  { %v1680_v39 = vpop.f32.mrf.mxu0  ;;  %1903 = vmatmul.mubr.bf16.vlgmr.msra.gmra.mxu0 %v1822_v34 }
 0x36f   :  { %v10980_v16 = vadd.f32 %v1680_v39, %v10785_v26  ;;  %1998 = vmatpush1.bf16.msra.mxu0 %v9752_v21  ;;  %v17004_v21 = vld [vmem:[#allocation53_spill] sm:$0xff]  ;;  %v17013_v26 = vld [vmem:[#allocation83_spill] sm:$0xff] }
 0x370   :  { %v1682_v37 = vpop.f32.mrf.mxu0  ;;  %1999 = vmatprep.subr.bf16.mxu0 %v9758_v22  ;;  %v17005_v22 = vld [vmem:[#allocation4_spill] sm:$0xff] }
 0x371   :  { %17000 = vst [vmem:[#allocation100_spill] sm:$0xff] %v10980_v16  ;;  %v10985_v48 = vadd.f32 %v1682_v37, %v10800_v57 }
 0x372   :  { %v1684_v19 = vpop.f32.mrf.mxu0 }
 0x373   :  { %17001 = vst [vmem:[#allocation101_spill] sm:$0xff] %v10985_v48  ;;  %2000 = vmatpush1.bf16.msra.mxu0 %v9777_v44  ;;  %v17007_v44 = vld [vmem:[#allocation55_spill] sm:$0xff]  ;;  %v11022_v48 = vld [vmem:[%s15771_s0 + $0x10] sm:$0xf] }
 0x374   :  { %v1685_v49 = vpop.f32.mrf.mxu0  ;;  %2001 = vmatprep.subr.bf16.mxu0 %v9783_v1  ;;  %v17008_v1 = vld [vmem:[#allocation57_spill] sm:$0xff]  ;;  %2029 = vmatprep.mubr.bf16.mxu0 %v11022_v48 }
 0x377   :  { %2002 = vmatpush1.bf16.msra.mxu0 %v9801_v38  ;;  %v17011_v38 = vld [vmem:[#allocation59_spill] sm:$0xff] }
 0x378   :  { %2003 = vmatprep.subr.bf16.mxu0 %v9807_v59 }
 0x37b   :  { %2004 = vmatpush1.bf16.msra.mxu0 %v9825_v25  ;;  %v17006_v25 = vld [vmem:[#allocation5_spill] sm:$0xff] }
 0x37c   :  { %2005 = vmatprep.subr.bf16.mxu0 %v9831_v18  ;;  %v17009_v18 = vld [vmem:[#allocation6_spill] sm:$0xff] }
 0x37f   :  { %2006 = vmatpush1.bf16.msra.mxu0 %v9849_v2  ;;  %v17002_v2 = vld [vmem:[#allocation3_spill] sm:$0xff] }
 0x380   :  { %2007 = vmatprep.subr.bf16.mxu0 %v9855_v17  ;;  %v17012_v17 = vld [vmem:[#allocation81_spill] sm:$0xff] }
 0x383   :  { %2008 = vmatpush1.bf16.msra.mxu0 %v16879_v20 }
 0x384   :  { %2009 = vmatprep.subr.bf16.mxu0 %v9879_v13  ;;  %v17010_v13 = vld [vmem:[#allocation7_spill] sm:$0xff] }
 0x387   :  { %2010 = vmatpush1.bf16.msra.mxu0 %v9897_v61  ;;  %v17003_v61 = vld [vmem:[#allocation51_spill] sm:$0xff] }
 0x388   :  { %2011 = vmatprep.subr.bf16.mxu0 %v10247_v36 }
 0x38b   :  { %2012 = vmatpush1.bf16.msra.mxu0 %v10253_v15 }
 0x38c   :  { %2013 = vmatprep.subr.bf16.mxu0 %v10259_v28 }
 0x38f   :  { %2014 = vmatpush2.bf16.msra.mxu0 %v10265_v27 }
 0x390   :  { %2015 = vmatprep.subr.bf16.mxu0 %v10271_v47 }
 0x393   :  { %2016 = vmatpush2.bf16.msra.mxu0 %v10277_v24 }
 0x394   :  { %2017 = vmatprep.subr.bf16.mxu0 %v10283_v51 }
 0x397   :  { %2018 = vmatpush2.bf16.msra.mxu0 %v17002_v2 }
 0x398   :  { %2019 = vmatprep.subr.bf16.mxu0 %v10296_v43 }
 0x39b   :  { %2020 = vmatpush2.bf16.msra.mxu0 %v10303_v23 }
 0x39c   :  { %2021 = vmatprep.subr.bf16.mxu0 %v17003_v61 }
 0x39f   :  { %2022 = vmatpush2.bf16.msra.mxu0 %v17004_v21 }
 0x3a0   :  { %2023 = vmatprep.subr.bf16.mxu0 %v17005_v22 }
 0x3a3   :  { %2024 = vmatpush2.bf16.msra.mxu0 %v17006_v25 }
 0x3a4   :  { %2025 = vmatprep.subr.bf16.mxu0 %v17007_v44 }
 0x3a7   :  { %2026 = vmatpush2.bf16.msra.mxu0 %v17008_v1 }
 0x3a8   :  { %2027 = vmatprep.subr.bf16.mxu0 %v17009_v18 }
 0x3ab   :  { %2028 = vmatpush2.bf16.msra.mxu0 %v17010_v13 }
 0x3ac   :  { %2094 = vmatprep.subr.bf16.mxu0 %v17011_v38 }
 0x3ae   :  { %v1725_v59 = vpop.f32.mrf.mxu0  ;;  %2030 = vmatmul.mubr.bf16.vlgmr.msra.gmra.mxu0 %v10351_v31 }
 0x3af   :  { %v1726_v20 = vadd.f32 %v1725_v59, %v17012_v17  ;;  %v17014_v59 = vld [vmem:[#allocation62_spill] sm:$0xff] }
 0x3b0   :  { %v1727_v49 = vpop.f32.mrf.mxu0  ;;  %2095 = vmatpush1.bf16.msra.mxu0 %v17014_v59 }
 0x3b1   :  { %v1728_v57 = vadd.f32 %v1727_v49, %v17013_v26  ;;  %8125 = vtanh.f32 %v1726_v20  ;;  %v11030_v20 = vld [vmem:[%s15772_s3 + $0x270] ss:$8 sps:$4 sm:$0xff]  }
 0x3b2   :  { %v1729_v37 = vpop.f32.mrf.mxu0  ;;  %v17015_v49 = vld [vmem:[#allocation8_spill] sm:$0xff] }
 0x3b3   :  { %8127 = vtanh.f32 %v1728_v57  ;;  %2096 = vmatprep.subr.bf16.mxu0 %v17015_v49  ;;  %v11037_v57 = vld [vmem:[%s15772_s3 + $0x264] ss:$8 sps:$4 sm:$0xff]  }
 0x3b4   :  { %v1730_v39 = vpop.f32.mrf.mxu0  ;;  %v17018_v37 = vld [vmem:[#allocation10_spill] sm:$0xff] }
 0x3b5   :  { %v11051_v39 = vld [vmem:[%s15772_s3 + $0x254] ss:$8 sps:$4 sm:$0xff]  }
 0x3b6   :  { %17019 = vst [vmem:[#allocation103_spill] sm:$0xff] %v11051_v39 }
 0x3be   :  { %v8126_v34 = vpop.eup %8125 }
 0x3bf   :  { %v1820_v13 = vpack.c.bf16 %v8126_v34, %v8126_v34  ;;  %v17020_v34 = vld [vmem:[#allocation11_spill] sm:$0xff] }
 0x3c0   :  { %v8128_v19 = vpop.eup %8127 }
 0x3c1   :  { %v1821_v16 = vpack.c.bf16 %v8128_v19, %v8128_v19  ;;  %v11058_v19 = vld [vmem:[%s15772_s3 + $0x250] ss:$8 sps:$4 sm:$0xff]  }
 0x3c2   :  { %17021 = vst [vmem:[#allocation106_spill] sm:$0xff] %v11058_v19 }
 0x3c3   :  { %1861 = vmatprep.mubr.bf16.mxu1 %v1821_v16  ;;  %v17016_v16 = vld [vmem:[#allocation9_spill] sm:$0xff] }
 0x3c4   :  { %1862 = vmatmul.mubr.bf16.vlgmr.msra.gmra.mxu1 %v1820_v13  ;;  %2097 = vmatpush1.bf16.msra.mxu0 %v17016_v16  ;;  %v11044_v13 = vld [vmem:[%s15772_s3 + $0x260] ss:$8 sps:$4 sm:$0xff]   ;;  %v17022_v16 = vld [vmem:[#allocation12_spill] sm:$0xff] }
 0x3c5   :  { %1912 = vmatpush1.bf16.msra.mxu1 %v11030_v20  ;;  %17017 = vst [vmem:[#allocation102_spill] sm:$0xff] %v11044_v13  ;;  %2098 = vmatprep.subr.bf16.mxu0 %v17018_v37  ;;  %v11065_v37 = vld [vmem:[%s15772_s3 + $0x244] ss:$8 sps:$4 sm:$0xff]  }
 0x3c6   :  { %1913 = vmatprep.subr.bf16.mxu1 %v11037_v57  ;;  %17023 = vst [vmem:[#allocation107_spill] sm:$0xff] %v11065_v37 }
 0x3c8   :  { %2099 = vmatpush1.bf16.msra.mxu0 %v17020_v34  ;;  %v11072_v34 = vld [vmem:[%s15772_s3 + $0x240] ss:$8 sps:$4 sm:$0xff]  }
 0x3c9   :  { %1914 = vmatpush1.bf16.msra.mxu1 %v11044_v13  ;;  %2100 = vmatprep.subr.bf16.mxu0 %v17022_v16  ;;  %v17024_v13 = vld [vmem:[#allocation13_spill] sm:$0xff]  ;;  %17025 = vst [vmem:[#allocation108_spill] sm:$0xff] %v11072_v34 }
 0x3ca   :  { %1915 = vmatprep.subr.bf16.mxu1 %v11051_v39  ;;  %v17026_v39 = vld [vmem:[#allocation14_spill] sm:$0xff]  ;;  %v11079_v16 = vld [vmem:[%s15772_s3 + $0x234] ss:$8 sps:$4 sm:$0xff]  }
 0x3cb   :  { %17027 = vst [vmem:[#allocation109_spill] sm:$0xff] %v11079_v16 }
 0x3cc   :  { %2101 = vmatpush1.bf16.msra.mxu0 %v17024_v13  ;;  %v11086_v13 = vld [vmem:[%s15772_s3 + $0x230] ss:$8 sps:$4 sm:$0xff]  }
 0x3cd   :  { %1916 = vmatpush1.bf16.msra.mxu1 %v11058_v19  ;;  %2102 = vmatprep.subr.bf16.mxu0 %v17026_v39  ;;  %v17028_v19 = vld [vmem:[#allocation15_spill] sm:$0xff] }
 0x3ce   :  { %1917 = vmatprep.subr.bf16.mxu1 %v11065_v37  ;;  %v17029_v37 = vld [vmem:[#allocation16_spill] sm:$0xff]  ;;  %v11093_v39 = vld [vmem:[%s15772_s3 + $0x224] ss:$8 sps:$4 sm:$0xff]  }
 0x3cf   :  { %17030 = vst [vmem:[#allocation110_spill] sm:$0xff] %v11093_v39 }
 0x3d0   :  { %2103 = vmatpush1.bf16.msra.mxu0 %v17028_v19  ;;  %v11100_v19 = vld [vmem:[%s15772_s3 + $0x220] ss:$8 sps:$4 sm:$0xff]  }
 0x3d1   :  { %1918 = vmatpush1.bf16.msra.mxu1 %v11072_v34  ;;  %2104 = vmatprep.subr.bf16.mxu0 %v17029_v37  ;;  %v17031_v34 = vld [vmem:[#allocation17_spill] sm:$0xff]  ;;  %17032 = vst [vmem:[#allocation111_spill] sm:$0xff] %v11100_v19 }
 0x3d2   :  { %1919 = vmatprep.subr.bf16.mxu1 %v11079_v16  ;;  %v17033_v16 = vld [vmem:[#allocation18_spill] sm:$0xff]  ;;  %v11107_v37 = vld [vmem:[%s15772_s3 + $0x214] ss:$8 sps:$4 sm:$0xff]  }
 0x3d3   :  { %17034 = vst [vmem:[#allocation112_spill] sm:$0xff] %v11107_v37 }
 0x3d4   :  { %2105 = vmatpush1.bf16.msra.mxu0 %v17031_v34  ;;  %v11114_v34 = vld [vmem:[%s15772_s3 + $0x210] ss:$8 sps:$4 sm:$0xff]  }
 0x3d5   :  { %1920 = vmatpush1.bf16.msra.mxu1 %v11086_v13  ;;  %2106 = vmatprep.subr.bf16.mxu0 %v17033_v16  ;;  %17035 = vst [vmem:[#allocation113_spill] sm:$0xff] %v11114_v34  ;;  %v11121_v16 = vld [vmem:[%s15772_s3 + $0x204] ss:$8 sps:$4 sm:$0xff]  }
 0x3d6   :  { %1921 = vmatprep.subr.bf16.mxu1 %v11093_v39  ;;  %v17036_v39 = vld [vmem:[#allocation20_spill] sm:$0xff]  ;;  %17037 = vst [vmem:[#allocation45_spill] sm:$0xff] %v11121_v16 }
 0x3d8   :  { %2107 = vmatpush1.bf16.msra.mxu0 %v10456_v29  ;;  %v11128_v29 = vld [vmem:[%s15772_s3 + $0x200] ss:$8 sps:$4 sm:$0xff]  }
 0x3d9   :  { %1922 = vmatpush1.bf16.msra.mxu1 %v11100_v19  ;;  %2108 = vmatprep.subr.bf16.mxu0 %v17036_v39  ;;  %v17038_v19 = vld [vmem:[#allocation21_spill] sm:$0xff]  ;;  %17039 = vst [vmem:[#allocation114_spill] sm:$0xff] %v11128_v29 }
 0x3da   :  { %1923 = vmatprep.subr.bf16.mxu1 %v11107_v37  ;;  %v17040_v37 = vld [vmem:[#allocation22_spill] sm:$0xff]  ;;  %v11135_v39 = vld [vmem:[%s15772_s3 + $0x294] ss:$8 sps:$4 sm:$0xff]  }
 0x3db   :  { %17041 = vst [vmem:[#allocation47_spill] sm:$0xff] %v11135_v39 }
 0x3dc   :  { %2109 = vmatpush1.bf16.msra.mxu0 %v17038_v19  ;;  %v11142_v19 = vld [vmem:[%s15772_s3 + $0x290] ss:$8 sps:$4 sm:$0xff]  }
 0x3dd   :  { %1924 = vmatpush1.bf16.msra.mxu1 %v11114_v34  ;;  %2110 = vmatprep.subr.bf16.mxu0 %v17040_v37  ;;  %v17042_v34 = vld [vmem:[#allocation23_spill] sm:$0xff]  ;;  %17043 = vst [vmem:[#allocation3_spill] sm:$0xff] %v11142_v19 }
 0x3de   :  { %1925 = vmatprep.subr.bf16.mxu1 %v11121_v16  ;;  %v17044_v16 = vld [vmem:[#allocation24_spill] sm:$0xff]  ;;  %v11149_v37 = vld [vmem:[%s15772_s3 + $0x284] ss:$8 sps:$4 sm:$0xff]  }
 0x3df   :  { %17045 = vst [vmem:[#allocation51_spill] sm:$0xff] %v11149_v37 }
 0x3e0   :  { %2111 = vmatpush2.bf16.msra.mxu0 %v17042_v34  ;;  %v11156_v34 = vld [vmem:[%s15772_s3 + $0x280] ss:$8 sps:$4 sm:$0xff]  }
 0x3e1   :  { %1926 = vmatpush1.bf16.msra.mxu1 %v11128_v29  ;;  %2112 = vmatprep.subr.bf16.mxu0 %v17044_v16  ;;  %v17046_v29 = vld [vmem:[#allocation25_spill] sm:$0xff]  ;;  %17047 = vst [vmem:[#allocation53_spill] sm:$0xff] %v11156_v34  ;;  %v11163_v16 = vld [vmem:[%s15770_s1 + $0x154] ss:$24 sps:$4 sm:$0xff]  }
 0x3e2   :  { %1939 = vmatprep.subr.bf16.mxu1 %v11135_v39  ;;  %17048 = vst [vmem:[#allocation4_spill] sm:$0xff] %v11163_v16  ;;  %v11189_v39 = vld [vmem:[%s15772_s3 + $0xb4] ss:$8 sps:$4 sm:$0xff]  }
 0x3e3   :  { %17052 = vst [vmem:[#allocation6_spill] sm:$0xff] %v11189_v39 }
 0x3e4   :  { %2113 = vmatpush2.bf16.msra.mxu0 %v17046_v29  ;;  %v11169_v29 = vld [vmem:[%s15772_s3 + $0xd0] ss:$8 sps:$4 sm:$0xff]  }
 0x3e5   :  { %1940 = vmatpush2.bf16.msra.mxu1 %v11142_v19  ;;  %2114 = vmatprep.subr.bf16.mxu0 %v10504_v32  ;;  %17049 = vst [vmem:[#allocation5_spill] sm:$0xff] %v11169_v29 }
 0x3e6   :  { %1941 = vmatprep.subr.bf16.mxu1 %v11149_v37 }
 0x3e8   :  { %2115 = vmatpush2.bf16.msra.mxu0 %v11169_v29 }
 0x3e9   :  { %1942 = vmatpush2.bf16.msra.mxu1 %v11156_v34  ;;  %v11175_v34 = vld [vmem:[%s15772_s3 + $0xc4] ss:$8 sps:$4 sm:$0xff]  }
 0x3ea   :  { %1956 = vmatprep.subr.bf16.mxu1 %v11163_v16  ;;  %17050 = vst [vmem:[#allocation55_spill] sm:$0xff] %v11175_v34  ;;  %2116 = vmatprep.subr.bf16.mxu0 %v11175_v34  ;;  %v11182_v16 = vld [vmem:[%s15772_s3 + $0xc0] ss:$8 sps:$4 sm:$0xff]  }
 0x3eb   :  { %17051 = vst [vmem:[#allocation57_spill] sm:$0xff] %v11182_v16 }
 0x3ec   :  { %2117 = vmatpush2.bf16.msra.mxu0 %v11182_v16 }
 0x3ed   :  { %2118 = vmatprep.subr.bf16.mxu0 %v11189_v39 }
 0x3ee   :  { %v1807_v32 = vpop.f32.mrf.mxu0 }
 0x3ef   :  { %v1808_v37 = vadd.f32 %v1807_v32, %v9935_v33  ;;  %v11195_v33 = vld [vmem:[%s15772_s3 + $0xb0] ss:$8 sps:$4 sm:$0xff]  }
 0x3f0   :  { %v1809_v19 = vpop.f32.mrf.mxu0  ;;  %17053 = vst [vmem:[#allocation59_spill] sm:$0xff] %v11195_v33  ;;  %2119 = vmatpush2.bf16.msra.mxu0 %v11195_v33 }
 0x3f1   :  { %v1810_v29 = vadd.f32 %v1809_v19, %v9939_v35  ;;  %8129 = vtanh.f32 %v1808_v37  ;;  %v11201_v19 = vld [vmem:[%s15772_s3 + $0xa4] ss:$8 sps:$4 sm:$0xff]   ;;  %v11207_v37 = vld [vmem:[%s15772_s3 + $0xa0] ss:$8 sps:$4 sm:$0xff]  }
 0x3f2   :  { %v1811_v34 = vpop.f32.mrf.mxu0  ;;  %17054 = vst [vmem:[#allocation83_spill] sm:$0xff] %v11201_v19  ;;  %2120 = vmatprep.subr.bf16.mxu0 %v11201_v19  ;;  %17055 = vst [vmem:[#allocation62_spill] sm:$0xff] %v11207_v37 }
 0x3f3   :  { %8131 = vtanh.f32 %v1810_v29  ;;  %v11213_v29 = vld [vmem:[%s15772_s3 + $0x94] ss:$8 sps:$4 sm:$0xff]   ;;  %v11219_v34 = vld [vmem:[%s15772_s3 + $0x90] ss:$8 sps:$4 sm:$0xff]  }
 0x3f4   :  { %v1812_v32 = vpop.f32.mrf.mxu0  ;;  %2121 = vmatpush2.bf16.msra.mxu0 %v11207_v37  ;;  %17056 = vst [vmem:[#allocation8_spill] sm:$0xff] %v11213_v29  ;;  %17057 = vst [vmem:[#allocation115_spill] sm:$0xff] %v11219_v34 }
 0x3f5   :  { %2122 = vmatprep.subr.bf16.mxu0 %v11213_v29  ;;  %v11225_v32 = vld [vmem:[%s15772_s3 + $0x84] ss:$8 sps:$4 sm:$0xff]   ;;  %v11231_v29 = vld [vmem:[%s15772_s3 + $0x80] ss:$8 sps:$4 sm:$0xff]  }
 0x3f6   :  { %17058 = vst [vmem:[#allocation116_spill] sm:$0xff] %v11225_v32  ;;  %17059 = vst [vmem:[#allocation117_spill] sm:$0xff] %v11231_v29 }
 0x3f8   :  { %2123 = vmatpush2.bf16.msra.mxu0 %v11219_v34  ;;  %v11237_v34 = vld [vmem:[%s15772_s3 + $0x274] ss:$8 sps:$4 sm:$0xff]  }
 0x3f9   :  { %2124 = vmatprep.subr.bf16.mxu0 %v11225_v32  ;;  %v11244_v32 = vld [vmem:[%s15770_s1 + $0x150] ss:$24 sps:$4 sm:$0xff]  }
 0x3fc   :  { %2125 = vmatpush2.bf16.msra.mxu0 %v11231_v29 }
 0x3fd   :  { %2176 = vmatprep.subr.bf16.mxu0 %v11237_v34 }
 0x3fe   :  { %v8130_v37 = vpop.eup %8129 }
 0x3ff   :  { %v1824_v39 = vpack.c.bf16 %v8130_v37, %v8130_v37  ;;  %v11269_v37 = vld [vmem:[%s15770_s1 + $0xf0] ss:$24 sps:$4 sm:$0xff]  }
 0x400   :  { %v8132_v19 = vpop.eup %8131  ;;  %17063 = vst [vmem:[#allocation121_spill] sm:$0xff] %v11269_v37 }
 0x401   :  { %v1825_v33 = vpack.c.bf16 %v8132_v19, %v8132_v19  ;;  %v11251_v19 = vld [vmem:[%s15770_s1 + $0x124] ss:$24 sps:$4 sm:$0xff]  }
 0x402   :  { %17060 = vst [vmem:[#allocation118_spill] sm:$0xff] %v11251_v19 }
 0x403   :  { %6672 = vmatprep.mubr.msk.bf16.mxu1 %vm1295_vm0, %v1825_v33  ;;  %v11257_v33 = vld [vmem:[%s15770_s1 + $0x120] ss:$24 sps:$4 sm:$0xff]  }
 0x404   :  { %1944 = vmatmul.mubr.bf16.vlgmr.msra.gmra.mxu1 %v1824_v39  ;;  %17061 = vst [vmem:[#allocation119_spill] sm:$0xff] %v11257_v33  ;;  %v11263_v39 = vld [vmem:[%s15770_s1 + $0xf4] ss:$24 sps:$4 sm:$0xff]  }
 0x405   :  { %1957 = vmatpush1.bf16.msra.mxu1 %v11244_v32  ;;  %1988 = vmatprep.mubr.bf16.mxu1 %v11022_v48  ;;  %17062 = vst [vmem:[#allocation120_spill] sm:$0xff] %v11263_v39 }
 0x406   :  { %1958 = vmatprep.subr.bf16.mxu1 %v11251_v19  ;;  %v11275_v19 = vld [vmem:[%s15770_s1 + $0xc4] ss:$24 sps:$4 sm:$0xff]  }
 0x407   :  { %17064 = vst [vmem:[#allocation122_spill] sm:$0xff] %v11275_v19 }
 0x409   :  { %1959 = vmatpush1.bf16.msra.mxu1 %v11257_v33  ;;  %v11281_v33 = vld [vmem:[%s15770_s1 + $0xc0] ss:$24 sps:$4 sm:$0xff]  }
 0x40a   :  { %1960 = vmatprep.subr.bf16.mxu1 %v11263_v39  ;;  %17065 = vst [vmem:[#allocation123_spill] sm:$0xff] %v11281_v33  ;;  %v11287_v39 = vld [vmem:[%s15770_s1 + $0x94] ss:$24 sps:$4 sm:$0xff]  }
 0x40b   :  { %17066 = vst [vmem:[#allocation124_spill] sm:$0xff] %v11287_v39 }
 0x40d   :  { %1961 = vmatpush1.bf16.msra.mxu1 %v11269_v37  ;;  %v11293_v37 = vld [vmem:[%s15770_s1 + $0x90] ss:$24 sps:$4 sm:$0xff]  }
 0x40e   :  { %1962 = vmatprep.subr.bf16.mxu1 %v11275_v19  ;;  %17067 = vst [vmem:[#allocation125_spill] sm:$0xff] %v11293_v37  ;;  %v11299_v19 = vld [vmem:[%s15770_s1 + $0x64] ss:$24 sps:$4 sm:$0xff]  }
 0x40f   :  { %17068 = vst [vmem:[#allocation126_spill] sm:$0xff] %v11299_v19 }
 0x411   :  { %1963 = vmatpush1.bf16.msra.mxu1 %v11281_v33  ;;  %v11305_v33 = vld [vmem:[%s15770_s1 + $0x60] ss:$24 sps:$4 sm:$0xff]  }
 0x412   :  { %1964 = vmatprep.subr.bf16.mxu1 %v11287_v39  ;;  %17069 = vst [vmem:[#allocation127_spill] sm:$0xff] %v11305_v33  ;;  %v11311_v39 = vld [vmem:[%s15770_s1 + $0x34] ss:$24 sps:$4 sm:$0xff]  }
 0x413   :  { %17070 = vst [vmem:[#allocation128_spill] sm:$0xff] %v11311_v39 }
 0x415   :  { %1965 = vmatpush1.bf16.msra.mxu1 %v11293_v37 }
 0x416   :  { %1966 = vmatprep.subr.bf16.mxu1 %v11299_v19 }
 0x419   :  { %1967 = vmatpush1.bf16.msra.mxu1 %v11305_v33 }
 0x41a   :  { %1968 = vmatprep.subr.bf16.mxu1 %v11311_v39 }
 0x41d   :  { %1969 = vmatpush1.bf16.msra.mxu1 %v10045_v9 }
 0x41e   :  { %1970 = vmatprep.subr.bf16.mxu1 %v10051_v10 }
 0x421   :  { %1971 = vmatpush1.bf16.msra.mxu1 %v10059_v11 }
 0x422   :  { %1972 = vmatprep.subr.bf16.mxu1 %v10065_v12  ;;  %v17071_v12 = vld [vmem:[#allocation28_spill] sm:$0xff] }
 0x425   :  { %1973 = vmatpush2.bf16.msra.mxu1 %v16930_v3  ;;  %v17072_v3 = vld [vmem:[#allocation29_spill] sm:$0xff] }
 0x426   :  { %1974 = vmatprep.subr.bf16.mxu1 %v16931_v50  ;;  %v17073_v50 = vld [vmem:[#allocation30_spill] sm:$0xff] }
 0x429   :  { %1975 = vmatpush2.bf16.msra.mxu1 %v16932_v52  ;;  %v17074_v52 = vld [vmem:[#allocation31_spill] sm:$0xff] }
 0x42a   :  { %1976 = vmatprep.subr.bf16.mxu1 %v16933_v54  ;;  %v17075_v54 = vld [vmem:[#allocation32_spill] sm:$0xff] }
 0x42d   :  { %1977 = vmatpush2.bf16.msra.mxu1 %v16934_v56  ;;  %v17076_v56 = vld [vmem:[#allocation33_spill] sm:$0xff] }
 0x42e   :  { %1978 = vmatprep.subr.bf16.mxu1 %v16935_v46  ;;  %v11324_v39 = vpop.f32.mrf.mxu0  ;;  %v17077_v46 = vld [vmem:[#allocation34_spill] sm:$0xff] }
 0x430   :  { %v11326_v9 = vpop.f32.mrf.mxu0 }
 0x431   :  { %1979 = vmatpush2.bf16.msra.mxu1 %v16936_v58  ;;  %v17078_v58 = vld [vmem:[#allocation35_spill] sm:$0xff] }
 0x432   :  { %1980 = vmatprep.subr.bf16.mxu1 %v16937_v60  ;;  %v1908_v10 = vpop.f32.mrf.mxu0  ;;  %v17079_v60 = vld [vmem:[#allocation36_spill] sm:$0xff] }
 0x433   :  { %v17082_v10 = vld [vmem:[#allocation39_spill] sm:$0xff] }
 0x434   :  { %v1909_v11 = vpop.f32.mrf.mxu0 }
 0x435   :  { %1981 = vmatpush2.bf16.msra.mxu1 %v16938_v62  ;;  %v17080_v62 = vld [vmem:[#allocation37_spill] sm:$0xff]  ;;  %v17083_v11 = vld [vmem:[#allocation40_spill] sm:$0xff] }
 0x436   :  { %1982 = vmatprep.subr.bf16.mxu1 %v16939_v0  ;;  %v17081_v0 = vld [vmem:[#allocation38_spill] sm:$0xff] }
 0x439   :  { %1983 = vmatpush2.bf16.msra.mxu1 %v10552_v6 }
 0x43a   :  { %1984 = vmatprep.subr.bf16.mxu1 %v10558_v7 }
 0x43d   :  { %1985 = vmatpush2.bf16.msra.mxu1 %v10564_v8 }
 0x43e   :  { %1986 = vmatprep.subr.bf16.mxu1 %v10570_v30 }
 0x441   :  { %1987 = vmatpush2.bf16.msra.mxu1 %v10576_v40 }
 0x442   :  { %2038 = vmatprep.subr.bf16.mxu1 %v10582_v42 }
 0x444   :  { %1989 = vmatmul.mubr.bf16.vlgmr.msra.gmra.mxu1 %v10351_v31 }
 0x445   :  { %2039 = vmatpush1.bf16.msra.mxu1 %v10589_v53  ;;  %2070 = vmatprep.mubr.bf16.mxu1 %v11022_v48 }
 0x446   :  { %2040 = vmatprep.subr.bf16.mxu1 %v10596_v5 }
 0x449   :  { %2041 = vmatpush1.bf16.msra.mxu1 %v10606_v45 }
 0x44a   :  { %2042 = vmatprep.subr.bf16.mxu1 %v10612_v4  ;;  %v17105_v4 = vld [vmem:[#allocation72_spill] sm:$0xff] }
 0x44d   :  { %2043 = vmatpush1.bf16.msra.mxu1 %v17071_v12  ;;  %v17103_v12 = vld [vmem:[#allocation70_spill] sm:$0xff] }
 0x44e   :  { %2044 = vmatprep.subr.bf16.mxu1 %v17072_v3 }
 0x451   :  { %2045 = vmatpush1.bf16.msra.mxu1 %v17073_v50  ;;  %v17084_v50 = vld [vmem:[#allocation41_spill] sm:$0xff] }
 0x452   :  { %2046 = vmatprep.subr.bf16.mxu1 %v17074_v52  ;;  %v17085_v52 = vld [vmem:[#allocation42_spill] sm:$0xff] }
 0x455   :  { %2047 = vmatpush1.bf16.msra.mxu1 %v17075_v54  ;;  %v17086_v54 = vld [vmem:[#allocation43_spill] sm:$0xff] }
 0x456   :  { %2048 = vmatprep.subr.bf16.mxu1 %v17076_v56  ;;  %v17087_v56 = vld [vmem:[#allocation44_spill] sm:$0xff] }
 0x459   :  { %2049 = vmatpush1.bf16.msra.mxu1 %v17077_v46  ;;  %v17088_v46 = vld [vmem:[#allocation46_spill] sm:$0xff] }
 0x45a   :  { %2050 = vmatprep.subr.bf16.mxu1 %v17078_v58  ;;  %v17089_v58 = vld [vmem:[#allocation48_spill] sm:$0xff] }
 0x45d   :  { %2051 = vmatpush1.bf16.msra.mxu1 %v17079_v60  ;;  %v17090_v60 = vld [vmem:[#allocation50_spill] sm:$0xff] }
 0x45e   :  { %2052 = vmatprep.subr.bf16.mxu1 %v17080_v62  ;;  %v17091_v62 = vld [vmem:[#allocation52_spill] sm:$0xff] }
 0x461   :  { %2053 = vmatpush1.bf16.msra.mxu1 %v17081_v0  ;;  %v17092_v0 = vld [vmem:[#allocation54_spill] sm:$0xff] }
 0x462   :  { %2054 = vmatprep.subr.bf16.mxu1 %v17082_v10  ;;  %v17093_v10 = vld [vmem:[#allocation56_spill] sm:$0xff] }
 0x465   :  { %2055 = vmatpush2.bf16.msra.mxu1 %v17083_v11  ;;  %v17094_v11 = vld [vmem:[#allocation58_spill] sm:$0xff] }
 0x466   :  { %2056 = vmatprep.subr.bf16.mxu1 %v17084_v50  ;;  %v17095_v50 = vld [vmem:[#allocation60_spill] sm:$0xff] }
 0x469   :  { %2057 = vmatpush2.bf16.msra.mxu1 %v17085_v52  ;;  %v17096_v52 = vld [vmem:[#allocation61_spill] sm:$0xff] }
 0x46a   :  { %2058 = vmatprep.subr.bf16.mxu1 %v17086_v54  ;;  %v17097_v54 = vld [vmem:[#allocation63_spill] sm:$0xff] }
 0x46d   :  { %2059 = vmatpush2.bf16.msra.mxu1 %v17087_v56  ;;  %v17098_v56 = vld [vmem:[#allocation64_spill] sm:$0xff] }
 0x46e   :  { %2060 = vmatprep.subr.bf16.mxu1 %v17088_v46  ;;  %v17099_v46 = vld [vmem:[#allocation65_spill] sm:$0xff] }
 0x471   :  { %2061 = vmatpush2.bf16.msra.mxu1 %v17089_v58 }
 0x472   :  { %2062 = vmatprep.subr.bf16.mxu1 %v17090_v60  ;;  %v2031_v60 = vpop.f32.mrf.mxu0 }
 0x475   :  { %2063 = vmatpush2.bf16.msra.mxu1 %v17091_v62 }
 0x476   :  { %2064 = vmatprep.subr.bf16.mxu1 %v17092_v0  ;;  %v17100_v0 = vld [vmem:[#allocation66_spill] sm:$0xff] }
 0x479   :  { %2065 = vmatpush2.bf16.msra.mxu1 %v17093_v10  ;;  %v2033_v10 = vpop.f32.mrf.mxu0 }
 0x47a   :  { %2066 = vmatprep.subr.bf16.mxu1 %v17094_v11  ;;  %v2034_v11 = vadd.f32 %v2033_v10, %v9716_v63 }
 0x47c   :  { %8133 = vtanh.f32 %v2034_v11  ;;  %v17111_v11 = vld [vmem:[#allocation78_spill] sm:$0xff] }
 0x47d   :  { %2067 = vmatpush2.bf16.msra.mxu1 %v17095_v50  ;;  %v2035_v50 = vpop.f32.mrf.mxu0 }
 0x47e   :  { %2068 = vmatprep.subr.bf16.mxu1 %v17096_v52  ;;  %v17101_v52 = vld [vmem:[#allocation68_spill] sm:$0xff] }
 0x481   :  { %2069 = vmatpush2.bf16.msra.mxu1 %v17097_v54 }
 0x482   :  { %2135 = vmatprep.subr.bf16.mxu1 %v17098_v56  ;;  %v2036_v56 = vpop.f32.mrf.mxu0 }
 0x483   :  { %v17110_v56 = vld [vmem:[#allocation77_spill] sm:$0xff] }
 0x484   :  { %2071 = vmatmul.mubr.bf16.vlgmr.msra.gmra.mxu1 %v10351_v31  ;;  %v1863_v58 = vpop.f32.mrf.mxu1  ;;  %v17102_v31 = vld [vmem:[#allocation69_spill] sm:$0xff] }
 0x485   :  { %2136 = vmatpush1.bf16.msra.mxu1 %v17099_v46  ;;  %v17104_v46 = vld [vmem:[#allocation71_spill] sm:$0xff] }
 0x486   :  { %v1865_v62 = vpop.f32.mrf.mxu1  ;;  %2137 = vmatprep.subr.bf16.mxu1 %v17100_v0  ;;  %v17106_v0 = vld [vmem:[#allocation73_spill] sm:$0xff] }
 0x488   :  { %v1867_v3 = vpop.f32.mrf.mxu1 }
 0x489   :  { %2138 = vmatpush1.bf16.msra.mxu1 %v10805_v41  ;;  %v8134_v10 = vpop.eup %8133  ;;  %v17107_v3 = vld [vmem:[#allocation74_spill] sm:$0xff]  ;;  %v17108_v41 = vld [vmem:[#allocation75_spill] sm:$0xff] }
 0x48a   :  { %v1868_v54 = vpop.f32.mrf.mxu1  ;;  %2139 = vmatprep.subr.bf16.mxu1 %v17101_v52  ;;  %v2088_v50 = vpack.c.bf16 %v8134_v10, %v8134_v10  ;;  %v17117_v10 = vld [vmem:[#allocation88_spill] sm:$0xff] }
 0x48b   :  { %v17109_v54 = vld [vmem:[#allocation76_spill] sm:$0xff] }
 0x48c   :  { %2167 = vmatprep.mubr.bf16.mxu1 %v2088_v50 }
 0x48d   :  { %2140 = vmatpush1.bf16.msra.mxu1 %v17102_v31  ;;  %v17116_v31 = vld [vmem:[#allocation87_spill] sm:$0xff] }
 0x48e   :  { %2141 = vmatprep.subr.bf16.mxu1 %v17103_v12  ;;  %v17112_v12 = vld [vmem:[#allocation79_spill] sm:$0xff] }
 0x491   :  { %2142 = vmatpush1.bf16.msra.mxu1 %v17104_v46  ;;  %v17113_v46 = vld [vmem:[#allocation99_spill] sm:$0xff] }
 0x492   :  { %2143 = vmatprep.subr.bf16.mxu1 %v17105_v4  ;;  %v17114_v4 = vld [vmem:[#allocation85_spill] sm:$0xff] }
 0x495   :  { %2144 = vmatpush1.bf16.msra.mxu1 %v17106_v0  ;;  %v17115_v0 = vld [vmem:[#allocation86_spill] sm:$0xff] }
 0x496   :  { %2145 = vmatprep.subr.bf16.mxu1 %v17107_v3  ;;  %v17119_v3 = vld [vmem:[#allocation89_spill] sm:$0xff] }
 0x499   :  { %2146 = vmatpush1.bf16.msra.mxu1 %v17108_v41  ;;  %v17118_v41 = vld [vmem:[#allocation82_spill] sm:$0xff] }
 0x49a   :  { %2147 = vmatprep.subr.bf16.mxu1 %v17109_v54  ;;  %v2032_v50 = vadd.f32 %v2031_v60, %v17118_v41  ;;  %v17120_v54 = vld [vmem:[#allocation90_spill] sm:$0xff] }
 0x49b   :  { %v17128_v60 = vld [vmem:[#allocation98_spill] sm:$0xff] }
 0x49c   :  { %8135 = vtanh.f32 %v2032_v50  ;;  %v1905_v50 = vadd.f32 %v11324_v39, %v1863_v58 }
 0x49d   :  { %2148 = vmatpush1.bf16.msra.mxu1 %v17110_v56  ;;  %v17127_v56 = vld [vmem:[#allocation97_spill] sm:$0xff] }
 0x49e   :  { %2149 = vmatprep.subr.bf16.mxu1 %v17111_v11  ;;  %v17121_v11 = vld [vmem:[#allocation91_spill] sm:$0xff] }
 0x4a1   :  { %2150 = vmatpush1.bf16.msra.mxu1 %v17112_v12  ;;  %v17122_v12 = vld [vmem:[#allocation92_spill] sm:$0xff] }
 0x4a2   :  { %2151 = vmatprep.subr.bf16.mxu1 %v17113_v46  ;;  %v17123_v46 = vld [vmem:[#allocation93_spill] sm:$0xff] }
 0x4a5   :  { %2152 = vmatpush2.bf16.msra.mxu1 %v17114_v4  ;;  %v17124_v4 = vld [vmem:[#allocation94_spill] sm:$0xff] }
 0x4a6   :  { %2153 = vmatprep.subr.bf16.mxu1 %v17115_v0  ;;  %v17125_v0 = vld [vmem:[#allocation95_spill] sm:$0xff] }
 0x4a9   :  { %2154 = vmatpush2.bf16.msra.mxu1 %v17116_v31  ;;  %v17126_v31 = vld [vmem:[#allocation96_spill] sm:$0xff] }
 0x4aa   :  { %2155 = vmatprep.subr.bf16.mxu1 %v17117_v10  ;;  %v8136_v10 = vpop.eup %8135 }
 0x4ad   :  { %2156 = vmatpush2.bf16.msra.mxu1 %v17119_v3  ;;  %v2087_v3 = vpack.c.bf16 %v8136_v10, %v8136_v10 }
 0x4ae   :  { %2157 = vmatprep.subr.bf16.mxu1 %v17120_v54 }
 0x4b1   :  { %2158 = vmatpush2.bf16.msra.mxu1 %v17121_v11 }
 0x4b2   :  { %2159 = vmatprep.subr.bf16.mxu1 %v17122_v12 }
 0x4b5   :  { %2160 = vmatpush2.bf16.msra.mxu1 %v17123_v46 }
 0x4b6   :  { %2161 = vmatprep.subr.bf16.mxu1 %v17124_v4  ;;  %v1907_v4 = vadd.f32 %v11326_v9, %v1865_v62  ;;  %v11434_v62 = vld [vmem:[%s15770_s1 + $0xfc] ss:$24 sps:$4 sm:$0xff]  }
 0x4b9   :  { %2162 = vmatpush2.bf16.msra.mxu1 %v17125_v0 }
 0x4ba   :  { %2163 = vmatprep.subr.bf16.mxu1 %v17126_v31  ;;  %v11414_v31 = vld [vmem:[%s15770_s1 + $0x158] ss:$24 sps:$4 sm:$0xff]  }
 0x4bd   :  { %2164 = vmatpush2.bf16.msra.mxu1 %v17127_v56 }
 0x4be   :  { %2165 = vmatprep.subr.bf16.mxu1 %v17128_v60 }
 0x4c1   :  { %2166 = vmatpush2.bf16.msra.mxu1 %v10975_v55 }
 0x4c2   :  { %2262 = vmatprep.subr.bf16.mxu1 %v16999_v14  ;;  %v11420_v14 = vld [vmem:[%s15770_s1 + $0x12c] ss:$24 sps:$4 sm:$0xff]  }
 0x4c4   :  { %v1945_v12 = vpop.f32.mrf.mxu1  ;;  %2168 = vmatmul.mubr.bf16.vlgmr.msra.gmra.mxu1 %v2087_v3  ;;  %v11446_v3 = vld [vmem:[%s15770_s1 + $0xcc] ss:$24 sps:$4 sm:$0xff]  }
 0x4c5   :  { %v11409_v46 = vadd.f32 %v1945_v12, %v1905_v50  ;;  %2263 = vmatpush1.bf16.msra.mxu1 %v11414_v31  ;;  %v11428_v12 = vld [vmem:[%s15770_s1 + $0x128] ss:$24 sps:$4 sm:$0xff]  }
 0x4c6   :  { %v1947_v10 = vpop.f32.mrf.mxu1  ;;  %2264 = vmatprep.subr.bf16.mxu1 %v11420_v14  ;;  %v11452_v50 = vld [vmem:[%s15770_s1 + $0xc8] ss:$24 sps:$4 sm:$0xff]  }
 0x4c7   :  { %17129 = vst [vmem:[#allocation68_spill] sm:$0xff] %v11409_v46  ;;  %v11423_v39 = vadd.f32 %v1947_v10, %v1907_v4  ;;  %v11440_v4 = vld [vmem:[%s15770_s1 + $0xf8] ss:$24 sps:$4 sm:$0xff]   ;;  %v11458_v10 = vld [vmem:[%s15770_s1 + $0x9c] ss:$24 sps:$4 sm:$0xff]  }
 0x4c8   :  { %v1949_v9 = vpop.f32.mrf.mxu1  ;;  %v11476_v46 = vld [vmem:[%s15770_s1 + $0x68] ss:$24 sps:$4 sm:$0xff]  }
 0x4c9   :  { %17130 = vst [vmem:[#allocation90_spill] sm:$0xff] %v11423_v39  ;;  %2265 = vmatpush1.bf16.msra.mxu1 %v11428_v12  ;;  %v11464_v9 = vld [vmem:[%s15770_s1 + $0x98] ss:$24 sps:$4 sm:$0xff]   ;;  %v11482_v39 = vld [vmem:[%s15770_s1 + $0x3c] ss:$24 sps:$4 sm:$0xff]  }
 0x4ca   :  { %v1950_v58 = vpop.f32.mrf.mxu1  ;;  %2266 = vmatprep.subr.bf16.mxu1 %v11434_v62  ;;  %17131 = vst [vmem:[#allocation91_spill] sm:$0xff] %v11464_v9 }
 0x4cb   :  { %v11470_v58 = vld [vmem:[%s15770_s1 + $0x6c] ss:$24 sps:$4 sm:$0xff]  }
 0x4cd   :  { %2267 = vmatpush1.bf16.msra.mxu1 %v11440_v4 }
 0x4ce   :  { %2268 = vmatprep.subr.bf16.mxu1 %v11446_v3 }
 0x4d1   :  { %2269 = vmatpush1.bf16.msra.mxu1 %v11452_v50 }
 0x4d2   :  { %2270 = vmatprep.subr.bf16.mxu1 %v11458_v10 }
 0x4d5   :  { %2271 = vmatpush1.bf16.msra.mxu1 %v11464_v9  ;;  %v11488_v9 = vld [vmem:[%s15770_s1 + $0x38] ss:$24 sps:$4 sm:$0xff]  }
 0x4d6   :  { %2272 = vmatprep.subr.bf16.mxu1 %v11470_v58 }
 0x4d9   :  { %2273 = vmatpush1.bf16.msra.mxu1 %v11476_v46 }
 0x4da   :  { %2274 = vmatprep.subr.bf16.mxu1 %v11482_v39 }
 0x4dd   :  { %2275 = vmatpush1.bf16.msra.mxu1 %v11488_v9 }
 0x4de   :  { %2276 = vmatprep.subr.bf16.mxu1 %v10247_v36  ;;  %v17132_v36 = vld [vmem:[#allocation7_spill] sm:$0xff] }
 0x4e1   :  { %2277 = vmatpush1.bf16.msra.mxu1 %v10253_v15 }
 0x4e2   :  { %2278 = vmatprep.subr.bf16.mxu1 %v10259_v28 }
 0x4e5   :  { %2279 = vmatpush2.bf16.msra.mxu1 %v10265_v27 }
 0x4e6   :  { %2280 = vmatprep.subr.bf16.mxu1 %v10271_v47 }
 0x4e9   :  { %2281 = vmatpush2.bf16.msra.mxu1 %v10277_v24 }
 0x4ea   :  { %2282 = vmatprep.subr.bf16.mxu1 %v10283_v51 }
 0x4ed   :  { %2283 = vmatpush2.bf16.msra.mxu1 %v17002_v2 }
 0x4ee   :  { %2284 = vmatprep.subr.bf16.mxu1 %v10296_v43 }
 0x4f1   :  { %2285 = vmatpush2.bf16.msra.mxu1 %v10303_v23 }
 0x4f2   :  { %2286 = vmatprep.subr.bf16.mxu1 %v17003_v61  ;;  %v11515_v61 = vld [vmem:[%s15771_s0 + $0x14] sm:$0xf] }
 0x4f3   :  { %2294 = vmatprep.mubr.bf16.mxu1 %v11515_v61 }
 0x4f5   :  { %2287 = vmatpush2.bf16.msra.mxu1 %v17004_v21 }
 0x4f6   :  { %2288 = vmatprep.subr.bf16.mxu1 %v17005_v22  ;;  %v17133_v22 = vld [vmem:[#allocation9_spill] sm:$0xff] }
 0x4f9   :  { %2289 = vmatpush2.bf16.msra.mxu1 %v17006_v25  ;;  %v17134_v25 = vld [vmem:[#allocation102_spill] sm:$0xff] }
 0x4fa   :  { %2290 = vmatprep.subr.bf16.mxu1 %v17007_v44  ;;  %v17135_v44 = vld [vmem:[#allocation10_spill] sm:$0xff] }
 0x4fd   :  { %2291 = vmatpush2.bf16.msra.mxu1 %v17008_v1  ;;  %v17136_v1 = vld [vmem:[#allocation103_spill] sm:$0xff] }
 0x4fe   :  { %2292 = vmatprep.subr.bf16.mxu1 %v17009_v18  ;;  %v17137_v18 = vld [vmem:[#allocation11_spill] sm:$0xff] }
 0x501   :  { %2293 = vmatpush2.bf16.msra.mxu1 %v17132_v36  ;;  %v17139_v36 = vld [vmem:[#allocation12_spill] sm:$0xff] }
 0x502   :  { %2359 = vmatprep.subr.bf16.mxu1 %v17011_v38  ;;  %v17138_v38 = vld [vmem:[#allocation106_spill] sm:$0xff] }
 0x504   :  { %v1990_v15 = vpop.f32.mrf.mxu1  ;;  %2295 = vmatmul.mubr.bf16.vlgmr.msra.gmra.mxu1 %v11022_v48 }
 0x505   :  { %v1991_v28 = vadd.f32 %v1990_v15, %v17012_v17  ;;  %2360 = vmatpush1.bf16.msra.mxu1 %v17014_v59  ;;  %v17140_v59 = vld [vmem:[#allocation107_spill] sm:$0xff]  ;;  %v17141_v15 = vld [vmem:[#allocation13_spill] sm:$0xff] }
 0x506   :  { %v1992_v27 = vpop.f32.mrf.mxu1  ;;  %2361 = vmatprep.subr.bf16.mxu1 %v17015_v49  ;;  %v17142_v49 = vld [vmem:[#allocation108_spill] sm:$0xff] }
 0x507   :  { %v1993_v47 = vadd.f32 %v1992_v27, %v17013_v26  ;;  %8137 = vtanh.f32 %v1991_v28  ;;  %v17143_v28 = vld [vmem:[#allocation14_spill] sm:$0xff]  ;;  %v17144_v27 = vld [vmem:[#allocation109_spill] sm:$0xff] }
 0x508   :  { %v1994_v24 = vpop.f32.mrf.mxu1 }
 0x509   :  { %8139 = vtanh.f32 %v1993_v47  ;;  %2362 = vmatpush1.bf16.msra.mxu1 %v17133_v22  ;;  %v17145_v47 = vld [vmem:[#allocation15_spill] sm:$0xff]  ;;  %v17146_v24 = vld [vmem:[#allocation16_spill] sm:$0xff] }
 0x50a   :  { %v1995_v51 = vpop.f32.mrf.mxu1  ;;  %2363 = vmatprep.subr.bf16.mxu1 %v17135_v44  ;;  %v17152_v22 = vld [vmem:[#allocation19_spill] sm:$0xff]  ;;  %v17153_v44 = vld [vmem:[#allocation113_spill] sm:$0xff] }
 0x50b   :  { %v17147_v51 = vld [vmem:[#allocation110_spill] sm:$0xff] }
 0x50d   :  { %2364 = vmatpush1.bf16.msra.mxu1 %v17137_v18  ;;  %v17154_v18 = vld [vmem:[#allocation20_spill] sm:$0xff] }
 0x50e   :  { %2365 = vmatprep.subr.bf16.mxu1 %v17139_v36  ;;  %v17155_v36 = vld [vmem:[#allocation45_spill] sm:$0xff] }
 0x511   :  { %2366 = vmatpush1.bf16.msra.mxu1 %v17141_v15  ;;  %v17156_v15 = vld [vmem:[#allocation21_spill] sm:$0xff] }
 0x512   :  { %2367 = vmatprep.subr.bf16.mxu1 %v17143_v28  ;;  %v17157_v28 = vld [vmem:[#allocation114_spill] sm:$0xff] }
 0x514   :  { %v8138_v43 = vpop.eup %8137 }
 0x515   :  { %v2085_v21 = vpack.c.bf16 %v8138_v43, %v8138_v43  ;;  %2368 = vmatpush1.bf16.msra.mxu1 %v17145_v47  ;;  %v17148_v43 = vld [vmem:[#allocation17_spill] sm:$0xff]  ;;  %v17158_v47 = vld [vmem:[#allocation22_spill] sm:$0xff] }
 0x516   :  { %v8140_v23 = vpop.eup %8139  ;;  %2369 = vmatprep.subr.bf16.mxu1 %v17146_v24  ;;  %v17159_v24 = vld [vmem:[#allocation47_spill] sm:$0xff] }
 0x517   :  { %v2086_v2 = vpack.c.bf16 %v8140_v23, %v8140_v23  ;;  %v17149_v23 = vld [vmem:[#allocation111_spill] sm:$0xff] }
 0x519   :  { %2126 = vmatprep.mubr.bf16.mxu0 %v2086_v2  ;;  %2370 = vmatpush1.bf16.msra.mxu1 %v17148_v43  ;;  %v17150_v2 = vld [vmem:[#allocation18_spill] sm:$0xff]  ;;  %v17160_v43 = vld [vmem:[#allocation23_spill] sm:$0xff] }
 0x51a   :  { %2127 = vmatmul.mubr.bf16.vlgmr.msra.gmra.mxu0 %v2085_v21  ;;  %2371 = vmatprep.subr.bf16.mxu1 %v17150_v2  ;;  %v17151_v21 = vld [vmem:[#allocation112_spill] sm:$0xff]  ;;  %v17161_v2 = vld [vmem:[#allocation3_spill] sm:$0xff] }
 0x51b   :  { %2177 = vmatpush1.bf16.msra.mxu0 %v11030_v20 }
 0x51c   :  { %2178 = vmatprep.subr.bf16.mxu0 %v11037_v57 }
 0x51d   :  { %2372 = vmatpush1.bf16.msra.mxu1 %v17152_v22  ;;  %v17163_v22 = vld [vmem:[#allocation51_spill] sm:$0xff] }
 0x51e   :  { %2373 = vmatprep.subr.bf16.mxu1 %v17154_v18  ;;  %v17165_v18 = vld [vmem:[#allocation53_spill] sm:$0xff] }
 0x51f   :  { %2179 = vmatpush1.bf16.msra.mxu0 %v17134_v25 }
 0x520   :  { %2180 = vmatprep.subr.bf16.mxu0 %v17136_v1 }
 0x521   :  { %2374 = vmatpush1.bf16.msra.mxu1 %v17156_v15  ;;  %v17167_v15 = vld [vmem:[#allocation4_spill] sm:$0xff] }
 0x522   :  { %2375 = vmatprep.subr.bf16.mxu1 %v17158_v47  ;;  %v17169_v47 = vld [vmem:[#allocation55_spill] sm:$0xff] }
 0x523   :  { %2181 = vmatpush1.bf16.msra.mxu0 %v17138_v38 }
 0x524   :  { %2182 = vmatprep.subr.bf16.mxu0 %v17140_v59 }
 0x525   :  { %2376 = vmatpush2.bf16.msra.mxu1 %v17160_v43  ;;  %v17170_v43 = vld [vmem:[#allocation104_spill] sm:$0xff] }
 0x527   :  { %2183 = vmatpush1.bf16.msra.mxu0 %v17142_v49 }
 0x528   :  { %2184 = vmatprep.subr.bf16.mxu0 %v17144_v27 }
 0x52b   :  { %2185 = vmatpush1.bf16.msra.mxu0 %v11086_v13 }
 0x52c   :  { %2186 = vmatprep.subr.bf16.mxu0 %v17147_v51 }
 0x52f   :  { %2187 = vmatpush1.bf16.msra.mxu0 %v17149_v23 }
 0x530   :  { %2188 = vmatprep.subr.bf16.mxu0 %v17151_v21  ;;  %v17162_v21 = vld [vmem:[#allocation24_spill] sm:$0xff] }
 0x531   :  { %2377 = vmatprep.subr.bf16.mxu1 %v17162_v21 }
 0x533   :  { %2189 = vmatpush1.bf16.msra.mxu0 %v17153_v44  ;;  %v17164_v44 = vld [vmem:[#allocation25_spill] sm:$0xff] }
 0x534   :  { %2190 = vmatprep.subr.bf16.mxu0 %v17155_v36  ;;  %2378 = vmatpush2.bf16.msra.mxu1 %v17164_v44  ;;  %v17166_v36 = vld [vmem:[#allocation26_spill] sm:$0xff] }
 0x535   :  { %2379 = vmatprep.subr.bf16.mxu1 %v17166_v36 }
 0x537   :  { %2191 = vmatpush1.bf16.msra.mxu0 %v17157_v28  ;;  %v17168_v28 = vld [vmem:[#allocation5_spill] sm:$0xff] }
 0x538   :  { %2204 = vmatprep.subr.bf16.mxu0 %v17159_v24  ;;  %2380 = vmatpush2.bf16.msra.mxu1 %v17168_v28  ;;  %v17174_v28 = vld [vmem:[#allocation62_spill] sm:$0xff] }
 0x539   :  { %2381 = vmatprep.subr.bf16.mxu1 %v17169_v47  ;;  %v17175_v47 = vld [vmem:[#allocation8_spill] sm:$0xff] }
 0x53b   :  { %2205 = vmatpush2.bf16.msra.mxu0 %v17161_v2 }
 0x53c   :  { %2206 = vmatprep.subr.bf16.mxu0 %v17163_v22  ;;  %2382 = vmatpush2.bf16.msra.mxu1 %v11182_v16  ;;  %v17171_v22 = vld [vmem:[#allocation6_spill] sm:$0xff] }
 0x53d   :  { %2383 = vmatprep.subr.bf16.mxu1 %v17171_v22 }
 0x53f   :  { %2207 = vmatpush2.bf16.msra.mxu0 %v17165_v18  ;;  %v17172_v18 = vld [vmem:[#allocation59_spill] sm:$0xff] }
 0x540   :  { %2221 = vmatprep.subr.bf16.mxu0 %v17167_v15  ;;  %2384 = vmatpush2.bf16.msra.mxu1 %v17172_v18  ;;  %v17173_v15 = vld [vmem:[#allocation83_spill] sm:$0xff] }
 0x541   :  { %2385 = vmatprep.subr.bf16.mxu1 %v17173_v15 }
 0x544   :  { %v2072_v24 = vpop.f32.mrf.mxu1  ;;  %2386 = vmatpush2.bf16.msra.mxu1 %v17174_v28 }
 0x545   :  { %v2073_v23 = vadd.f32 %v2072_v24, %v17170_v43  ;;  %2387 = vmatprep.subr.bf16.mxu1 %v17175_v47  ;;  %v17176_v24 = vld [vmem:[#allocation115_spill] sm:$0xff]  ;;  %v17177_v43 = vld [vmem:[#allocation116_spill] sm:$0xff] }
 0x546   :  { %v2074_v2 = vpop.f32.mrf.mxu1 }
 0x547   :  { %v2075_v21 = vadd.f32 %v2074_v2, %v9939_v35  ;;  %8141 = vtanh.f32 %v2073_v23  ;;  %v17180_v35 = vld [vmem:[#allocation120_spill] sm:$0xff] }
 0x548   :  { %v2076_v44 = vpop.f32.mrf.mxu1  ;;  %2388 = vmatpush2.bf16.msra.mxu1 %v17176_v24 }
 0x549   :  { %8143 = vtanh.f32 %v2075_v21  ;;  %2389 = vmatprep.subr.bf16.mxu1 %v17177_v43  ;;  %v17178_v44 = vld [vmem:[#allocation118_spill] sm:$0xff]  ;;  %v17181_v43 = vld [vmem:[#allocation121_spill] sm:$0xff] }
 0x54a   :  { %v2077_v36 = vpop.f32.mrf.mxu1 }
 0x54b   :  { %v17179_v36 = vld [vmem:[#allocation119_spill] sm:$0xff] }
 0x54c   :  { %2390 = vmatpush2.bf16.msra.mxu1 %v11231_v29  ;;  %v17182_v29 = vld [vmem:[#allocation122_spill] sm:$0xff] }
 0x54d   :  { %2441 = vmatprep.subr.bf16.mxu1 %v11237_v34 }
 0x554   :  { %v8142_v16 = vpop.eup %8141 }
 0x555   :  { %v2089_v21 = vpack.c.bf16 %v8142_v16, %v8142_v16  ;;  %v17184_v16 = vld [vmem:[#allocation124_spill] sm:$0xff] }
 0x556   :  { %v8144_v2 = vpop.eup %8143 }
 0x557   :  { %v2090_v23 = vpack.c.bf16 %v8144_v2, %v8144_v2  ;;  %v17183_v2 = vld [vmem:[#allocation123_spill] sm:$0xff] }
 0x559   :  { %6674 = vmatprep.mubr.msk.bf16.mxu0 %vm1295_vm0, %v2090_v23  ;;  %v17185_v23 = vld [vmem:[#allocation128_spill] sm:$0xff] }
 0x55a   :  { %2209 = vmatmul.mubr.bf16.vlgmr.msra.gmra.mxu0 %v2089_v21  ;;  %v11590_v21 = vld [vmem:[%s15770_s1 + $0x30] ss:$24 sps:$4 sm:$0xff]  }
 0x55b   :  { %2222 = vmatpush1.bf16.msra.mxu0 %v11244_v32  ;;  %2253 = vmatprep.mubr.bf16.mxu0 %v11515_v61  ;;  %17186 = vst [vmem:[#allocation95_spill] sm:$0xff] %v11590_v21 }
 0x55c   :  { %2223 = vmatprep.subr.bf16.mxu0 %v17178_v44 }
 0x55f   :  { %2224 = vmatpush1.bf16.msra.mxu0 %v17179_v36 }
 0x560   :  { %2225 = vmatprep.subr.bf16.mxu0 %v17180_v35 }
 0x563   :  { %2226 = vmatpush1.bf16.msra.mxu0 %v17181_v43 }
 0x564   :  { %2227 = vmatprep.subr.bf16.mxu0 %v17182_v29 }
 0x567   :  { %2228 = vmatpush1.bf16.msra.mxu0 %v17183_v2  ;;  %v11596_v2 = vld [vmem:[%s15770_s1 + $0x4] ss:$24 sps:$4 sm:$0xff]  }
 0x568   :  { %2229 = vmatprep.subr.bf16.mxu0 %v17184_v16  ;;  %17187 = vst [vmem:[#allocation97_spill] sm:$0xff] %v11596_v2  ;;  %v11666_v16 = vld [vmem:[%s15770_s1 + $0x210] ss:$24 sps:$4 sm:$0xff]  }
 0x569   :  { %17198 = vst [vmem:[#allocation13_spill] sm:$0xff] %v11666_v16 }
 0x56b   :  { %2230 = vmatpush1.bf16.msra.mxu0 %v11293_v37 }
 0x56c   :  { %2231 = vmatprep.subr.bf16.mxu0 %v11299_v19 }
 0x56f   :  { %2232 = vmatpush1.bf16.msra.mxu0 %v11305_v33  ;;  %v11602_v33 = vld [vmem:[%s15770_s1] ss:$24 sps:$4 sm:$0xff]  }
 0x570   :  { %2233 = vmatprep.subr.bf16.mxu0 %v17185_v23  ;;  %17188 = vst [vmem:[#allocation98_spill] sm:$0xff] %v11602_v33  ;;  %v11608_v23 = vld [vmem:[%s15770_s1 + $0x2d4] ss:$24 sps:$4 sm:$0xff]  }
 0x571   :  { %17189 = vst [vmem:[#allocation7_spill] sm:$0xff] %v11608_v23 }
 0x573   :  { %2234 = vmatpush1.bf16.msra.mxu0 %v11590_v21  ;;  %v11614_v21 = vld [vmem:[%s15770_s1 + $0x2d0] ss:$24 sps:$4 sm:$0xff]  }
 0x574   :  { %2235 = vmatprep.subr.bf16.mxu0 %v11596_v2  ;;  %17190 = vst [vmem:[#allocation9_spill] sm:$0xff] %v11614_v21  ;;  %v11620_v2 = vld [vmem:[%s15770_s1 + $0x2a4] ss:$24 sps:$4 sm:$0xff]  }
 0x575   :  { %17191 = vst [vmem:[#allocation102_spill] sm:$0xff] %v11620_v2 }
 0x577   :  { %2236 = vmatpush1.bf16.msra.mxu0 %v11602_v33  ;;  %v11626_v33 = vld [vmem:[%s15770_s1 + $0x2a0] ss:$24 sps:$4 sm:$0xff]  }
 0x578   :  { %2237 = vmatprep.subr.bf16.mxu0 %v11608_v23  ;;  %17192 = vst [vmem:[#allocation10_spill] sm:$0xff] %v11626_v33  ;;  %v11632_v23 = vld [vmem:[%s15770_s1 + $0x274] ss:$24 sps:$4 sm:$0xff]  }
 0x579   :  { %17193 = vst [vmem:[#allocation103_spill] sm:$0xff] %v11632_v23 }
 0x57b   :  { %2238 = vmatpush2.bf16.msra.mxu0 %v11614_v21  ;;  %v11638_v21 = vld [vmem:[%s15770_s1 + $0x270] ss:$24 sps:$4 sm:$0xff]  }
 0x57c   :  { %2239 = vmatprep.subr.bf16.mxu0 %v11620_v2  ;;  %17194 = vst [vmem:[#allocation11_spill] sm:$0xff] %v11638_v21  ;;  %v11644_v2 = vld [vmem:[%s15770_s1 + $0x244] ss:$24 sps:$4 sm:$0xff]  }
 0x57d   :  { %17195 = vst [vmem:[#allocation106_spill] sm:$0xff] %v11644_v2 }
 0x57f   :  { %2240 = vmatpush2.bf16.msra.mxu0 %v11626_v33 }
 0x580   :  { %2241 = vmatprep.subr.bf16.mxu0 %v11632_v23  ;;  %v11654_v23 = vld [vmem:[%s15770_s1 + $0x240] ss:$24 sps:$4 sm:$0xff]  }
 0x581   :  { %17196 = vst [vmem:[#allocation12_spill] sm:$0xff] %v11654_v23 }
 0x583   :  { %2242 = vmatpush2.bf16.msra.mxu0 %v11638_v21  ;;  %v11660_v21 = vld [vmem:[%s15770_s1 + $0x214] ss:$24 sps:$4 sm:$0xff]  }
 0x584   :  { %2243 = vmatprep.subr.bf16.mxu0 %v11644_v2  ;;  %v11647_v33 = vpop.f32.mrf.mxu1  ;;  %17197 = vst [vmem:[#allocation107_spill] sm:$0xff] %v11660_v21 }
 0x586   :  { %v11649_v19 = vpop.f32.mrf.mxu1 }
 0x587   :  { %2244 = vmatpush2.bf16.msra.mxu0 %v11654_v23  ;;  %v11672_v23 = vld [vmem:[%s15770_s1 + $0x1e4] ss:$24 sps:$4 sm:$0xff]  }
 0x588   :  { %2245 = vmatprep.subr.bf16.mxu0 %v11660_v21  ;;  %v2173_v37 = vpop.f32.mrf.mxu1  ;;  %17199 = vst [vmem:[#allocation108_spill] sm:$0xff] %v11672_v23  ;;  %v17235_v21 = vld [vmem:[#allocation72_spill] sm:$0xff] }
 0x589   :  { %v17206_v37 = vld [vmem:[#allocation33_spill] sm:$0xff] }
 0x58a   :  { %v2174_v2 = vpop.f32.mrf.mxu1 }
 0x58b   :  { %2246 = vmatpush2.bf16.msra.mxu0 %v11666_v16  ;;  %v17208_v2 = vld [vmem:[#allocation35_spill] sm:$0xff] }
 0x58c   :  { %2247 = vmatprep.subr.bf16.mxu0 %v11672_v23  ;;  %v17231_v16 = vld [vmem:[#allocation67_spill] sm:$0xff] }
 0x58f   :  { %2248 = vmatpush2.bf16.msra.mxu0 %v10552_v6  ;;  %v17200_v6 = vld [vmem:[#allocation27_spill] sm:$0xff] }
 0x590   :  { %2249 = vmatprep.subr.bf16.mxu0 %v10558_v7  ;;  %v17201_v7 = vld [vmem:[#allocation28_spill] sm:$0xff] }
 0x593   :  { %2250 = vmatpush2.bf16.msra.mxu0 %v10564_v8  ;;  %v17202_v8 = vld [vmem:[#allocation29_spill] sm:$0xff] }
 0x594   :  { %2251 = vmatprep.subr.bf16.mxu0 %v10570_v30  ;;  %v17203_v30 = vld [vmem:[#allocation30_spill] sm:$0xff] }
 0x597   :  { %2252 = vmatpush2.bf16.msra.mxu0 %v10576_v40  ;;  %v17204_v40 = vld [vmem:[#allocation31_spill] sm:$0xff] }
 0x598   :  { %2303 = vmatprep.subr.bf16.mxu0 %v10582_v42  ;;  %v17205_v42 = vld [vmem:[#allocation32_spill] sm:$0xff] }
 0x59a   :  { %2254 = vmatmul.mubr.bf16.vlgmr.msra.gmra.mxu0 %v11022_v48 }
 0x59b   :  { %2304 = vmatpush1.bf16.msra.mxu0 %v10589_v53  ;;  %2335 = vmatprep.mubr.bf16.mxu0 %v11515_v61  ;;  %v17207_v53 = vld [vmem:[#allocation34_spill] sm:$0xff] }
 0x59c   :  { %2305 = vmatprep.subr.bf16.mxu0 %v10596_v5  ;;  %v17209_v5 = vld [vmem:[#allocation36_spill] sm:$0xff] }
 0x59f   :  { %2306 = vmatpush1.bf16.msra.mxu0 %v10606_v45  ;;  %v17210_v45 = vld [vmem:[#allocation37_spill] sm:$0xff] }
 0x5a0   :  { %2307 = vmatprep.subr.bf16.mxu0 %v17200_v6  ;;  %v17211_v6 = vld [vmem:[#allocation38_spill] sm:$0xff] }
 0x5a3   :  { %2308 = vmatpush1.bf16.msra.mxu0 %v17201_v7  ;;  %v17212_v7 = vld [vmem:[#allocation39_spill] sm:$0xff] }
 0x5a4   :  { %2309 = vmatprep.subr.bf16.mxu0 %v17202_v8  ;;  %v17213_v8 = vld [vmem:[#allocation40_spill] sm:$0xff] }
 0x5a7   :  { %2310 = vmatpush1.bf16.msra.mxu0 %v17203_v30  ;;  %v17214_v30 = vld [vmem:[#allocation41_spill] sm:$0xff] }
 0x5a8   :  { %2311 = vmatprep.subr.bf16.mxu0 %v17204_v40  ;;  %v17215_v40 = vld [vmem:[#allocation42_spill] sm:$0xff] }
 0x5ab   :  { %2312 = vmatpush1.bf16.msra.mxu0 %v17205_v42  ;;  %v17216_v42 = vld [vmem:[#allocation43_spill] sm:$0xff] }
 0x5ac   :  { %2313 = vmatprep.subr.bf16.mxu0 %v17206_v37  ;;  %v17217_v37 = vld [vmem:[#allocation44_spill] sm:$0xff] }
 0x5af   :  { %2314 = vmatpush1.bf16.msra.mxu0 %v17207_v53  ;;  %v17218_v53 = vld [vmem:[#allocation46_spill] sm:$0xff] }
 0x5b0   :  { %2315 = vmatprep.subr.bf16.mxu0 %v17208_v2  ;;  %v17219_v2 = vld [vmem:[#allocation48_spill] sm:$0xff] }
 0x5b3   :  { %2316 = vmatpush1.bf16.msra.mxu0 %v17209_v5  ;;  %v17220_v5 = vld [vmem:[#allocation50_spill] sm:$0xff] }
 0x5b4   :  { %2317 = vmatprep.subr.bf16.mxu0 %v17210_v45  ;;  %v17221_v45 = vld [vmem:[#allocation52_spill] sm:$0xff] }
 0x5b7   :  { %2318 = vmatpush1.bf16.msra.mxu0 %v17211_v6  ;;  %v17222_v6 = vld [vmem:[#allocation54_spill] sm:$0xff] }
 0x5b8   :  { %2319 = vmatprep.subr.bf16.mxu0 %v17212_v7  ;;  %v17223_v7 = vld [vmem:[#allocation56_spill] sm:$0xff] }
 0x5bb   :  { %2320 = vmatpush2.bf16.msra.mxu0 %v17213_v8  ;;  %v17224_v8 = vld [vmem:[#allocation58_spill] sm:$0xff] }
 0x5bc   :  { %2321 = vmatprep.subr.bf16.mxu0 %v17214_v30  ;;  %v17225_v30 = vld [vmem:[#allocation60_spill] sm:$0xff] }
 0x5bf   :  { %2322 = vmatpush2.bf16.msra.mxu0 %v17215_v40  ;;  %v17226_v40 = vld [vmem:[#allocation61_spill] sm:$0xff] }
 0x5c0   :  { %2323 = vmatprep.subr.bf16.mxu0 %v17216_v42  ;;  %v17227_v42 = vld [vmem:[#allocation63_spill] sm:$0xff] }
 0x5c3   :  { %2324 = vmatpush2.bf16.msra.mxu0 %v17217_v37  ;;  %v17228_v37 = vld [vmem:[#allocation64_spill] sm:$0xff] }
 0x5c4   :  { %2325 = vmatprep.subr.bf16.mxu0 %v17218_v53 }
 0x5c7   :  { %2326 = vmatpush2.bf16.msra.mxu0 %v17219_v2  ;;  %v2296_v2 = vpop.f32.mrf.mxu1 }
 0x5c8   :  { %2327 = vmatprep.subr.bf16.mxu0 %v17220_v5  ;;  %v17229_v5 = vld [vmem:[#allocation65_spill] sm:$0xff] }
 0x5cb   :  { %2328 = vmatpush2.bf16.msra.mxu0 %v17221_v45 }
 0x5cc   :  { %2329 = vmatprep.subr.bf16.mxu0 %v17222_v6  ;;  %v17230_v6 = vld [vmem:[#allocation66_spill] sm:$0xff] }
 0x5cf   :  { %2330 = vmatpush2.bf16.msra.mxu0 %v17223_v7  ;;  %v2298_v7 = vpop.f32.mrf.mxu1 }
 0x5d0   :  { %2331 = vmatprep.subr.bf16.mxu0 %v17224_v8  ;;  %v2299_v8 = vadd.f32 %v2298_v7, %v9716_v63 }
 0x5d2   :  { %8145 = vtanh.f32 %v2299_v8  ;;  %v17239_v8 = vld [vmem:[#allocation76_spill] sm:$0xff] }
 0x5d3   :  { %2332 = vmatpush2.bf16.msra.mxu0 %v17225_v30  ;;  %v2300_v30 = vpop.f32.mrf.mxu1 }
 0x5d4   :  { %2333 = vmatprep.subr.bf16.mxu0 %v17226_v40 }
 0x5d7   :  { %2334 = vmatpush2.bf16.msra.mxu0 %v17227_v42  ;;  %v2301_v42 = vpop.f32.mrf.mxu1 }
 0x5d8   :  { %2400 = vmatprep.subr.bf16.mxu0 %v17228_v37  ;;  %v17233_v37 = vld [vmem:[#allocation70_spill] sm:$0xff]  ;;  %v17242_v42 = vld [vmem:[#allocation79_spill] sm:$0xff] }
 0x5da   :  { %2336 = vmatmul.mubr.bf16.vlgmr.msra.gmra.mxu0 %v11022_v48  ;;  %v2128_v53 = vpop.f32.mrf.mxu0  ;;  %v17232_v48 = vld [vmem:[#allocation69_spill] sm:$0xff] }
 0x5db   :  { %2401 = vmatpush1.bf16.msra.mxu0 %v17229_v5  ;;  %v17234_v5 = vld [vmem:[#allocation71_spill] sm:$0xff] }
 0x5dc   :  { %v2130_v45 = vpop.f32.mrf.mxu0  ;;  %2402 = vmatprep.subr.bf16.mxu0 %v17230_v6  ;;  %v17236_v6 = vld [vmem:[#allocation73_spill] sm:$0xff] }
 0x5de   :  { %v2132_v23 = vpop.f32.mrf.mxu0 }
 0x5df   :  { %2403 = vmatpush1.bf16.msra.mxu0 %v17231_v16  ;;  %v8146_v7 = vpop.eup %8145  ;;  %v17237_v23 = vld [vmem:[#allocation74_spill] sm:$0xff]  ;;  %v17238_v16 = vld [vmem:[#allocation75_spill] sm:$0xff] }
 0x5e0   :  { %v2133_v40 = vpop.f32.mrf.mxu0  ;;  %2404 = vmatprep.subr.bf16.mxu0 %v17101_v52  ;;  %v2353_v30 = vpack.c.bf16 %v8146_v7, %v8146_v7  ;;  %v17240_v52 = vld [vmem:[#allocation77_spill] sm:$0xff]  ;;  %v2297_v7 = vadd.f32 %v2296_v2, %v17118_v41 }
 0x5e1   :  { %v17241_v40 = vld [vmem:[#allocation78_spill] sm:$0xff] }
 0x5e2   :  { %2432 = vmatprep.mubr.bf16.mxu0 %v2353_v30  ;;  %8147 = vtanh.f32 %v2297_v7  ;;  %v17249_v30 = vld [vmem:[#allocation92_spill] sm:$0xff] }
 0x5e3   :  { %2405 = vmatpush1.bf16.msra.mxu0 %v17232_v48  ;;  %v17243_v48 = vld [vmem:[#allocation99_spill] sm:$0xff]  ;;  %v11813_v7 = vld [vmem:[%s15770_s1 + $0x27c] ss:$24 sps:$4 sm:$0xff]  }
 0x5e4   :  { %2406 = vmatprep.subr.bf16.mxu0 %v17233_v37  ;;  %v17245_v37 = vld [vmem:[#allocation86_spill] sm:$0xff] }
 0x5e7   :  { %2407 = vmatpush1.bf16.msra.mxu0 %v17234_v5  ;;  %v17246_v5 = vld [vmem:[#allocation87_spill] sm:$0xff] }
 0x5e8   :  { %2408 = vmatprep.subr.bf16.mxu0 %v17235_v21  ;;  %v17244_v21 = vld [vmem:[#allocation85_spill] sm:$0xff] }
 0x5eb   :  { %2409 = vmatpush1.bf16.msra.mxu0 %v17236_v6  ;;  %v17247_v6 = vld [vmem:[#allocation88_spill] sm:$0xff] }
 0x5ec   :  { %2410 = vmatprep.subr.bf16.mxu0 %v17237_v23  ;;  %v17248_v23 = vld [vmem:[#allocation89_spill] sm:$0xff] }
 0x5ef   :  { %2411 = vmatpush1.bf16.msra.mxu0 %v17238_v16  ;;  %v17250_v16 = vld [vmem:[#allocation93_spill] sm:$0xff] }
 0x5f0   :  { %2412 = vmatprep.subr.bf16.mxu0 %v17239_v8  ;;  %v17251_v8 = vld [vmem:[#allocation94_spill] sm:$0xff] }
 0x5f3   :  { %2413 = vmatpush1.bf16.msra.mxu0 %v17240_v52  ;;  %v17252_v52 = vld [vmem:[#allocation96_spill] sm:$0xff] }
 0x5f4   :  { %2414 = vmatprep.subr.bf16.mxu0 %v17241_v40  ;;  %v8148_v40 = vpop.eup %8147 }
 0x5f5   :  { %v2352_v2 = vpack.c.bf16 %v8148_v40, %v8148_v40  ;;  %v11849_v40 = vld [vmem:[%s15770_s1 + $0x1ec] ss:$24 sps:$4 sm:$0xff]  }
 0x5f7   :  { %2415 = vmatpush1.bf16.msra.mxu0 %v17242_v42  ;;  %v2172_v42 = vadd.f32 %v11649_v19, %v2130_v45  ;;  %v17255_v19 = vld [vmem:[#allocation91_spill] sm:$0xff]  ;;  %v11789_v45 = vld [vmem:[%s15770_s1 + $0x2dc] ss:$24 sps:$4 sm:$0xff]  }
 0x5f8   :  { %2416 = vmatprep.subr.bf16.mxu0 %v17243_v48 }
 0x5fb   :  { %2417 = vmatpush2.bf16.msra.mxu0 %v17244_v21 }
 0x5fc   :  { %2418 = vmatprep.subr.bf16.mxu0 %v17245_v37  ;;  %v11795_v37 = vld [vmem:[%s15770_s1 + $0x2d8] ss:$24 sps:$4 sm:$0xff]  }
 0x5ff   :  { %2419 = vmatpush2.bf16.msra.mxu0 %v17246_v5  ;;  %v11801_v5 = vld [vmem:[%s15770_s1 + $0x2ac] ss:$24 sps:$4 sm:$0xff]  }
 0x600   :  { %2420 = vmatprep.subr.bf16.mxu0 %v17247_v6  ;;  %v11807_v6 = vld [vmem:[%s15770_s1 + $0x2a8] ss:$24 sps:$4 sm:$0xff]  }
 0x603   :  { %2421 = vmatpush2.bf16.msra.mxu0 %v17248_v23  ;;  %v11819_v23 = vld [vmem:[%s15770_s1 + $0x278] ss:$24 sps:$4 sm:$0xff]  }
 0x604   :  { %2422 = vmatprep.subr.bf16.mxu0 %v17120_v54  ;;  %v11752_v54 = vld [vmem:[%s15770_s1 + $0x15c] ss:$24 sps:$4 sm:$0xff]  }
 0x607   :  { %2423 = vmatpush2.bf16.msra.mxu0 %v17121_v11  ;;  %v2170_v11 = vadd.f32 %v11647_v33, %v2128_v53  ;;  %v11777_v33 = vld [vmem:[%s15770_s1 + $0xc] ss:$24 sps:$4 sm:$0xff]   ;;  %v11783_v53 = vld [vmem:[%s15770_s1 + $0x8] ss:$24 sps:$4 sm:$0xff]  }
 0x608   :  { %2424 = vmatprep.subr.bf16.mxu0 %v17249_v30  ;;  %v11825_v30 = vld [vmem:[%s15770_s1 + $0x24c] ss:$24 sps:$4 sm:$0xff]  }
 0x60b   :  { %2425 = vmatpush2.bf16.msra.mxu0 %v17250_v16  ;;  %v11831_v16 = vld [vmem:[%s15770_s1 + $0x248] ss:$24 sps:$4 sm:$0xff]  }
 0x60c   :  { %2426 = vmatprep.subr.bf16.mxu0 %v17251_v8  ;;  %v11837_v8 = vld [vmem:[%s15770_s1 + $0x21c] ss:$24 sps:$4 sm:$0xff]  }
 0x60f   :  { %2427 = vmatpush2.bf16.msra.mxu0 %v17125_v0 }
 0x610   :  { %2428 = vmatprep.subr.bf16.mxu0 %v17252_v52  ;;  %v11843_v52 = vld [vmem:[%s15770_s1 + $0x218] ss:$24 sps:$4 sm:$0xff]  }
 0x613   :  { %2429 = vmatpush2.bf16.msra.mxu0 %v17127_v56 }
 0x614   :  { %2430 = vmatprep.subr.bf16.mxu0 %v17128_v60 }
 0x617   :  { %2431 = vmatpush2.bf16.msra.mxu0 %v10975_v55 }
 0x618   :  { %2527 = vmatprep.subr.bf16.mxu0 %v11752_v54 }
 0x61a   :  { %v2210_v0 = vpop.f32.mrf.mxu0  ;;  %2433 = vmatmul.mubr.bf16.vlgmr.msra.gmra.mxu0 %v2352_v2  ;;  %v11855_v2 = vld [vmem:[%s15770_s1 + $0x1e8] ss:$24 sps:$4 sm:$0xff]  }
 0x61b   :  { %v11757_v48 = vadd.f32 %v2210_v0, %v2170_v11  ;;  %2528 = vmatpush1.bf16.msra.mxu0 %v11414_v31  ;;  %v11861_v11 = vld [vmem:[%s15770_s1 + $0x1bc] ss:$24 sps:$4 sm:$0xff]   ;;  %v11867_v0 = vld [vmem:[%s15770_s1 + $0x1b8] ss:$24 sps:$4 sm:$0xff]  }
 0x61c   :  { %v2212_v56 = vpop.f32.mrf.mxu0  ;;  %2529 = vmatprep.subr.bf16.mxu0 %v11420_v14  ;;  %17256 = vst [vmem:[#allocation15_spill] sm:$0xff] %v11861_v11  ;;  %17257 = vst [vmem:[#allocation16_spill] sm:$0xff] %v11867_v0 }
 0x61d   :  { %17253 = vst [vmem:[#allocation14_spill] sm:$0xff] %v11757_v48  ;;  %v11761_v55 = vadd.f32 %v2212_v56, %v2172_v42  ;;  %v11873_v42 = vld [vmem:[%s15770_s1 + $0x18c] ss:$24 sps:$4 sm:$0xff]   ;;  %v11879_v56 = vld [vmem:[%s15770_s1 + $0x188] ss:$24 sps:$4 sm:$0xff]  }
 0x61e   :  { %v2214_v60 = vpop.f32.mrf.mxu0  ;;  %17258 = vst [vmem:[#allocation110_spill] sm:$0xff] %v11873_v42  ;;  %17259 = vst [vmem:[#allocation17_spill] sm:$0xff] %v11879_v56 }
 0x61f   :  { %17254 = vst [vmem:[#allocation109_spill] sm:$0xff] %v11761_v55  ;;  %2530 = vmatpush1.bf16.msra.mxu0 %v11428_v12  ;;  %v11885_v60 = vld [vmem:[%s15771_s0 + $0x18] sm:$0xf] }
 0x620   :  { %v2215_v21 = vpop.f32.mrf.mxu0  ;;  %2531 = vmatprep.subr.bf16.mxu0 %v11434_v62  ;;  %2559 = vmatprep.mubr.bf16.mxu0 %v11885_v60 }
 0x621   :  { %v11890_v21 = vld [vmem:[%s15772_s3 + $0x74] ss:$8 sps:$4 sm:$0xff]  }
 0x622   :  { %17260 = vst [vmem:[#allocation18_spill] sm:$0xff] %v11890_v21 }
 0x623   :  { %2532 = vmatpush1.bf16.msra.mxu0 %v11440_v4 }
 0x624   :  { %2533 = vmatprep.subr.bf16.mxu0 %v11446_v3 }
 0x627   :  { %2534 = vmatpush1.bf16.msra.mxu0 %v11452_v50 }
 0x628   :  { %2535 = vmatprep.subr.bf16.mxu0 %v11458_v10 }
 0x62b   :  { %2536 = vmatpush1.bf16.msra.mxu0 %v17255_v19 }
 0x62c   :  { %2537 = vmatprep.subr.bf16.mxu0 %v11470_v58 }
 0x62f   :  { %2538 = vmatpush1.bf16.msra.mxu0 %v11476_v46 }
 0x630   :  { %2539 = vmatprep.subr.bf16.mxu0 %v11482_v39 }
 0x633   :  { %2540 = vmatpush1.bf16.msra.mxu0 %v11488_v9 }
 0x634   :  { %2541 = vmatprep.subr.bf16.mxu0 %v11777_v33 }
 0x637   :  { %2542 = vmatpush1.bf16.msra.mxu0 %v11783_v53 }
 0x638   :  { %2543 = vmatprep.subr.bf16.mxu0 %v11789_v45 }
 0x63b   :  { %2544 = vmatpush2.bf16.msra.mxu0 %v11795_v37 }
 0x63c   :  { %2545 = vmatprep.subr.bf16.mxu0 %v11801_v5 }
 0x63f   :  { %2546 = vmatpush2.bf16.msra.mxu0 %v11807_v6 }
 0x640   :  { %2547 = vmatprep.subr.bf16.mxu0 %v11813_v7 }
 0x643   :  { %2548 = vmatpush2.bf16.msra.mxu0 %v11819_v23 }
 0x644   :  { %2549 = vmatprep.subr.bf16.mxu0 %v11825_v30 }
 0x647   :  { %2550 = vmatpush2.bf16.msra.mxu0 %v11831_v16 }
 0x648   :  { %2551 = vmatprep.subr.bf16.mxu0 %v11837_v8 }
 0x64b   :  { %2552 = vmatpush2.bf16.msra.mxu0 %v11843_v52 }
 0x64c   :  { %2553 = vmatprep.subr.bf16.mxu0 %v11849_v40 }
 0x64f   :  { %2554 = vmatpush2.bf16.msra.mxu0 %v11855_v2 }
 0x650   :  { %2555 = vmatprep.subr.bf16.mxu0 %v11861_v11 }
 0x653   :  { %2556 = vmatpush2.bf16.msra.mxu0 %v11867_v0  ;;  %v11905_v0 = vld [vmem:[%s15772_s3 + $0x64] ss:$8 sps:$4 sm:$0xff]  }
 0x654   :  { %2557 = vmatprep.subr.bf16.mxu0 %v11873_v42 }
 0x657   :  { %2558 = vmatpush2.bf16.msra.mxu0 %v11879_v56  ;;  %v11899_v56 = vld [vmem:[%s15772_s3 + $0x70] ss:$8 sps:$4 sm:$0xff]  }
 0x658   :  { %2624 = vmatprep.subr.bf16.mxu0 %v11890_v21  ;;  %17261 = vst [vmem:[#allocation19_spill] sm:$0xff] %v11899_v56 }
 0x65a   :  { %v2255_v48 = vpop.f32.mrf.mxu0  ;;  %2560 = vmatmul.mubr.bf16.vlgmr.msra.gmra.mxu0 %v11515_v61 }
 0x65b   :  { %v2256_v55 = vadd.f32 %v2255_v48, %v17012_v17  ;;  %2625 = vmatpush1.bf16.msra.mxu0 %v11899_v56  ;;  %v11912_v48 = vld [vmem:[%s15772_s3 + $0x60] ss:$8 sps:$4 sm:$0xff]   ;;  %v11918_v17 = vld [vmem:[%s15772_s3 + $0x54] ss:$8 sps:$4 sm:$0xff]  }
 0x65c   :  { %v2257_v42 = vpop.f32.mrf.mxu0  ;;  %2626 = vmatprep.subr.bf16.mxu0 %v11905_v0  ;;  %17262 = vst [vmem:[#allocation20_spill] sm:$0xff] %v11912_v48  ;;  %17263 = vst [vmem:[#allocation21_spill] sm:$0xff] %v11918_v17 }
 0x65d   :  { %v2258_v21 = vadd.f32 %v2257_v42, %v17013_v26  ;;  %8149 = vtanh.f32 %v2256_v55  ;;  %v11924_v55 = vld [vmem:[%s15772_s3 + $0x50] ss:$8 sps:$4 sm:$0xff]   ;;  %v11936_v42 = vld [vmem:[%s15772_s3 + $0x40] ss:$8 sps:$4 sm:$0xff]  }
 0x65e   :  { %v2259_v11 = vpop.f32.mrf.mxu0  ;;  %17264 = vst [vmem:[#allocation22_spill] sm:$0xff] %v11924_v55  ;;  %17266 = vst [vmem:[#allocation24_spill] sm:$0xff] %v11936_v42 }
 0x65f   :  { %8151 = vtanh.f32 %v2258_v21  ;;  %2627 = vmatpush1.bf16.msra.mxu0 %v11912_v48  ;;  %v11930_v11 = vld [vmem:[%s15772_s3 + $0x44] ss:$8 sps:$4 sm:$0xff]  }
 0x660   :  { %v2260_v56 = vpop.f32.mrf.mxu0  ;;  %2628 = vmatprep.subr.bf16.mxu0 %v11918_v17  ;;  %17265 = vst [vmem:[#allocation23_spill] sm:$0xff] %v11930_v11 }
 0x661   :  { %v11942_v56 = vld [vmem:[%s15772_s3 + $0x34] ss:$8 sps:$4 sm:$0xff]  }
 0x662   :  { %17267 = vst [vmem:[#allocation25_spill] sm:$0xff] %v11942_v56 }
 0x663   :  { %2629 = vmatpush1.bf16.msra.mxu0 %v11924_v55  ;;  %v11948_v55 = vld [vmem:[%s15772_s3 + $0x30] ss:$8 sps:$4 sm:$0xff]  }
 0x664   :  { %2630 = vmatprep.subr.bf16.mxu0 %v11930_v11  ;;  %17268 = vst [vmem:[#allocation26_spill] sm:$0xff] %v11948_v55 }
 0x667   :  { %2631 = vmatpush1.bf16.msra.mxu0 %v11936_v42  ;;  %v11954_v42 = vld [vmem:[%s15772_s3 + $0x24] ss:$8 sps:$4 sm:$0xff]  }
 0x668   :  { %2632 = vmatprep.subr.bf16.mxu0 %v11942_v56  ;;  %v11960_v56 = vld [vmem:[%s15772_s3 + $0x20] ss:$8 sps:$4 sm:$0xff]  }
 0x66a   :  { %v8150_v21 = vpop.eup %8149 }
 0x66b   :  { %2633 = vmatpush1.bf16.msra.mxu0 %v11948_v55  ;;  %v2350_v48 = vpack.c.bf16 %v8150_v21, %v8150_v21  ;;  %v11966_v55 = vld [vmem:[%s15772_s3 + $0x14] ss:$8 sps:$4 sm:$0xff]  }
 0x66c   :  { %v8152_v11 = vpop.eup %8151  ;;  %2634 = vmatprep.subr.bf16.mxu0 %v11954_v42  ;;  %v17275_v21 = vld [vmem:[#allocation112_spill] sm:$0xff] }
 0x66d   :  { %v2351_v17 = vpack.c.bf16 %v8152_v11, %v8152_v11  ;;  %v17274_v11 = vld [vmem:[#allocation111_spill] sm:$0xff] }
 0x66f   :  { %2391 = vmatprep.mubr.bf16.mxu1 %v2351_v17  ;;  %2635 = vmatpush1.bf16.msra.mxu0 %v11960_v56  ;;  %v11974_v17 = vld [vmem:[%s15772_s3 + $0x10] ss:$8 sps:$4 sm:$0xff]  }
 0x670   :  { %2392 = vmatmul.mubr.bf16.vlgmr.msra.gmra.mxu1 %v2350_v48  ;;  %2636 = vmatprep.subr.bf16.mxu0 %v11966_v55  ;;  %v11980_v48 = vld [vmem:[%s15772_s3 + $0x4] ss:$8 sps:$4 sm:$0xff]  }
 0x671   :  { %2442 = vmatpush1.bf16.msra.mxu1 %v11030_v20  ;;  %v11988_v20 = vld [vmem:[%s15772_s3] ss:$8 sps:$4 sm:$0xff]  }
 0x672   :  { %2443 = vmatprep.subr.bf16.mxu1 %v11037_v57  ;;  %v11994_v57 = vld [vmem:[%s15772_s3 + $0xf4] ss:$8 sps:$4 sm:$0xff]  }
 0x673   :  { %2637 = vmatpush1.bf16.msra.mxu0 %v11974_v17 }
 0x674   :  { %2638 = vmatprep.subr.bf16.mxu0 %v11980_v48 }
 0x675   :  { %2444 = vmatpush1.bf16.msra.mxu1 %v17134_v25  ;;  %v12002_v25 = vld [vmem:[%s15772_s3 + $0xf0] ss:$8 sps:$4 sm:$0xff]  }
 0x676   :  { %2445 = vmatprep.subr.bf16.mxu1 %v17136_v1  ;;  %17269 = vst [vmem:[#allocation6_spill] sm:$0xff] %v12002_v25  ;;  %v12008_v1 = vld [vmem:[%s15772_s3 + $0xe4] ss:$8 sps:$4 sm:$0xff]  }
 0x677   :  { %2639 = vmatpush1.bf16.msra.mxu0 %v11988_v20  ;;  %17270 = vst [vmem:[#allocation59_spill] sm:$0xff] %v12008_v1 }
 0x678   :  { %2640 = vmatprep.subr.bf16.mxu0 %v11994_v57 }
 0x679   :  { %2446 = vmatpush1.bf16.msra.mxu1 %v17138_v38  ;;  %v12016_v38 = vld [vmem:[%s15772_s3 + $0xe0] ss:$8 sps:$4 sm:$0xff]  }
 0x67a   :  { %2447 = vmatprep.subr.bf16.mxu1 %v17140_v59  ;;  %17271 = vst [vmem:[#allocation83_spill] sm:$0xff] %v12016_v38  ;;  %v12022_v59 = vld [vmem:[%s15772_s3 + $0xd4] ss:$8 sps:$4 sm:$0xff]  }
 0x67b   :  { %2641 = vmatpush2.bf16.msra.mxu0 %v12002_v25  ;;  %v17278_v25 = vld [vmem:[#allocation45_spill] sm:$0xff] }
 0x67c   :  { %2642 = vmatprep.subr.bf16.mxu0 %v12008_v1  ;;  %v17277_v1 = vld [vmem:[#allocation113_spill] sm:$0xff] }
 0x67d   :  { %2448 = vmatpush1.bf16.msra.mxu1 %v17142_v49  ;;  %v17272_v49 = vld [vmem:[#allocation5_spill] sm:$0xff] }
 0x67e   :  { %2449 = vmatprep.subr.bf16.mxu1 %v17144_v27  ;;  %v17273_v27 = vld [vmem:[#allocation55_spill] sm:$0xff] }
 0x67f   :  { %2643 = vmatpush2.bf16.msra.mxu0 %v12016_v38  ;;  %v17276_v38 = vld [vmem:[#allocation57_spill] sm:$0xff] }
 0x680   :  { %2644 = vmatprep.subr.bf16.mxu0 %v12022_v59 }
 0x681   :  { %2450 = vmatpush1.bf16.msra.mxu1 %v11086_v13  ;;  %v17279_v13 = vld [vmem:[#allocation114_spill] sm:$0xff] }
 0x682   :  { %2451 = vmatprep.subr.bf16.mxu1 %v17147_v51  ;;  %v17280_v51 = vld [vmem:[#allocation47_spill] sm:$0xff] }
 0x683   :  { %2645 = vmatpush2.bf16.msra.mxu0 %v17272_v49  ;;  %v17281_v49 = vld [vmem:[#allocation3_spill] sm:$0xff] }
 0x684   :  { %2646 = vmatprep.subr.bf16.mxu0 %v17273_v27 }
 0x685   :  { %2452 = vmatpush1.bf16.msra.mxu1 %v17274_v11  ;;  %v17288_v11 = vld [vmem:[#allocation105_spill] sm:$0xff] }
 0x686   :  { %2453 = vmatprep.subr.bf16.mxu1 %v17275_v21 }
 0x687   :  { %2647 = vmatpush2.bf16.msra.mxu0 %v17276_v38  ;;  %v17282_v38 = vld [vmem:[#allocation51_spill] sm:$0xff] }
 0x688   :  { %2648 = vmatprep.subr.bf16.mxu0 %v17171_v22  ;;  %v17283_v22 = vld [vmem:[#allocation116_spill] sm:$0xff] }
 0x689   :  { %2454 = vmatpush1.bf16.msra.mxu1 %v17277_v1 }
 0x68a   :  { %2455 = vmatprep.subr.bf16.mxu1 %v17278_v25  ;;  %v17284_v25 = vld [vmem:[#allocation53_spill] sm:$0xff] }
 0x68b   :  { %2649 = vmatpush2.bf16.msra.mxu0 %v17172_v18  ;;  %v17285_v18 = vld [vmem:[#allocation4_spill] sm:$0xff] }
 0x68c   :  { %2650 = vmatprep.subr.bf16.mxu0 %v17173_v15  ;;  %v17286_v15 = vld [vmem:[#allocation117_spill] sm:$0xff] }
 0x68d   :  { %2456 = vmatpush1.bf16.msra.mxu1 %v17279_v13 }
 0x68e   :  { %2469 = vmatprep.subr.bf16.mxu1 %v17280_v51 }
 0x68f   :  { %2651 = vmatpush2.bf16.msra.mxu0 %v17174_v28  ;;  %v17287_v28 = vld [vmem:[#allocation104_spill] sm:$0xff] }
 0x690   :  { %2652 = vmatprep.subr.bf16.mxu0 %v17175_v47 }
 0x691   :  { %2470 = vmatpush2.bf16.msra.mxu1 %v17281_v49 }
 0x692   :  { %2471 = vmatprep.subr.bf16.mxu1 %v17282_v38 }
 0x693   :  { %2653 = vmatpush2.bf16.msra.mxu0 %v17176_v24 }
 0x694   :  { %2654 = vmatprep.subr.bf16.mxu0 %v17283_v22 }
 0x695   :  { %2472 = vmatpush2.bf16.msra.mxu1 %v17284_v25  ;;  %v17290_v25 = vld [vmem:[#allocation124_spill] sm:$0xff] }
 0x696   :  { %2486 = vmatprep.subr.bf16.mxu1 %v17285_v18  ;;  %v17291_v18 = vld [vmem:[#allocation125_spill] sm:$0xff] }
 0x697   :  { %2655 = vmatpush2.bf16.msra.mxu0 %v17286_v15  ;;  %v17292_v15 = vld [vmem:[#allocation126_spill] sm:$0xff] }
 0x698   :  { %2706 = vmatprep.subr.bf16.mxu0 %v11237_v34  ;;  %v17289_v34 = vld [vmem:[#allocation123_spill] sm:$0xff] }
 0x69a   :  { %v2337_v1 = vpop.f32.mrf.mxu0 }
 0x69b   :  { %v2338_v27 = vadd.f32 %v2337_v1, %v17287_v28  ;;  %v17294_v1 = vld [vmem:[#allocation128_spill] sm:$0xff] }
 0x69c   :  { %v2339_v47 = vpop.f32.mrf.mxu0 }
 0x69d   :  { %v2340_v21 = vadd.f32 %v2339_v47, %v17288_v11  ;;  %8153 = vtanh.f32 %v2338_v27  ;;  %v17300_v27 = vld [vmem:[#allocation102_spill] sm:$0xff] }
 0x69e   :  { %v2341_v13 = vpop.f32.mrf.mxu0  ;;  %v17301_v47 = vld [vmem:[#allocation10_spill] sm:$0xff] }
 0x69f   :  { %8155 = vtanh.f32 %v2340_v21  ;;  %v17302_v21 = vld [vmem:[#allocation103_spill] sm:$0xff] }
 0x6a0   :  { %v2342_v24 = vpop.f32.mrf.mxu0  ;;  %v17303_v13 = vld [vmem:[#allocation11_spill] sm:$0xff] }
 0x6a1   :  { %v17304_v24 = vld [vmem:[#allocation106_spill] sm:$0xff] }
 0x6aa   :  { %v8154_v51 = vpop.eup %8153 }
 0x6ab   :  { %v2354_v22 = vpack.c.bf16 %v8154_v51, %v8154_v51 }
 0x6ac   :  { %v8156_v49 = vpop.eup %8155 }
 0x6ad   :  { %v2355_v38 = vpack.c.bf16 %v8156_v49, %v8156_v49 }
 0x6af   :  { %6676 = vmatprep.mubr.msk.bf16.mxu1 %vm1295_vm0, %v2355_v38  ;;  %v17305_v38 = vld [vmem:[#allocation12_spill] sm:$0xff] }
 0x6b0   :  { %2474 = vmatmul.mubr.bf16.vlgmr.msra.gmra.mxu1 %v2354_v22  ;;  %v17306_v22 = vld [vmem:[#allocation107_spill] sm:$0xff] }
 0x6b1   :  { %2487 = vmatpush1.bf16.msra.mxu1 %v11244_v32  ;;  %2518 = vmatprep.mubr.bf16.mxu1 %v11885_v60  ;;  %v17293_v32 = vld [vmem:[#allocation127_spill] sm:$0xff] }
 0x6b2   :  { %2488 = vmatprep.subr.bf16.mxu1 %v17178_v44  ;;  %v17295_v44 = vld [vmem:[#allocation95_spill] sm:$0xff] }
 0x6b5   :  { %2489 = vmatpush1.bf16.msra.mxu1 %v17179_v36  ;;  %v17296_v36 = vld [vmem:[#allocation97_spill] sm:$0xff] }
 0x6b6   :  { %2490 = vmatprep.subr.bf16.mxu1 %v17180_v35  ;;  %v17297_v35 = vld [vmem:[#allocation98_spill] sm:$0xff] }
 0x6b9   :  { %2491 = vmatpush1.bf16.msra.mxu1 %v17181_v43  ;;  %v17298_v43 = vld [vmem:[#allocation7_spill] sm:$0xff] }
 0x6ba   :  { %2492 = vmatprep.subr.bf16.mxu1 %v17182_v29  ;;  %v17299_v29 = vld [vmem:[#allocation9_spill] sm:$0xff] }
 0x6bd   :  { %2493 = vmatpush1.bf16.msra.mxu1 %v17289_v34 }
 0x6be   :  { %2494 = vmatprep.subr.bf16.mxu1 %v17290_v25 }
 0x6c1   :  { %2495 = vmatpush1.bf16.msra.mxu1 %v17291_v18  ;;  %v17307_v18 = vld [vmem:[#allocation13_spill] sm:$0xff] }
 0x6c2   :  { %2496 = vmatprep.subr.bf16.mxu1 %v17292_v15  ;;  %v17308_v15 = vld [vmem:[#allocation108_spill] sm:$0xff] }
 0x6c5   :  { %2497 = vmatpush1.bf16.msra.mxu1 %v17293_v32  ;;  %v12086_v32 = vld [vmem:[%s15770_s1 + $0x1e0] ss:$24 sps:$4 sm:$0xff]  }
 0x6c6   :  { %2498 = vmatprep.subr.bf16.mxu1 %v17294_v1  ;;  %17309 = vst [vmem:[#allocation62_spill] sm:$0xff] %v12086_v32  ;;  %v12092_v1 = vld [vmem:[%s15770_s1 + $0x1b4] ss:$24 sps:$4 sm:$0xff]  }
 0x6c7   :  { %17310 = vst [vmem:[#allocation8_spill] sm:$0xff] %v12092_v1 }
 0x6c9   :  { %2499 = vmatpush1.bf16.msra.mxu1 %v17295_v44 }
 0x6ca   :  { %2500 = vmatprep.subr.bf16.mxu1 %v17296_v36 }
 0x6cd   :  { %2501 = vmatpush1.bf16.msra.mxu1 %v17297_v35 }
 0x6ce   :  { %2502 = vmatprep.subr.bf16.mxu1 %v17298_v43 }
 0x6d1   :  { %2503 = vmatpush2.bf16.msra.mxu1 %v17299_v29 }
 0x6d2   :  { %2504 = vmatprep.subr.bf16.mxu1 %v17300_v27 }
 0x6d5   :  { %2505 = vmatpush2.bf16.msra.mxu1 %v17301_v47 }
 0x6d6   :  { %2506 = vmatprep.subr.bf16.mxu1 %v17302_v21 }
 0x6d9   :  { %2507 = vmatpush2.bf16.msra.mxu1 %v17303_v13 }
 0x6da   :  { %2508 = vmatprep.subr.bf16.mxu1 %v17304_v24  ;;  %v12075_v51 = vpop.f32.mrf.mxu0 }
 0x6dc   :  { %v12077_v49 = vpop.f32.mrf.mxu0 }
 0x6dd   :  { %2509 = vmatpush2.bf16.msra.mxu1 %v17305_v38  ;;  %v12271_v38 = vld [vmem:[%s15770_s1 + $0x220] ss:$24 sps:$4 sm:$0xff]  }
 0x6de   :  { %2510 = vmatprep.subr.bf16.mxu1 %v17306_v22  ;;  %v2438_v34 = vpop.f32.mrf.mxu0  ;;  %17338 = vst [vmem:[#allocation52_spill] sm:$0xff] %v12271_v38 }
 0x6df   :  { %v12098_v34 = vld [vmem:[%s15770_s1 + $0x1b0] ss:$24 sps:$4 sm:$0xff]  }
 0x6e0   :  { %v2439_v25 = vpop.f32.mrf.mxu0  ;;  %17311 = vst [vmem:[#allocation115_spill] sm:$0xff] %v12098_v34 }
 0x6e1   :  { %2511 = vmatpush2.bf16.msra.mxu1 %v17307_v18  ;;  %v12104_v25 = vld [vmem:[%s15770_s1 + $0x184] ss:$24 sps:$4 sm:$0xff]  }
 0x6e2   :  { %2512 = vmatprep.subr.bf16.mxu1 %v17308_v15  ;;  %17312 = vst [vmem:[#allocation118_spill] sm:$0xff] %v12104_v25 }
 0x6e5   :  { %2513 = vmatpush2.bf16.msra.mxu1 %v12086_v32  ;;  %v12110_v32 = vld [vmem:[%s15770_s1 + $0x180] ss:$24 sps:$4 sm:$0xff]  }
 0x6e6   :  { %2514 = vmatprep.subr.bf16.mxu1 %v12092_v1  ;;  %17313 = vst [vmem:[#allocation119_spill] sm:$0xff] %v12110_v32  ;;  %v12116_v1 = vld [vmem:[%s15770_s1 + $0x164] ss:$24 sps:$4 sm:$0xff]  }
 0x6e7   :  { %17314 = vst [vmem:[#allocation120_spill] sm:$0xff] %v12116_v1 }
 0x6e9   :  { %2515 = vmatpush2.bf16.msra.mxu1 %v12098_v34  ;;  %v12148_v34 = vld [vmem:[%s15770_s1 + $0x100] ss:$24 sps:$4 sm:$0xff]  }
 0x6ea   :  { %2516 = vmatprep.subr.bf16.mxu1 %v12104_v25  ;;  %v12123_v25 = vld [vmem:[%s15770_s1 + $0x160] ss:$24 sps:$4 sm:$0xff]   ;;  %17319 = vst [vmem:[#allocation29_spill] sm:$0xff] %v12148_v34 }
 0x6eb   :  { %17315 = vst [vmem:[#allocation121_spill] sm:$0xff] %v12123_v25 }
 0x6ed   :  { %2517 = vmatpush2.bf16.msra.mxu1 %v12110_v32  ;;  %v12130_v32 = vld [vmem:[%s15770_s1 + $0x134] ss:$24 sps:$4 sm:$0xff]  }
 0x6ee   :  { %2568 = vmatprep.subr.bf16.mxu1 %v12116_v1  ;;  %17316 = vst [vmem:[#allocation122_spill] sm:$0xff] %v12130_v32  ;;  %v12136_v1 = vld [vmem:[%s15770_s1 + $0x130] ss:$24 sps:$4 sm:$0xff]  }
 0x6ef   :  { %17317 = vst [vmem:[#allocation27_spill] sm:$0xff] %v12136_v1 }
 0x6f0   :  { %2519 = vmatmul.mubr.bf16.vlgmr.msra.gmra.mxu1 %v11515_v61 }
 0x6f1   :  { %2569 = vmatpush1.bf16.msra.mxu1 %v12123_v25  ;;  %2600 = vmatprep.mubr.bf16.mxu1 %v11885_v60  ;;  %v12142_v25 = vld [vmem:[%s15770_s1 + $0x104] ss:$24 sps:$4 sm:$0xff]  }
 0x6f2   :  { %2570 = vmatprep.subr.bf16.mxu1 %v12130_v32  ;;  %17318 = vst [vmem:[#allocation28_spill] sm:$0xff] %v12142_v25  ;;  %v12154_v32 = vld [vmem:[%s15770_s1 + $0xd4] ss:$24 sps:$4 sm:$0xff]  }
 0x6f3   :  { %17320 = vst [vmem:[#allocation30_spill] sm:$0xff] %v12154_v32 }
 0x6f5   :  { %2571 = vmatpush1.bf16.msra.mxu1 %v12136_v1  ;;  %v12160_v1 = vld [vmem:[%s15770_s1 + $0xd0] ss:$24 sps:$4 sm:$0xff]  }
 0x6f6   :  { %2572 = vmatprep.subr.bf16.mxu1 %v12142_v25  ;;  %17321 = vst [vmem:[#allocation31_spill] sm:$0xff] %v12160_v1  ;;  %v12166_v25 = vld [vmem:[%s15770_s1 + $0xa4] ss:$24 sps:$4 sm:$0xff]  }
 0x6f7   :  { %17322 = vst [vmem:[#allocation32_spill] sm:$0xff] %v12166_v25 }
 0x6f9   :  { %2573 = vmatpush1.bf16.msra.mxu1 %v12148_v34  ;;  %v12172_v34 = vld [vmem:[%s15770_s1 + $0xa0] ss:$24 sps:$4 sm:$0xff]  }
 0x6fa   :  { %2574 = vmatprep.subr.bf16.mxu1 %v12154_v32  ;;  %17323 = vst [vmem:[#allocation33_spill] sm:$0xff] %v12172_v34  ;;  %v12178_v32 = vld [vmem:[%s15770_s1 + $0x74] ss:$24 sps:$4 sm:$0xff]  }
 0x6fb   :  { %17324 = vst [vmem:[#allocation34_spill] sm:$0xff] %v12178_v32 }
 0x6fd   :  { %2575 = vmatpush1.bf16.msra.mxu1 %v12160_v1  ;;  %v12184_v1 = vld [vmem:[%s15770_s1 + $0x70] ss:$24 sps:$4 sm:$0xff]  }
 0x6fe   :  { %2576 = vmatprep.subr.bf16.mxu1 %v12166_v25  ;;  %17325 = vst [vmem:[#allocation35_spill] sm:$0xff] %v12184_v1  ;;  %v12190_v25 = vld [vmem:[%s15770_s1 + $0x44] ss:$24 sps:$4 sm:$0xff]  }
 0x6ff   :  { %17326 = vst [vmem:[#allocation36_spill] sm:$0xff] %v12190_v25 }
 0x701   :  { %2577 = vmatpush1.bf16.msra.mxu1 %v12172_v34  ;;  %v12196_v34 = vld [vmem:[%s15770_s1 + $0x40] ss:$24 sps:$4 sm:$0xff]  }
 0x702   :  { %2578 = vmatprep.subr.bf16.mxu1 %v12178_v32  ;;  %17327 = vst [vmem:[#allocation37_spill] sm:$0xff] %v12196_v34  ;;  %v12202_v32 = vld [vmem:[%s15770_s1 + $0x14] ss:$24 sps:$4 sm:$0xff]  }
 0x703   :  { %17328 = vst [vmem:[#allocation38_spill] sm:$0xff] %v12202_v32 }
 0x705   :  { %2579 = vmatpush1.bf16.msra.mxu1 %v12184_v1  ;;  %v12208_v1 = vld [vmem:[%s15770_s1 + $0x10] ss:$24 sps:$4 sm:$0xff]  }
 0x706   :  { %2580 = vmatprep.subr.bf16.mxu1 %v12190_v25  ;;  %17329 = vst [vmem:[#allocation39_spill] sm:$0xff] %v12208_v1  ;;  %v12214_v25 = vld [vmem:[%s15770_s1 + $0x2e4] ss:$24 sps:$4 sm:$0xff]  }
 0x707   :  { %17330 = vst [vmem:[#allocation40_spill] sm:$0xff] %v12214_v25 }
 0x709   :  { %2581 = vmatpush1.bf16.msra.mxu1 %v12196_v34  ;;  %v12220_v34 = vld [vmem:[%s15770_s1 + $0x2e0] ss:$24 sps:$4 sm:$0xff]  }
 0x70a   :  { %2582 = vmatprep.subr.bf16.mxu1 %v12202_v32  ;;  %17331 = vst [vmem:[#allocation41_spill] sm:$0xff] %v12220_v34  ;;  %v12226_v32 = vld [vmem:[%s15770_s1 + $0x2b4] ss:$24 sps:$4 sm:$0xff]  }
 0x70b   :  { %17332 = vst [vmem:[#allocation42_spill] sm:$0xff] %v12226_v32 }
 0x70d   :  { %2583 = vmatpush1.bf16.msra.mxu1 %v12208_v1  ;;  %v12232_v1 = vld [vmem:[%s15770_s1 + $0x2b0] ss:$24 sps:$4 sm:$0xff]  }
 0x70e   :  { %2584 = vmatprep.subr.bf16.mxu1 %v12214_v25  ;;  %17333 = vst [vmem:[#allocation43_spill] sm:$0xff] %v12232_v1  ;;  %v12238_v25 = vld [vmem:[%s15770_s1 + $0x284] ss:$24 sps:$4 sm:$0xff]  }
 0x70f   :  { %17334 = vst [vmem:[#allocation44_spill] sm:$0xff] %v12238_v25 }
 0x711   :  { %2585 = vmatpush2.bf16.msra.mxu1 %v12220_v34  ;;  %v12244_v34 = vld [vmem:[%s15770_s1 + $0x280] ss:$24 sps:$4 sm:$0xff]  }
 0x712   :  { %2586 = vmatprep.subr.bf16.mxu1 %v12226_v32  ;;  %17335 = vst [vmem:[#allocation46_spill] sm:$0xff] %v12244_v34  ;;  %v12250_v32 = vld [vmem:[%s15770_s1 + $0x254] ss:$24 sps:$4 sm:$0xff]  }
 0x713   :  { %17336 = vst [vmem:[#allocation48_spill] sm:$0xff] %v12250_v32 }
 0x715   :  { %2587 = vmatpush2.bf16.msra.mxu1 %v12232_v1 }
 0x716   :  { %2588 = vmatprep.subr.bf16.mxu1 %v12238_v25  ;;  %v12258_v25 = vld [vmem:[%s15770_s1 + $0x250] ss:$24 sps:$4 sm:$0xff]  }
 0x719   :  { %2589 = vmatpush2.bf16.msra.mxu1 %v12244_v34  ;;  %v12265_v34 = vld [vmem:[%s15770_s1 + $0x224] ss:$24 sps:$4 sm:$0xff]  }
 0x71a   :  { %2590 = vmatprep.subr.bf16.mxu1 %v12250_v32  ;;  %v12253_v1 = vpop.f32.mrf.mxu0  ;;  %17337 = vst [vmem:[#allocation50_spill] sm:$0xff] %v12265_v34 }
 0x71c   :  { %v2563_v15 = vpop.f32.mrf.mxu0 }
 0x71d   :  { %2591 = vmatpush2.bf16.msra.mxu1 %v12258_v25  ;;  %v2564_v18 = vadd.f32 %v2563_v15, %v9716_v63  ;;  %v12277_v15 = vld [vmem:[%s15770_s1 + $0x1f4] ss:$24 sps:$4 sm:$0xff]  }
 0x71e   :  { %2592 = vmatprep.subr.bf16.mxu1 %v12265_v34  ;;  %v2565_v32 = vpop.f32.mrf.mxu0  ;;  %17339 = vst [vmem:[#allocation54_spill] sm:$0xff] %v12277_v15 }
 0x71f   :  { %8157 = vtanh.f32 %v2564_v18  ;;  %v12283_v32 = vld [vmem:[%s15770_s1 + $0x1f0] ss:$24 sps:$4 sm:$0xff]   ;;  %v12295_v18 = vld [vmem:[%s15770_s1 + $0x1c0] ss:$24 sps:$4 sm:$0xff]  }
 0x720   :  { %v2566_v22 = vpop.f32.mrf.mxu0  ;;  %17340 = vst [vmem:[#allocation56_spill] sm:$0xff] %v12283_v32  ;;  %17342 = vst [vmem:[#allocation60_spill] sm:$0xff] %v12295_v18 }
 0x721   :  { %2593 = vmatpush2.bf16.msra.mxu1 %v12271_v38  ;;  %v12289_v22 = vld [vmem:[%s15770_s1 + $0x1c4] ss:$24 sps:$4 sm:$0xff]   ;;  %v12307_v38 = vld [vmem:[%s15770_s1 + $0x190] ss:$24 sps:$4 sm:$0xff]  }
 0x722   :  { %2594 = vmatprep.subr.bf16.mxu1 %v12277_v15  ;;  %17341 = vst [vmem:[#allocation58_spill] sm:$0xff] %v12289_v22  ;;  %v12301_v15 = vld [vmem:[%s15770_s1 + $0x194] ss:$24 sps:$4 sm:$0xff]   ;;  %17344 = vst [vmem:[#allocation63_spill] sm:$0xff] %v12307_v38 }
 0x723   :  { %17343 = vst [vmem:[#allocation61_spill] sm:$0xff] %v12301_v15 }
 0x725   :  { %2595 = vmatpush2.bf16.msra.mxu1 %v12283_v32 }
 0x726   :  { %2596 = vmatprep.subr.bf16.mxu1 %v12289_v22 }
 0x729   :  { %2597 = vmatpush2.bf16.msra.mxu1 %v12295_v18  ;;  %v12313_v18 = vld [vmem:[%s15772_s3 + $0x174] ss:$8 sps:$4 sm:$0xff]  }
 0x72a   :  { %2598 = vmatprep.subr.bf16.mxu1 %v12301_v15  ;;  %17345 = vst [vmem:[#allocation64_spill] sm:$0xff] %v12313_v18  ;;  %v12322_v15 = vld [vmem:[%s15772_s3 + $0x170] ss:$8 sps:$4 sm:$0xff]  }
 0x72b   :  { %17346 = vst [vmem:[#allocation65_spill] sm:$0xff] %v12322_v15 }
 0x72c   :  { %v8158_v32 = vpop.eup %8157 }
 0x72d   :  { %2599 = vmatpush2.bf16.msra.mxu1 %v12307_v38  ;;  %v2618_v22 = vpack.c.bf16 %v8158_v32, %v8158_v32  ;;  %v12330_v38 = vld [vmem:[%s15772_s3 + $0x164] ss:$8 sps:$4 sm:$0xff]  }
 0x72e   :  { %2665 = vmatprep.subr.bf16.mxu1 %v12313_v18  ;;  %17347 = vst [vmem:[#allocation66_spill] sm:$0xff] %v12330_v38  ;;  %v12336_v18 = vld [vmem:[%s15772_s3 + $0x160] ss:$8 sps:$4 sm:$0xff]  }
 0x72f   :  { %17348 = vst [vmem:[#allocation67_spill] sm:$0xff] %v12336_v18 }
 0x730   :  { %2601 = vmatmul.mubr.bf16.vlgmr.msra.gmra.mxu1 %v11515_v61  ;;  %v12317_v34 = vpop.f32.mrf.mxu1 }
 0x731   :  { %2666 = vmatpush1.bf16.msra.mxu1 %v12322_v15  ;;  %2697 = vmatprep.mubr.bf16.mxu1 %v2618_v22  ;;  %v12342_v22 = vld [vmem:[%s15772_s3 + $0x154] ss:$8 sps:$4 sm:$0xff]  }
 0x732   :  { %v12325_v32 = vpop.f32.mrf.mxu1  ;;  %2667 = vmatprep.subr.bf16.mxu1 %v12330_v38  ;;  %17349 = vst [vmem:[#allocation69_spill] sm:$0xff] %v12342_v22  ;;  %v12348_v38 = vld [vmem:[%s15772_s3 + $0x150] ss:$8 sps:$4 sm:$0xff]  }
 0x733   :  { %17350 = vst [vmem:[#allocation70_spill] sm:$0xff] %v12348_v38 }
 0x734   :  { %v2397_v61 = vpop.f32.mrf.mxu1 }
 0x735   :  { %2668 = vmatpush1.bf16.msra.mxu1 %v12336_v18  ;;  %v12354_v61 = vld [vmem:[%s15772_s3 + $0x144] ss:$8 sps:$4 sm:$0xff]  }
 0x736   :  { %v2398_v63 = vpop.f32.mrf.mxu1  ;;  %2669 = vmatprep.subr.bf16.mxu1 %v12342_v22  ;;  %17351 = vst [vmem:[#allocation71_spill] sm:$0xff] %v12354_v61  ;;  %v12366_v22 = vld [vmem:[%s15772_s3 + $0x134] ss:$8 sps:$4 sm:$0xff]  }
 0x737   :  { %v12360_v63 = vld [vmem:[%s15772_s3 + $0x140] ss:$8 sps:$4 sm:$0xff]   ;;  %17353 = vst [vmem:[#allocation73_spill] sm:$0xff] %v12366_v22 }
 0x738   :  { %17352 = vst [vmem:[#allocation72_spill] sm:$0xff] %v12360_v63 }
 0x739   :  { %2670 = vmatpush1.bf16.msra.mxu1 %v12348_v38  ;;  %v12372_v38 = vld [vmem:[%s15772_s3 + $0x130] ss:$8 sps:$4 sm:$0xff]  }
 0x73a   :  { %2671 = vmatprep.subr.bf16.mxu1 %v12354_v61  ;;  %17354 = vst [vmem:[#allocation74_spill] sm:$0xff] %v12372_v38  ;;  %v12378_v61 = vld [vmem:[%s15772_s3 + $0x124] ss:$8 sps:$4 sm:$0xff]  }
 0x73b   :  { %17355 = vst [vmem:[#allocation75_spill] sm:$0xff] %v12378_v61 }
 0x73d   :  { %2672 = vmatpush1.bf16.msra.mxu1 %v12360_v63  ;;  %v12384_v63 = vld [vmem:[%s15772_s3 + $0x120] ss:$8 sps:$4 sm:$0xff]  }
 0x73e   :  { %2673 = vmatprep.subr.bf16.mxu1 %v12366_v22  ;;  %17356 = vst [vmem:[#allocation76_spill] sm:$0xff] %v12384_v63  ;;  %v12390_v22 = vld [vmem:[%s15772_s3 + $0x114] ss:$8 sps:$4 sm:$0xff]  }
 0x73f   :  { %17357 = vst [vmem:[#allocation77_spill] sm:$0xff] %v12390_v22 }
 0x741   :  { %2674 = vmatpush1.bf16.msra.mxu1 %v12372_v38  ;;  %v12396_v38 = vld [vmem:[%s15772_s3 + $0x110] ss:$8 sps:$4 sm:$0xff]  }
 0x742   :  { %2675 = vmatprep.subr.bf16.mxu1 %v12378_v61  ;;  %17358 = vst [vmem:[#allocation78_spill] sm:$0xff] %v12396_v38  ;;  %v12402_v61 = vld [vmem:[%s15772_s3 + $0x104] ss:$8 sps:$4 sm:$0xff]  }
 0x743   :  { %17359 = vst [vmem:[#allocation79_spill] sm:$0xff] %v12402_v61 }
 0x745   :  { %2676 = vmatpush1.bf16.msra.mxu1 %v12384_v63  ;;  %v12408_v63 = vld [vmem:[%s15772_s3 + $0x100] ss:$8 sps:$4 sm:$0xff]  }
 0x746   :  { %2677 = vmatprep.subr.bf16.mxu1 %v12390_v22  ;;  %17360 = vst [vmem:[#allocation99_spill] sm:$0xff] %v12408_v63  ;;  %v12414_v22 = vld [vmem:[%s15772_s3 + $0x1f4] ss:$8 sps:$4 sm:$0xff]  }
 0x747   :  { %17361 = vst [vmem:[#allocation85_spill] sm:$0xff] %v12414_v22 }
 0x749   :  { %2678 = vmatpush1.bf16.msra.mxu1 %v12396_v38  ;;  %v12420_v38 = vld [vmem:[%s15772_s3 + $0x1f0] ss:$8 sps:$4 sm:$0xff]  }
 0x74a   :  { %2679 = vmatprep.subr.bf16.mxu1 %v12402_v61  ;;  %17362 = vst [vmem:[#allocation86_spill] sm:$0xff] %v12420_v38  ;;  %v12426_v61 = vld [vmem:[%s15772_s3 + $0x1e4] ss:$8 sps:$4 sm:$0xff]  }
 0x74b   :  { %17363 = vst [vmem:[#allocation87_spill] sm:$0xff] %v12426_v61 }
 0x74d   :  { %2680 = vmatpush1.bf16.msra.mxu1 %v12408_v63  ;;  %v12432_v63 = vld [vmem:[%s15772_s3 + $0x1e0] ss:$8 sps:$4 sm:$0xff]  }
 0x74e   :  { %2681 = vmatprep.subr.bf16.mxu1 %v12414_v22  ;;  %17364 = vst [vmem:[#allocation88_spill] sm:$0xff] %v12432_v63  ;;  %v12438_v22 = vld [vmem:[%s15772_s3 + $0x1d4] ss:$8 sps:$4 sm:$0xff]  }
 0x74f   :  { %17365 = vst [vmem:[#allocation89_spill] sm:$0xff] %v12438_v22 }
 0x751   :  { %2682 = vmatpush2.bf16.msra.mxu1 %v12420_v38  ;;  %v2562_v38 = vadd.f32 %v12253_v1, %v17118_v41  ;;  %v12464_v1 = vld [vmem:[%s15772_s3 + $0x1b4] ss:$8 sps:$4 sm:$0xff]   ;;  %v2435_v41 = vadd.f32 %v12075_v51, %v12317_v34  ;;  %v8555_v34 = vld [vmem:[%s15772_s3 + $0xd0] ss:$8 sps:$4 sm:$0xff]  }
 0x752   :  { %2683 = vmatprep.subr.bf16.mxu1 %v12426_v61  ;;  %v12446_v61 = vld [vmem:[%s15772_s3 + $0x1d0] ss:$8 sps:$4 sm:$0xff]   ;;  %17369 = vst [vmem:[#allocation96_spill] sm:$0xff] %v12464_v1 }
 0x753   :  { %17366 = vst [vmem:[#allocation92_spill] sm:$0xff] %v12446_v61  ;;  %8159 = vtanh.f32 %v2562_v38  ;;  %v12476_v38 = vld [vmem:[%s15772_s3 + $0x1a4] ss:$8 sps:$4 sm:$0xff]  }
 0x754   :  { %17371 = vst [vmem:[#allocation5_spill] sm:$0xff] %v12476_v38 }
 0x755   :  { %2684 = vmatpush2.bf16.msra.mxu1 %v12432_v63  ;;  %v12452_v63 = vld [vmem:[%s15772_s3 + $0x1c4] ss:$8 sps:$4 sm:$0xff]  }
 0x756   :  { %2685 = vmatprep.subr.bf16.mxu1 %v12438_v22  ;;  %17367 = vst [vmem:[#allocation93_spill] sm:$0xff] %v12452_v63  ;;  %v12458_v22 = vld [vmem:[%s15772_s3 + $0x1c0] ss:$8 sps:$4 sm:$0xff]  }
 0x757   :  { %17368 = vst [vmem:[#allocation94_spill] sm:$0xff] %v12458_v22 }
 0x759   :  { %2686 = vmatpush2.bf16.msra.mxu1 %v12446_v61  ;;  %v12470_v61 = vld [vmem:[%s15772_s3 + $0x1b0] ss:$8 sps:$4 sm:$0xff]  }
 0x75a   :  { %2687 = vmatprep.subr.bf16.mxu1 %v12452_v63  ;;  %17370 = vst [vmem:[#allocation91_spill] sm:$0xff] %v12470_v61  ;;  %v12494_v63 = vld [vmem:[%s15772_s3 + $0x190] ss:$8 sps:$4 sm:$0xff]  }
 0x75b   :  { %17374 = vst [vmem:[#allocation112_spill] sm:$0xff] %v12494_v63 }
 0x75d   :  { %2688 = vmatpush2.bf16.msra.mxu1 %v12458_v22  ;;  %v12482_v22 = vld [vmem:[%s15772_s3 + $0x1a0] ss:$8 sps:$4 sm:$0xff]  }
 0x75e   :  { %2689 = vmatprep.subr.bf16.mxu1 %v12464_v1  ;;  %17372 = vst [vmem:[#allocation55_spill] sm:$0xff] %v12482_v22  ;;  %v12488_v1 = vld [vmem:[%s15772_s3 + $0x194] ss:$8 sps:$4 sm:$0xff]  }
 0x75f   :  { %17373 = vst [vmem:[#allocation111_spill] sm:$0xff] %v12488_v1 }
 0x761   :  { %2690 = vmatpush2.bf16.msra.mxu1 %v12470_v61  ;;  %v8160_v61 = vpop.eup %8159 }
 0x762   :  { %2691 = vmatprep.subr.bf16.mxu1 %v12476_v38  ;;  %v12500_v38 = vld [vmem:[%s15772_s3 + $0x184] ss:$8 sps:$4 sm:$0xff]  }
 0x763   :  { %17375 = vst [vmem:[#allocation57_spill] sm:$0xff] %v12500_v38 }
 0x765   :  { %2692 = vmatpush2.bf16.msra.mxu1 %v12482_v22  ;;  %v2617_v22 = vpack.c.bf16 %v8160_v61, %v8160_v61  ;;  %v2437_v61 = vadd.f32 %v12077_v49, %v12325_v32  ;;  %v12636_v49 = vld [vmem:[%s15772_s3 + $0x224] ss:$8 sps:$4 sm:$0xff]   ;;  %v8559_v32 = vld [vmem:[%s15772_s3 + $0xc0] ss:$8 sps:$4 sm:$0xff]  }
 0x766   :  { %2693 = vmatprep.subr.bf16.mxu1 %v12488_v1  ;;  %v12506_v1 = vld [vmem:[%s15772_s3 + $0x180] ss:$8 sps:$4 sm:$0xff]  }
 0x767   :  { %17376 = vst [vmem:[#allocation113_spill] sm:$0xff] %v12506_v1 }
 0x769   :  { %2694 = vmatpush2.bf16.msra.mxu1 %v12494_v63  ;;  %v12513_v63 = vld [vmem:[%s15771_s0 + $0x1c] sm:$0xf] }
 0x76a   :  { %2695 = vmatprep.subr.bf16.mxu1 %v12500_v38 }
 0x76d   :  { %2696 = vmatpush2.bf16.msra.mxu1 %v12506_v1 }
 0x76e   :  { %2792 = vmatprep.subr.bf16.mxu1 %v11752_v54 }
 0x770   :  { %v2475_v18 = vpop.f32.mrf.mxu1  ;;  %2698 = vmatmul.mubr.bf16.vlgmr.msra.gmra.mxu1 %v2617_v22  ;;  %v8560_v22 = vld [vmem:[%s15772_s3 + $0xb4] ss:$8 sps:$4 sm:$0xff]  }
 0x771   :  { %v12519_v38 = vadd.f32 %v2475_v18, %v2435_v41  ;;  %2793 = vmatpush1.bf16.msra.mxu1 %v11414_v31  ;;  %2824 = vmatprep.mubr.bf16.mxu1 %v12513_v63  ;;  %v17379_v41 = vld [vmem:[#allocation15_spill] sm:$0xff]  ;;  %v17381_v31 = vld [vmem:[#allocation110_spill] sm:$0xff]  ;;  %v12654_v18 = vld [vmem:[%s15772_s3 + $0x214] ss:$8 sps:$4 sm:$0xff]  }
 0x772   :  { %v2477_v54 = vpop.f32.mrf.mxu1  ;;  %2794 = vmatprep.subr.bf16.mxu1 %v11420_v14  ;;  %v17382_v14 = vld [vmem:[#allocation17_spill] sm:$0xff] }
 0x773   :  { %17377 = vst [vmem:[#allocation45_spill] sm:$0xff] %v12519_v38  ;;  %v12524_v1 = vadd.f32 %v2477_v54, %v2437_v61  ;;  %v12666_v61 = vld [vmem:[%s15772_s3 + $0x210] ss:$8 sps:$4 sm:$0xff]   ;;  %v12672_v54 = vld [vmem:[%s15772_s3 + $0x204] ss:$8 sps:$4 sm:$0xff]  }
 0x774   :  { %v2479_v15 = vpop.f32.mrf.mxu1 }
 0x775   :  { %17378 = vst [vmem:[#allocation114_spill] sm:$0xff] %v12524_v1  ;;  %2795 = vmatpush1.bf16.msra.mxu1 %v11428_v12  ;;  %v12648_v15 = vld [vmem:[%s15772_s3 + $0x220] ss:$8 sps:$4 sm:$0xff]  }
 0x776   :  { %v2480_v51 = vpop.f32.mrf.mxu1  ;;  %2796 = vmatprep.subr.bf16.mxu1 %v11434_v62  ;;  %v17384_v62 = vld [vmem:[#allocation81_spill] sm:$0xff] }
 0x777   :  { %v8563_v51 = vld [vmem:[%s15772_s3 + $0xb0] ss:$8 sps:$4 sm:$0xff]  }
 0x779   :  { %2797 = vmatpush1.bf16.msra.mxu1 %v11440_v4 }
 0x77a   :  { %2798 = vmatprep.subr.bf16.mxu1 %v11446_v3  ;;  %v17385_v3 = vld [vmem:[#allocation19_spill] sm:$0xff] }
 0x77d   :  { %2799 = vmatpush1.bf16.msra.mxu1 %v11452_v50 }
 0x77e   :  { %2800 = vmatprep.subr.bf16.mxu1 %v11458_v10 }
 0x781   :  { %2801 = vmatpush1.bf16.msra.mxu1 %v17255_v19 }
 0x782   :  { %2802 = vmatprep.subr.bf16.mxu1 %v11470_v58  ;;  %v17386_v58 = vld [vmem:[#allocation20_spill] sm:$0xff] }
 0x785   :  { %2803 = vmatpush1.bf16.msra.mxu1 %v11476_v46  ;;  %v17380_v46 = vld [vmem:[#allocation16_spill] sm:$0xff] }
 0x786   :  { %2804 = vmatprep.subr.bf16.mxu1 %v11482_v39  ;;  %v17383_v39 = vld [vmem:[#allocation18_spill] sm:$0xff] }
 0x789   :  { %2805 = vmatpush1.bf16.msra.mxu1 %v11488_v9 }
 0x78a   :  { %2806 = vmatprep.subr.bf16.mxu1 %v11777_v33  ;;  %v17387_v33 = vld [vmem:[#allocation21_spill] sm:$0xff] }
 0x78d   :  { %2807 = vmatpush1.bf16.msra.mxu1 %v11783_v53  ;;  %v17388_v53 = vld [vmem:[#allocation22_spill] sm:$0xff] }
 0x78e   :  { %2808 = vmatprep.subr.bf16.mxu1 %v11789_v45  ;;  %v17389_v45 = vld [vmem:[#allocation23_spill] sm:$0xff] }
 0x791   :  { %2809 = vmatpush2.bf16.msra.mxu1 %v11795_v37  ;;  %v17390_v37 = vld [vmem:[#allocation24_spill] sm:$0xff] }
 0x792   :  { %2810 = vmatprep.subr.bf16.mxu1 %v11801_v5  ;;  %v17391_v5 = vld [vmem:[#allocation25_spill] sm:$0xff] }
 0x795   :  { %2811 = vmatpush2.bf16.msra.mxu1 %v11807_v6 }
 0x796   :  { %2812 = vmatprep.subr.bf16.mxu1 %v11813_v7  ;;  %v17392_v7 = vld [vmem:[#allocation26_spill] sm:$0xff] }
 0x799   :  { %2813 = vmatpush2.bf16.msra.mxu1 %v11819_v23 }
 0x79a   :  { %2814 = vmatprep.subr.bf16.mxu1 %v11825_v30 }
 0x79d   :  { %2815 = vmatpush2.bf16.msra.mxu1 %v11831_v16 }
 0x79e   :  { %2816 = vmatprep.subr.bf16.mxu1 %v11837_v8  ;;  %v12574_v8 = vld [vmem:[%s15772_s3 + $0x270] ss:$8 sps:$4 sm:$0xff]  }
 0x7a1   :  { %2817 = vmatpush2.bf16.msra.mxu1 %v11843_v52  ;;  %v12580_v52 = vld [vmem:[%s15772_s3 + $0x264] ss:$8 sps:$4 sm:$0xff]  }
 0x7a2   :  { %2818 = vmatprep.subr.bf16.mxu1 %v11849_v40  ;;  %v12588_v40 = vld [vmem:[%s15772_s3 + $0x260] ss:$8 sps:$4 sm:$0xff]  }
 0x7a5   :  { %2819 = vmatpush2.bf16.msra.mxu1 %v11855_v2  ;;  %v12594_v2 = vld [vmem:[%s15772_s3 + $0x254] ss:$8 sps:$4 sm:$0xff]  }
 0x7a6   :  { %2820 = vmatprep.subr.bf16.mxu1 %v17379_v41  ;;  %v8564_v41 = vld [vmem:[%s15772_s3 + $0xa4] ss:$8 sps:$4 sm:$0xff]  }
 0x7a9   :  { %2821 = vmatpush2.bf16.msra.mxu1 %v17380_v46  ;;  %v12684_v46 = vld [vmem:[%s15772_s3 + $0x200] ss:$8 sps:$4 sm:$0xff]  }
 0x7aa   :  { %2822 = vmatprep.subr.bf16.mxu1 %v17381_v31  ;;  %v12690_v31 = vld [vmem:[%s15772_s3 + $0x294] ss:$8 sps:$4 sm:$0xff]  }
 0x7ad   :  { %2823 = vmatpush2.bf16.msra.mxu1 %v17382_v14  ;;  %v8567_v14 = vld [vmem:[%s15772_s3 + $0xa0] ss:$8 sps:$4 sm:$0xff]  }
 0x7ae   :  { %2889 = vmatprep.subr.bf16.mxu1 %v17383_v39  ;;  %v8568_v39 = vld [vmem:[%s15772_s3 + $0x94] ss:$8 sps:$4 sm:$0xff]  }
 0x7b0   :  { %v2520_v12 = vpop.f32.mrf.mxu1  ;;  %2825 = vmatmul.mubr.bf16.vlgmr.msra.gmra.mxu1 %v11885_v60 }
 0x7b1   :  { %v2521_v4 = vadd.f32 %v2520_v12, %v17384_v62  ;;  %2890 = vmatpush1.bf16.msra.mxu1 %v17385_v3  ;;  %v12702_v12 = vld [vmem:[%s15772_s3 + $0x290] ss:$8 sps:$4 sm:$0xff]  }
 0x7b2   :  { %v2522_v50 = vpop.f32.mrf.mxu1  ;;  %2891 = vmatprep.subr.bf16.mxu1 %v11905_v0  ;;  %v12602_v0 = vld [vmem:[%s15772_s3 + $0x250] ss:$8 sps:$4 sm:$0xff]  }
 0x7b3   :  { %v2523_v10 = vadd.f32 %v2522_v50, %v17013_v26  ;;  %8161 = vtanh.f32 %v2521_v4  ;;  %v12708_v4 = vld [vmem:[%s15772_s3 + $0x284] ss:$8 sps:$4 sm:$0xff]   ;;  %v8571_v3 = vld [vmem:[%s15772_s3 + $0x90] ss:$8 sps:$4 sm:$0xff]  }
 0x7b4   :  { %v2524_v9 = vpop.f32.mrf.mxu1  ;;  %v8572_v50 = vld [vmem:[%s15772_s3 + $0x84] ss:$8 sps:$4 sm:$0xff]  }
 0x7b5   :  { %8163 = vtanh.f32 %v2523_v10  ;;  %2892 = vmatpush1.bf16.msra.mxu1 %v17386_v58  ;;  %v12720_v10 = vld [vmem:[%s15772_s3 + $0x280] ss:$8 sps:$4 sm:$0xff]   ;;  %v8574_v9 = vld [vmem:[%s15770_s1 + $0x154] ss:$24 sps:$4 sm:$0xff]  }
 0x7b6   :  { %v2525_v19 = vpop.f32.mrf.mxu1  ;;  %2893 = vmatprep.subr.bf16.mxu1 %v17387_v33  ;;  %v8575_v58 = vld [vmem:[%s15772_s3 + $0x80] ss:$8 sps:$4 sm:$0xff]  }
 0x7b7   :  { %v8576_v19 = vld [vmem:[%s15772_s3 + $0x274] ss:$8 sps:$4 sm:$0xff]  }
 0x7b9   :  { %2894 = vmatpush1.bf16.msra.mxu1 %v17388_v53 }
 0x7ba   :  { %2895 = vmatprep.subr.bf16.mxu1 %v17389_v45 }
 0x7bd   :  { %2896 = vmatpush1.bf16.msra.mxu1 %v17390_v37 }
 0x7be   :  { %2897 = vmatprep.subr.bf16.mxu1 %v17391_v5 }
 0x7c0   :  { %v8162_v6 = vpop.eup %8161 }
 0x7c1   :  { %2898 = vmatpush1.bf16.msra.mxu1 %v17392_v7  ;;  %v2615_v16 = vpack.c.bf16 %v8162_v6, %v8162_v6 }
 0x7c2   :  { %v8164_v23 = vpop.eup %8163  ;;  %2899 = vmatprep.subr.bf16.mxu1 %v11954_v42  ;;  %v17393_v42 = vld [vmem:[#allocation6_spill] sm:$0xff] }
 0x7c3   :  { %v2616_v30 = vpack.c.bf16 %v8164_v23, %v8164_v23 }
 0x7c5   :  { %2656 = vmatprep.mubr.bf16.mxu0 %v2616_v30  ;;  %2900 = vmatpush1.bf16.msra.mxu1 %v11960_v56  ;;  %v17394_v56 = vld [vmem:[#allocation59_spill] sm:$0xff] }
 0x7c6   :  { %2657 = vmatmul.mubr.bf16.vlgmr.msra.gmra.mxu0 %v2615_v16  ;;  %2901 = vmatprep.subr.bf16.mxu1 %v11966_v55  ;;  %v12608_v55 = vld [vmem:[%s15772_s3 + $0x244] ss:$8 sps:$4 sm:$0xff]  }
 0x7c7   :  { %2707 = vmatpush1.bf16.msra.mxu0 %v12574_v8 }
 0x7c8   :  { %2708 = vmatprep.subr.bf16.mxu0 %v12580_v52 }
 0x7c9   :  { %2902 = vmatpush1.bf16.msra.mxu1 %v11974_v17  ;;  %v12616_v17 = vld [vmem:[%s15772_s3 + $0x240] ss:$8 sps:$4 sm:$0xff]  }
 0x7ca   :  { %2903 = vmatprep.subr.bf16.mxu1 %v11980_v48  ;;  %v12622_v48 = vld [vmem:[%s15772_s3 + $0x234] ss:$8 sps:$4 sm:$0xff]  }
 0x7cb   :  { %2709 = vmatpush1.bf16.msra.mxu0 %v12588_v40 }
 0x7cc   :  { %2710 = vmatprep.subr.bf16.mxu0 %v12594_v2 }
 0x7cd   :  { %2904 = vmatpush1.bf16.msra.mxu1 %v11988_v20  ;;  %v17395_v20 = vld [vmem:[#allocation83_spill] sm:$0xff] }
 0x7ce   :  { %2905 = vmatprep.subr.bf16.mxu1 %v11994_v57  ;;  %v12630_v57 = vld [vmem:[%s15772_s3 + $0x230] ss:$8 sps:$4 sm:$0xff]  }
 0x7cf   :  { %2711 = vmatpush1.bf16.msra.mxu0 %v12602_v0 }
 0x7d0   :  { %2712 = vmatprep.subr.bf16.mxu0 %v12608_v55 }
 0x7d1   :  { %2906 = vmatpush2.bf16.msra.mxu1 %v17393_v42  ;;  %v8577_v42 = vld [vmem:[%s15770_s1 + $0x150] ss:$24 sps:$4 sm:$0xff]  }
 0x7d2   :  { %2907 = vmatprep.subr.bf16.mxu1 %v17394_v56  ;;  %v8578_v56 = vld [vmem:[%s15770_s1 + $0x124] ss:$24 sps:$4 sm:$0xff]  }
 0x7d3   :  { %2713 = vmatpush1.bf16.msra.mxu0 %v12616_v17 }
 0x7d4   :  { %2714 = vmatprep.subr.bf16.mxu0 %v12622_v48 }
 0x7d5   :  { %2908 = vmatpush2.bf16.msra.mxu1 %v17395_v20  ;;  %v8579_v20 = vld [vmem:[%s15770_s1 + $0x120] ss:$24 sps:$4 sm:$0xff]  }
 0x7d6   :  { %2909 = vmatprep.subr.bf16.mxu1 %v12022_v59  ;;  %v8556_v59 = vld [vmem:[%s15772_s3 + $0xc4] ss:$8 sps:$4 sm:$0xff]  }
 0x7d7   :  { %2715 = vmatpush1.bf16.msra.mxu0 %v12630_v57 }
 0x7d8   :  { %2716 = vmatprep.subr.bf16.mxu0 %v12636_v49 }
 0x7d9   :  { %2910 = vmatpush2.bf16.msra.mxu1 %v8555_v34  ;;  %v8580_v34 = vld [vmem:[%s15770_s1 + $0xf4] ss:$24 sps:$4 sm:$0xff]  }
 0x7da   :  { %2911 = vmatprep.subr.bf16.mxu1 %v8556_v59  ;;  %v8581_v59 = vld [vmem:[%s15770_s1 + $0xf0] ss:$24 sps:$4 sm:$0xff]  }
 0x7db   :  { %2717 = vmatpush1.bf16.msra.mxu0 %v12648_v15 }
 0x7dc   :  { %2718 = vmatprep.subr.bf16.mxu0 %v12654_v18 }
 0x7dd   :  { %2912 = vmatpush2.bf16.msra.mxu1 %v8559_v32  ;;  %v8582_v32 = vld [vmem:[%s15770_s1 + $0xc4] ss:$24 sps:$4 sm:$0xff]  }
 0x7de   :  { %2913 = vmatprep.subr.bf16.mxu1 %v8560_v22  ;;  %v8583_v22 = vld [vmem:[%s15770_s1 + $0xc0] ss:$24 sps:$4 sm:$0xff]  }
 0x7df   :  { %2719 = vmatpush1.bf16.msra.mxu0 %v12666_v61 }
 0x7e0   :  { %2720 = vmatprep.subr.bf16.mxu0 %v12672_v54 }
 0x7e1   :  { %2914 = vmatpush2.bf16.msra.mxu1 %v8563_v51  ;;  %v8584_v51 = vld [vmem:[%s15770_s1 + $0x94] ss:$24 sps:$4 sm:$0xff]  }
 0x7e2   :  { %2915 = vmatprep.subr.bf16.mxu1 %v8564_v41  ;;  %v8585_v41 = vld [vmem:[%s15770_s1 + $0x90] ss:$24 sps:$4 sm:$0xff]  }
 0x7e3   :  { %2721 = vmatpush1.bf16.msra.mxu0 %v12684_v46 }
 0x7e4   :  { %2734 = vmatprep.subr.bf16.mxu0 %v12690_v31 }
 0x7e5   :  { %2916 = vmatpush2.bf16.msra.mxu1 %v8567_v14  ;;  %v8586_v14 = vld [vmem:[%s15770_s1 + $0x64] ss:$24 sps:$4 sm:$0xff]  }
 0x7e6   :  { %2917 = vmatprep.subr.bf16.mxu1 %v8568_v39  ;;  %v8587_v39 = vld [vmem:[%s15770_s1 + $0x60] ss:$24 sps:$4 sm:$0xff]  }
 0x7e7   :  { %2735 = vmatpush2.bf16.msra.mxu0 %v12702_v12 }
 0x7e8   :  { %2736 = vmatprep.subr.bf16.mxu0 %v12708_v4 }
 0x7e9   :  { %2918 = vmatpush2.bf16.msra.mxu1 %v8571_v3  ;;  %v8588_v3 = vld [vmem:[%s15770_s1 + $0x34] ss:$24 sps:$4 sm:$0xff]  }
 0x7ea   :  { %2919 = vmatprep.subr.bf16.mxu1 %v8572_v50 }
 0x7eb   :  { %2737 = vmatpush2.bf16.msra.mxu0 %v12720_v10 }
 0x7ec   :  { %2751 = vmatprep.subr.bf16.mxu0 %v8574_v9  ;;  %v17398_v9 = vld [vmem:[#allocation13_spill] sm:$0xff] }
 0x7ed   :  { %2920 = vmatpush2.bf16.msra.mxu1 %v8575_v58  ;;  %v17404_v58 = vld [vmem:[#allocation119_spill] sm:$0xff] }
 0x7ee   :  { %2971 = vmatprep.subr.bf16.mxu1 %v8576_v19  ;;  %v17405_v19 = vld [vmem:[#allocation120_spill] sm:$0xff] }
 0x7f0   :  { %v2602_v33 = vpop.f32.mrf.mxu1 }
 0x7f1   :  { %v2603_v53 = vadd.f32 %v2602_v33, %v17287_v28  ;;  %v17406_v33 = vld [vmem:[#allocation121_spill] sm:$0xff] }
 0x7f2   :  { %v2604_v45 = vpop.f32.mrf.mxu1 }
 0x7f3   :  { %v2605_v37 = vadd.f32 %v2604_v45, %v17288_v11  ;;  %8165 = vtanh.f32 %v2603_v53  ;;  %v17407_v53 = vld [vmem:[#allocation122_spill] sm:$0xff]  ;;  %v17408_v45 = vld [vmem:[#allocation27_spill] sm:$0xff] }
 0x7f4   :  { %v2606_v5 = vpop.f32.mrf.mxu1 }
 0x7f5   :  { %8167 = vtanh.f32 %v2605_v37  ;;  %v17409_v37 = vld [vmem:[#allocation28_spill] sm:$0xff]  ;;  %v17410_v5 = vld [vmem:[#allocation29_spill] sm:$0xff] }
 0x7f6   :  { %v2607_v6 = vpop.f32.mrf.mxu1 }
 0x7f7   :  { %v17411_v6 = vld [vmem:[#allocation30_spill] sm:$0xff] }
 0x800   :  { %v8166_v7 = vpop.eup %8165 }
 0x801   :  { %v2619_v16 = vpack.c.bf16 %v8166_v7, %v8166_v7  ;;  %v17412_v7 = vld [vmem:[#allocation31_spill] sm:$0xff] }
 0x802   :  { %v8168_v23 = vpop.eup %8167 }
 0x803   :  { %v2620_v30 = vpack.c.bf16 %v8168_v23, %v8168_v23  ;;  %v17413_v23 = vld [vmem:[#allocation32_spill] sm:$0xff] }
 0x805   :  { %6678 = vmatprep.mubr.msk.bf16.mxu0 %vm1295_vm0, %v2620_v30  ;;  %v17414_v30 = vld [vmem:[#allocation33_spill] sm:$0xff] }
 0x806   :  { %2739 = vmatmul.mubr.bf16.vlgmr.msra.gmra.mxu0 %v2619_v16  ;;  %v17416_v16 = vld [vmem:[#allocation35_spill] sm:$0xff] }
 0x807   :  { %2752 = vmatpush1.bf16.msra.mxu0 %v8577_v42  ;;  %2783 = vmatprep.mubr.bf16.mxu0 %v12513_v63  ;;  %v17418_v42 = vld [vmem:[#allocation37_spill] sm:$0xff] }
 0x808   :  { %2753 = vmatprep.subr.bf16.mxu0 %v8578_v56  ;;  %v17419_v56 = vld [vmem:[#allocation38_spill] sm:$0xff] }
 0x80b   :  { %2754 = vmatpush1.bf16.msra.mxu0 %v8579_v20  ;;  %v17420_v20 = vld [vmem:[#allocation39_spill] sm:$0xff] }
 0x80c   :  { %2755 = vmatprep.subr.bf16.mxu0 %v8580_v34  ;;  %v17421_v34 = vld [vmem:[#allocation40_spill] sm:$0xff] }
 0x80f   :  { %2756 = vmatpush1.bf16.msra.mxu0 %v8581_v59  ;;  %v17422_v59 = vld [vmem:[#allocation41_spill] sm:$0xff] }
 0x810   :  { %2757 = vmatprep.subr.bf16.mxu0 %v8582_v32  ;;  %v17423_v32 = vld [vmem:[#allocation42_spill] sm:$0xff] }
 0x813   :  { %2758 = vmatpush1.bf16.msra.mxu0 %v8583_v22  ;;  %v17424_v22 = vld [vmem:[#allocation43_spill] sm:$0xff] }
 0x814   :  { %2759 = vmatprep.subr.bf16.mxu0 %v8584_v51  ;;  %v17425_v51 = vld [vmem:[#allocation44_spill] sm:$0xff] }
 0x817   :  { %2760 = vmatpush1.bf16.msra.mxu0 %v8585_v41  ;;  %v17426_v41 = vld [vmem:[#allocation46_spill] sm:$0xff] }
 0x818   :  { %2761 = vmatprep.subr.bf16.mxu0 %v8586_v14  ;;  %v17427_v14 = vld [vmem:[#allocation48_spill] sm:$0xff] }
 0x81b   :  { %2762 = vmatpush1.bf16.msra.mxu0 %v8587_v39 }
 0x81c   :  { %2763 = vmatprep.subr.bf16.mxu0 %v8588_v3 }
 0x81f   :  { %2764 = vmatpush1.bf16.msra.mxu0 %v17295_v44 }
 0x820   :  { %2765 = vmatprep.subr.bf16.mxu0 %v17296_v36  ;;  %v17396_v36 = vld [vmem:[#allocation12_spill] sm:$0xff] }
 0x823   :  { %2766 = vmatpush1.bf16.msra.mxu0 %v17297_v35  ;;  %v17397_v35 = vld [vmem:[#allocation107_spill] sm:$0xff] }
 0x824   :  { %2767 = vmatprep.subr.bf16.mxu0 %v17298_v43 }
 0x827   :  { %2768 = vmatpush2.bf16.msra.mxu0 %v17299_v29 }
 0x828   :  { %2769 = vmatprep.subr.bf16.mxu0 %v17300_v27  ;;  %v17399_v27 = vld [vmem:[#allocation108_spill] sm:$0xff] }
 0x82b   :  { %2770 = vmatpush2.bf16.msra.mxu0 %v17301_v47  ;;  %v17400_v47 = vld [vmem:[#allocation62_spill] sm:$0xff] }
 0x82c   :  { %2771 = vmatprep.subr.bf16.mxu0 %v17302_v21  ;;  %v17401_v21 = vld [vmem:[#allocation8_spill] sm:$0xff] }
 0x82f   :  { %2772 = vmatpush2.bf16.msra.mxu0 %v17303_v13  ;;  %v17402_v13 = vld [vmem:[#allocation115_spill] sm:$0xff] }
 0x830   :  { %2773 = vmatprep.subr.bf16.mxu0 %v17304_v24  ;;  %v12782_v50 = vpop.f32.mrf.mxu1  ;;  %v17403_v24 = vld [vmem:[#allocation118_spill] sm:$0xff] }
 0x832   :  { %v12784_v44 = vpop.f32.mrf.mxu1 }
 0x833   :  { %2774 = vmatpush2.bf16.msra.mxu0 %v17396_v36  ;;  %v17428_v36 = vld [vmem:[#allocation84_spill] sm:$0xff] }
 0x834   :  { %2775 = vmatprep.subr.bf16.mxu0 %v17397_v35  ;;  %v2703_v43 = vpop.f32.mrf.mxu1 }
 0x835   :  { %v17429_v43 = vld [vmem:[#allocation50_spill] sm:$0xff] }
 0x836   :  { %v2704_v29 = vpop.f32.mrf.mxu1 }
 0x837   :  { %2776 = vmatpush2.bf16.msra.mxu0 %v17398_v9 }
 0x838   :  { %2777 = vmatprep.subr.bf16.mxu0 %v17399_v27  ;;  %v17430_v27 = vld [vmem:[#allocation52_spill] sm:$0xff] }
 0x83b   :  { %2778 = vmatpush2.bf16.msra.mxu0 %v17400_v47  ;;  %v17431_v47 = vld [vmem:[#allocation54_spill] sm:$0xff] }
 0x83c   :  { %2779 = vmatprep.subr.bf16.mxu0 %v17401_v21  ;;  %v17432_v21 = vld [vmem:[#allocation56_spill] sm:$0xff] }
 0x83f   :  { %2780 = vmatpush2.bf16.msra.mxu0 %v17402_v13  ;;  %v17433_v13 = vld [vmem:[#allocation58_spill] sm:$0xff] }
 0x840   :  { %2781 = vmatprep.subr.bf16.mxu0 %v17403_v24  ;;  %v17434_v24 = vld [vmem:[#allocation60_spill] sm:$0xff] }
 0x843   :  { %2782 = vmatpush2.bf16.msra.mxu0 %v17404_v58  ;;  %v17435_v58 = vld [vmem:[#allocation61_spill] sm:$0xff] }
 0x844   :  { %2833 = vmatprep.subr.bf16.mxu0 %v17405_v19  ;;  %v17436_v19 = vld [vmem:[#allocation63_spill] sm:$0xff] }
 0x846   :  { %2784 = vmatmul.mubr.bf16.vlgmr.msra.gmra.mxu0 %v11885_v60  ;;  %v17415_v60 = vld [vmem:[#allocation34_spill] sm:$0xff] }
 0x847   :  { %2834 = vmatpush1.bf16.msra.mxu0 %v17406_v33  ;;  %2865 = vmatprep.mubr.bf16.mxu0 %v12513_v63  ;;  %v17417_v63 = vld [vmem:[#allocation36_spill] sm:$0xff] }
 0x848   :  { %2835 = vmatprep.subr.bf16.mxu0 %v17407_v53  ;;  %v17437_v53 = vld [vmem:[#allocation64_spill] sm:$0xff] }
 0x84b   :  { %2836 = vmatpush1.bf16.msra.mxu0 %v17408_v45  ;;  %v8589_v45 = vld [vmem:[%s15771_s0 + $0x18] sm:$0xf] }
 0x84c   :  { %2837 = vmatprep.subr.bf16.mxu0 %v17409_v37 }
 0x84f   :  { %2838 = vmatpush1.bf16.msra.mxu0 %v17410_v5  ;;  %v17438_v5 = vld [vmem:[#allocation65_spill] sm:$0xff] }
 0x850   :  { %2839 = vmatprep.subr.bf16.mxu0 %v17411_v6 }
 0x853   :  { %2840 = vmatpush1.bf16.msra.mxu0 %v17412_v7  ;;  %v17439_v7 = vld [vmem:[#allocation66_spill] sm:$0xff] }
 0x854   :  { %2841 = vmatprep.subr.bf16.mxu0 %v17413_v23 }
 0x857   :  { %2842 = vmatpush1.bf16.msra.mxu0 %v17414_v30  ;;  %v17440_v30 = vld [vmem:[#allocation67_spill] sm:$0xff] }
 0x858   :  { %2843 = vmatprep.subr.bf16.mxu0 %v17415_v60 }
 0x85b   :  { %2844 = vmatpush1.bf16.msra.mxu0 %v17416_v16  ;;  %v17441_v16 = vld [vmem:[#allocation69_spill] sm:$0xff] }
 0x85c   :  { %2845 = vmatprep.subr.bf16.mxu0 %v17417_v63  ;;  %v17442_v63 = vld [vmem:[#allocation70_spill] sm:$0xff] }
 0x85f   :  { %2846 = vmatpush1.bf16.msra.mxu0 %v17418_v42  ;;  %v17443_v42 = vld [vmem:[#allocation71_spill] sm:$0xff] }
 0x860   :  { %2847 = vmatprep.subr.bf16.mxu0 %v17419_v56  ;;  %v17444_v56 = vld [vmem:[#allocation72_spill] sm:$0xff] }
 0x863   :  { %2848 = vmatpush1.bf16.msra.mxu0 %v17420_v20  ;;  %v17445_v20 = vld [vmem:[#allocation73_spill] sm:$0xff] }
 0x864   :  { %2849 = vmatprep.subr.bf16.mxu0 %v17421_v34  ;;  %v17446_v34 = vld [vmem:[#allocation74_spill] sm:$0xff] }
 0x867   :  { %2850 = vmatpush2.bf16.msra.mxu0 %v17422_v59  ;;  %v17447_v59 = vld [vmem:[#allocation75_spill] sm:$0xff] }
 0x868   :  { %2851 = vmatprep.subr.bf16.mxu0 %v17423_v32  ;;  %v17448_v32 = vld [vmem:[#allocation76_spill] sm:$0xff] }
 0x86b   :  { %2852 = vmatpush2.bf16.msra.mxu0 %v17424_v22  ;;  %v17449_v22 = vld [vmem:[#allocation77_spill] sm:$0xff] }
 0x86c   :  { %2853 = vmatprep.subr.bf16.mxu0 %v17425_v51  ;;  %v17450_v51 = vld [vmem:[#allocation78_spill] sm:$0xff] }
 0x86f   :  { %2854 = vmatpush2.bf16.msra.mxu0 %v17426_v41  ;;  %v17451_v41 = vld [vmem:[#allocation79_spill] sm:$0xff] }
 0x870   :  { %2855 = vmatprep.subr.bf16.mxu0 %v17427_v14  ;;  %v2826_v39 = vpop.f32.mrf.mxu1  ;;  %v17452_v14 = vld [vmem:[#allocation99_spill] sm:$0xff] }
 0x872   :  { %v2828_v3 = vpop.f32.mrf.mxu1 }
 0x873   :  { %2856 = vmatpush2.bf16.msra.mxu0 %v12258_v25  ;;  %v2829_v35 = vadd.f32 %v2828_v3, %v17428_v36  ;;  %v17453_v3 = vld [vmem:[#allocation85_spill] sm:$0xff]  ;;  %v17454_v36 = vld [vmem:[#allocation86_spill] sm:$0xff] }
 0x874   :  { %2857 = vmatprep.subr.bf16.mxu0 %v17429_v43  ;;  %v2830_v29 = vpop.f32.mrf.mxu1  ;;  %v17456_v43 = vld [vmem:[#allocation88_spill] sm:$0xff] }
 0x875   :  { %8169 = vtanh.f32 %v2829_v35  ;;  %v17455_v35 = vld [vmem:[#allocation87_spill] sm:$0xff]  ;;  %v17457_v29 = vld [vmem:[#allocation89_spill] sm:$0xff] }
 0x876   :  { %v2831_v9 = vpop.f32.mrf.mxu1 }
 0x877   :  { %2858 = vmatpush2.bf16.msra.mxu0 %v17430_v27  ;;  %v17458_v9 = vld [vmem:[#allocation82_spill] sm:$0xff] }
 0x878   :  { %2859 = vmatprep.subr.bf16.mxu0 %v17431_v47  ;;  %v2827_v27 = vadd.f32 %v2826_v39, %v17458_v9  ;;  %v17459_v47 = vld [vmem:[#allocation92_spill] sm:$0xff]  ;;  %v17468_v39 = vld [vmem:[#allocation57_spill] sm:$0xff] }
 0x879   :  { %v12963_v9 = vld [vmem:[%s15774_s4 + $0x184] ss:$12 sps:$4 sm:$0xff]  }
 0x87a   :  { %8171 = vtanh.f32 %v2827_v27  ;;  %v12969_v27 = vld [vmem:[%s15774_s4 + $0x180] ss:$12 sps:$4 sm:$0xff]  }
 0x87b   :  { %2860 = vmatpush2.bf16.msra.mxu0 %v17432_v21  ;;  %v17460_v21 = vld [vmem:[#allocation93_spill] sm:$0xff] }
 0x87c   :  { %2861 = vmatprep.subr.bf16.mxu0 %v17433_v13  ;;  %v17461_v13 = vld [vmem:[#allocation94_spill] sm:$0xff] }
 0x87f   :  { %2862 = vmatpush2.bf16.msra.mxu0 %v17434_v24  ;;  %v17462_v24 = vld [vmem:[#allocation96_spill] sm:$0xff] }
 0x880   :  { %2863 = vmatprep.subr.bf16.mxu0 %v17435_v58  ;;  %v17463_v58 = vld [vmem:[#allocation91_spill] sm:$0xff] }
 0x882   :  { %v8170_v25 = vpop.eup %8169 }
 0x883   :  { %2864 = vmatpush2.bf16.msra.mxu0 %v17436_v19  ;;  %v2883_v33 = vpack.c.bf16 %v8170_v25, %v8170_v25  ;;  %v17464_v25 = vld [vmem:[#allocation5_spill] sm:$0xff]  ;;  %v17465_v19 = vld [vmem:[#allocation55_spill] sm:$0xff] }
 0x884   :  { %2930 = vmatprep.subr.bf16.mxu0 %v17437_v53 }
 0x886   :  { %2866 = vmatmul.mubr.bf16.vlgmr.msra.gmra.mxu0 %v8589_v45  ;;  %v2658_v37 = vpop.f32.mrf.mxu0  ;;  %v17467_v45 = vld [vmem:[#allocation112_spill] sm:$0xff] }
 0x887   :  { %2931 = vmatpush1.bf16.msra.mxu0 %v17438_v5  ;;  %2962 = vmatprep.mubr.bf16.mxu0 %v2883_v33  ;;  %v17466_v33 = vld [vmem:[#allocation111_spill] sm:$0xff]  ;;  %v8172_v53 = vpop.eup %8171 }
 0x888   :  { %v2660_v6 = vpop.f32.mrf.mxu0  ;;  %2932 = vmatprep.subr.bf16.mxu0 %v17439_v7  ;;  %v12868_v5 = vld [vmem:[%s15774_s4 + $0x22c] ss:$12 sps:$4 sm:$0xff]   ;;  %v2882_v7 = vpack.c.bf16 %v8172_v53, %v8172_v53 }
 0x889   :  { %v13023_v53 = vld [vmem:[%s15774_s4 + $0x28c] ss:$12 sps:$4 sm:$0xff]  }
 0x88a   :  { %v2662_v23 = vpop.f32.mrf.mxu0 }
 0x88b   :  { %2933 = vmatpush1.bf16.msra.mxu0 %v17440_v30  ;;  %v17469_v23 = vld [vmem:[#allocation113_spill] sm:$0xff]  ;;  %v12874_v30 = vld [vmem:[%s15774_s4 + $0x228] ss:$12 sps:$4 sm:$0xff]  }
 0x88c   :  { %v2663_v60 = vpop.f32.mrf.mxu0  ;;  %2934 = vmatprep.subr.bf16.mxu0 %v17441_v16  ;;  %v17470_v16 = vld [vmem:[#allocation101_spill] sm:$0xff] }
 0x88d   :  { %v12880_v60 = vld [vmem:[%s15774_s4 + $0x214] ss:$12 sps:$4 sm:$0xff]  }
 0x88f   :  { %2935 = vmatpush1.bf16.msra.mxu0 %v17442_v63  ;;  %v12884_v63 = vpack.c.bf16 %v17470_v16, %v17470_v16  ;;  %v13053_v16 = vld [vmem:[%s15774_s4 + $0x258] ss:$12 sps:$4 sm:$0xff]  }
 0x890   :  { %2936 = vmatprep.subr.bf16.mxu0 %v17443_v42  ;;  %v2700_v42 = vadd.f32 %v12782_v50, %v2658_v37  ;;  %v12901_v50 = vld [vmem:[%s15774_s4 + $0x1fc] ss:$12 sps:$4 sm:$0xff]   ;;  %17473 = vst [vmem:[#allocation51_spill] sm:$0xff] %v13053_v16 }
 0x893   :  { %2937 = vmatpush1.bf16.msra.mxu0 %v17444_v56 }
 0x894   :  { %2938 = vmatprep.subr.bf16.mxu0 %v17445_v20  ;;  %v2702_v20 = vadd.f32 %v12784_v44, %v2660_v6  ;;  %v12909_v6 = vld [vmem:[%s15774_s4 + $0x1f8] ss:$12 sps:$4 sm:$0xff]  }
 0x897   :  { %2939 = vmatpush1.bf16.msra.mxu0 %v17446_v34 }
 0x898   :  { %2940 = vmatprep.subr.bf16.mxu0 %v17447_v59  ;;  %v12895_v59 = vld [vmem:[%s15774_s4 + $0x210] ss:$12 sps:$4 sm:$0xff]  }
 0x89b   :  { %2941 = vmatpush1.bf16.msra.mxu0 %v17448_v32 }
 0x89c   :  { %2942 = vmatprep.subr.bf16.mxu0 %v17449_v22 }
 0x89f   :  { %2943 = vmatpush1.bf16.msra.mxu0 %v17450_v51  ;;  %v12915_v51 = vld [vmem:[%s15774_s4 + $0x1e4] ss:$12 sps:$4 sm:$0xff]  }
 0x8a0   :  { %2944 = vmatprep.subr.bf16.mxu0 %v17451_v41  ;;  %v12921_v41 = vld [vmem:[%s15774_s4 + $0x1e0] ss:$12 sps:$4 sm:$0xff]  }
 0x8a3   :  { %2945 = vmatpush1.bf16.msra.mxu0 %v17452_v14  ;;  %v12927_v14 = vld [vmem:[%s15774_s4 + $0x1cc] ss:$12 sps:$4 sm:$0xff]  }
 0x8a4   :  { %2946 = vmatprep.subr.bf16.mxu0 %v17453_v3  ;;  %v12933_v3 = vld [vmem:[%s15774_s4 + $0x1c8] ss:$12 sps:$4 sm:$0xff]  }
 0x8a7   :  { %2947 = vmatpush2.bf16.msra.mxu0 %v17454_v36  ;;  %v12939_v36 = vld [vmem:[%s15774_s4 + $0x1b4] ss:$12 sps:$4 sm:$0xff]  }
 0x8a8   :  { %2948 = vmatprep.subr.bf16.mxu0 %v17455_v35  ;;  %v12945_v35 = vld [vmem:[%s15774_s4 + $0x1b0] ss:$12 sps:$4 sm:$0xff]  }
 0x8ab   :  { %2949 = vmatpush2.bf16.msra.mxu0 %v17456_v43  ;;  %v12951_v43 = vld [vmem:[%s15774_s4 + $0x19c] ss:$12 sps:$4 sm:$0xff]  }
 0x8ac   :  { %2950 = vmatprep.subr.bf16.mxu0 %v17457_v29  ;;  %v12957_v29 = vld [vmem:[%s15774_s4 + $0x198] ss:$12 sps:$4 sm:$0xff]  }
 0x8af   :  { %2951 = vmatpush2.bf16.msra.mxu0 %v17459_v47  ;;  %v12975_v47 = vld [vmem:[%s15774_s4 + $0x2ec] ss:$12 sps:$4 sm:$0xff]  }
 0x8b0   :  { %2952 = vmatprep.subr.bf16.mxu0 %v17460_v21  ;;  %v12981_v21 = vld [vmem:[%s15774_s4 + $0x2e8] ss:$12 sps:$4 sm:$0xff]  }
 0x8b3   :  { %2953 = vmatpush2.bf16.msra.mxu0 %v17461_v13  ;;  %v12987_v13 = vld [vmem:[%s15774_s4 + $0x2d4] ss:$12 sps:$4 sm:$0xff]  }
 0x8b4   :  { %2954 = vmatprep.subr.bf16.mxu0 %v17462_v24  ;;  %v12993_v24 = vld [vmem:[%s15774_s4 + $0x2d0] ss:$12 sps:$4 sm:$0xff]  }
 0x8b7   :  { %2955 = vmatpush2.bf16.msra.mxu0 %v17463_v58  ;;  %v12999_v58 = vld [vmem:[%s15774_s4 + $0x2bc] ss:$12 sps:$4 sm:$0xff]  }
 0x8b8   :  { %2956 = vmatprep.subr.bf16.mxu0 %v17464_v25  ;;  %v13005_v25 = vld [vmem:[%s15774_s4 + $0x2b8] ss:$12 sps:$4 sm:$0xff]  }
 0x8bb   :  { %2957 = vmatpush2.bf16.msra.mxu0 %v17465_v19  ;;  %v13011_v19 = vld [vmem:[%s15774_s4 + $0x2a4] ss:$12 sps:$4 sm:$0xff]  }
 0x8bc   :  { %2958 = vmatprep.subr.bf16.mxu0 %v17466_v33  ;;  %v13017_v33 = vld [vmem:[%s15774_s4 + $0x2a0] ss:$12 sps:$4 sm:$0xff]  }
 0x8bf   :  { %2959 = vmatpush2.bf16.msra.mxu0 %v17467_v45  ;;  %v13029_v45 = vld [vmem:[%s15774_s4 + $0x288] ss:$12 sps:$4 sm:$0xff]  }
 0x8c0   :  { %2960 = vmatprep.subr.bf16.mxu0 %v17468_v39  ;;  %v13035_v39 = vld [vmem:[%s15774_s4 + $0x274] ss:$12 sps:$4 sm:$0xff]  }
 0x8c3   :  { %2961 = vmatpush2.bf16.msra.mxu0 %v17469_v23  ;;  %v13047_v23 = vld [vmem:[%s15774_s4 + $0x25c] ss:$12 sps:$4 sm:$0xff]  }
 0x8c4   :  { %4032 = vmatprep.subr.bf16.mxu0 %v12868_v5 }
 0x8c6   :  { %2963 = vmatmul.mubr.bf16.vlgmr.msra.gmra.mxu0 %v2882_v7  ;;  %v2740_v56 = vpop.f32.mrf.mxu0  ;;  %v13041_v7 = vld [vmem:[%s15774_s4 + $0x270] ss:$12 sps:$4 sm:$0xff]  }
 0x8c7   :  { %v12888_v34 = vadd.f32 %v2740_v56, %v2700_v42  ;;  %4033 = vmatpush1.bf16.msra.mxu0 %v12874_v30  ;;  %4064 = vmatprep.mubr.bf16.mxu0 %v12884_v63  ;;  %v13059_v42 = vld [vmem:[%s15774_s4 + $0x244] ss:$12 sps:$4 sm:$0xff]   ;;  %v13065_v56 = vld [vmem:[%s15774_s4 + $0x240] ss:$12 sps:$4 sm:$0xff]  }
 0x8c8   :  { %v2742_v32 = vpop.f32.mrf.mxu0  ;;  %4034 = vmatprep.subr.bf16.mxu0 %v12880_v60  ;;  %17474 = vst [vmem:[#allocation116_spill] sm:$0xff] %v13059_v42  ;;  %17475 = vst [vmem:[#allocation53_spill] sm:$0xff] %v13065_v56 }
 0x8c9   :  { %17471 = vst [vmem:[#allocation47_spill] sm:$0xff] %v12888_v34  ;;  %v12903_v44 = vadd.f32 %v2742_v32, %v2702_v20  ;;  %v13071_v20 = vld [vmem:[%s15774_s4 + $0x170] ss:$12 sps:$4 sm:$0xff]   ;;  %v13087_v34 = vld [vmem:[%s15774_s4 + $0x158] ss:$12 sps:$4 sm:$0xff]  }
 0x8ca   :  { %v2744_v37 = vpop.f32.mrf.mxu0  ;;  %17476 = vst [vmem:[#allocation4_spill] sm:$0xff] %v13071_v20  ;;  %v13077_v32 = vld [vmem:[%s15774_s4 + $0xb0] ss:$12 sps:$4 sm:$0xff]   ;;  %17480 = vst [vmem:[#allocation105_spill] sm:$0xff] %v13087_v34 }
 0x8cb   :  { %17472 = vst [vmem:[#allocation3_spill] sm:$0xff] %v12903_v44  ;;  %4035 = vmatpush1.bf16.msra.mxu0 %v12895_v59  ;;  %17477 = vst [vmem:[#allocation117_spill] sm:$0xff] %v13077_v32  ;;  %v17478_v37 = vld [vmem:[#allocation100_spill] sm:$0xff]  ;;  %v17481_v44 = vld [vmem:[#allocation2_spill] sm:$0xff] }
 0x8cc   :  { %v2745_v22 = vpop.f32.mrf.mxu0  ;;  %4036 = vmatprep.subr.bf16.mxu0 %v12901_v50  ;;  %v13091_v38 = vpack.c.bf16 %v17481_v44, %v17481_v44  ;;  %v13106_v44 = vld [vmem:[%s15774_s4 + $0x140] ss:$12 sps:$4 sm:$0xff]  }
 0x8cd   :  { %v13081_v22 = vpack.c.bf16 %v17478_v37, %v17478_v37  ;;  %v13100_v37 = vld [vmem:[%s15774_s4 + $0x98] ss:$12 sps:$4 sm:$0xff]   ;;  %17483 = vst [vmem:[#allocation124_spill] sm:$0xff] %v13106_v44 }
 0x8ce   :  { %17482 = vst [vmem:[#allocation123_spill] sm:$0xff] %v13100_v37 }
 0x8cf   :  { %4037 = vmatpush1.bf16.msra.mxu0 %v12909_v6  ;;  %17479 = vst [vmem:[#allocation104_spill] sm:$0xff] %v13081_v22 }
 0x8d0   :  { %4038 = vmatprep.subr.bf16.mxu0 %v12915_v51 }
 0x8d3   :  { %4039 = vmatpush1.bf16.msra.mxu0 %v12921_v41 }
 0x8d4   :  { %4040 = vmatprep.subr.bf16.mxu0 %v12927_v14 }
 0x8d7   :  { %4041 = vmatpush1.bf16.msra.mxu0 %v12933_v3 }
 0x8d8   :  { %4042 = vmatprep.subr.bf16.mxu0 %v12939_v36 }
 0x8db   :  { %4043 = vmatpush1.bf16.msra.mxu0 %v12945_v35 }
 0x8dc   :  { %4044 = vmatprep.subr.bf16.mxu0 %v12951_v43 }
 0x8df   :  { %4045 = vmatpush1.bf16.msra.mxu0 %v12957_v29 }
 0x8e0   :  { %4046 = vmatprep.subr.bf16.mxu0 %v12963_v9 }
 0x8e3   :  { %4047 = vmatpush1.bf16.msra.mxu0 %v12969_v27 }
 0x8e4   :  { %4048 = vmatprep.subr.bf16.mxu0 %v12975_v47 }
 0x8e7   :  { %4049 = vmatpush2.bf16.msra.mxu0 %v12981_v21 }
 0x8e8   :  { %4050 = vmatprep.subr.bf16.mxu0 %v12987_v13 }
 0x8eb   :  { %4051 = vmatpush2.bf16.msra.mxu0 %v12993_v24 }
 0x8ec   :  { %4052 = vmatprep.subr.bf16.mxu0 %v12999_v58 }
 0x8ef   :  { %4053 = vmatpush2.bf16.msra.mxu0 %v13005_v25 }
 0x8f0   :  { %4054 = vmatprep.subr.bf16.mxu0 %v13011_v19 }
 0x8f3   :  { %4055 = vmatpush2.bf16.msra.mxu0 %v13017_v33 }
 0x8f4   :  { %4056 = vmatprep.subr.bf16.mxu0 %v13023_v53 }
 0x8f7   :  { %4057 = vmatpush2.bf16.msra.mxu0 %v13029_v45 }
 0x8f8   :  { %4058 = vmatprep.subr.bf16.mxu0 %v13035_v39 }
 0x8fb   :  { %4059 = vmatpush2.bf16.msra.mxu0 %v13041_v7 }
 0x8fc   :  { %4060 = vmatprep.subr.bf16.mxu0 %v13047_v23 }
 0x8ff   :  { %4061 = vmatpush2.bf16.msra.mxu0 %v13053_v16 }
 0x900   :  { %4062 = vmatprep.subr.bf16.mxu0 %v13059_v42 }
 0x903   :  { %4063 = vmatpush2.bf16.msra.mxu0 %v13065_v56 }
 0x904   :  { %6909 = vmatprep.subr.bf16.mxu0 %v13071_v20 }
 0x906   :  { %v2785_v1 = vpop.f32.mrf.mxu0  ;;  %4065 = vmatmul.mubr.bf16.vlgmr.msra.gmra.mxu0 %v13081_v22 }
 0x907   :  { %v2786_v56 = vadd.f32 %v2785_v1, %v17384_v62  ;;  %6910 = vmatpush3.bf16.msra.mxu0 %v13077_v32  ;;  %4146 = vmatprep.mubr.bf16.mxu0 %v13091_v38  ;;  %v13113_v62 = vld [vmem:[%s15774_s4 + $0x80] ss:$12 sps:$4 sm:$0xff]  }
 0x908   :  { %v2787_v20 = vpop.f32.mrf.mxu0  ;;  %6911 = vmatprep.subr.bf16.mxu0 %v13087_v34  ;;  %17484 = vst [vmem:[#allocation125_spill] sm:$0xff] %v13113_v62  ;;  %v13119_v34 = vld [vmem:[%s15774_s4 + $0x128] ss:$12 sps:$4 sm:$0xff]  }
 0x909   :  { %v2788_v42 = vadd.f32 %v2787_v20, %v17013_v26  ;;  %8173 = vtanh.f32 %v2786_v56  ;;  %17485 = vst [vmem:[#allocation126_spill] sm:$0xff] %v13119_v34  ;;  %v13125_v26 = vld [vmem:[%s15774_s4 + $0x68] ss:$12 sps:$4 sm:$0xff]   ;;  %v13137_v56 = vld [vmem:[%s15774_s4 + $0x50] ss:$12 sps:$4 sm:$0xff]  }
 0x90a   :  { %v2789_v1 = vpop.f32.mrf.mxu0  ;;  %17486 = vst [vmem:[#allocation127_spill] sm:$0xff] %v13125_v26  ;;  %17488 = vst [vmem:[#allocation95_spill] sm:$0xff] %v13137_v56  ;;  %v13143_v20 = vld [vmem:[%s15774_s4 + $0xf8] ss:$12 sps:$4 sm:$0xff]  }
 0x90b   :  { %8175 = vtanh.f32 %v2788_v42  ;;  %6912 = vmatpush3.bf16.msra.mxu0 %v13100_v37  ;;  %v13131_v42 = vld [vmem:[%s15774_s4 + $0x110] ss:$12 sps:$4 sm:$0xff]   ;;  %17489 = vst [vmem:[#allocation97_spill] sm:$0xff] %v13143_v20  ;;  %v13149_v1 = vld [vmem:[%s15774_s4 + $0x38] ss:$12 sps:$4 sm:$0xff]  }
 0x90c   :  { %v2790_v32 = vpop.f32.mrf.mxu0  ;;  %6913 = vmatprep.subr.bf16.mxu0 %v13106_v44  ;;  %17487 = vst [vmem:[#allocation128_spill] sm:$0xff] %v13131_v42  ;;  %17490 = vst [vmem:[#allocation98_spill] sm:$0xff] %v13149_v1 }
 0x90f   :  { %6914 = vmatpush3.bf16.msra.mxu0 %v13113_v62 }
 0x910   :  { %6915 = vmatprep.subr.bf16.mxu0 %v13119_v34 }
 0x913   :  { %6916 = vmatpush3.bf16.msra.mxu0 %v13125_v26 }
 0x914   :  { %6917 = vmatprep.subr.bf16.mxu0 %v13131_v42  ;;  %v13155_v42 = vld [vmem:[%s15774_s4 + $0xe0] ss:$12 sps:$4 sm:$0xff]  }
 0x915   :  { %17491 = vst [vmem:[#allocation7_spill] sm:$0xff] %v13155_v42 }
 0x916   :  { %v8174_v32 = vpop.eup %8173 }
 0x917   :  { %6918 = vmatpush3.bf16.msra.mxu0 %v13137_v56  ;;  %v2880_v62 = vpack.c.bf16 %v8174_v32, %v8174_v32  ;;  %v13161_v56 = vld [vmem:[%s15774_s4 + $0x20] ss:$12 sps:$4 sm:$0xff]   ;;  %v13199_v32 = vld [vmem:[%s15774_s4 + $0x2d8] ss:$12 sps:$4 sm:$0xff]  }
 0x918   :  { %v8176_v26 = vpop.eup %8175  ;;  %6919 = vmatprep.subr.bf16.mxu0 %v13143_v20  ;;  %17492 = vst [vmem:[#allocation9_spill] sm:$0xff] %v13161_v56  ;;  %v13167_v20 = vld [vmem:[%s15774_s4 + $0xc8] ss:$12 sps:$4 sm:$0xff]   ;;  %17498 = vst [vmem:[#allocation106_spill] sm:$0xff] %v13199_v32 }
 0x919   :  { %v2881_v34 = vpack.c.bf16 %v8176_v26, %v8176_v26  ;;  %17493 = vst [vmem:[#allocation102_spill] sm:$0xff] %v13167_v20 }
 0x91b   :  { %2921 = vmatprep.mubr.bf16.mxu1 %v2881_v34  ;;  %6920 = vmatpush3.bf16.msra.mxu0 %v13149_v1  ;;  %v13175_v34 = vld [vmem:[%s15774_s4 + $0x8] ss:$12 sps:$4 sm:$0xff]  }
 0x91c   :  { %2922 = vmatmul.mubr.bf16.vlgmr.msra.gmra.mxu1 %v2880_v62  ;;  %6921 = vmatprep.subr.bf16.mxu0 %v13155_v42  ;;  %17494 = vst [vmem:[#allocation10_spill] sm:$0xff] %v13175_v34  ;;  %v13181_v62 = vld [vmem:[%s15774_s4 + $0x2f0] ss:$12 sps:$4 sm:$0xff]   ;;  %v13465_v42 = vld [vmem:[%s15774_s4 + $0xf4] ss:$12 sps:$4 sm:$0xff]  }
 0x91d   :  { %2972 = vmatpush1.bf16.msra.mxu1 %v12574_v8  ;;  %17495 = vst [vmem:[#allocation103_spill] sm:$0xff] %v13181_v62  ;;  %v13189_v8 = vld [vmem:[%s15774_s4 + $0x230] ss:$12 sps:$4 sm:$0xff]   ;;  %17527 = vst [vmem:[#allocation122_spill] sm:$0xff] %v13465_v42 }
 0x91e   :  { %2973 = vmatprep.subr.bf16.mxu1 %v12580_v52  ;;  %17496 = vst [vmem:[#allocation11_spill] sm:$0xff] %v13189_v8  ;;  %v17497_v52 = vld [vmem:[#allocation49_spill] sm:$0xff] }
 0x91f   :  { %6922 = vmatpush3.bf16.msra.mxu0 %v13161_v56  ;;  %v13193_v26 = vpack.c.bf16 %v17497_v52, %v17497_v52  ;;  %v13459_v56 = vld [vmem:[%s15774_s4 + $0x108] ss:$12 sps:$4 sm:$0xff]  }
 0x920   :  { %6923 = vmatprep.subr.bf16.mxu0 %v13167_v20  ;;  %17526 = vst [vmem:[#allocation121_spill] sm:$0xff] %v13459_v56 }
 0x921   :  { %2974 = vmatpush1.bf16.msra.mxu1 %v12588_v40  ;;  %v13209_v40 = vld [vmem:[%s15774_s4 + $0x218] ss:$12 sps:$4 sm:$0xff]  }
 0x922   :  { %2975 = vmatprep.subr.bf16.mxu1 %v12594_v2  ;;  %17499 = vst [vmem:[#allocation15_spill] sm:$0xff] %v13209_v40  ;;  %v13215_v2 = vld [vmem:[%s15774_s4 + $0x2c0] ss:$12 sps:$4 sm:$0xff]  }
 0x923   :  { %6924 = vmatpush3.bf16.msra.mxu0 %v13175_v34  ;;  %17500 = vst [vmem:[#allocation16_spill] sm:$0xff] %v13215_v2 }
 0x924   :  { %6931 = vmatprep.subr.bf16.mxu0 %v13181_v62  ;;  %v13449_v62 = vld [vmem:[%s15774_s4 + $0x10c] ss:$12 sps:$4 sm:$0xff]  }
 0x925   :  { %2976 = vmatpush1.bf16.msra.mxu1 %v12602_v0  ;;  %v13223_v0 = vld [vmem:[%s15774_s4 + $0x200] ss:$12 sps:$4 sm:$0xff]   ;;  %17525 = vst [vmem:[#allocation120_spill] sm:$0xff] %v13449_v62 }
 0x926   :  { %4147 = vmatmul.mubr.bf16.vlgmr.msra.gmra.mxu0 %v13193_v26  ;;  %2977 = vmatprep.subr.bf16.mxu1 %v12608_v55  ;;  %17501 = vst [vmem:[#allocation110_spill] sm:$0xff] %v13223_v0  ;;  %v13229_v55 = vld [vmem:[%s15774_s4 + $0x2a8] ss:$12 sps:$4 sm:$0xff]  }
 0x927   :  { %6932 = vmatpush3.bf16.msra.mxu0 %v13189_v8  ;;  %4186 = vmatprep.mubr.bf16.mxu0 %v12884_v63  ;;  %17502 = vst [vmem:[#allocation17_spill] sm:$0xff] %v13229_v55  ;;  %v13437_v8 = vld [vmem:[%s15774_s4 + $0x124] ss:$12 sps:$4 sm:$0xff]  }
 0x928   :  { %6933 = vmatprep.subr.bf16.mxu0 %v13199_v32  ;;  %v13431_v32 = vld [vmem:[%s15774_s4 + $0x138] ss:$12 sps:$4 sm:$0xff]   ;;  %17523 = vst [vmem:[#allocation118_spill] sm:$0xff] %v13437_v8 }
 0x929   :  { %2978 = vmatpush1.bf16.msra.mxu1 %v12616_v17  ;;  %v13237_v17 = vld [vmem:[%s15774_s4 + $0x1e8] ss:$12 sps:$4 sm:$0xff]   ;;  %17522 = vst [vmem:[#allocation115_spill] sm:$0xff] %v13431_v32 }
 0x92a   :  { %2979 = vmatprep.subr.bf16.mxu1 %v12622_v48  ;;  %17503 = vst [vmem:[#allocation18_spill] sm:$0xff] %v13237_v17  ;;  %v13243_v48 = vld [vmem:[%s15774_s4 + $0x290] ss:$12 sps:$4 sm:$0xff]  }
 0x92b   :  { %6934 = vmatpush3.bf16.msra.mxu0 %v13209_v40  ;;  %17504 = vst [vmem:[#allocation81_spill] sm:$0xff] %v13243_v48  ;;  %v13425_v40 = vld [vmem:[%s15774_s4 + $0x13c] ss:$12 sps:$4 sm:$0xff]  }
 0x92c   :  { %6935 = vmatprep.subr.bf16.mxu0 %v13215_v2  ;;  %v13419_v2 = vld [vmem:[%s15774_s4 + $0x150] ss:$12 sps:$4 sm:$0xff]   ;;  %17521 = vst [vmem:[#allocation8_spill] sm:$0xff] %v13425_v40 }
 0x92d   :  { %2980 = vmatpush1.bf16.msra.mxu1 %v12630_v57  ;;  %v13251_v57 = vld [vmem:[%s15774_s4 + $0x1d0] ss:$12 sps:$4 sm:$0xff]   ;;  %17520 = vst [vmem:[#allocation62_spill] sm:$0xff] %v13419_v2 }
 0x92e   :  { %2981 = vmatprep.subr.bf16.mxu1 %v12636_v49  ;;  %17505 = vst [vmem:[#allocation19_spill] sm:$0xff] %v13251_v57  ;;  %v13257_v49 = vld [vmem:[%s15774_s4 + $0x278] ss:$12 sps:$4 sm:$0xff]  }
 0x92f   :  { %6936 = vmatpush3.bf16.msra.mxu0 %v13223_v0  ;;  %17506 = vst [vmem:[#allocation20_spill] sm:$0xff] %v13257_v49  ;;  %v13413_v0 = vld [vmem:[%s15774_s4 + $0x154] ss:$12 sps:$4 sm:$0xff]  }
 0x930   :  { %6937 = vmatprep.subr.bf16.mxu0 %v13229_v55  ;;  %v13407_v55 = vld [vmem:[%s15774_s4 + $0x168] ss:$12 sps:$4 sm:$0xff]   ;;  %17519 = vst [vmem:[#allocation108_spill] sm:$0xff] %v13413_v0 }
 0x931   :  { %2982 = vmatpush1.bf16.msra.mxu1 %v12648_v15  ;;  %v13265_v15 = vld [vmem:[%s15774_s4 + $0x1b8] ss:$12 sps:$4 sm:$0xff]   ;;  %17518 = vst [vmem:[#allocation13_spill] sm:$0xff] %v13407_v55 }
 0x932   :  { %2983 = vmatprep.subr.bf16.mxu1 %v12654_v18  ;;  %17507 = vst [vmem:[#allocation21_spill] sm:$0xff] %v13265_v15  ;;  %v13271_v18 = vld [vmem:[%s15774_s4 + $0x260] ss:$12 sps:$4 sm:$0xff]  }
 0x933   :  { %6938 = vmatpush3.bf16.msra.mxu0 %v13237_v17  ;;  %17508 = vst [vmem:[#allocation22_spill] sm:$0xff] %v13271_v18  ;;  %v13401_v17 = vld [vmem:[%s15774_s4 + $0x16c] ss:$12 sps:$4 sm:$0xff]  }
 0x934   :  { %6939 = vmatprep.subr.bf16.mxu0 %v13243_v48  ;;  %v13395_v48 = vld [vmem:[%s15774_s4] ss:$12 sps:$4 sm:$0xff]   ;;  %17517 = vst [vmem:[#allocation107_spill] sm:$0xff] %v13401_v17 }
 0x935   :  { %2984 = vmatpush1.bf16.msra.mxu1 %v12666_v61  ;;  %v13279_v61 = vld [vmem:[%s15774_s4 + $0x1a0] ss:$12 sps:$4 sm:$0xff]   ;;  %17516 = vst [vmem:[#allocation12_spill] sm:$0xff] %v13395_v48 }
 0x936   :  { %2985 = vmatprep.subr.bf16.mxu1 %v12672_v54  ;;  %17509 = vst [vmem:[#allocation23_spill] sm:$0xff] %v13279_v61  ;;  %v13285_v54 = vld [vmem:[%s15774_s4 + $0x248] ss:$12 sps:$4 sm:$0xff]  }
 0x937   :  { %6940 = vmatpush3.bf16.msra.mxu0 %v13251_v57  ;;  %17510 = vst [vmem:[#allocation24_spill] sm:$0xff] %v13285_v54 }
 0x938   :  { %6941 = vmatprep.subr.bf16.mxu0 %v13257_v49 }
 0x939   :  { %2986 = vmatpush1.bf16.msra.mxu1 %v12684_v46  ;;  %v13292_v46 = vld [vmem:[%s15774_s4 + $0xac] ss:$12 sps:$4 sm:$0xff]  }
 0x93a   :  { %2999 = vmatprep.subr.bf16.mxu1 %v12690_v31  ;;  %17511 = vst [vmem:[#allocation25_spill] sm:$0xff] %v13292_v46  ;;  %v13298_v31 = vld [vmem:[%s15774_s4 + $0x188] ss:$12 sps:$4 sm:$0xff]  }
 0x93b   :  { %6942 = vmatpush3.bf16.msra.mxu0 %v13265_v15  ;;  %17512 = vst [vmem:[#allocation26_spill] sm:$0xff] %v13298_v31 }
 0x93c   :  { %6943 = vmatprep.subr.bf16.mxu0 %v13271_v18 }
 0x93d   :  { %3000 = vmatpush2.bf16.msra.mxu1 %v12702_v12 }
 0x93e   :  { %3001 = vmatprep.subr.bf16.mxu1 %v12708_v4 }
 0x93f   :  { %6944 = vmatpush3.bf16.msra.mxu0 %v13279_v61 }
 0x940   :  { %6945 = vmatprep.subr.bf16.mxu0 %v13285_v54 }
 0x941   :  { %3002 = vmatpush2.bf16.msra.mxu1 %v12720_v10  ;;  %v13310_v10 = vld [vmem:[%s15774_s4 + $0xa8] ss:$12 sps:$4 sm:$0xff]  }
 0x942   :  { %3991 = vmatprep.subr.bf16.mxu1 %v13292_v46 }
 0x943   :  { %6946 = vmatpush3.bf16.msra.mxu0 %v13298_v31 }
 0x946   :  { %v2867_v12 = vpop.f32.mrf.mxu0  ;;  %4187 = vmatmul.mubr.bf16.vlgmr.msra.gmra.mxu0 %v13081_v22  ;;  %v13443_v22 = vld [vmem:[%s15774_s4 + $0x120] ss:$12 sps:$4 sm:$0xff]  }
 0x947   :  { %v2868_v4 = vadd.f32 %v2867_v12, %v17287_v28  ;;  %v13315_v28 = vld [vmem:[%s15774_s4 + $0x94] ss:$12 sps:$4 sm:$0xff]   ;;  %v13377_v12 = vld [vmem:[%s15774_s4 + $0x1c] ss:$12 sps:$4 sm:$0xff]   ;;  %17524 = vst [vmem:[#allocation119_spill] sm:$0xff] %v13443_v22 }
 0x948   :  { %v2869_v52 = vpop.f32.mrf.mxu0  ;;  %17513 = vst [vmem:[#allocation6_spill] sm:$0xff] %v13377_v12 }
 0x949   :  { %v2870_v61 = vadd.f32 %v2869_v52, %v17288_v11  ;;  %8177 = vtanh.f32 %v2868_v4  ;;  %v13323_v11 = vld [vmem:[%s15774_s4 + $0x90] ss:$12 sps:$4 sm:$0xff]   ;;  %v13383_v4 = vld [vmem:[%s15774_s4 + $0x18] ss:$12 sps:$4 sm:$0xff]  }
 0x94a   :  { %v2871_v18 = vpop.f32.mrf.mxu0  ;;  %17514 = vst [vmem:[#allocation59_spill] sm:$0xff] %v13383_v4  ;;  %v13389_v52 = vld [vmem:[%s15774_s4 + $0x4] ss:$12 sps:$4 sm:$0xff]  }
 0x94b   :  { %8179 = vtanh.f32 %v2870_v61  ;;  %v13353_v18 = vld [vmem:[%s15774_s4 + $0x4c] ss:$12 sps:$4 sm:$0xff]   ;;  %v13359_v61 = vld [vmem:[%s15774_s4 + $0x48] ss:$12 sps:$4 sm:$0xff]   ;;  %17515 = vst [vmem:[#allocation83_spill] sm:$0xff] %v13389_v52 }
 0x94c   :  { %v2872_v15 = vpop.f32.mrf.mxu0 }
 0x94d   :  { %v13347_v15 = vld [vmem:[%s15774_s4 + $0x60] ss:$12 sps:$4 sm:$0xff]  }
 0x956   :  { %v8178_v49 = vpop.eup %8177 }
 0x957   :  { %v2884_v31 = vpack.c.bf16 %v8178_v49, %v8178_v49  ;;  %v13329_v49 = vld [vmem:[%s15774_s4 + $0x7c] ss:$12 sps:$4 sm:$0xff]  }
 0x958   :  { %v8180_v54 = vpop.eup %8179 }
 0x959   :  { %v2885_v57 = vpack.c.bf16 %v8180_v54, %v8180_v54  ;;  %v13365_v54 = vld [vmem:[%s15774_s4 + $0x34] ss:$12 sps:$4 sm:$0xff]  }
 0x95b   :  { %6680 = vmatprep.mubr.msk.bf16.mxu1 %vm1295_vm0, %v2885_v57  ;;  %v13335_v57 = vld [vmem:[%s15774_s4 + $0x78] ss:$12 sps:$4 sm:$0xff]  }
 0x95c   :  { %3004 = vmatmul.mubr.bf16.vlgmr.msra.gmra.mxu1 %v2884_v31  ;;  %v13371_v31 = vld [vmem:[%s15774_s4 + $0x30] ss:$12 sps:$4 sm:$0xff]  }
 0x95d   :  { %3992 = vmatpush1.bf16.msra.mxu1 %v13310_v10  ;;  %4023 = vmatprep.mubr.bf16.mxu1 %v13091_v38  ;;  %v13341_v38 = vld [vmem:[%s15774_s4 + $0x64] ss:$12 sps:$4 sm:$0xff]  }
 0x95e   :  { %3993 = vmatprep.subr.bf16.mxu1 %v13315_v28 }
 0x961   :  { %3994 = vmatpush1.bf16.msra.mxu1 %v13323_v11 }
 0x962   :  { %3995 = vmatprep.subr.bf16.mxu1 %v13329_v49 }
 0x965   :  { %3996 = vmatpush1.bf16.msra.mxu1 %v13335_v57 }
 0x966   :  { %3997 = vmatprep.subr.bf16.mxu1 %v13341_v38 }
 0x969   :  { %3998 = vmatpush1.bf16.msra.mxu1 %v13347_v15 }
 0x96a   :  { %3999 = vmatprep.subr.bf16.mxu1 %v13353_v18 }
 0x96d   :  { %4000 = vmatpush1.bf16.msra.mxu1 %v13359_v61 }
 0x96e   :  { %4001 = vmatprep.subr.bf16.mxu1 %v13365_v54 }
 0x971   :  { %4002 = vmatpush1.bf16.msra.mxu1 %v13371_v31 }
 0x972   :  { %4003 = vmatprep.subr.bf16.mxu1 %v13377_v12  ;;  %v13814_v12 = vld [vmem:[%s15774_s4 + $0x3e0] ss:$12 sps:$4 sm:$0xff]  }
 0x973   :  { %17586 = vst [vmem:[#allocation5_spill] sm:$0xff] %v13814_v12 }
 0x975   :  { %4004 = vmatpush1.bf16.msra.mxu1 %v13383_v4  ;;  %v13808_v4 = vld [vmem:[%s15774_s4 + $0x338] ss:$12 sps:$4 sm:$0xff]  }
 0x976   :  { %4005 = vmatprep.subr.bf16.mxu1 %v13389_v52  ;;  %17585 = vst [vmem:[#allocation91_spill] sm:$0xff] %v13808_v4 }
 0x979   :  { %4006 = vmatpush1.bf16.msra.mxu1 %v13395_v48  ;;  %v13800_v48 = vld [vmem:[%s15775_s6 + $0x28] sm:$0xff]  }
 0x97a   :  { %4007 = vmatprep.subr.bf16.mxu1 %v13401_v17  ;;  %v13779_v17 = vld [vmem:[%s15775_s6 + $0x30] sm:$0xff]   ;;  %17584 = vst [vmem:[#allocation96_spill] sm:$0xff] %v13800_v48 }
 0x97b   :  { %17580 = vst [vmem:[#allocation82_spill] sm:$0xff] %v13779_v17 }
 0x97d   :  { %4008 = vmatpush2.bf16.msra.mxu1 %v13407_v55 }
 0x97e   :  { %4009 = vmatprep.subr.bf16.mxu1 %v13413_v0  ;;  %v13750_v0 = vld [vmem:[%s15774_s4 + $0x368] ss:$12 sps:$4 sm:$0xff]  }
 0x97f   :  { %17575 = vst [vmem:[#allocation85_spill] sm:$0xff] %v13750_v0 }
 0x981   :  { %4010 = vmatpush2.bf16.msra.mxu1 %v13419_v2 }
 0x982   :  { %4011 = vmatprep.subr.bf16.mxu1 %v13425_v40 }
 0x985   :  { %4012 = vmatpush2.bf16.msra.mxu1 %v13431_v32 }
 0x986   :  { %4013 = vmatprep.subr.bf16.mxu1 %v13437_v8  ;;  %v13451_v34 = vpop.f32.mrf.mxu0 }
 0x988   :  { %v13453_v20 = vpop.f32.mrf.mxu0 }
 0x989   :  { %4014 = vmatpush2.bf16.msra.mxu1 %v13443_v22  ;;  %v13471_v22 = vld [vmem:[%s15774_s4 + $0xf0] ss:$12 sps:$4 sm:$0xff]  }
 0x98a   :  { %4015 = vmatprep.subr.bf16.mxu1 %v13449_v62  ;;  %v2968_v1 = vpop.f32.mrf.mxu0  ;;  %17528 = vst [vmem:[#allocation27_spill] sm:$0xff] %v13471_v22  ;;  %v13477_v62 = vld [vmem:[%s15774_s4 + $0xdc] ss:$12 sps:$4 sm:$0xff]  }
 0x98b   :  { %17529 = vst [vmem:[#allocation28_spill] sm:$0xff] %v13477_v62  ;;  %v13483_v1 = vld [vmem:[%s15774_s4 + $0xd8] ss:$12 sps:$4 sm:$0xff]  }
 0x98c   :  { %v2969_v8 = vpop.f32.mrf.mxu0  ;;  %17530 = vst [vmem:[#allocation29_spill] sm:$0xff] %v13483_v1 }
 0x98d   :  { %4016 = vmatpush2.bf16.msra.mxu1 %v13459_v56  ;;  %v13489_v8 = vld [vmem:[%s15774_s4 + $0xc4] ss:$12 sps:$4 sm:$0xff]  }
 0x98e   :  { %4017 = vmatprep.subr.bf16.mxu1 %v13465_v42  ;;  %17531 = vst [vmem:[#allocation30_spill] sm:$0xff] %v13489_v8  ;;  %v13495_v42 = vld [vmem:[%s15774_s4 + $0xc0] ss:$12 sps:$4 sm:$0xff]  }
 0x98f   :  { %17532 = vst [vmem:[#allocation31_spill] sm:$0xff] %v13495_v42 }
 0x991   :  { %4018 = vmatpush2.bf16.msra.mxu1 %v13471_v22  ;;  %v13501_v22 = vld [vmem:[%s15774_s4 + $0x3ac] ss:$12 sps:$4 sm:$0xff]  }
 0x992   :  { %4019 = vmatprep.subr.bf16.mxu1 %v13477_v62  ;;  %17533 = vst [vmem:[#allocation32_spill] sm:$0xff] %v13501_v22  ;;  %v13507_v62 = vld [vmem:[%s15774_s4 + $0x3a8] ss:$12 sps:$4 sm:$0xff]  }
 0x993   :  { %17534 = vst [vmem:[#allocation33_spill] sm:$0xff] %v13507_v62 }
 0x995   :  { %4020 = vmatpush2.bf16.msra.mxu1 %v13483_v1  ;;  %v13513_v1 = vld [vmem:[%s15774_s4 + $0x394] ss:$12 sps:$4 sm:$0xff]  }
 0x996   :  { %4021 = vmatprep.subr.bf16.mxu1 %v13489_v8  ;;  %17535 = vst [vmem:[#allocation34_spill] sm:$0xff] %v13513_v1  ;;  %v17536_v8 = vld [vmem:[#allocation90_spill] sm:$0xff] }
 0x997   :  { %v13517_v56 = vpack.c.bf16 %v17536_v8, %v17536_v8  ;;  %v13543_v8 = vld [vmem:[%s15774_s4 + $0x364] ss:$12 sps:$4 sm:$0xff]  }
 0x998   :  { %17540 = vst [vmem:[#allocation38_spill] sm:$0xff] %v13543_v8 }
 0x999   :  { %4022 = vmatpush2.bf16.msra.mxu1 %v13495_v42  ;;  %v13525_v42 = vld [vmem:[%s15774_s4 + $0x390] ss:$12 sps:$4 sm:$0xff]  }
 0x99a   :  { %4073 = vmatprep.subr.bf16.mxu1 %v13501_v22  ;;  %17537 = vst [vmem:[#allocation35_spill] sm:$0xff] %v13525_v42  ;;  %v13531_v22 = vld [vmem:[%s15774_s4 + $0x37c] ss:$12 sps:$4 sm:$0xff]  }
 0x99b   :  { %17538 = vst [vmem:[#allocation36_spill] sm:$0xff] %v13531_v22 }
 0x99c   :  { %4024 = vmatmul.mubr.bf16.vlgmr.msra.gmra.mxu1 %v13193_v26  ;;  %v13537_v26 = vld [vmem:[%s15774_s4 + $0x378] ss:$12 sps:$4 sm:$0xff]  }
 0x99d   :  { %4074 = vmatpush1.bf16.msra.mxu1 %v13507_v62  ;;  %4105 = vmatprep.mubr.bf16.mxu1 %v13517_v56  ;;  %17539 = vst [vmem:[#allocation37_spill] sm:$0xff] %v13537_v26 }
 0x99e   :  { %4075 = vmatprep.subr.bf16.mxu1 %v13513_v1  ;;  %v13549_v1 = vld [vmem:[%s15774_s4 + $0x360] ss:$12 sps:$4 sm:$0xff]  }
 0x99f   :  { %17541 = vst [vmem:[#allocation39_spill] sm:$0xff] %v13549_v1 }
 0x9a1   :  { %4076 = vmatpush1.bf16.msra.mxu1 %v13525_v42  ;;  %v13555_v42 = vld [vmem:[%s15774_s4 + $0x34c] ss:$12 sps:$4 sm:$0xff]  }
 0x9a2   :  { %4077 = vmatprep.subr.bf16.mxu1 %v13531_v22  ;;  %17542 = vst [vmem:[#allocation40_spill] sm:$0xff] %v13555_v42  ;;  %v13561_v22 = vld [vmem:[%s15774_s4 + $0x348] ss:$12 sps:$4 sm:$0xff]  }
 0x9a3   :  { %17543 = vst [vmem:[#allocation41_spill] sm:$0xff] %v13561_v22 }
 0x9a5   :  { %4078 = vmatpush1.bf16.msra.mxu1 %v13537_v26  ;;  %v13567_v26 = vld [vmem:[%s15774_s4 + $0x334] ss:$12 sps:$4 sm:$0xff]  }
 0x9a6   :  { %4079 = vmatprep.subr.bf16.mxu1 %v13543_v8  ;;  %17544 = vst [vmem:[#allocation42_spill] sm:$0xff] %v13567_v26  ;;  %v13573_v8 = vld [vmem:[%s15774_s4 + $0x330] ss:$12 sps:$4 sm:$0xff]  }
 0x9a7   :  { %17545 = vst [vmem:[#allocation43_spill] sm:$0xff] %v13573_v8 }
 0x9a9   :  { %4080 = vmatpush1.bf16.msra.mxu1 %v13549_v1  ;;  %v13579_v1 = vld [vmem:[%s15774_s4 + $0x31c] ss:$12 sps:$4 sm:$0xff]  }
 0x9aa   :  { %4081 = vmatprep.subr.bf16.mxu1 %v13555_v42  ;;  %17546 = vst [vmem:[#allocation44_spill] sm:$0xff] %v13579_v1  ;;  %v13585_v42 = vld [vmem:[%s15774_s4 + $0x318] ss:$12 sps:$4 sm:$0xff]  }
 0x9ab   :  { %17547 = vst [vmem:[#allocation46_spill] sm:$0xff] %v13585_v42 }
 0x9ad   :  { %4082 = vmatpush1.bf16.msra.mxu1 %v13561_v22  ;;  %v13591_v22 = vld [vmem:[%s15774_s4 + $0x304] ss:$12 sps:$4 sm:$0xff]  }
 0x9ae   :  { %4083 = vmatprep.subr.bf16.mxu1 %v13567_v26  ;;  %17548 = vst [vmem:[#allocation48_spill] sm:$0xff] %v13591_v22  ;;  %v13597_v26 = vld [vmem:[%s15774_s4 + $0x300] ss:$12 sps:$4 sm:$0xff]  }
 0x9af   :  { %17549 = vst [vmem:[#allocation84_spill] sm:$0xff] %v13597_v26 }
 0x9b1   :  { %4084 = vmatpush1.bf16.msra.mxu1 %v13573_v8  ;;  %v13603_v8 = vld [vmem:[%s15774_s4 + $0x46c] ss:$12 sps:$4 sm:$0xff]  }
 0x9b2   :  { %4085 = vmatprep.subr.bf16.mxu1 %v13579_v1  ;;  %17550 = vst [vmem:[#allocation50_spill] sm:$0xff] %v13603_v8  ;;  %v13609_v1 = vld [vmem:[%s15774_s4 + $0x468] ss:$12 sps:$4 sm:$0xff]  }
 0x9b3   :  { %17551 = vst [vmem:[#allocation52_spill] sm:$0xff] %v13609_v1 }
 0x9b5   :  { %4086 = vmatpush1.bf16.msra.mxu1 %v13585_v42  ;;  %v13615_v42 = vld [vmem:[%s15774_s4 + $0x454] ss:$12 sps:$4 sm:$0xff]  }
 0x9b6   :  { %4087 = vmatprep.subr.bf16.mxu1 %v13591_v22  ;;  %17552 = vst [vmem:[#allocation54_spill] sm:$0xff] %v13615_v42  ;;  %v13621_v22 = vld [vmem:[%s15774_s4 + $0x450] ss:$12 sps:$4 sm:$0xff]  }
 0x9b7   :  { %17553 = vst [vmem:[#allocation56_spill] sm:$0xff] %v13621_v22 }
 0x9b9   :  { %4088 = vmatpush1.bf16.msra.mxu1 %v13597_v26  ;;  %v13627_v26 = vld [vmem:[%s15774_s4 + $0x43c] ss:$12 sps:$4 sm:$0xff]  }
 0x9ba   :  { %4089 = vmatprep.subr.bf16.mxu1 %v13603_v8  ;;  %17554 = vst [vmem:[#allocation58_spill] sm:$0xff] %v13627_v26  ;;  %v13633_v8 = vld [vmem:[%s15774_s4 + $0x438] ss:$12 sps:$4 sm:$0xff]  }
 0x9bb   :  { %17555 = vst [vmem:[#allocation60_spill] sm:$0xff] %v13633_v8 }
 0x9bd   :  { %4090 = vmatpush2.bf16.msra.mxu1 %v13609_v1  ;;  %v13639_v1 = vld [vmem:[%s15774_s4 + $0x424] ss:$12 sps:$4 sm:$0xff]  }
 0x9be   :  { %4091 = vmatprep.subr.bf16.mxu1 %v13615_v42  ;;  %17556 = vst [vmem:[#allocation61_spill] sm:$0xff] %v13639_v1  ;;  %v13645_v42 = vld [vmem:[%s15774_s4 + $0x420] ss:$12 sps:$4 sm:$0xff]  }
 0x9bf   :  { %17557 = vst [vmem:[#allocation63_spill] sm:$0xff] %v13645_v42 }
 0x9c1   :  { %4092 = vmatpush2.bf16.msra.mxu1 %v13621_v22 }
 0x9c2   :  { %4093 = vmatprep.subr.bf16.mxu1 %v13627_v26  ;;  %v13653_v26 = vld [vmem:[%s15774_s4 + $0x40c] ss:$12 sps:$4 sm:$0xff]  }
 0x9c3   :  { %17558 = vst [vmem:[#allocation64_spill] sm:$0xff] %v13653_v26 }
 0x9c5   :  { %4094 = vmatpush2.bf16.msra.mxu1 %v13633_v8  ;;  %v13661_v8 = vld [vmem:[%s15774_s4 + $0x408] ss:$12 sps:$4 sm:$0xff]  }
 0x9c6   :  { %v13647_v22 = vpop.f32.mrf.mxu0  ;;  %4095 = vmatprep.subr.bf16.mxu1 %v13639_v1  ;;  %17559 = vst [vmem:[#allocation65_spill] sm:$0xff] %v13661_v8  ;;  %v13667_v1 = vld [vmem:[%s15774_s4 + $0x3f4] ss:$12 sps:$4 sm:$0xff]  }
 0x9c7   :  { %17560 = vst [vmem:[#allocation66_spill] sm:$0xff] %v13667_v1 }
 0x9c8   :  { %v13655_v62 = vpop.f32.mrf.mxu0 }
 0x9c9   :  { %4096 = vmatpush2.bf16.msra.mxu1 %v13645_v42  ;;  %v13673_v42 = vld [vmem:[%s15774_s4 + $0x3f0] ss:$12 sps:$4 sm:$0xff]  }
 0x9ca   :  { %v4070_v32 = vpop.f32.mrf.mxu0  ;;  %4097 = vmatprep.subr.bf16.mxu1 %v13653_v26  ;;  %17561 = vst [vmem:[#allocation67_spill] sm:$0xff] %v13673_v42 }
 0x9cb   :  { %v13679_v32 = vld [vmem:[%s15774_s4 + $0x3dc] ss:$12 sps:$4 sm:$0xff]  }
 0x9cc   :  { %v4071_v40 = vpop.f32.mrf.mxu0  ;;  %17562 = vst [vmem:[#allocation69_spill] sm:$0xff] %v13679_v32 }
 0x9cd   :  { %4098 = vmatpush2.bf16.msra.mxu1 %v13661_v8  ;;  %v13685_v40 = vld [vmem:[%s15774_s4 + $0x3d8] ss:$12 sps:$4 sm:$0xff]  }
 0x9ce   :  { %4099 = vmatprep.subr.bf16.mxu1 %v13667_v1  ;;  %17563 = vst [vmem:[#allocation70_spill] sm:$0xff] %v13685_v40  ;;  %v13691_v8 = vld [vmem:[%s15774_s4 + $0x3c4] ss:$12 sps:$4 sm:$0xff]   ;;  %v13697_v1 = vld [vmem:[%s15774_s4 + $0x3c0] ss:$12 sps:$4 sm:$0xff]  }
 0x9cf   :  { %17564 = vst [vmem:[#allocation71_spill] sm:$0xff] %v13691_v8  ;;  %17565 = vst [vmem:[#allocation72_spill] sm:$0xff] %v13697_v1 }
 0x9d1   :  { %4100 = vmatpush2.bf16.msra.mxu1 %v13673_v42  ;;  %v13703_v42 = vld [vmem:[%s15774_s4 + $0x470] ss:$12 sps:$4 sm:$0xff]  }
 0x9d2   :  { %4101 = vmatprep.subr.bf16.mxu1 %v13679_v32  ;;  %17566 = vst [vmem:[#allocation73_spill] sm:$0xff] %v13703_v42  ;;  %v13709_v32 = vld [vmem:[%s15774_s4 + $0x3b0] ss:$12 sps:$4 sm:$0xff]  }
 0x9d3   :  { %17567 = vst [vmem:[#allocation74_spill] sm:$0xff] %v13709_v32 }
 0x9d5   :  { %4102 = vmatpush2.bf16.msra.mxu1 %v13685_v40  ;;  %v17568_v40 = vld [vmem:[#allocation68_spill] sm:$0xff] }
 0x9d6   :  { %4103 = vmatprep.subr.bf16.mxu1 %v13691_v8  ;;  %v13713_v26 = vpack.c.bf16 %v17568_v40, %v17568_v40  ;;  %v13719_v8 = vld [vmem:[%s15774_s4 + $0x458] ss:$12 sps:$4 sm:$0xff]  }
 0x9d7   :  { %17570 = vst [vmem:[#allocation76_spill] sm:$0xff] %v13719_v8 }
 0x9d8   :  { %17569 = vst [vmem:[#allocation75_spill] sm:$0xff] %v13713_v26 }
 0x9d9   :  { %4104 = vmatpush2.bf16.msra.mxu1 %v13697_v1  ;;  %v13727_v1 = vld [vmem:[%s15774_s4 + $0x398] ss:$12 sps:$4 sm:$0xff]  }
 0x9da   :  { %6953 = vmatprep.subr.bf16.mxu1 %v13703_v42  ;;  %17571 = vst [vmem:[#allocation77_spill] sm:$0xff] %v13727_v1  ;;  %v13733_v42 = vld [vmem:[%s15774_s4 + $0x440] ss:$12 sps:$4 sm:$0xff]  }
 0x9db   :  { %17572 = vst [vmem:[#allocation78_spill] sm:$0xff] %v13733_v42 }
 0x9dc   :  { %4106 = vmatmul.mubr.bf16.vlgmr.msra.gmra.mxu1 %v13713_v26  ;;  %v2923_v44 = vpop.f32.mrf.mxu1 }
 0x9dd   :  { %6954 = vmatpush3.bf16.msra.mxu1 %v13709_v32  ;;  %4226 = vmatprep.mubr.bf16.mxu1 %v13517_v56  ;;  %v13739_v32 = vld [vmem:[%s15774_s4 + $0x380] ss:$12 sps:$4 sm:$0xff]  }
 0x9de   :  { %v2925_v40 = vpop.f32.mrf.mxu1  ;;  %6955 = vmatprep.subr.bf16.mxu1 %v13719_v8  ;;  %17573 = vst [vmem:[#allocation79_spill] sm:$0xff] %v13739_v32  ;;  %v13745_v8 = vld [vmem:[%s15774_s4 + $0x428] ss:$12 sps:$4 sm:$0xff]  }
 0x9df   :  { %17574 = vst [vmem:[#allocation99_spill] sm:$0xff] %v13745_v8 }
 0x9e0   :  { %v2927_v2 = vpop.f32.mrf.mxu1 }
 0x9e1   :  { %6956 = vmatpush3.bf16.msra.mxu1 %v13727_v1  ;;  %v13755_v2 = vld [vmem:[%s15775_s6 + $0x78] sm:$0xff]   ;;  %v13772_v1 = vld [vmem:[%s15775_s6 + $0x70] sm:$0xff]  }
 0x9e2   :  { %v2928_v37 = vpop.f32.mrf.mxu1  ;;  %6957 = vmatprep.subr.bf16.mxu1 %v13733_v42  ;;  %17576 = vst [vmem:[#allocation86_spill] sm:$0xff] %v13755_v2  ;;  %v13765_v42 = vld [vmem:[%s15775_s6 + $0x38] sm:$0xff]   ;;  %6975 = vmatprep.subr.bf16.mxu0 %v13755_v2  ;;  %17579 = vst [vmem:[#allocation89_spill] sm:$0xff] %v13772_v1  ;;  %v13790_v2 = vld [vmem:[%s15775_s6 + $0x68] sm:$0xff]  }
 0x9e3   :  { %v13760_v37 = vld [vmem:[%s15774_s4 + $0x410] ss:$12 sps:$4 sm:$0xff]   ;;  %17578 = vst [vmem:[#allocation88_spill] sm:$0xff] %v13765_v42  ;;  %6976 = vmatpush3.bf16.msra.mxu0 %v13765_v42  ;;  %17582 = vst [vmem:[#allocation93_spill] sm:$0xff] %v13790_v2  ;;  %v13795_v42 = vld [vmem:[%s15774_s4 + $0x3f8] ss:$12 sps:$4 sm:$0xff]  }
 0x9e4   :  { %17577 = vst [vmem:[#allocation87_spill] sm:$0xff] %v13760_v37  ;;  %6977 = vmatprep.subr.bf16.mxu0 %v13772_v1  ;;  %17583 = vst [vmem:[#allocation94_spill] sm:$0xff] %v13795_v42 }
 0x9e5   :  { %6958 = vmatpush3.bf16.msra.mxu1 %v13739_v32  ;;  %v13784_v32 = vld [vmem:[%s15774_s4 + $0x350] ss:$12 sps:$4 sm:$0xff]  }
 0x9e6   :  { %v6925_v55 = vpop.f32.mrf.mxu0  ;;  %6959 = vmatprep.subr.bf16.mxu1 %v13745_v8  ;;  %17581 = vst [vmem:[#allocation92_spill] sm:$0xff] %v13784_v32 }
 0x9e7   :  { %6978 = vmatpush3.bf16.msra.mxu0 %v13779_v17  ;;  %v13854_v17 = vld [vmem:[%s15775_s6 + $0x60] sm:$0xff]  }
 0x9e8   :  { %v6926_v8 = vpop.f32.mrf.mxu0  ;;  %6979 = vmatprep.subr.bf16.mxu0 %v13790_v2 }
 0x9e9   :  { %v6927_v52 = vadd.f32 %v6926_v8, %v6925_v55  ;;  %6960 = vmatpush3.bf16.msra.mxu1 %v13750_v0  ;;  %v13822_v55 = vld [vmem:[%s15774_s4 + $0x320] ss:$12 sps:$4 sm:$0xff]  }
 0x9ea   :  { %v6928_v1 = vpop.f32.mrf.mxu0  ;;  %6961 = vmatprep.subr.bf16.mxu1 %v13760_v37  ;;  %17587 = vst [vmem:[#allocation55_spill] sm:$0xff] %v13822_v55  ;;  %v3206_v8 = vld [vmem:[%s15776_s5] sm:$0x7] }
 0x9eb   :  { %6980 = vmatpush3.bf16.msra.mxu0 %v13800_v48  ;;  %v13835_v1 = vld [vmem:[%s15774_s4 + $0x308] ss:$12 sps:$4 sm:$0xff]  }
 0x9ec   :  { %v6929_v16 = vpop.f32.mrf.mxu0  ;;  %17589 = vst [vmem:[#allocation112_spill] sm:$0xff] %v13835_v1  ;;  %6981 = vmatprep.subr.bf16.mxu0 %v13854_v17 }
 0x9ed   :  { %6962 = vmatpush3.bf16.msra.mxu1 %v13784_v32  ;;  %v13829_v16 = vld [vmem:[%s15774_s4 + $0x3c8] ss:$12 sps:$4 sm:$0xff]  }
 0x9ee   :  { %6963 = vmatprep.subr.bf16.mxu1 %v13795_v42  ;;  %17588 = vst [vmem:[#allocation111_spill] sm:$0xff] %v13829_v16 }
 0x9f1   :  { %6964 = vmatpush3.bf16.msra.mxu1 %v13808_v4 }
 0x9f2   :  { %6965 = vmatprep.subr.bf16.mxu1 %v13814_v12  ;;  %v17590_v12 = vld [vmem:[#allocation80_spill] sm:$0xff] }
 0x9f3   :  { %v17591_v4 = vsub.s32 2, %v17590_v12 }
 0x9f5   :  { %6966 = vmatpush3.bf16.msra.mxu1 %v13822_v55  ;;  %v13845_v42 = vrot.slane %v3206_v8, %v17591_v4  ;;  %v13859_v4 = vld [vmem:[%s15775_s6 + $0x20] sm:$0xff]  }
 0x9f6   :  { %6967 = vmatprep.subr.bf16.mxu1 %v13829_v16  ;;  %6982 = vmatpush3.bf16.msra.mxu0 %v13859_v4 }
 0x9f7   :  { %17592 = vst [vmem:[#allocation57_spill] sm:$0xff] %v13845_v42  ;;  %v4149_v37 = vadd.f32 %v6927_v52, %v13845_v42  ;;  %v2967_v52 = vadd.f32 %v13453_v20, %v2925_v40  ;;  %v13888_v40 = vld [vmem:[%s15775_s6 + $0x10] sm:$0xff]  }
 0x9f8   :  { %17598 = vst [vmem:[#allocation90_spill] sm:$0xff] %v13888_v40 }
 0x9f9   :  { %6968 = vmatpush3.bf16.msra.mxu1 %v13835_v1  ;;  %v2965_v1 = vadd.f32 %v13451_v34, %v2923_v44  ;;  %v13871_v34 = vld [vmem:[%s15775_s6 + $0x58] sm:$0xff]  }
 0x9fa   :  { %17595 = vst [vmem:[#allocation100_spill] sm:$0xff] %v13871_v34  ;;  %6983 = vmatprep.subr.bf16.mxu0 %v13871_v34 }
 0x9fc   :  { %4227 = vmatmul.mubr.bf16.vlgmr.msra.gmra.mxu1 %v13713_v26 }
 0xa06   :  { %v6947_v55 = vpop.f32.mrf.mxu0 }
 0xa08   :  { %v6948_v32 = vpop.f32.mrf.mxu0 }
 0xa09   :  { %v6949_v0 = vadd.f32 %v6948_v32, %v6947_v55  ;;  %v13895_v55 = vld [vmem:[%s15775_s6 + $0x48] sm:$0xff]  }
 0xa0a   :  { %v6950_v48 = vpop.f32.mrf.mxu0  ;;  %17599 = vst [vmem:[#allocation68_spill] sm:$0xff] %v13895_v55 }
 0xa0b   :  { %v13848_v2 = vadd.f32 %v6949_v0, %v4149_v37  ;;  %v13876_v37 = vld [vmem:[%s15775_s6 + $0x18] sm:$0xff]  }
 0xa0c   :  { %v6951_v16 = vpop.f32.mrf.mxu0  ;;  %17596 = vst [vmem:[#allocation2_spill] sm:$0xff] %v13876_v37  ;;  %6984 = vmatpush3.bf16.msra.mxu0 %v13876_v37 }
 0xa0d   :  { %v13900_v16 = vld [vmem:[%s15775_s6 + $0x8] sm:$0xff]  }
 0xa0e   :  { %17600 = vst [vmem:[#allocation80_spill] sm:$0xff] %v13900_v16 }
 0xa1c   :  { %v3005_v26 = vpop.f32.mrf.mxu1 }
 0xa1d   :  { %v13862_v32 = vadd.f32 %v3005_v26, %v2965_v1  ;;  %v13883_v26 = vld [vmem:[%s15775_s6 + $0x50] sm:$0xff]   ;;  %v13907_v1 = vld [vmem:[%s15775_s6 + $0x40] sm:$0xff]  }
 0xa1e   :  { %v3007_v0 = vpop.f32.mrf.mxu1  ;;  %17597 = vst [vmem:[#allocation49_spill] sm:$0xff] %v13883_v26  ;;  %6985 = vmatprep.subr.bf16.mxu0 %v13883_v26  ;;  %17601 = vst [vmem:[#allocation129_spill] sm:$0xff] %v13907_v1 }
 0xa1f   :  { %17593 = vst [vmem:[#allocation113_spill] sm:$0xff] %v13862_v32  ;;  %v13866_v44 = vadd.f32 %v3007_v0, %v2967_v52  ;;  %6986 = vmatpush3.bf16.msra.mxu0 %v13888_v40  ;;  %v13912_v52 = vld [vmem:[%s15775_s6] sm:$0xff]   ;;  %v13920_v0 = vld [vmem:[%s15775_s6 + $0x98] sm:$0xff]  }
 0xa20   :  { %v3009_v48 = vpop.f32.mrf.mxu1  ;;  %6987 = vmatprep.subr.bf16.mxu0 %v13895_v55  ;;  %17602 = vst [vmem:[#allocation130_spill] sm:$0xff] %v13912_v52  ;;  %17603 = vst [vmem:[#allocation131_spill] sm:$0xff] %v13920_v0  ;;  %v13942_v32 = vld [vmem:[%s15775_s6 + $0x80] sm:$0xff]  }
 0xa21   :  { %17594 = vst [vmem:[#allocation101_spill] sm:$0xff] %v13866_v44  ;;  %v16430_v48 = vmov 0.0   ;;  %17606 = vst [vmem:[#allocation134_spill] sm:$0xff] %v13942_v32 }
 0xa22   :  { %v3010_v20 = vpop.f32.mrf.mxu1  ;;  %7443 = vmatprep.subr.bf16.mxu1 %v16430_v48  ;;  %7451 = vmatprep.mubr.msk.bf16.mxu1 %vm8755_vm1, %v16430_v48 }
 0xa23   :  { %6988 = vmatpush3.bf16.msra.mxu0 %v13900_v16  ;;  %7444 = vmatpush3.bf16.msra.mxu1 %v13920_v0  ;;  %v13928_v20 = vld [vmem:[%s15775_s6 + $0x90] sm:$0xff]  }
 0xa24   :  { %6989 = vmatprep.subr.bf16.mxu0 %v13907_v1  ;;  %7445 = vmatprep.subr.bf16.mxu1 %v16430_v48  ;;  %17604 = vst [vmem:[#allocation132_spill] sm:$0xff] %v13928_v20  ;;  %v17608_v1 = vsub.s32 1, %v17590_v12 }
 0xa26   :  { %v13954_v16 = vrot.slane %v3206_v8, %v17608_v1 }
 0xa27   :  { %6990 = vmatpush3.bf16.msra.mxu0 %v13912_v52  ;;  %7446 = vmatpush3.bf16.msra.mxu1 %v13928_v20 }
 0xa28   :  { %4526 = vmatprep.subr.bf16.mxu0 %v12868_v5  ;;  %7447 = vmatprep.subr.bf16.mxu1 %v16430_v48  ;;  %v13935_v5 = vld [vmem:[%s15775_s6 + $0x88] sm:$0xff]  }
 0xa29   :  { %17605 = vst [vmem:[#allocation133_spill] sm:$0xff] %v13935_v5 }
 0xa2b   :  { %7448 = vmatpush3.bf16.msra.mxu1 %v13935_v5  ;;  %v17607_v5 = vsub.s32 0, %v17590_v12 }
 0xa2c   :  { %7449 = vmatprep.subr.bf16.mxu1 %v16430_v48 }
 0xa2d   :  { %v13950_v52 = vrot.slane %v3206_v8, %v17607_v5 }
 0xa2f   :  { %7450 = vmatpush3.bf16.msra.mxu1 %v13942_v32 }
 0xa30   :  { %4485 = vmatprep.subr.bf16.mxu1 %v13292_v46 }
 0xa5c   :  { %v4025_v44 = vpop.f32.mrf.mxu1 }
 0xa5d   :  { %v4026_v32 = vadd.f32 %v4025_v44, %v13950_v52  ;;  %v17647_v44 = vld [vmem:[#allocation10_spill] sm:$0xff] }
 0xa5e   :  { %v4027_v42 = vpop.f32.mrf.mxu1 }
 0xa5f   :  { %v4028_v46 = vadd.f32 %v4027_v42, %v13954_v16  ;;  %v4067_v55 = vadd.f32 %v13647_v22, %v4026_v32 }
 0xa60   :  { %v4029_v20 = vpop.f32.mrf.mxu1 }
 0xa61   :  { %v4069_v26 = vadd.f32 %v13655_v62, %v4028_v46 }
 0xa62   :  { %v4030_v0 = vpop.f32.mrf.mxu1 }
 0xa9c   :  { %v4107_v40 = vpop.f32.mrf.mxu1 }
 0xa9d   :  { %v4108_v48 = vadd.f32 %v4107_v40, %v4067_v55  ;;  %v17651_v40 = vld [vmem:[#allocation104_spill] sm:$0xff]  ;;  %v17652_v55 = vld [vmem:[#allocation109_spill] sm:$0xff] }
 0xa9e   :  { %v4109_v20 = vpop.f32.mrf.mxu1 }
 0xa9f   :  { %v4110_v0 = vadd.f32 %v4109_v20, %v4069_v26  ;;  %8181 = vtanh.f32 %v4108_v48  ;;  %v17650_v26 = vld [vmem:[#allocation32_spill] sm:$0xff]  ;;  %v14049_v48 = vpack.c.bf16 %v17652_v55, %v17652_v55  ;;  %v17653_v20 = vld [vmem:[#allocation11_spill] sm:$0xff]  ;;  %v17709_v55 = vld [vmem:[#allocation129_spill] sm:$0xff] }
 0xaa0   :  { %v4111_v37 = vpop.f32.mrf.mxu1 }
 0xaa1   :  { %8183 = vtanh.f32 %v4110_v0  ;;  %v17649_v37 = vld [vmem:[#allocation103_spill] sm:$0xff]  ;;  %v17654_v0 = vld [vmem:[#allocation33_spill] sm:$0xff] }
 0xaa2   :  { %v4112_v5 = vpop.f32.mrf.mxu1 }
 0xaa3   :  { %v17655_v5 = vld [vmem:[#allocation106_spill] sm:$0xff] }
 0xaac   :  { %v8182_v34 = vpop.eup %8181 }
 0xaad   :  { %v4237_v1 = vpack.c.bf16 %v8182_v34, %v8182_v34  ;;  %v17648_v34 = vld [vmem:[#allocation31_spill] sm:$0xff] }
 0xaae   :  { %v8184_v12 = vpop.eup %8183 }
 0xaaf   :  { %v4238_v8 = vpack.c.bf16 %v8184_v12, %v8184_v12  ;;  %v17656_v12 = vld [vmem:[#allocation34_spill] sm:$0xff] }
 0xab1   :  { %4436 = vmatprep.mubr.bf16.mxu0 %v4238_v8  ;;  %v17657_v8 = vld [vmem:[#allocation15_spill] sm:$0xff] }
 0xab2   :  { %4437 = vmatmul.mubr.bf16.vlgmr.msra.gmra.mxu0 %v4237_v1  ;;  %v17658_v1 = vld [vmem:[#allocation35_spill] sm:$0xff] }
 0xab3   :  { %4527 = vmatpush1.bf16.msra.mxu0 %v12874_v30  ;;  %4558 = vmatprep.mubr.bf16.mxu0 %v13517_v56 }
 0xab4   :  { %4528 = vmatprep.subr.bf16.mxu0 %v12880_v60 }
 0xab7   :  { %4529 = vmatpush1.bf16.msra.mxu0 %v12895_v59 }
 0xab8   :  { %4530 = vmatprep.subr.bf16.mxu0 %v12901_v50  ;;  %v17609_v50 = vld [vmem:[#allocation6_spill] sm:$0xff] }
 0xabb   :  { %4531 = vmatpush1.bf16.msra.mxu0 %v12909_v6  ;;  %v17610_v6 = vld [vmem:[#allocation51_spill] sm:$0xff] }
 0xabc   :  { %v6969_v22 = vpop.f32.mrf.mxu1  ;;  %4532 = vmatprep.subr.bf16.mxu0 %v12915_v51  ;;  %v17611_v51 = vld [vmem:[#allocation59_spill] sm:$0xff] }
 0xabe   :  { %v6970_v42 = vpop.f32.mrf.mxu1 }
 0xabf   :  { %v6971_v62 = vadd.f32 %v6970_v42, %v6969_v22  ;;  %4533 = vmatpush1.bf16.msra.mxu0 %v12921_v41  ;;  %v17612_v41 = vld [vmem:[#allocation116_spill] sm:$0xff] }
 0xac0   :  { %v6972_v46 = vpop.f32.mrf.mxu1  ;;  %4534 = vmatprep.subr.bf16.mxu0 %v12927_v14  ;;  %v17613_v14 = vld [vmem:[#allocation83_spill] sm:$0xff]  ;;  %v17659_v22 = vld [vmem:[#allocation16_spill] sm:$0xff] }
 0xac1   :  { %v4229_v30 = vadd.f32 %v6971_v62, %v13848_v2  ;;  %v17646_v2 = vld [vmem:[#allocation30_spill] sm:$0xff]  ;;  %v17660_v42 = vld [vmem:[#allocation36_spill] sm:$0xff]  ;;  %v17662_v46 = vld [vmem:[#allocation37_spill] sm:$0xff] }
 0xac2   :  { %v6973_v32 = vpop.f32.mrf.mxu1  ;;  %v17661_v62 = vld [vmem:[#allocation110_spill] sm:$0xff] }
 0xac3   :  { %8185 = vtanh.f32 %v4229_v30  ;;  %4535 = vmatpush1.bf16.msra.mxu0 %v12933_v3  ;;  %v17614_v3 = vld [vmem:[#allocation53_spill] sm:$0xff]  ;;  %v17664_v32 = vld [vmem:[#allocation38_spill] sm:$0xff] }
 0xac4   :  { %4536 = vmatprep.subr.bf16.mxu0 %v12939_v36  ;;  %v17615_v36 = vld [vmem:[#allocation12_spill] sm:$0xff]  ;;  %v17663_v30 = vld [vmem:[#allocation17_spill] sm:$0xff] }
 0xac7   :  { %4537 = vmatpush1.bf16.msra.mxu0 %v12945_v35  ;;  %v17616_v35 = vld [vmem:[#allocation4_spill] sm:$0xff] }
 0xac8   :  { %4538 = vmatprep.subr.bf16.mxu0 %v12951_v43  ;;  %v17617_v43 = vld [vmem:[#allocation107_spill] sm:$0xff] }
 0xacb   :  { %4539 = vmatpush1.bf16.msra.mxu0 %v12957_v29  ;;  %v17618_v29 = vld [vmem:[#allocation75_spill] sm:$0xff] }
 0xacc   :  { %4540 = vmatprep.subr.bf16.mxu0 %v12963_v9  ;;  %v17619_v9 = vld [vmem:[#allocation117_spill] sm:$0xff] }
 0xacf   :  { %4541 = vmatpush1.bf16.msra.mxu0 %v12969_v27  ;;  %v17620_v27 = vld [vmem:[#allocation13_spill] sm:$0xff] }
 0xad0   :  { %v8186_v60 = vpop.eup %8185  ;;  %4542 = vmatprep.subr.bf16.mxu0 %v12975_v47  ;;  %v17621_v47 = vld [vmem:[#allocation105_spill] sm:$0xff] }
 0xad1   :  { %v4239_v59 = vpack.c.bf16 %v8186_v60, %v8186_v60  ;;  %v17665_v60 = vld [vmem:[#allocation18_spill] sm:$0xff] }
 0xad3   :  { %4543 = vmatpush2.bf16.msra.mxu0 %v12981_v21  ;;  %7452 = vmatmul.mubr.msk.bf16.vlgmr.msra.gmra.mxu1 %vm4400_vm2, %v4239_v59  ;;  %v17622_v21 = vld [vmem:[#allocation108_spill] sm:$0xff]  ;;  %v17666_v59 = vld [vmem:[#allocation39_spill] sm:$0xff] }
 0xad4   :  { %4486 = vmatpush1.bf16.msra.mxu1 %v13310_v10  ;;  %4517 = vmatprep.mubr.bf16.mxu1 %v12884_v63  ;;  %v17635_v10 = vld [vmem:[#allocation95_spill] sm:$0xff] }
 0xad5   :  { %4544 = vmatprep.subr.bf16.mxu0 %v12987_v13  ;;  %4487 = vmatprep.subr.bf16.mxu1 %v13315_v28  ;;  %v17623_v13 = vld [vmem:[#allocation123_spill] sm:$0xff]  ;;  %v17636_v28 = vld [vmem:[#allocation121_spill] sm:$0xff] }
 0xad7   :  { %4545 = vmatpush2.bf16.msra.mxu0 %v12993_v24  ;;  %v17624_v24 = vld [vmem:[#allocation62_spill] sm:$0xff] }
 0xad8   :  { %4488 = vmatpush1.bf16.msra.mxu1 %v13323_v11  ;;  %4546 = vmatprep.subr.bf16.mxu0 %v12999_v58  ;;  %v17625_v58 = vld [vmem:[#allocation124_spill] sm:$0xff]  ;;  %v17637_v11 = vld [vmem:[#allocation97_spill] sm:$0xff] }
 0xad9   :  { %4489 = vmatprep.subr.bf16.mxu1 %v13329_v49  ;;  %v17638_v49 = vld [vmem:[#allocation122_spill] sm:$0xff] }
 0xadb   :  { %4547 = vmatpush2.bf16.msra.mxu0 %v13005_v25  ;;  %v17626_v25 = vld [vmem:[#allocation8_spill] sm:$0xff] }
 0xadc   :  { %4490 = vmatpush1.bf16.msra.mxu1 %v13335_v57  ;;  %4548 = vmatprep.subr.bf16.mxu0 %v13011_v19  ;;  %v17627_v19 = vld [vmem:[#allocation125_spill] sm:$0xff]  ;;  %v17639_v57 = vld [vmem:[#allocation98_spill] sm:$0xff] }
 0xadd   :  { %4491 = vmatprep.subr.bf16.mxu1 %v13341_v38  ;;  %v17640_v38 = vld [vmem:[#allocation27_spill] sm:$0xff] }
 0xadf   :  { %4549 = vmatpush2.bf16.msra.mxu0 %v13017_v33  ;;  %v17628_v33 = vld [vmem:[#allocation115_spill] sm:$0xff] }
 0xae0   :  { %4492 = vmatpush1.bf16.msra.mxu1 %v13347_v15  ;;  %4550 = vmatprep.subr.bf16.mxu0 %v13023_v53  ;;  %v17629_v53 = vld [vmem:[#allocation126_spill] sm:$0xff]  ;;  %v17641_v15 = vld [vmem:[#allocation7_spill] sm:$0xff] }
 0xae1   :  { %4493 = vmatprep.subr.bf16.mxu1 %v13353_v18  ;;  %v17642_v18 = vld [vmem:[#allocation28_spill] sm:$0xff] }
 0xae3   :  { %4551 = vmatpush2.bf16.msra.mxu0 %v13029_v45  ;;  %v17631_v45 = vld [vmem:[#allocation127_spill] sm:$0xff] }
 0xae4   :  { %4494 = vmatpush1.bf16.msra.mxu1 %v13359_v61  ;;  %4552 = vmatprep.subr.bf16.mxu0 %v13035_v39  ;;  %v17632_v39 = vld [vmem:[#allocation119_spill] sm:$0xff]  ;;  %v17643_v61 = vld [vmem:[#allocation9_spill] sm:$0xff] }
 0xae5   :  { %4495 = vmatprep.subr.bf16.mxu1 %v13365_v54  ;;  %v17644_v54 = vld [vmem:[#allocation29_spill] sm:$0xff] }
 0xae7   :  { %4553 = vmatpush2.bf16.msra.mxu0 %v13041_v7  ;;  %v17633_v7 = vld [vmem:[#allocation128_spill] sm:$0xff] }
 0xae8   :  { %4496 = vmatpush1.bf16.msra.mxu1 %v13371_v31  ;;  %4554 = vmatprep.subr.bf16.mxu0 %v13047_v23  ;;  %v17634_v23 = vld [vmem:[#allocation120_spill] sm:$0xff]  ;;  %v17645_v31 = vld [vmem:[#allocation102_spill] sm:$0xff] }
 0xae9   :  { %4497 = vmatprep.subr.bf16.mxu1 %v17609_v50  ;;  %v17667_v50 = vld [vmem:[#allocation81_spill] sm:$0xff] }
 0xaeb   :  { %4555 = vmatpush2.bf16.msra.mxu0 %v17610_v6  ;;  %v17668_v6 = vld [vmem:[#allocation40_spill] sm:$0xff] }
 0xaec   :  { %4498 = vmatpush1.bf16.msra.mxu1 %v17611_v51  ;;  %4556 = vmatprep.subr.bf16.mxu0 %v17612_v41  ;;  %v17669_v51 = vld [vmem:[#allocation19_spill] sm:$0xff]  ;;  %v17670_v41 = vld [vmem:[#allocation41_spill] sm:$0xff] }
 0xaed   :  { %4499 = vmatprep.subr.bf16.mxu1 %v17613_v14  ;;  %v17671_v14 = vld [vmem:[#allocation20_spill] sm:$0xff] }
 0xaef   :  { %4557 = vmatpush2.bf16.msra.mxu0 %v17614_v3  ;;  %v17672_v3 = vld [vmem:[#allocation42_spill] sm:$0xff] }
 0xaf0   :  { %4500 = vmatpush1.bf16.msra.mxu1 %v17615_v36  ;;  %7002 = vmatprep.subr.bf16.mxu0 %v17616_v35  ;;  %v17673_v36 = vld [vmem:[#allocation21_spill] sm:$0xff]  ;;  %v17674_v35 = vld [vmem:[#allocation43_spill] sm:$0xff] }
 0xaf1   :  { %4501 = vmatprep.subr.bf16.mxu1 %v17617_v43  ;;  %v17675_v43 = vld [vmem:[#allocation22_spill] sm:$0xff] }
 0xaf2   :  { %4559 = vmatmul.mubr.bf16.vlgmr.msra.gmra.mxu0 %v17618_v29 }
 0xaf3   :  { %7003 = vmatpush3.bf16.msra.mxu0 %v17619_v9  ;;  %4640 = vmatprep.mubr.bf16.mxu0 %v12884_v63  ;;  %v17630_v63 = vld [vmem:[#allocation118_spill] sm:$0xff]  ;;  %v17676_v9 = vld [vmem:[#allocation44_spill] sm:$0xff] }
 0xaf4   :  { %4502 = vmatpush2.bf16.msra.mxu1 %v17620_v27  ;;  %7004 = vmatprep.subr.bf16.mxu0 %v17621_v47  ;;  %v17677_v27 = vld [vmem:[#allocation23_spill] sm:$0xff]  ;;  %v17678_v47 = vld [vmem:[#allocation46_spill] sm:$0xff] }
 0xaf5   :  { %4503 = vmatprep.subr.bf16.mxu1 %v17622_v21  ;;  %v17679_v21 = vld [vmem:[#allocation24_spill] sm:$0xff] }
 0xaf7   :  { %7005 = vmatpush3.bf16.msra.mxu0 %v17623_v13  ;;  %v17680_v13 = vld [vmem:[#allocation48_spill] sm:$0xff] }
 0xaf8   :  { %4504 = vmatpush2.bf16.msra.mxu1 %v17624_v24  ;;  %7006 = vmatprep.subr.bf16.mxu0 %v17625_v58  ;;  %v17681_v24 = vld [vmem:[#allocation26_spill] sm:$0xff]  ;;  %v17682_v58 = vld [vmem:[#allocation84_spill] sm:$0xff] }
 0xaf9   :  { %4505 = vmatprep.subr.bf16.mxu1 %v17626_v25  ;;  %v17683_v25 = vld [vmem:[#allocation86_spill] sm:$0xff] }
 0xafb   :  { %7007 = vmatpush3.bf16.msra.mxu0 %v17627_v19  ;;  %v17684_v19 = vld [vmem:[#allocation50_spill] sm:$0xff] }
 0xafc   :  { %4506 = vmatpush2.bf16.msra.mxu1 %v17628_v33  ;;  %7008 = vmatprep.subr.bf16.mxu0 %v17629_v53  ;;  %v17685_v33 = vld [vmem:[#allocation88_spill] sm:$0xff] }
 0xafd   :  { %4507 = vmatprep.subr.bf16.mxu1 %v17630_v63  ;;  %v17686_v53 = vld [vmem:[#allocation52_spill] sm:$0xff]  ;;  %v17687_v63 = vld [vmem:[#allocation89_spill] sm:$0xff] }
 0xaff   :  { %7009 = vmatpush3.bf16.msra.mxu0 %v17631_v45  ;;  %v17688_v45 = vld [vmem:[#allocation54_spill] sm:$0xff] }
 0xb00   :  { %4508 = vmatpush2.bf16.msra.mxu1 %v17632_v39  ;;  %7010 = vmatprep.subr.bf16.mxu0 %v17633_v7  ;;  %v17689_v39 = vld [vmem:[#allocation82_spill] sm:$0xff]  ;;  %v17690_v7 = vld [vmem:[#allocation56_spill] sm:$0xff] }
 0xb01   :  { %4509 = vmatprep.subr.bf16.mxu1 %v17634_v23  ;;  %v17691_v23 = vld [vmem:[#allocation93_spill] sm:$0xff] }
 0xb03   :  { %7011 = vmatpush3.bf16.msra.mxu0 %v17635_v10  ;;  %v17692_v10 = vld [vmem:[#allocation58_spill] sm:$0xff] }
 0xb04   :  { %4510 = vmatpush2.bf16.msra.mxu1 %v17636_v28  ;;  %7012 = vmatprep.subr.bf16.mxu0 %v17637_v11  ;;  %v17693_v28 = vld [vmem:[#allocation96_spill] sm:$0xff] }
 0xb05   :  { %4511 = vmatprep.subr.bf16.mxu1 %v17638_v49  ;;  %v17694_v11 = vld [vmem:[#allocation60_spill] sm:$0xff]  ;;  %v17695_v49 = vld [vmem:[#allocation61_spill] sm:$0xff] }
 0xb07   :  { %7013 = vmatpush3.bf16.msra.mxu0 %v17639_v57  ;;  %v17696_v57 = vld [vmem:[#allocation63_spill] sm:$0xff] }
 0xb08   :  { %4512 = vmatpush2.bf16.msra.mxu1 %v17640_v38  ;;  %7014 = vmatprep.subr.bf16.mxu0 %v17641_v15  ;;  %v17697_v38 = vld [vmem:[#allocation100_spill] sm:$0xff] }
 0xb09   :  { %4513 = vmatprep.subr.bf16.mxu1 %v17642_v18  ;;  %v17698_v15 = vld [vmem:[#allocation64_spill] sm:$0xff]  ;;  %v17699_v18 = vld [vmem:[#allocation2_spill] sm:$0xff] }
 0xb0b   :  { %7015 = vmatpush3.bf16.msra.mxu0 %v17643_v61  ;;  %v17700_v61 = vld [vmem:[#allocation65_spill] sm:$0xff] }
 0xb0c   :  { %4514 = vmatpush2.bf16.msra.mxu1 %v17644_v54  ;;  %7016 = vmatprep.subr.bf16.mxu0 %v17645_v31  ;;  %v17701_v54 = vld [vmem:[#allocation49_spill] sm:$0xff]  ;;  %v17702_v31 = vld [vmem:[#allocation66_spill] sm:$0xff] }
 0xb0d   :  { %4515 = vmatprep.subr.bf16.mxu1 %v17646_v2  ;;  %v17703_v2 = vld [vmem:[#allocation90_spill] sm:$0xff] }
 0xb0f   :  { %7017 = vmatpush3.bf16.msra.mxu0 %v17647_v44  ;;  %v17704_v44 = vld [vmem:[#allocation67_spill] sm:$0xff] }
 0xb10   :  { %4516 = vmatpush2.bf16.msra.mxu1 %v17648_v34  ;;  %7024 = vmatprep.subr.bf16.mxu0 %v17649_v37  ;;  %v17705_v34 = vld [vmem:[#allocation68_spill] sm:$0xff]  ;;  %v17706_v37 = vld [vmem:[#allocation69_spill] sm:$0xff] }
 0xb11   :  { %4567 = vmatprep.subr.bf16.mxu1 %v17650_v26  ;;  %v17707_v26 = vld [vmem:[#allocation80_spill] sm:$0xff] }
 0xb12   :  { %4641 = vmatmul.mubr.bf16.vlgmr.msra.gmra.mxu0 %v17651_v40 }
 0xb13   :  { %4518 = vmatmul.mubr.bf16.vlgmr.msra.gmra.mxu1 %v17651_v40  ;;  %7025 = vmatpush3.bf16.msra.mxu0 %v17653_v20  ;;  %v17708_v40 = vld [vmem:[#allocation70_spill] sm:$0xff]  ;;  %v17710_v20 = vld [vmem:[#allocation71_spill] sm:$0xff] }
 0xb14   :  { %4680 = vmatprep.mubr.bf16.mxu0 %v13517_v56  ;;  %4568 = vmatpush1.bf16.msra.mxu1 %v17654_v0  ;;  %v17711_v0 = vld [vmem:[#allocation130_spill] sm:$0xff] }
 0xb15   :  { %4599 = vmatprep.mubr.bf16.mxu1 %v14049_v48  ;;  %7026 = vmatprep.subr.bf16.mxu0 %v17655_v5  ;;  %v17712_v5 = vld [vmem:[#allocation72_spill] sm:$0xff] }
 0xb16   :  { %4569 = vmatprep.subr.bf16.mxu1 %v17656_v12  ;;  %v17713_v12 = vld [vmem:[#allocation25_spill] sm:$0xff] }
 0xb17   :  { %7027 = vmatpush3.bf16.msra.mxu0 %v17657_v8  ;;  %v17714_v8 = vld [vmem:[#allocation14_spill] sm:$0xff] }
 0xb18   :  { %4570 = vmatpush1.bf16.msra.mxu1 %v17658_v1  ;;  %7028 = vmatprep.subr.bf16.mxu0 %v17659_v22  ;;  %v14120_v1 = vpack.c.bf16 %v17714_v8, %v17714_v8  ;;  %v17715_v22 = vld [vmem:[#allocation73_spill] sm:$0xff] }
 0xb19   :  { %4571 = vmatprep.subr.bf16.mxu1 %v17660_v42  ;;  %v17716_v42 = vld [vmem:[#allocation74_spill] sm:$0xff]  ;;  %v17738_v8 = vld [vmem:[#allocation57_spill] sm:$0xff] }
 0xb1b   :  { %7029 = vmatpush3.bf16.msra.mxu0 %v17661_v62  ;;  %v17717_v62 = vld [vmem:[#allocation76_spill] sm:$0xff] }
 0xb1c   :  { %4572 = vmatpush1.bf16.msra.mxu1 %v17662_v46  ;;  %7030 = vmatprep.subr.bf16.mxu0 %v17663_v30  ;;  %v17718_v46 = vld [vmem:[#allocation77_spill] sm:$0xff]  ;;  %v17719_v30 = vld [vmem:[#allocation78_spill] sm:$0xff] }
 0xb1d   :  { %4573 = vmatprep.subr.bf16.mxu1 %v17664_v32  ;;  %v17720_v32 = vld [vmem:[#allocation79_spill] sm:$0xff] }
 0xb1f   :  { %7031 = vmatpush3.bf16.msra.mxu0 %v17665_v60  ;;  %v17721_v60 = vld [vmem:[#allocation99_spill] sm:$0xff] }
 0xb20   :  { %4574 = vmatpush1.bf16.msra.mxu1 %v17666_v59  ;;  %7032 = vmatprep.subr.bf16.mxu0 %v17667_v50  ;;  %v17722_v59 = vld [vmem:[#allocation85_spill] sm:$0xff]  ;;  %v17723_v50 = vld [vmem:[#allocation87_spill] sm:$0xff] }
 0xb21   :  { %4575 = vmatprep.subr.bf16.mxu1 %v17668_v6  ;;  %v17724_v6 = vld [vmem:[#allocation92_spill] sm:$0xff] }
 0xb23   :  { %7033 = vmatpush3.bf16.msra.mxu0 %v17669_v51  ;;  %v17725_v51 = vld [vmem:[#allocation94_spill] sm:$0xff] }
 0xb24   :  { %4576 = vmatpush1.bf16.msra.mxu1 %v17670_v41  ;;  %7034 = vmatprep.subr.bf16.mxu0 %v17671_v14  ;;  %v17726_v41 = vld [vmem:[#allocation91_spill] sm:$0xff]  ;;  %v17727_v14 = vld [vmem:[#allocation5_spill] sm:$0xff] }
 0xb25   :  { %4577 = vmatprep.subr.bf16.mxu1 %v17672_v3  ;;  %v17728_v3 = vld [vmem:[#allocation55_spill] sm:$0xff] }
 0xb27   :  { %7035 = vmatpush3.bf16.msra.mxu0 %v17673_v36  ;;  %v17729_v36 = vld [vmem:[#allocation111_spill] sm:$0xff] }
 0xb28   :  { %4578 = vmatpush1.bf16.msra.mxu1 %v17674_v35  ;;  %7036 = vmatprep.subr.bf16.mxu0 %v17675_v43  ;;  %v17730_v35 = vld [vmem:[#allocation112_spill] sm:$0xff]  ;;  %v17731_v43 = vmov 0.0  }
 0xb29   :  { %4579 = vmatprep.subr.bf16.mxu1 %v17676_v9 }
 0xb2b   :  { %7037 = vmatpush3.bf16.msra.mxu0 %v17677_v27 }
 0xb2c   :  { %4580 = vmatpush1.bf16.msra.mxu1 %v17678_v47  ;;  %7038 = vmatprep.subr.bf16.mxu0 %v17679_v21  ;;  %v17732_v47 = vld [vmem:[#allocation131_spill] sm:$0xff] }
 0xb2d   :  { %4581 = vmatprep.subr.bf16.mxu1 %v17680_v13 }
 0xb2f   :  { %7039 = vmatpush3.bf16.msra.mxu0 %v17681_v24 }
 0xb30   :  { %4582 = vmatpush1.bf16.msra.mxu1 %v17682_v58  ;;  %7068 = vmatprep.subr.bf16.mxu0 %v17683_v25  ;;  %v17733_v58 = vld [vmem:[#allocation132_spill] sm:$0xff]  ;;  %v17734_v25 = vld [vmem:[#allocation133_spill] sm:$0xff] }
 0xb31   :  { %4583 = vmatprep.subr.bf16.mxu1 %v17684_v19  ;;  %v17735_v19 = vld [vmem:[#allocation134_spill] sm:$0xff] }
 0xb32   :  { %4681 = vmatmul.mubr.bf16.vlgmr.msra.gmra.mxu0 %v17618_v29 }
 0xb33   :  { %7069 = vmatpush3.bf16.msra.mxu0 %v17685_v33  ;;  %v14154_v33 = vld [vmem:[%s15774_s4 + $0x22c] ss:$12 sps:$4 sm:$0xff]  }
 0xb34   :  { %4584 = vmatpush2.bf16.msra.mxu1 %v17686_v53  ;;  %7070 = vmatprep.subr.bf16.mxu0 %v17687_v63  ;;  %17736 = vst [vmem:[#allocation6_spill] sm:$0xff] %v14154_v33 }
 0xb35   :  { %4585 = vmatprep.subr.bf16.mxu1 %v17688_v45 }
 0xb37   :  { %7071 = vmatpush3.bf16.msra.mxu0 %v17689_v39 }
 0xb38   :  { %4586 = vmatpush2.bf16.msra.mxu1 %v17690_v7  ;;  %7072 = vmatprep.subr.bf16.mxu0 %v17691_v23 }
 0xb39   :  { %4587 = vmatprep.subr.bf16.mxu1 %v17692_v10 }
 0xb3b   :  { %7073 = vmatpush3.bf16.msra.mxu0 %v17693_v28 }
 0xb3c   :  { %4588 = vmatpush2.bf16.msra.mxu1 %v17694_v11  ;;  %7074 = vmatprep.subr.bf16.mxu0 %v13854_v17 }
 0xb3d   :  { %4589 = vmatprep.subr.bf16.mxu1 %v17695_v49 }
 0xb3f   :  { %7075 = vmatpush3.bf16.msra.mxu0 %v13859_v4 }
 0xb40   :  { %4590 = vmatpush2.bf16.msra.mxu1 %v17696_v57  ;;  %7076 = vmatprep.subr.bf16.mxu0 %v17697_v38 }
 0xb41   :  { %4591 = vmatprep.subr.bf16.mxu1 %v17698_v15 }
 0xb43   :  { %7077 = vmatpush3.bf16.msra.mxu0 %v17699_v18 }
 0xb44   :  { %4592 = vmatpush2.bf16.msra.mxu1 %v17700_v61  ;;  %7078 = vmatprep.subr.bf16.mxu0 %v17701_v54 }
 0xb45   :  { %4593 = vmatprep.subr.bf16.mxu1 %v17702_v31 }
 0xb47   :  { %7079 = vmatpush3.bf16.msra.mxu0 %v17703_v2 }
 0xb48   :  { %4594 = vmatpush2.bf16.msra.mxu1 %v17704_v44  ;;  %7080 = vmatprep.subr.bf16.mxu0 %v17705_v34 }
 0xb49   :  { %4595 = vmatprep.subr.bf16.mxu1 %v17706_v37 }
 0xb4b   :  { %7081 = vmatpush3.bf16.msra.mxu0 %v17707_v26 }
 0xb4c   :  { %4596 = vmatpush2.bf16.msra.mxu1 %v17708_v40  ;;  %7082 = vmatprep.subr.bf16.mxu0 %v17709_v55 }
 0xb4d   :  { %4597 = vmatprep.subr.bf16.mxu1 %v17710_v20 }
 0xb4f   :  { %7083 = vmatpush3.bf16.msra.mxu0 %v17711_v0 }
 0xb50   :  { %4598 = vmatpush2.bf16.msra.mxu1 %v17712_v5  ;;  %4818 = vmatprep.subr.bf16.mxu0 %v17713_v12 }
 0xb51   :  { %7046 = vmatprep.subr.bf16.mxu1 %v17715_v22 }
 0xb53   :  { %4600 = vmatmul.mubr.bf16.vlgmr.msra.gmra.mxu1 %v14120_v1 }
 0xb54   :  { %7047 = vmatpush3.bf16.msra.mxu1 %v17716_v42  ;;  %4720 = vmatprep.mubr.bf16.mxu1 %v14049_v48 }
 0xb55   :  { %7048 = vmatprep.subr.bf16.mxu1 %v17717_v62 }
 0xb58   :  { %7049 = vmatpush3.bf16.msra.mxu1 %v17718_v46 }
 0xb59   :  { %7050 = vmatprep.subr.bf16.mxu1 %v17719_v30 }
 0xb5c   :  { %7051 = vmatpush3.bf16.msra.mxu1 %v17720_v32 }
 0xb5d   :  { %7052 = vmatprep.subr.bf16.mxu1 %v17721_v60 }
 0xb60   :  { %7053 = vmatpush3.bf16.msra.mxu1 %v17722_v59 }
 0xb61   :  { %7054 = vmatprep.subr.bf16.mxu1 %v17723_v50 }
 0xb64   :  { %7055 = vmatpush3.bf16.msra.mxu1 %v17724_v6 }
 0xb65   :  { %7056 = vmatprep.subr.bf16.mxu1 %v17725_v51 }
 0xb68   :  { %7057 = vmatpush3.bf16.msra.mxu1 %v17726_v41 }
 0xb69   :  { %7058 = vmatprep.subr.bf16.mxu1 %v17727_v14 }
 0xb6c   :  { %7059 = vmatpush3.bf16.msra.mxu1 %v17728_v3 }
 0xb6d   :  { %7060 = vmatprep.subr.bf16.mxu1 %v17729_v36 }
 0xb70   :  { %7061 = vmatpush3.bf16.msra.mxu1 %v17730_v35 }
 0xb71   :  { %7455 = vmatprep.subr.bf16.mxu1 %v17731_v43 }
 0xb72   :  { %v6991_v9 = vpop.f32.mrf.mxu0 }
 0xb73   :  { %4721 = vmatmul.mubr.bf16.vlgmr.msra.gmra.mxu1 %v14120_v1 }
 0xb74   :  { %v6992_v27 = vpop.f32.mrf.mxu0  ;;  %7456 = vmatpush3.bf16.msra.mxu1 %v17732_v47  ;;  %7463 = vmatprep.mubr.msk.bf16.mxu1 %vm8755_vm1, %v17731_v43 }
 0xb75   :  { %v6993_v21 = vadd.f32 %v6992_v27, %v6991_v9  ;;  %7457 = vmatprep.subr.bf16.mxu1 %v17731_v43 }
 0xb76   :  { %v6994_v13 = vpop.f32.mrf.mxu0 }
 0xb78   :  { %v6995_v24 = vpop.f32.mrf.mxu0  ;;  %7458 = vmatpush3.bf16.msra.mxu1 %v17733_v58 }
 0xb79   :  { %7459 = vmatprep.subr.bf16.mxu1 %v17731_v43 }
 0xb7c   :  { %7460 = vmatpush3.bf16.msra.mxu1 %v17734_v25 }
 0xb7d   :  { %7461 = vmatprep.subr.bf16.mxu1 %v17731_v43 }
 0xb80   :  { %7462 = vmatpush3.bf16.msra.mxu1 %v17735_v19 }
 0xb81   :  { %4859 = vmatprep.subr.bf16.mxu1 %v14154_v33 }
 0xb93   :  { %v4478_v53 = vpop.f32.mrf.mxu1 }
 0xb94   :  { %v14157_v63 = vadd.f32 %v6993_v21, %v4478_v53 }
 0xb95   :  { %v7453_v45 = vpop.f32.mrf.mxu1 }
 0xb96   :  { %17737 = vst [vmem:[#allocation51_spill] sm:$0xff] %v14157_v63  ;;  %v14384_v63 = vld [vmem:[%s15774_s4 + $0xf0] ss:$12 sps:$4 sm:$0xff]  }
 0xb97   :  { %v4481_v39 = vpop.f32.mrf.mxu1  ;;  %17743 = vst [vmem:[#allocation12_spill] sm:$0xff] %v14384_v63 }
 0xb98   :  { %v14165_v39 = vld [vmem:[%s15774_s4 + $0xa8] ss:$12 sps:$4 sm:$0xff]  }
 0xb99   :  { %v7454_v7 = vpop.f32.mrf.mxu1 }
 0xb9a   :  { %v14172_v7 = vld [vmem:[%s15774_s4 + $0x94] ss:$12 sps:$4 sm:$0xff]  }
 0xbb2   :  { %v4560_v23 = vpop.f32.mrf.mxu0 }
 0xbb4   :  { %v4562_v10 = vpop.f32.mrf.mxu0 }
 0xbb6   :  { %v4564_v28 = vpop.f32.mrf.mxu0 }
 0xbb7   :  { %v14190_v28 = vld [vmem:[%s15774_s4 + $0x78] ss:$12 sps:$4 sm:$0xff]  }
 0xbb8   :  { %v4565_v11 = vpop.f32.mrf.mxu0 }
 0xbd2   :  { %v7018_v49 = vpop.f32.mrf.mxu0 }
 0xbd3   :  { %v4519_v57 = vpop.f32.mrf.mxu1 }
 0xbd4   :  { %v7019_v15 = vpop.f32.mrf.mxu0  ;;  %v4520_v32 = vadd.f32 %v4519_v57, %v13950_v52 }
 0xbd5   :  { %v7020_v61 = vadd.f32 %v7019_v15, %v7018_v49  ;;  %v4521_v31 = vpop.f32.mrf.mxu1  ;;  %v14196_v49 = vld [vmem:[%s15774_s4 + $0x64] ss:$12 sps:$4 sm:$0xff]  }
 0xbd6   :  { %v7021_v44 = vpop.f32.mrf.mxu0  ;;  %v4522_v60 = vadd.f32 %v4521_v31, %v13954_v16  ;;  %v4561_v59 = vadd.f32 %v4560_v23, %v4520_v32  ;;  %v14178_v23 = vld [vmem:[%s15774_s4 + $0x90] ss:$12 sps:$4 sm:$0xff]   ;;  %v14256_v32 = vld [vmem:[%s15774_s4 + $0x16c] ss:$12 sps:$4 sm:$0xff]  }
 0xbd7   :  { %v4523_v37 = vpop.f32.mrf.mxu1  ;;  %v4643_v22 = vadd.f32 %v7020_v61, %v17738_v8  ;;  %v14202_v61 = vld [vmem:[%s15774_s4 + $0x60] ss:$12 sps:$4 sm:$0xff]  }
 0xbd8   :  { %v7022_v40 = vpop.f32.mrf.mxu0  ;;  %v4563_v51 = vadd.f32 %v4562_v10, %v4522_v60  ;;  %v14184_v10 = vld [vmem:[%s15774_s4 + $0x7c] ss:$12 sps:$4 sm:$0xff]   ;;  %v14208_v44 = vld [vmem:[%s15774_s4 + $0x4c] ss:$12 sps:$4 sm:$0xff]  }
 0xbd9   :  { %v4524_v20 = vpop.f32.mrf.mxu1 }
 0xbda   :  { %v14214_v20 = vld [vmem:[%s15774_s4 + $0x48] ss:$12 sps:$4 sm:$0xff]  }
 0xbf2   :  { %v7040_v5 = vpop.f32.mrf.mxu0 }
 0xbf4   :  { %v7041_v12 = vpop.f32.mrf.mxu0 }
 0xbf5   :  { %v7042_v42 = vadd.f32 %v7041_v12, %v7040_v5  ;;  %v14220_v5 = vld [vmem:[%s15774_s4 + $0x34] ss:$12 sps:$4 sm:$0xff]   ;;  %v14226_v12 = vld [vmem:[%s15774_s4 + $0x30] ss:$12 sps:$4 sm:$0xff]  }
 0xbf6   :  { %v7043_v62 = vpop.f32.mrf.mxu0 }
 0xbf7   :  { %v4683_v46 = vadd.f32 %v7042_v42, %v4643_v22  ;;  %v14232_v22 = vld [vmem:[%s15774_s4 + $0x1c] ss:$12 sps:$4 sm:$0xff]   ;;  %v14238_v42 = vld [vmem:[%s15774_s4 + $0x18] ss:$12 sps:$4 sm:$0xff]  }
 0xbf8   :  { %v7044_v30 = vpop.f32.mrf.mxu0  ;;  %v14244_v62 = vld [vmem:[%s15774_s4 + $0x4] ss:$12 sps:$4 sm:$0xff]  }
 0xc13   :  { %v4601_v50 = vpop.f32.mrf.mxu1 }
 0xc14   :  { %v4602_v6 = vadd.f32 %v4601_v50, %v4561_v59  ;;  %v14262_v59 = vld [vmem:[%s15774_s4 + $0x168] ss:$12 sps:$4 sm:$0xff]  }
 0xc15   :  { %v4603_v41 = vpop.f32.mrf.mxu1  ;;  %v14269_v50 = vld [vmem:[%s15774_s4 + $0x228] ss:$12 sps:$4 sm:$0xff]  }
 0xc16   :  { %v4604_v9 = vadd.f32 %v4603_v41, %v4563_v51  ;;  %8187 = vtanh.f32 %v4602_v6  ;;  %v14276_v6 = vld [vmem:[%s15774_s4 + $0x154] ss:$12 sps:$4 sm:$0xff]   ;;  %v14288_v41 = vld [vmem:[%s15774_s4 + $0x150] ss:$12 sps:$4 sm:$0xff]  }
 0xc17   :  { %v4605_v27 = vpop.f32.mrf.mxu1  ;;  %v14282_v51 = vld [vmem:[%s15774_s4 + $0x214] ss:$12 sps:$4 sm:$0xff]  }
 0xc18   :  { %8189 = vtanh.f32 %v4604_v9  ;;  %v14294_v9 = vld [vmem:[%s15774_s4 + $0x210] ss:$12 sps:$4 sm:$0xff]  }
 0xc19   :  { %v4606_v21 = vpop.f32.mrf.mxu1  ;;  %v14300_v27 = vld [vmem:[%s15774_s4 + $0x13c] ss:$12 sps:$4 sm:$0xff]  }
 0xc1a   :  { %v14306_v21 = vld [vmem:[%s15774_s4 + $0x1fc] ss:$12 sps:$4 sm:$0xff]  }
 0xc23   :  { %v8188_v13 = vpop.eup %8187 }
 0xc24   :  { %v4731_v45 = vpack.c.bf16 %v8188_v13, %v8188_v13  ;;  %v14312_v13 = vld [vmem:[%s15774_s4 + $0x138] ss:$12 sps:$4 sm:$0xff]  }
 0xc25   :  { %v8190_v24 = vpop.eup %8189 }
 0xc26   :  { %v4732_v53 = vpack.c.bf16 %v8190_v24, %v8190_v24  ;;  %v14318_v24 = vld [vmem:[%s15774_s4 + $0x1f8] ss:$12 sps:$4 sm:$0xff]  }
 0xc28   :  { %4769 = vmatprep.mubr.bf16.mxu0 %v4732_v53  ;;  %v14324_v53 = vld [vmem:[%s15774_s4 + $0x124] ss:$12 sps:$4 sm:$0xff]  }
 0xc29   :  { %4770 = vmatmul.mubr.bf16.vlgmr.msra.gmra.mxu0 %v4731_v45  ;;  %v14330_v45 = vld [vmem:[%s15774_s4 + $0x1e4] ss:$12 sps:$4 sm:$0xff]  }
 0xc2a   :  { %4819 = vmatpush1.bf16.msra.mxu0 %v14165_v39  ;;  %4850 = vmatprep.mubr.bf16.mxu0 %v13517_v56 }
 0xc2b   :  { %4820 = vmatprep.subr.bf16.mxu0 %v14172_v7 }
 0xc2e   :  { %4821 = vmatpush1.bf16.msra.mxu0 %v14178_v23 }
 0xc2f   :  { %4822 = vmatprep.subr.bf16.mxu0 %v14184_v10 }
 0xc32   :  { %4823 = vmatpush1.bf16.msra.mxu0 %v14190_v28 }
 0xc33   :  { %v7062_v11 = vpop.f32.mrf.mxu1  ;;  %4824 = vmatprep.subr.bf16.mxu0 %v14196_v49 }
 0xc35   :  { %v7063_v57 = vpop.f32.mrf.mxu1 }
 0xc36   :  { %v7064_v15 = vadd.f32 %v7063_v57, %v7062_v11  ;;  %4825 = vmatpush1.bf16.msra.mxu0 %v14202_v61  ;;  %v14336_v11 = vld [vmem:[%s15774_s4 + $0x120] ss:$12 sps:$4 sm:$0xff]  }
 0xc37   :  { %v7065_v31 = vpop.f32.mrf.mxu1  ;;  %4826 = vmatprep.subr.bf16.mxu0 %v14208_v44  ;;  %v14342_v57 = vld [vmem:[%s15774_s4 + $0x1e0] ss:$12 sps:$4 sm:$0xff]  }
 0xc38   :  { %v4723_v37 = vadd.f32 %v7064_v15, %v4683_v46  ;;  %v14250_v46 = vld [vmem:[%s15774_s4] ss:$12 sps:$4 sm:$0xff]  }
 0xc39   :  { %v7066_v40 = vpop.f32.mrf.mxu1  ;;  %v14348_v15 = vld [vmem:[%s15774_s4 + $0x10c] ss:$12 sps:$4 sm:$0xff]  }
 0xc3a   :  { %8191 = vtanh.f32 %v4723_v37  ;;  %4827 = vmatpush1.bf16.msra.mxu0 %v14214_v20  ;;  %v14354_v31 = vld [vmem:[%s15774_s4 + $0x1cc] ss:$12 sps:$4 sm:$0xff]   ;;  %v14360_v37 = vld [vmem:[%s15774_s4 + $0x108] ss:$12 sps:$4 sm:$0xff]  }
 0xc3b   :  { %4828 = vmatprep.subr.bf16.mxu0 %v14220_v5  ;;  %17739 = vst [vmem:[#allocation59_spill] sm:$0xff] %v14354_v31  ;;  %v14366_v40 = vld [vmem:[%s15774_s4 + $0x1c8] ss:$12 sps:$4 sm:$0xff]  }
 0xc3c   :  { %17740 = vst [vmem:[#allocation116_spill] sm:$0xff] %v14366_v40 }
 0xc3e   :  { %4829 = vmatpush1.bf16.msra.mxu0 %v14226_v12 }
 0xc3f   :  { %4830 = vmatprep.subr.bf16.mxu0 %v14232_v22 }
 0xc42   :  { %4831 = vmatpush1.bf16.msra.mxu0 %v14238_v42 }
 0xc43   :  { %4832 = vmatprep.subr.bf16.mxu0 %v14244_v62 }
 0xc46   :  { %4833 = vmatpush1.bf16.msra.mxu0 %v14250_v46 }
 0xc47   :  { %v8192_v30 = vpop.eup %8191  ;;  %4834 = vmatprep.subr.bf16.mxu0 %v14256_v32 }
 0xc48   :  { %v4733_v60 = vpack.c.bf16 %v8192_v30, %v8192_v30  ;;  %v14372_v30 = vld [vmem:[%s15774_s4 + $0xf4] ss:$12 sps:$4 sm:$0xff]  }
 0xc49   :  { %17741 = vst [vmem:[#allocation83_spill] sm:$0xff] %v14372_v30 }
 0xc4a   :  { %4835 = vmatpush2.bf16.msra.mxu0 %v14262_v59  ;;  %7464 = vmatmul.mubr.msk.bf16.vlgmr.msra.gmra.mxu1 %vm4400_vm2, %v4733_v60  ;;  %v14378_v60 = vld [vmem:[%s15774_s4 + $0x1b4] ss:$12 sps:$4 sm:$0xff]  }
 0xc4b   :  { %4860 = vmatpush1.bf16.msra.mxu1 %v14269_v50  ;;  %4891 = vmatprep.mubr.bf16.mxu1 %v14049_v48  ;;  %17742 = vst [vmem:[#allocation53_spill] sm:$0xff] %v14378_v60 }
 0xc4c   :  { %4836 = vmatprep.subr.bf16.mxu0 %v14276_v6  ;;  %4861 = vmatprep.subr.bf16.mxu1 %v14282_v51 }
 0xc4e   :  { %4837 = vmatpush2.bf16.msra.mxu0 %v14288_v41 }
 0xc4f   :  { %4862 = vmatpush1.bf16.msra.mxu1 %v14294_v9  ;;  %4838 = vmatprep.subr.bf16.mxu0 %v14300_v27 }
 0xc50   :  { %4863 = vmatprep.subr.bf16.mxu1 %v14306_v21 }
 0xc52   :  { %4839 = vmatpush2.bf16.msra.mxu0 %v14312_v13 }
 0xc53   :  { %4864 = vmatpush1.bf16.msra.mxu1 %v14318_v24  ;;  %4840 = vmatprep.subr.bf16.mxu0 %v14324_v53 }
 0xc54   :  { %4865 = vmatprep.subr.bf16.mxu1 %v14330_v45 }
 0xc56   :  { %4841 = vmatpush2.bf16.msra.mxu0 %v14336_v11 }
 0xc57   :  { %4866 = vmatpush1.bf16.msra.mxu1 %v14342_v57  ;;  %4842 = vmatprep.subr.bf16.mxu0 %v14348_v15 }
 0xc58   :  { %4867 = vmatprep.subr.bf16.mxu1 %v14354_v31  ;;  %v14396_v31 = vld [vmem:[%s15774_s4 + $0xdc] ss:$12 sps:$4 sm:$0xff]  }
 0xc59   :  { %17745 = vst [vmem:[#allocation107_spill] sm:$0xff] %v14396_v31 }
 0xc5a   :  { %4843 = vmatpush2.bf16.msra.mxu0 %v14360_v37 }
 0xc5b   :  { %4868 = vmatpush1.bf16.msra.mxu1 %v14366_v40  ;;  %4844 = vmatprep.subr.bf16.mxu0 %v14372_v30  ;;  %v14390_v40 = vld [vmem:[%s15774_s4 + $0x1b0] ss:$12 sps:$4 sm:$0xff]  }
 0xc5c   :  { %4869 = vmatprep.subr.bf16.mxu1 %v14378_v60  ;;  %17744 = vst [vmem:[#allocation4_spill] sm:$0xff] %v14390_v40  ;;  %v14402_v60 = vld [vmem:[%s15774_s4 + $0x19c] ss:$12 sps:$4 sm:$0xff]  }
 0xc5d   :  { %17746 = vst [vmem:[#allocation75_spill] sm:$0xff] %v14402_v60 }
 0xc5e   :  { %4845 = vmatpush2.bf16.msra.mxu0 %v14384_v63  ;;  %v14408_v63 = vld [vmem:[%s15774_s4 + $0xd8] ss:$12 sps:$4 sm:$0xff]  }
 0xc5f   :  { %4870 = vmatpush1.bf16.msra.mxu1 %v14390_v40  ;;  %4846 = vmatprep.subr.bf16.mxu0 %v14396_v31  ;;  %17747 = vst [vmem:[#allocation117_spill] sm:$0xff] %v14408_v63  ;;  %v14414_v40 = vld [vmem:[%s15774_s4 + $0x198] ss:$12 sps:$4 sm:$0xff]  }
 0xc60   :  { %4871 = vmatprep.subr.bf16.mxu1 %v14402_v60  ;;  %17748 = vst [vmem:[#allocation13_spill] sm:$0xff] %v14414_v40  ;;  %v14420_v31 = vld [vmem:[%s15774_s4 + $0xc4] ss:$12 sps:$4 sm:$0xff]  }
 0xc61   :  { %17749 = vst [vmem:[#allocation105_spill] sm:$0xff] %v14420_v31  ;;  %v14426_v60 = vld [vmem:[%s15774_s4 + $0x184] ss:$12 sps:$4 sm:$0xff]  }
 0xc62   :  { %4847 = vmatpush2.bf16.msra.mxu0 %v14408_v63  ;;  %17750 = vst [vmem:[#allocation108_spill] sm:$0xff] %v14426_v60  ;;  %v14432_v63 = vld [vmem:[%s15774_s4 + $0xc0] ss:$12 sps:$4 sm:$0xff]  }
 0xc63   :  { %4872 = vmatpush1.bf16.msra.mxu1 %v14414_v40  ;;  %4848 = vmatprep.subr.bf16.mxu0 %v14420_v31  ;;  %17751 = vst [vmem:[#allocation123_spill] sm:$0xff] %v14432_v63  ;;  %v14438_v40 = vld [vmem:[%s15774_s4 + $0x180] ss:$12 sps:$4 sm:$0xff]  }
 0xc64   :  { %4873 = vmatprep.subr.bf16.mxu1 %v14426_v60  ;;  %17752 = vst [vmem:[#allocation62_spill] sm:$0xff] %v14438_v40  ;;  %v14444_v31 = vld [vmem:[%s15774_s4 + $0x3ac] ss:$12 sps:$4 sm:$0xff]   ;;  %v17754_v60 = vld [vmem:[#allocation114_spill] sm:$0xff] }
 0xc65   :  { %17753 = vst [vmem:[#allocation124_spill] sm:$0xff] %v14444_v31  ;;  %v14449_v30 = vpack.c.bf16 %v17754_v60, %v17754_v60  ;;  %v14468_v60 = vld [vmem:[%s15774_s4 + $0x2e8] ss:$12 sps:$4 sm:$0xff]  }
 0xc66   :  { %4849 = vmatpush2.bf16.msra.mxu0 %v14432_v63  ;;  %v14454_v63 = vld [vmem:[%s15774_s4 + $0x2ec] ss:$12 sps:$4 sm:$0xff]   ;;  %17757 = vst [vmem:[#allocation115_spill] sm:$0xff] %v14468_v60 }
 0xc67   :  { %4874 = vmatpush1.bf16.msra.mxu1 %v14438_v40  ;;  %4900 = vmatprep.subr.bf16.mxu0 %v14444_v31  ;;  %17755 = vst [vmem:[#allocation8_spill] sm:$0xff] %v14454_v63  ;;  %v14461_v40 = vld [vmem:[%s15774_s4 + $0x3a8] ss:$12 sps:$4 sm:$0xff]   ;;  %v14486_v31 = vld [vmem:[%s15774_s4 + $0x390] ss:$12 sps:$4 sm:$0xff]  }
 0xc68   :  { %4875 = vmatprep.subr.bf16.mxu1 %v14454_v63  ;;  %17756 = vst [vmem:[#allocation125_spill] sm:$0xff] %v14461_v40  ;;  %v14474_v63 = vld [vmem:[%s15774_s4 + $0x394] ss:$12 sps:$4 sm:$0xff]   ;;  %17760 = vst [vmem:[#allocation127_spill] sm:$0xff] %v14486_v31 }
 0xc69   :  { %4851 = vmatmul.mubr.bf16.vlgmr.msra.gmra.mxu0 %v17618_v29  ;;  %17758 = vst [vmem:[#allocation126_spill] sm:$0xff] %v14474_v63 }
 0xc6a   :  { %4901 = vmatpush1.bf16.msra.mxu0 %v14461_v40  ;;  %4932 = vmatprep.mubr.bf16.mxu0 %v14449_v30  ;;  %v14480_v40 = vld [vmem:[%s15774_s4 + $0x2d4] ss:$12 sps:$4 sm:$0xff]  }
 0xc6b   :  { %4876 = vmatpush2.bf16.msra.mxu1 %v14468_v60  ;;  %4902 = vmatprep.subr.bf16.mxu0 %v14474_v63  ;;  %17759 = vst [vmem:[#allocation118_spill] sm:$0xff] %v14480_v40  ;;  %v14492_v60 = vld [vmem:[%s15774_s4 + $0x2d0] ss:$12 sps:$4 sm:$0xff]  }
 0xc6c   :  { %4877 = vmatprep.subr.bf16.mxu1 %v14480_v40  ;;  %17761 = vst [vmem:[#allocation119_spill] sm:$0xff] %v14492_v60  ;;  %v14498_v63 = vld [vmem:[%s15774_s4 + $0x37c] ss:$12 sps:$4 sm:$0xff]  }
 0xc6d   :  { %17762 = vst [vmem:[#allocation128_spill] sm:$0xff] %v14498_v63  ;;  %v14504_v40 = vld [vmem:[%s15774_s4 + $0x2bc] ss:$12 sps:$4 sm:$0xff]  }
 0xc6e   :  { %4903 = vmatpush1.bf16.msra.mxu0 %v14486_v31  ;;  %17763 = vst [vmem:[#allocation120_spill] sm:$0xff] %v14504_v40  ;;  %v14510_v31 = vld [vmem:[%s15774_s4 + $0x378] ss:$12 sps:$4 sm:$0xff]  }
 0xc6f   :  { %4878 = vmatpush2.bf16.msra.mxu1 %v14492_v60  ;;  %4904 = vmatprep.subr.bf16.mxu0 %v14498_v63  ;;  %17764 = vst [vmem:[#allocation95_spill] sm:$0xff] %v14510_v31  ;;  %v14516_v60 = vld [vmem:[%s15774_s4 + $0x2b8] ss:$12 sps:$4 sm:$0xff]  }
 0xc70   :  { %4879 = vmatprep.subr.bf16.mxu1 %v14504_v40  ;;  %17765 = vst [vmem:[#allocation121_spill] sm:$0xff] %v14516_v60  ;;  %v14522_v63 = vld [vmem:[%s15774_s4 + $0x364] ss:$12 sps:$4 sm:$0xff]  }
 0xc71   :  { %17766 = vst [vmem:[#allocation97_spill] sm:$0xff] %v14522_v63  ;;  %v14528_v40 = vld [vmem:[%s15774_s4 + $0x2a4] ss:$12 sps:$4 sm:$0xff]  }
 0xc72   :  { %4905 = vmatpush1.bf16.msra.mxu0 %v14510_v31  ;;  %17767 = vst [vmem:[#allocation122_spill] sm:$0xff] %v14528_v40  ;;  %v14534_v31 = vld [vmem:[%s15774_s4 + $0x360] ss:$12 sps:$4 sm:$0xff]  }
 0xc73   :  { %4880 = vmatpush2.bf16.msra.mxu1 %v14516_v60  ;;  %4906 = vmatprep.subr.bf16.mxu0 %v14522_v63  ;;  %17768 = vst [vmem:[#allocation98_spill] sm:$0xff] %v14534_v31  ;;  %v14540_v60 = vld [vmem:[%s15774_s4 + $0x2a0] ss:$12 sps:$4 sm:$0xff]  }
 0xc74   :  { %4881 = vmatprep.subr.bf16.mxu1 %v14528_v40  ;;  %17769 = vst [vmem:[#allocation27_spill] sm:$0xff] %v14540_v60  ;;  %v14546_v63 = vld [vmem:[%s15774_s4 + $0x34c] ss:$12 sps:$4 sm:$0xff]  }
 0xc75   :  { %17770 = vst [vmem:[#allocation7_spill] sm:$0xff] %v14546_v63  ;;  %v14552_v40 = vld [vmem:[%s15774_s4 + $0x28c] ss:$12 sps:$4 sm:$0xff]  }
 0xc76   :  { %4907 = vmatpush1.bf16.msra.mxu0 %v14534_v31  ;;  %17771 = vst [vmem:[#allocation28_spill] sm:$0xff] %v14552_v40  ;;  %v14558_v31 = vld [vmem:[%s15774_s4 + $0x348] ss:$12 sps:$4 sm:$0xff]  }
 0xc77   :  { %4882 = vmatpush2.bf16.msra.mxu1 %v14540_v60  ;;  %4908 = vmatprep.subr.bf16.mxu0 %v14546_v63  ;;  %17772 = vst [vmem:[#allocation9_spill] sm:$0xff] %v14558_v31  ;;  %v14564_v60 = vld [vmem:[%s15774_s4 + $0x288] ss:$12 sps:$4 sm:$0xff]  }
 0xc78   :  { %4883 = vmatprep.subr.bf16.mxu1 %v14552_v40  ;;  %17773 = vst [vmem:[#allocation29_spill] sm:$0xff] %v14564_v60  ;;  %v14570_v63 = vld [vmem:[%s15774_s4 + $0x334] ss:$12 sps:$4 sm:$0xff]  }
 0xc79   :  { %17774 = vst [vmem:[#allocation102_spill] sm:$0xff] %v14570_v63  ;;  %v14576_v40 = vld [vmem:[%s15774_s4 + $0x274] ss:$12 sps:$4 sm:$0xff]  }
 0xc7a   :  { %4909 = vmatpush1.bf16.msra.mxu0 %v14558_v31  ;;  %17775 = vst [vmem:[#allocation30_spill] sm:$0xff] %v14576_v40  ;;  %v14582_v31 = vld [vmem:[%s15774_s4 + $0x330] ss:$12 sps:$4 sm:$0xff]  }
 0xc7b   :  { %4884 = vmatpush2.bf16.msra.mxu1 %v14564_v60  ;;  %4910 = vmatprep.subr.bf16.mxu0 %v14570_v63  ;;  %17776 = vst [vmem:[#allocation10_spill] sm:$0xff] %v14582_v31  ;;  %v14588_v60 = vld [vmem:[%s15774_s4 + $0x270] ss:$12 sps:$4 sm:$0xff]  }
 0xc7c   :  { %4885 = vmatprep.subr.bf16.mxu1 %v14576_v40  ;;  %17777 = vst [vmem:[#allocation31_spill] sm:$0xff] %v14588_v60  ;;  %v14594_v63 = vld [vmem:[%s15774_s4 + $0x31c] ss:$12 sps:$4 sm:$0xff]  }
 0xc7d   :  { %17778 = vst [vmem:[#allocation103_spill] sm:$0xff] %v14594_v63  ;;  %v14600_v40 = vld [vmem:[%s15774_s4 + $0x25c] ss:$12 sps:$4 sm:$0xff]  }
 0xc7e   :  { %4911 = vmatpush1.bf16.msra.mxu0 %v14582_v31  ;;  %17779 = vst [vmem:[#allocation32_spill] sm:$0xff] %v14600_v40  ;;  %v14606_v31 = vld [vmem:[%s15774_s4 + $0x318] ss:$12 sps:$4 sm:$0xff]  }
 0xc7f   :  { %4886 = vmatpush2.bf16.msra.mxu1 %v14588_v60  ;;  %4912 = vmatprep.subr.bf16.mxu0 %v14594_v63  ;;  %17780 = vst [vmem:[#allocation104_spill] sm:$0xff] %v14606_v31  ;;  %v14612_v60 = vld [vmem:[%s15774_s4 + $0x258] ss:$12 sps:$4 sm:$0xff]  }
 0xc80   :  { %4887 = vmatprep.subr.bf16.mxu1 %v14600_v40  ;;  %17781 = vst [vmem:[#allocation109_spill] sm:$0xff] %v14612_v60  ;;  %v14618_v63 = vld [vmem:[%s15774_s4 + $0x304] ss:$12 sps:$4 sm:$0xff]  }
 0xc81   :  { %17782 = vst [vmem:[#allocation11_spill] sm:$0xff] %v14618_v63  ;;  %v14624_v40 = vld [vmem:[%s15774_s4 + $0x244] ss:$12 sps:$4 sm:$0xff]  }
 0xc82   :  { %4913 = vmatpush1.bf16.msra.mxu0 %v14606_v31  ;;  %17783 = vst [vmem:[#allocation33_spill] sm:$0xff] %v14624_v40  ;;  %v14630_v31 = vld [vmem:[%s15774_s4 + $0x300] ss:$12 sps:$4 sm:$0xff]  }
 0xc83   :  { %4888 = vmatpush2.bf16.msra.mxu1 %v14612_v60  ;;  %4914 = vmatprep.subr.bf16.mxu0 %v14618_v63  ;;  %17784 = vst [vmem:[#allocation106_spill] sm:$0xff] %v14630_v31  ;;  %v14636_v60 = vld [vmem:[%s15774_s4 + $0x240] ss:$12 sps:$4 sm:$0xff]  }
 0xc84   :  { %4889 = vmatprep.subr.bf16.mxu1 %v14624_v40  ;;  %17785 = vst [vmem:[#allocation34_spill] sm:$0xff] %v14636_v60  ;;  %v14642_v63 = vld [vmem:[%s15774_s4 + $0x46c] ss:$12 sps:$4 sm:$0xff]   ;;  %v14648_v40 = vld [vmem:[%s15774_s4 + $0x170] ss:$12 sps:$4 sm:$0xff]  }
 0xc85   :  { %17786 = vst [vmem:[#allocation15_spill] sm:$0xff] %v14642_v63  ;;  %17787 = vst [vmem:[#allocation35_spill] sm:$0xff] %v14648_v40 }
 0xc86   :  { %4915 = vmatpush1.bf16.msra.mxu0 %v14630_v31 }
 0xc87   :  { %4890 = vmatpush2.bf16.msra.mxu1 %v14636_v60  ;;  %4916 = vmatprep.subr.bf16.mxu0 %v14642_v63  ;;  %v14655_v60 = vld [vmem:[%s15774_s4 + $0x468] ss:$12 sps:$4 sm:$0xff]   ;;  %v14661_v63 = vld [vmem:[%s15774_s4 + $0xb0] ss:$12 sps:$4 sm:$0xff]  }
 0xc88   :  { %7095 = vmatprep.subr.bf16.mxu1 %v14648_v40  ;;  %17788 = vst [vmem:[#allocation16_spill] sm:$0xff] %v14655_v60  ;;  %17789 = vst [vmem:[#allocation36_spill] sm:$0xff] %v14661_v63  ;;  %v14668_v40 = vld [vmem:[%s15774_s4 + $0x454] ss:$12 sps:$4 sm:$0xff]  }
 0xc89   :  { %17790 = vst [vmem:[#allocation110_spill] sm:$0xff] %v14668_v40 }
 0xc8a   :  { %4892 = vmatmul.mubr.bf16.vlgmr.msra.gmra.mxu1 %v14120_v1  ;;  %4917 = vmatpush2.bf16.msra.mxu0 %v14655_v60  ;;  %v14674_v60 = vld [vmem:[%s15774_s4 + $0x158] ss:$12 sps:$4 sm:$0xff]  }
 0xc8b   :  { %7096 = vmatpush3.bf16.msra.mxu1 %v14661_v63  ;;  %4973 = vmatprep.mubr.bf16.mxu1 %v13517_v56  ;;  %17791 = vst [vmem:[#allocation37_spill] sm:$0xff] %v14674_v60  ;;  %v14680_v63 = vld [vmem:[%s15774_s4 + $0x450] ss:$12 sps:$4 sm:$0xff]   ;;  %v14686_v56 = vld [vmem:[%s15774_s4 + $0x98] ss:$12 sps:$4 sm:$0xff]  }
 0xc8c   :  { %4918 = vmatprep.subr.bf16.mxu0 %v14668_v40  ;;  %7097 = vmatprep.subr.bf16.mxu1 %v14674_v60  ;;  %17792 = vst [vmem:[#allocation17_spill] sm:$0xff] %v14680_v63  ;;  %17793 = vst [vmem:[#allocation38_spill] sm:$0xff] %v14686_v56  ;;  %v14692_v40 = vld [vmem:[%s15774_s4 + $0x43c] ss:$12 sps:$4 sm:$0xff]   ;;  %v14698_v60 = vld [vmem:[%s15774_s4 + $0x140] ss:$12 sps:$4 sm:$0xff]  }
 0xc8d   :  { %17794 = vst [vmem:[#allocation18_spill] sm:$0xff] %v14692_v40  ;;  %17795 = vst [vmem:[#allocation39_spill] sm:$0xff] %v14698_v60 }
 0xc8e   :  { %4919 = vmatpush2.bf16.msra.mxu0 %v14680_v63  ;;  %v14704_v63 = vld [vmem:[%s15774_s4 + $0x438] ss:$12 sps:$4 sm:$0xff]  }
 0xc8f   :  { %7098 = vmatpush3.bf16.msra.mxu1 %v14686_v56  ;;  %4920 = vmatprep.subr.bf16.mxu0 %v14692_v40  ;;  %17796 = vst [vmem:[#allocation81_spill] sm:$0xff] %v14704_v63  ;;  %v14710_v56 = vld [vmem:[%s15774_s4 + $0x80] ss:$12 sps:$4 sm:$0xff]   ;;  %v14716_v40 = vld [vmem:[%s15774_s4 + $0x424] ss:$12 sps:$4 sm:$0xff]  }
 0xc90   :  { %7099 = vmatprep.subr.bf16.mxu1 %v14698_v60  ;;  %17797 = vst [vmem:[#allocation40_spill] sm:$0xff] %v14710_v56  ;;  %17798 = vst [vmem:[#allocation19_spill] sm:$0xff] %v14716_v40  ;;  %v14722_v60 = vld [vmem:[%s15774_s4 + $0x128] ss:$12 sps:$4 sm:$0xff]  }
 0xc91   :  { %17799 = vst [vmem:[#allocation41_spill] sm:$0xff] %v14722_v60 }
 0xc92   :  { %4921 = vmatpush2.bf16.msra.mxu0 %v14704_v63  ;;  %v14728_v63 = vld [vmem:[%s15774_s4 + $0x420] ss:$12 sps:$4 sm:$0xff]  }
 0xc93   :  { %7100 = vmatpush3.bf16.msra.mxu1 %v14710_v56  ;;  %4922 = vmatprep.subr.bf16.mxu0 %v14716_v40  ;;  %17800 = vst [vmem:[#allocation20_spill] sm:$0xff] %v14728_v63  ;;  %v14734_v56 = vld [vmem:[%s15774_s4 + $0x68] ss:$12 sps:$4 sm:$0xff]   ;;  %v14740_v40 = vld [vmem:[%s15774_s4 + $0x40c] ss:$12 sps:$4 sm:$0xff]  }
 0xc94   :  { %7101 = vmatprep.subr.bf16.mxu1 %v14722_v60  ;;  %17801 = vst [vmem:[#allocation42_spill] sm:$0xff] %v14734_v56  ;;  %17802 = vst [vmem:[#allocation21_spill] sm:$0xff] %v14740_v40  ;;  %v14746_v60 = vld [vmem:[%s15774_s4 + $0x110] ss:$12 sps:$4 sm:$0xff]  }
 0xc95   :  { %17803 = vst [vmem:[#allocation43_spill] sm:$0xff] %v14746_v60 }
 0xc96   :  { %4923 = vmatpush2.bf16.msra.mxu0 %v14728_v63  ;;  %v14752_v63 = vld [vmem:[%s15774_s4 + $0x408] ss:$12 sps:$4 sm:$0xff]  }
 0xc97   :  { %7102 = vmatpush3.bf16.msra.mxu1 %v14734_v56  ;;  %4924 = vmatprep.subr.bf16.mxu0 %v14740_v40  ;;  %17804 = vst [vmem:[#allocation22_spill] sm:$0xff] %v14752_v63  ;;  %v14758_v56 = vld [vmem:[%s15774_s4 + $0x50] ss:$12 sps:$4 sm:$0xff]   ;;  %v14764_v40 = vld [vmem:[%s15774_s4 + $0x3f4] ss:$12 sps:$4 sm:$0xff]  }
 0xc98   :  { %7103 = vmatprep.subr.bf16.mxu1 %v14746_v60  ;;  %17805 = vst [vmem:[#allocation44_spill] sm:$0xff] %v14758_v56  ;;  %17806 = vst [vmem:[#allocation23_spill] sm:$0xff] %v14764_v40  ;;  %v14770_v60 = vld [vmem:[%s15774_s4 + $0xf8] ss:$12 sps:$4 sm:$0xff]  }
 0xc99   :  { %17807 = vst [vmem:[#allocation46_spill] sm:$0xff] %v14770_v60 }
 0xc9a   :  { %4925 = vmatpush2.bf16.msra.mxu0 %v14752_v63  ;;  %v14776_v63 = vld [vmem:[%s15774_s4 + $0x3f0] ss:$12 sps:$4 sm:$0xff]  }
 0xc9b   :  { %7104 = vmatpush3.bf16.msra.mxu1 %v14758_v56  ;;  %4926 = vmatprep.subr.bf16.mxu0 %v14764_v40  ;;  %17808 = vst [vmem:[#allocation24_spill] sm:$0xff] %v14776_v63  ;;  %v14782_v56 = vld [vmem:[%s15774_s4 + $0x38] ss:$12 sps:$4 sm:$0xff]   ;;  %v14788_v40 = vld [vmem:[%s15774_s4 + $0x3dc] ss:$12 sps:$4 sm:$0xff]  }
 0xc9c   :  { %7105 = vmatprep.subr.bf16.mxu1 %v14770_v60  ;;  %17809 = vst [vmem:[#allocation48_spill] sm:$0xff] %v14782_v56  ;;  %17810 = vst [vmem:[#allocation26_spill] sm:$0xff] %v14788_v40  ;;  %v14794_v60 = vld [vmem:[%s15774_s4 + $0xe0] ss:$12 sps:$4 sm:$0xff]  }
 0xc9d   :  { %17811 = vst [vmem:[#allocation84_spill] sm:$0xff] %v14794_v60 }
 0xc9e   :  { %4927 = vmatpush2.bf16.msra.mxu0 %v14776_v63  ;;  %v14800_v63 = vld [vmem:[%s15774_s4 + $0x3d8] ss:$12 sps:$4 sm:$0xff]  }
 0xc9f   :  { %7106 = vmatpush3.bf16.msra.mxu1 %v14782_v56  ;;  %4928 = vmatprep.subr.bf16.mxu0 %v14788_v40  ;;  %17812 = vst [vmem:[#allocation86_spill] sm:$0xff] %v14800_v63  ;;  %v14806_v56 = vld [vmem:[%s15774_s4 + $0x20] ss:$12 sps:$4 sm:$0xff]   ;;  %v14812_v40 = vld [vmem:[%s15774_s4 + $0x3c4] ss:$12 sps:$4 sm:$0xff]  }
 0xca0   :  { %7107 = vmatprep.subr.bf16.mxu1 %v14794_v60  ;;  %17813 = vst [vmem:[#allocation50_spill] sm:$0xff] %v14806_v56  ;;  %17814 = vst [vmem:[#allocation88_spill] sm:$0xff] %v14812_v40  ;;  %v14818_v60 = vld [vmem:[%s15774_s4 + $0xc8] ss:$12 sps:$4 sm:$0xff]  }
 0xca1   :  { %17815 = vst [vmem:[#allocation52_spill] sm:$0xff] %v14818_v60 }
 0xca2   :  { %4929 = vmatpush2.bf16.msra.mxu0 %v14800_v63  ;;  %v14824_v63 = vld [vmem:[%s15774_s4 + $0x3c0] ss:$12 sps:$4 sm:$0xff]  }
 0xca3   :  { %7108 = vmatpush3.bf16.msra.mxu1 %v14806_v56  ;;  %4930 = vmatprep.subr.bf16.mxu0 %v14812_v40  ;;  %17816 = vst [vmem:[#allocation89_spill] sm:$0xff] %v14824_v63  ;;  %v17817_v56 = vld [vmem:[#allocation45_spill] sm:$0xff]  ;;  %v14834_v40 = vld [vmem:[%s15774_s4 + $0x8] ss:$12 sps:$4 sm:$0xff]  }
 0xca4   :  { %7109 = vmatprep.subr.bf16.mxu1 %v14818_v60  ;;  %v14829_v31 = vpack.c.bf16 %v17817_v56, %v17817_v56  ;;  %17819 = vst [vmem:[#allocation82_spill] sm:$0xff] %v14834_v40  ;;  %v14840_v60 = vld [vmem:[%s15774_s4 + $0x470] ss:$12 sps:$4 sm:$0xff]  }
 0xca5   :  { %17820 = vst [vmem:[#allocation56_spill] sm:$0xff] %v14840_v60  ;;  %v14854_v56 = vld [vmem:[%s15774_s4 + $0x3b0] ss:$12 sps:$4 sm:$0xff]  }
 0xca6   :  { %4931 = vmatpush2.bf16.msra.mxu0 %v14824_v63  ;;  %17818 = vst [vmem:[#allocation54_spill] sm:$0xff] %v14829_v31  ;;  %v14846_v63 = vld [vmem:[%s15774_s4 + $0x2f0] ss:$12 sps:$4 sm:$0xff]   ;;  %17822 = vst [vmem:[#allocation58_spill] sm:$0xff] %v14854_v56 }
 0xca7   :  { %7110 = vmatpush3.bf16.msra.mxu1 %v14834_v40  ;;  %7139 = vmatprep.subr.bf16.mxu0 %v14840_v60  ;;  %17821 = vst [vmem:[#allocation93_spill] sm:$0xff] %v14846_v63  ;;  %v14861_v40 = vld [vmem:[%s15774_s4 + $0x230] ss:$12 sps:$4 sm:$0xff]  }
 0xca8   :  { %7117 = vmatprep.subr.bf16.mxu1 %v14846_v63  ;;  %17823 = vst [vmem:[#allocation96_spill] sm:$0xff] %v14861_v40  ;;  %v14874_v63 = vld [vmem:[%s15774_s4 + $0x2d8] ss:$12 sps:$4 sm:$0xff]  }
 0xca9   :  { %4933 = vmatmul.mubr.bf16.vlgmr.msra.gmra.mxu0 %v14829_v31  ;;  %17825 = vst [vmem:[#allocation61_spill] sm:$0xff] %v14874_v63 }
 0xcaa   :  { %4974 = vmatmul.mubr.bf16.vlgmr.msra.gmra.mxu1 %v17618_v29  ;;  %7140 = vmatpush3.bf16.msra.mxu0 %v14854_v56  ;;  %v14868_v29 = vld [vmem:[%s15774_s4 + $0x458] ss:$12 sps:$4 sm:$0xff]  }
 0xcab   :  { %5053 = vmatprep.mubr.bf16.mxu0 %v14449_v30  ;;  %7118 = vmatpush3.bf16.msra.mxu1 %v14861_v40  ;;  %17824 = vst [vmem:[#allocation60_spill] sm:$0xff] %v14868_v29  ;;  %v14880_v40 = vld [vmem:[%s15774_s4 + $0x398] ss:$12 sps:$4 sm:$0xff]  }
 0xcac   :  { %5013 = vmatprep.mubr.bf16.mxu1 %v14049_v48  ;;  %7141 = vmatprep.subr.bf16.mxu0 %v14868_v29  ;;  %17826 = vst [vmem:[#allocation63_spill] sm:$0xff] %v14880_v40  ;;  %v14886_v56 = vld [vmem:[%s15774_s4 + $0x218] ss:$12 sps:$4 sm:$0xff]   ;;  %v14892_v29 = vld [vmem:[%s15774_s4 + $0x440] ss:$12 sps:$4 sm:$0xff]  }
 0xcad   :  { %7119 = vmatprep.subr.bf16.mxu1 %v14874_v63  ;;  %17827 = vst [vmem:[#allocation100_spill] sm:$0xff] %v14886_v56  ;;  %17828 = vst [vmem:[#allocation64_spill] sm:$0xff] %v14892_v29  ;;  %v14898_v63 = vld [vmem:[%s15774_s4 + $0x2c0] ss:$12 sps:$4 sm:$0xff]  }
 0xcae   :  { %7142 = vmatpush3.bf16.msra.mxu0 %v14880_v40  ;;  %17829 = vst [vmem:[#allocation2_spill] sm:$0xff] %v14898_v63  ;;  %v14904_v40 = vld [vmem:[%s15774_s4 + $0x380] ss:$12 sps:$4 sm:$0xff]  }
 0xcaf   :  { %7120 = vmatpush3.bf16.msra.mxu1 %v14886_v56  ;;  %7143 = vmatprep.subr.bf16.mxu0 %v14892_v29  ;;  %17830 = vst [vmem:[#allocation65_spill] sm:$0xff] %v14904_v40  ;;  %v14910_v56 = vld [vmem:[%s15774_s4 + $0x200] ss:$12 sps:$4 sm:$0xff]   ;;  %v14916_v29 = vld [vmem:[%s15774_s4 + $0x428] ss:$12 sps:$4 sm:$0xff]  }
 0xcb0   :  { %7121 = vmatprep.subr.bf16.mxu1 %v14898_v63  ;;  %17831 = vst [vmem:[#allocation49_spill] sm:$0xff] %v14910_v56  ;;  %17832 = vst [vmem:[#allocation66_spill] sm:$0xff] %v14916_v29  ;;  %v14922_v63 = vld [vmem:[%s15774_s4 + $0x2a8] ss:$12 sps:$4 sm:$0xff]  }
 0xcb1   :  { %17833 = vst [vmem:[#allocation90_spill] sm:$0xff] %v14922_v63 }
 0xcb2   :  { %7144 = vmatpush3.bf16.msra.mxu0 %v14904_v40  ;;  %v14928_v40 = vld [vmem:[%s15774_s4 + $0x368] ss:$12 sps:$4 sm:$0xff]  }
 0xcb3   :  { %7122 = vmatpush3.bf16.msra.mxu1 %v14910_v56  ;;  %7145 = vmatprep.subr.bf16.mxu0 %v14916_v29  ;;  %17834 = vst [vmem:[#allocation67_spill] sm:$0xff] %v14928_v40  ;;  %v14934_v56 = vld [vmem:[%s15774_s4 + $0x1e8] ss:$12 sps:$4 sm:$0xff]   ;;  %v14940_v29 = vld [vmem:[%s15774_s4 + $0x410] ss:$12 sps:$4 sm:$0xff]  }
 0xcb4   :  { %7123 = vmatprep.subr.bf16.mxu1 %v14922_v63  ;;  %17835 = vst [vmem:[#allocation68_spill] sm:$0xff] %v14934_v56  ;;  %17836 = vst [vmem:[#allocation69_spill] sm:$0xff] %v14940_v29  ;;  %v14946_v63 = vld [vmem:[%s15774_s4 + $0x290] ss:$12 sps:$4 sm:$0xff]  }
 0xcb5   :  { %17837 = vst [vmem:[#allocation80_spill] sm:$0xff] %v14946_v63 }
 0xcb6   :  { %7146 = vmatpush3.bf16.msra.mxu0 %v14928_v40  ;;  %v14952_v40 = vld [vmem:[%s15774_s4 + $0x350] ss:$12 sps:$4 sm:$0xff]  }
 0xcb7   :  { %7124 = vmatpush3.bf16.msra.mxu1 %v14934_v56  ;;  %7147 = vmatprep.subr.bf16.mxu0 %v14940_v29  ;;  %17838 = vst [vmem:[#allocation70_spill] sm:$0xff] %v14952_v40  ;;  %v14958_v56 = vld [vmem:[%s15774_s4 + $0x1d0] ss:$12 sps:$4 sm:$0xff]   ;;  %v14964_v29 = vld [vmem:[%s15774_s4 + $0x3f8] ss:$12 sps:$4 sm:$0xff]  }
 0xcb8   :  { %7125 = vmatprep.subr.bf16.mxu1 %v14946_v63  ;;  %17839 = vst [vmem:[#allocation129_spill] sm:$0xff] %v14958_v56  ;;  %17840 = vst [vmem:[#allocation71_spill] sm:$0xff] %v14964_v29  ;;  %v14970_v63 = vld [vmem:[%s15774_s4 + $0x278] ss:$12 sps:$4 sm:$0xff]  }
 0xcb9   :  { %17841 = vst [vmem:[#allocation130_spill] sm:$0xff] %v14970_v63 }
 0xcba   :  { %7148 = vmatpush3.bf16.msra.mxu0 %v14952_v40  ;;  %v14976_v40 = vld [vmem:[%s15774_s4 + $0x338] ss:$12 sps:$4 sm:$0xff]  }
 0xcbb   :  { %7126 = vmatpush3.bf16.msra.mxu1 %v14958_v56  ;;  %7149 = vmatprep.subr.bf16.mxu0 %v14964_v29  ;;  %17842 = vst [vmem:[#allocation72_spill] sm:$0xff] %v14976_v40  ;;  %v14982_v56 = vld [vmem:[%s15774_s4 + $0x1b8] ss:$12 sps:$4 sm:$0xff]  }
 0xcbc   :  { %7127 = vmatprep.subr.bf16.mxu1 %v14970_v63  ;;  %17843 = vst [vmem:[#allocation25_spill] sm:$0xff] %v14982_v56  ;;  %v14989_v63 = vld [vmem:[%s15774_s4 + $0x260] ss:$12 sps:$4 sm:$0xff]  }
 0xcbd   :  { %17844 = vst [vmem:[#allocation14_spill] sm:$0xff] %v14989_v63 }
 0xcbe   :  { %7150 = vmatpush3.bf16.msra.mxu0 %v14976_v40  ;;  %v14996_v40 = vld [vmem:[%s15774_s4 + $0x1a0] ss:$12 sps:$4 sm:$0xff]  }
 0xcbf   :  { %7128 = vmatpush3.bf16.msra.mxu1 %v14982_v56  ;;  %7151 = vmatprep.subr.bf16.mxu0 %v17727_v14  ;;  %17845 = vst [vmem:[#allocation73_spill] sm:$0xff] %v14996_v40  ;;  %v15003_v14 = vld [vmem:[%s15774_s4 + $0x248] ss:$12 sps:$4 sm:$0xff]  }
 0xcc0   :  { %7129 = vmatprep.subr.bf16.mxu1 %v14989_v63  ;;  %17846 = vst [vmem:[#allocation74_spill] sm:$0xff] %v15003_v14 }
 0xcc2   :  { %7152 = vmatpush3.bf16.msra.mxu0 %v17728_v3  ;;  %v15010_v3 = vld [vmem:[%s15774_s4 + $0x188] ss:$12 sps:$4 sm:$0xff]  }
 0xcc3   :  { %7130 = vmatpush3.bf16.msra.mxu1 %v14996_v40  ;;  %7153 = vmatprep.subr.bf16.mxu0 %v17729_v36  ;;  %17847 = vst [vmem:[#allocation76_spill] sm:$0xff] %v15010_v3  ;;  %v15017_v36 = vld [vmem:[%s15775_s6 + $0x78] sm:$0xff]  }
 0xcc4   :  { %7131 = vmatprep.subr.bf16.mxu1 %v15003_v14  ;;  %17848 = vst [vmem:[#allocation77_spill] sm:$0xff] %v15017_v36 }
 0xcc6   :  { %7154 = vmatpush3.bf16.msra.mxu0 %v17730_v35  ;;  %v15026_v35 = vld [vmem:[%s15775_s6 + $0x38] sm:$0xff]  }
 0xcc7   :  { %7132 = vmatpush3.bf16.msra.mxu1 %v15010_v3  ;;  %7467 = vmatprep.subr.bf16.mxu0 %v17731_v43  ;;  %17849 = vst [vmem:[#allocation78_spill] sm:$0xff] %v15026_v35  ;;  %v15033_v3 = vld [vmem:[%s15775_s6 + $0x70] sm:$0xff]  }
 0xcc8   :  { %7161 = vmatprep.subr.bf16.mxu1 %v15017_v36  ;;  %17850 = vst [vmem:[#allocation79_spill] sm:$0xff] %v15033_v3 }
 0xcc9   :  { %5054 = vmatmul.mubr.bf16.vlgmr.msra.gmra.mxu0 %v14829_v31 }
 0xcca   :  { %5014 = vmatmul.mubr.bf16.vlgmr.msra.gmra.mxu1 %v14120_v1  ;;  %7468 = vmatpush3.bf16.msra.mxu0 %v17732_v47  ;;  %v15042_v47 = vld [vmem:[%s15775_s6 + $0x30] sm:$0xff]  }
 0xccb   :  { %7162 = vmatpush3.bf16.msra.mxu1 %v15026_v35  ;;  %7469 = vmatprep.subr.bf16.mxu0 %v17731_v43  ;;  %17851 = vst [vmem:[#allocation99_spill] sm:$0xff] %v15042_v47  ;;  %v15049_v35 = vld [vmem:[%s15775_s6 + $0x68] sm:$0xff]  }
 0xccc   :  { %7163 = vmatprep.subr.bf16.mxu1 %v15033_v3  ;;  %7475 = vmatprep.mubr.msk.bf16.mxu0 %vm8755_vm1, %v17731_v43  ;;  %17852 = vst [vmem:[#allocation85_spill] sm:$0xff] %v15049_v35 }
 0xcce   :  { %7470 = vmatpush3.bf16.msra.mxu0 %v17733_v58  ;;  %v15056_v58 = vld [vmem:[%s15775_s6 + $0x28] sm:$0xff]  }
 0xccf   :  { %7164 = vmatpush3.bf16.msra.mxu1 %v15042_v47  ;;  %7471 = vmatprep.subr.bf16.mxu0 %v17731_v43  ;;  %17853 = vst [vmem:[#allocation87_spill] sm:$0xff] %v15056_v58 }
 0xcd0   :  { %7165 = vmatprep.subr.bf16.mxu1 %v15049_v35 }
 0xcd2   :  { %7472 = vmatpush3.bf16.msra.mxu0 %v17734_v25 }
 0xcd3   :  { %7166 = vmatpush3.bf16.msra.mxu1 %v15056_v58  ;;  %7473 = vmatprep.subr.bf16.mxu0 %v17731_v43 }
 0xcd4   :  { %7167 = vmatprep.subr.bf16.mxu1 %v13854_v17  ;;  %v15075_v17 = vld [vmem:[%s15774_s4 + $0xac] ss:$12 sps:$4 sm:$0xff]  }
 0xcd5   :  { %17854 = vst [vmem:[#allocation92_spill] sm:$0xff] %v15075_v17 }
 0xcd6   :  { %7474 = vmatpush3.bf16.msra.mxu0 %v17735_v19 }
 0xcd7   :  { %7168 = vmatpush3.bf16.msra.mxu1 %v13859_v4  ;;  %5192 = vmatprep.subr.bf16.mxu0 %v14154_v33 }
 0xcd8   :  { %7169 = vmatprep.subr.bf16.mxu1 %v17697_v38 }
 0xcdb   :  { %7170 = vmatpush3.bf16.msra.mxu1 %v17699_v18 }
 0xcdc   :  { %7171 = vmatprep.subr.bf16.mxu1 %v17701_v54 }
 0xcdf   :  { %7172 = vmatpush3.bf16.msra.mxu1 %v17703_v2 }
 0xce0   :  { %7173 = vmatprep.subr.bf16.mxu1 %v17705_v34 }
 0xce3   :  { %7174 = vmatpush3.bf16.msra.mxu1 %v17707_v26 }
 0xce4   :  { %7175 = vmatprep.subr.bf16.mxu1 %v17709_v55 }
 0xce7   :  { %7176 = vmatpush3.bf16.msra.mxu1 %v17711_v0 }
 0xce8   :  { %5151 = vmatprep.subr.bf16.mxu1 %v15075_v17 }
 0xce9   :  { %v7084_v4 = vpop.f32.mrf.mxu0 }
 0xceb   :  { %v7085_v38 = vpop.f32.mrf.mxu0 }
 0xcec   :  { %v7086_v18 = vadd.f32 %v7085_v38, %v7084_v4 }
 0xced   :  { %v7087_v54 = vpop.f32.mrf.mxu0 }
 0xcef   :  { %v7088_v2 = vpop.f32.mrf.mxu0 }
 0xd0a   :  { %v4811_v25 = vpop.f32.mrf.mxu1 }
 0xd0b   :  { %v15078_v34 = vadd.f32 %v7086_v18, %v4811_v25 }
 0xd0c   :  { %v7465_v26 = vpop.f32.mrf.mxu1 }
 0xd0d   :  { %17855 = vst [vmem:[#allocation94_spill] sm:$0xff] %v15078_v34 }
 0xd0e   :  { %v4814_v19 = vpop.f32.mrf.mxu1 }
 0xd10   :  { %v7466_v55 = vpop.f32.mrf.mxu1 }
 0xd29   :  { %v4852_v33 = vpop.f32.mrf.mxu0 }
 0xd2a   :  { %v4853_v17 = vadd.f32 %v4852_v33, %v13950_v52 }
 0xd2b   :  { %v4854_v0 = vpop.f32.mrf.mxu0 }
 0xd2c   :  { %v4855_v4 = vadd.f32 %v4854_v0, %v13954_v16 }
 0xd2d   :  { %v4856_v58 = vpop.f32.mrf.mxu0 }
 0xd2f   :  { %v4857_v35 = vpop.f32.mrf.mxu0 }
 0xd4a   :  { %v4893_v47 = vpop.f32.mrf.mxu1 }
 0xd4b   :  { %v4894_v38 = vadd.f32 %v4893_v47, %v4853_v17 }
 0xd4c   :  { %v4895_v3 = vpop.f32.mrf.mxu1 }
 0xd4d   :  { %v4896_v2 = vadd.f32 %v4895_v3, %v4855_v4 }
 0xd4e   :  { %v4897_v36 = vpop.f32.mrf.mxu1 }
 0xd50   :  { %v4898_v43 = vpop.f32.mrf.mxu1 }
 0xd69   :  { %v4934_v54 = vpop.f32.mrf.mxu0 }
 0xd6a   :  { %v4935_v18 = vadd.f32 %v4934_v54, %v4894_v38  ;;  %v7111_v25 = vpop.f32.mrf.mxu1 }
 0xd6b   :  { %v4936_v26 = vpop.f32.mrf.mxu0 }
 0xd6c   :  { %v4937_v19 = vadd.f32 %v4936_v26, %v4896_v2  ;;  %v7112_v55 = vpop.f32.mrf.mxu1  ;;  %8193 = vtanh.f32 %v4935_v18 }
 0xd6d   :  { %v4938_v34 = vpop.f32.mrf.mxu0  ;;  %v7113_v3 = vadd.f32 %v7112_v55, %v7111_v25 }
 0xd6e   :  { %8195 = vtanh.f32 %v4937_v19  ;;  %v7114_v35 = vpop.f32.mrf.mxu1 }
 0xd6f   :  { %v4939_v58 = vpop.f32.mrf.mxu0  ;;  %v4976_v34 = vadd.f32 %v7113_v3, %v17738_v8  ;;  %v17856_v35 = vld [vmem:[#allocation83_spill] sm:$0xff]  ;;  %v17861_v3 = vld [vmem:[#allocation53_spill] sm:$0xff] }
 0xd70   :  { %v7115_v14 = vpop.f32.mrf.mxu1  ;;  %v17857_v58 = vld [vmem:[#allocation59_spill] sm:$0xff] }
 0xd79   :  { %v8194_v36 = vpop.eup %8193 }
 0xd7a   :  { %v5064_v33 = vpack.c.bf16 %v8194_v36, %v8194_v36  ;;  %v17858_v36 = vld [vmem:[#allocation12_spill] sm:$0xff] }
 0xd7b   :  { %v8196_v43 = vpop.eup %8195 }
 0xd7c   :  { %v5065_v40 = vpack.c.bf16 %v8196_v43, %v8196_v43  ;;  %v17859_v43 = vld [vmem:[#allocation116_spill] sm:$0xff] }
 0xd7e   :  { %5102 = vmatprep.mubr.bf16.mxu1 %v5065_v40 }
 0xd7f   :  { %5103 = vmatmul.mubr.bf16.vlgmr.msra.gmra.mxu1 %v5064_v33  ;;  %v17860_v33 = vld [vmem:[#allocation107_spill] sm:$0xff] }
 0xd80   :  { %5152 = vmatpush1.bf16.msra.mxu1 %v14165_v39  ;;  %5183 = vmatprep.mubr.bf16.mxu1 %v14049_v48 }
 0xd81   :  { %5153 = vmatprep.subr.bf16.mxu1 %v14172_v7 }
 0xd84   :  { %5154 = vmatpush1.bf16.msra.mxu1 %v14178_v23 }
 0xd85   :  { %5155 = vmatprep.subr.bf16.mxu1 %v14184_v10 }
 0xd88   :  { %5156 = vmatpush1.bf16.msra.mxu1 %v14190_v28 }
 0xd89   :  { %v7155_v14 = vpop.f32.mrf.mxu0  ;;  %5157 = vmatprep.subr.bf16.mxu1 %v14196_v49 }
 0xd8a   :  { %v7133_v47 = vpop.f32.mrf.mxu1 }
 0xd8b   :  { %v7156_v17 = vpop.f32.mrf.mxu0 }
 0xd8c   :  { %5158 = vmatpush1.bf16.msra.mxu1 %v14202_v61  ;;  %v7134_v40 = vpop.f32.mrf.mxu1  ;;  %v7157_v54 = vadd.f32 %v7156_v17, %v7155_v14  ;;  %v17862_v14 = vld [vmem:[#allocation117_spill] sm:$0xff] }
 0xd8d   :  { %v7135_v0 = vadd.f32 %v7134_v40, %v7133_v47  ;;  %v7158_v4 = vpop.f32.mrf.mxu0  ;;  %5159 = vmatprep.subr.bf16.mxu1 %v14208_v44  ;;  %v17863_v47 = vld [vmem:[#allocation4_spill] sm:$0xff]  ;;  %v17864_v17 = vld [vmem:[#allocation105_spill] sm:$0xff]  ;;  %v17865_v40 = vld [vmem:[#allocation75_spill] sm:$0xff] }
 0xd8e   :  { %v7136_v38 = vpop.f32.mrf.mxu1  ;;  %v17868_v4 = vld [vmem:[#allocation108_spill] sm:$0xff] }
 0xd8f   :  { %v5016_v2 = vadd.f32 %v7135_v0, %v4976_v34  ;;  %v7159_v18 = vpop.f32.mrf.mxu0  ;;  %v17866_v34 = vld [vmem:[#allocation123_spill] sm:$0xff]  ;;  %v17867_v0 = vld [vmem:[#allocation13_spill] sm:$0xff]  ;;  %v17869_v38 = vld [vmem:[#allocation124_spill] sm:$0xff] }
 0xd90   :  { %5160 = vmatpush1.bf16.msra.mxu1 %v14214_v20  ;;  %v7137_v25 = vpop.f32.mrf.mxu1  ;;  %v17871_v18 = vld [vmem:[#allocation62_spill] sm:$0xff] }
 0xd91   :  { %v5056_v26 = vadd.f32 %v7157_v54, %v5016_v2  ;;  %5161 = vmatprep.subr.bf16.mxu1 %v14220_v5  ;;  %v17870_v54 = vld [vmem:[#allocation3_spill] sm:$0xff]  ;;  %v17872_v25 = vld [vmem:[#allocation125_spill] sm:$0xff] }
 0xd92   :  { %v15134_v2 = vpack.c.bf16 %v17870_v54, %v17870_v54  ;;  %v17878_v54 = vld [vmem:[#allocation128_spill] sm:$0xff] }
 0xd93   :  { %8197 = vtanh.f32 %v5056_v26  ;;  %v17873_v26 = vld [vmem:[#allocation8_spill] sm:$0xff] }
 0xd94   :  { %5162 = vmatpush1.bf16.msra.mxu1 %v14226_v12 }
 0xd95   :  { %5163 = vmatprep.subr.bf16.mxu1 %v14232_v22 }
 0xd98   :  { %5164 = vmatpush1.bf16.msra.mxu1 %v14238_v42 }
 0xd99   :  { %5165 = vmatprep.subr.bf16.mxu1 %v14244_v62 }
 0xd9c   :  { %5166 = vmatpush1.bf16.msra.mxu1 %v14250_v46 }
 0xd9d   :  { %5167 = vmatprep.subr.bf16.mxu1 %v14256_v32 }
 0xda0   :  { %v8198_v19 = vpop.eup %8197  ;;  %5168 = vmatpush2.bf16.msra.mxu1 %v14262_v59 }
 0xda1   :  { %v5066_v55 = vpack.c.bf16 %v8198_v19, %v8198_v19  ;;  %5169 = vmatprep.subr.bf16.mxu1 %v14276_v6  ;;  %v17874_v19 = vld [vmem:[#allocation126_spill] sm:$0xff] }
 0xda3   :  { %7476 = vmatmul.mubr.msk.bf16.vlgmr.msra.gmra.mxu0 %vm4400_vm2, %v5066_v55  ;;  %v17875_v55 = vld [vmem:[#allocation115_spill] sm:$0xff] }
 0xda4   :  { %5170 = vmatpush2.bf16.msra.mxu1 %v14288_v41  ;;  %5193 = vmatpush1.bf16.msra.mxu0 %v14269_v50 }
 0xda5   :  { %5224 = vmatprep.mubr.bf16.mxu0 %v14449_v30  ;;  %5171 = vmatprep.subr.bf16.mxu1 %v14300_v27 }
 0xda6   :  { %5194 = vmatprep.subr.bf16.mxu0 %v14282_v51 }
 0xda8   :  { %5172 = vmatpush2.bf16.msra.mxu1 %v14312_v13  ;;  %5195 = vmatpush1.bf16.msra.mxu0 %v14294_v9 }
 0xda9   :  { %5173 = vmatprep.subr.bf16.mxu1 %v14324_v53  ;;  %5196 = vmatprep.subr.bf16.mxu0 %v14306_v21 }
 0xdac   :  { %5174 = vmatpush2.bf16.msra.mxu1 %v14336_v11  ;;  %5197 = vmatpush1.bf16.msra.mxu0 %v14318_v24 }
 0xdad   :  { %5175 = vmatprep.subr.bf16.mxu1 %v14348_v15  ;;  %5198 = vmatprep.subr.bf16.mxu0 %v14330_v45 }
 0xdb0   :  { %5176 = vmatpush2.bf16.msra.mxu1 %v14360_v37  ;;  %5199 = vmatpush1.bf16.msra.mxu0 %v14342_v57 }
 0xdb1   :  { %5177 = vmatprep.subr.bf16.mxu1 %v17856_v35  ;;  %5200 = vmatprep.subr.bf16.mxu0 %v17857_v58 }
 0xdb4   :  { %5178 = vmatpush2.bf16.msra.mxu1 %v17858_v36  ;;  %5201 = vmatpush1.bf16.msra.mxu0 %v17859_v43 }
 0xdb5   :  { %5179 = vmatprep.subr.bf16.mxu1 %v17860_v33  ;;  %5202 = vmatprep.subr.bf16.mxu0 %v17861_v3 }
 0xdb8   :  { %5180 = vmatpush2.bf16.msra.mxu1 %v17862_v14  ;;  %5203 = vmatpush1.bf16.msra.mxu0 %v17863_v47 }
 0xdb9   :  { %5181 = vmatprep.subr.bf16.mxu1 %v17864_v17  ;;  %5204 = vmatprep.subr.bf16.mxu0 %v17865_v40  ;;  %v17880_v40 = vld [vmem:[#allocation95_spill] sm:$0xff] }
 0xdbc   :  { %5182 = vmatpush2.bf16.msra.mxu1 %v17866_v34  ;;  %5205 = vmatpush1.bf16.msra.mxu0 %v17867_v0  ;;  %v17877_v0 = vld [vmem:[#allocation118_spill] sm:$0xff]  ;;  %v17883_v34 = vld [vmem:[#allocation121_spill] sm:$0xff] }
 0xdbd   :  { %5206 = vmatprep.subr.bf16.mxu0 %v17868_v4  ;;  %5233 = vmatprep.subr.bf16.mxu1 %v17869_v38  ;;  %v17876_v4 = vld [vmem:[#allocation127_spill] sm:$0xff] }
 0xdbe   :  { %v17879_v38 = vld [vmem:[#allocation119_spill] sm:$0xff] }
 0xdbf   :  { %5184 = vmatmul.mubr.bf16.vlgmr.msra.gmra.mxu1 %v14120_v1 }
 0xdc0   :  { %5207 = vmatpush1.bf16.msra.mxu0 %v17871_v18  ;;  %5234 = vmatpush1.bf16.msra.mxu1 %v17872_v25  ;;  %v17881_v18 = vld [vmem:[#allocation120_spill] sm:$0xff]  ;;  %v17882_v25 = vld [vmem:[#allocation97_spill] sm:$0xff] }
 0xdc1   :  { %5265 = vmatprep.mubr.bf16.mxu1 %v15134_v2  ;;  %5208 = vmatprep.subr.bf16.mxu0 %v17873_v26  ;;  %v17884_v26 = vld [vmem:[#allocation98_spill] sm:$0xff] }
 0xdc2   :  { %5235 = vmatprep.subr.bf16.mxu1 %v17874_v19  ;;  %v17885_v19 = vld [vmem:[#allocation122_spill] sm:$0xff] }
 0xdc4   :  { %5209 = vmatpush2.bf16.msra.mxu0 %v17875_v55  ;;  %5236 = vmatpush1.bf16.msra.mxu1 %v17876_v4  ;;  %v17886_v55 = vld [vmem:[#allocation7_spill] sm:$0xff] }
 0xdc5   :  { %5210 = vmatprep.subr.bf16.mxu0 %v17877_v0  ;;  %5237 = vmatprep.subr.bf16.mxu1 %v17878_v54  ;;  %v17887_v4 = vld [vmem:[#allocation27_spill] sm:$0xff]  ;;  %v17888_v0 = vld [vmem:[#allocation9_spill] sm:$0xff]  ;;  %v17889_v54 = vld [vmem:[#allocation28_spill] sm:$0xff] }
 0xdc8   :  { %5211 = vmatpush2.bf16.msra.mxu0 %v17879_v38  ;;  %5238 = vmatpush1.bf16.msra.mxu1 %v17880_v40  ;;  %v17890_v38 = vld [vmem:[#allocation102_spill] sm:$0xff]  ;;  %v17891_v40 = vld [vmem:[#allocation29_spill] sm:$0xff] }
 0xdc9   :  { %5212 = vmatprep.subr.bf16.mxu0 %v17881_v18  ;;  %5239 = vmatprep.subr.bf16.mxu1 %v17882_v25  ;;  %v17892_v18 = vld [vmem:[#allocation10_spill] sm:$0xff] }
 0xdca   :  { %v17893_v25 = vld [vmem:[#allocation30_spill] sm:$0xff] }
 0xdcc   :  { %5213 = vmatpush2.bf16.msra.mxu0 %v17883_v34  ;;  %5240 = vmatpush1.bf16.msra.mxu1 %v17884_v26  ;;  %v17894_v34 = vld [vmem:[#allocation103_spill] sm:$0xff] }
 0xdcd   :  { %5214 = vmatprep.subr.bf16.mxu0 %v17885_v19  ;;  %5241 = vmatprep.subr.bf16.mxu1 %v17886_v55  ;;  %v17895_v26 = vld [vmem:[#allocation31_spill] sm:$0xff]  ;;  %v17896_v19 = vld [vmem:[#allocation104_spill] sm:$0xff] }
 0xdce   :  { %v17897_v55 = vld [vmem:[#allocation32_spill] sm:$0xff] }
 0xdd0   :  { %5215 = vmatpush2.bf16.msra.mxu0 %v17887_v4  ;;  %5242 = vmatpush1.bf16.msra.mxu1 %v17888_v0  ;;  %v17898_v4 = vld [vmem:[#allocation11_spill] sm:$0xff]  ;;  %v17899_v0 = vld [vmem:[#allocation109_spill] sm:$0xff] }
 0xdd1   :  { %5216 = vmatprep.subr.bf16.mxu0 %v17889_v54  ;;  %5243 = vmatprep.subr.bf16.mxu1 %v17890_v38  ;;  %v17900_v54 = vld [vmem:[#allocation106_spill] sm:$0xff]  ;;  %v17901_v38 = vld [vmem:[#allocation33_spill] sm:$0xff] }
 0xdd4   :  { %5217 = vmatpush2.bf16.msra.mxu0 %v17891_v40  ;;  %5244 = vmatpush1.bf16.msra.mxu1 %v17892_v18  ;;  %v17902_v40 = vld [vmem:[#allocation15_spill] sm:$0xff]  ;;  %v17903_v18 = vld [vmem:[#allocation34_spill] sm:$0xff] }
 0xdd5   :  { %5218 = vmatprep.subr.bf16.mxu0 %v17893_v25  ;;  %5245 = vmatprep.subr.bf16.mxu1 %v17894_v34  ;;  %v17904_v25 = vld [vmem:[#allocation16_spill] sm:$0xff]  ;;  %v17905_v34 = vld [vmem:[#allocation110_spill] sm:$0xff] }
 0xdd8   :  { %5219 = vmatpush2.bf16.msra.mxu0 %v17895_v26  ;;  %5246 = vmatpush1.bf16.msra.mxu1 %v17896_v19  ;;  %v17906_v26 = vld [vmem:[#allocation35_spill] sm:$0xff] }
 0xdd9   :  { %5220 = vmatprep.subr.bf16.mxu0 %v17897_v55  ;;  %5247 = vmatprep.subr.bf16.mxu1 %v17898_v4  ;;  %v17907_v55 = vld [vmem:[#allocation17_spill] sm:$0xff]  ;;  %v17908_v4 = vld [vmem:[#allocation36_spill] sm:$0xff] }
 0xddc   :  { %5221 = vmatpush2.bf16.msra.mxu0 %v17899_v0  ;;  %5248 = vmatpush1.bf16.msra.mxu1 %v17900_v54  ;;  %v17909_v0 = vld [vmem:[#allocation18_spill] sm:$0xff]  ;;  %v17916_v54 = vld [vmem:[#allocation40_spill] sm:$0xff] }
 0xddd   :  { %5222 = vmatprep.subr.bf16.mxu0 %v17901_v38  ;;  %5249 = vmatprep.subr.bf16.mxu1 %v17902_v40  ;;  %v17910_v38 = vld [vmem:[#allocation37_spill] sm:$0xff] }
 0xdde   :  { %v17911_v40 = vld [vmem:[#allocation81_spill] sm:$0xff] }
 0xde0   :  { %5223 = vmatpush2.bf16.msra.mxu0 %v17903_v18  ;;  %5250 = vmatpush2.bf16.msra.mxu1 %v17904_v25  ;;  %v17912_v18 = vld [vmem:[#allocation38_spill] sm:$0xff]  ;;  %v17913_v25 = vld [vmem:[#allocation19_spill] sm:$0xff] }
 0xde1   :  { %5251 = vmatprep.subr.bf16.mxu1 %v17905_v34  ;;  %7188 = vmatprep.subr.bf16.mxu0 %v17906_v26  ;;  %v17914_v34 = vld [vmem:[#allocation39_spill] sm:$0xff]  ;;  %v17915_v26 = vld [vmem:[#allocation20_spill] sm:$0xff] }
 0xde3   :  { %5225 = vmatmul.mubr.bf16.vlgmr.msra.gmra.mxu0 %v14829_v31 }
 0xde4   :  { %5252 = vmatpush2.bf16.msra.mxu1 %v17907_v55  ;;  %7189 = vmatpush3.bf16.msra.mxu0 %v17908_v4  ;;  %v17917_v55 = vld [vmem:[#allocation21_spill] sm:$0xff] }
 0xde5   :  { %5306 = vmatprep.mubr.bf16.mxu0 %v14049_v48  ;;  %5253 = vmatprep.subr.bf16.mxu1 %v17909_v0  ;;  %v17918_v4 = vld [vmem:[#allocation41_spill] sm:$0xff]  ;;  %v17919_v48 = vld [vmem:[#allocation22_spill] sm:$0xff] }
 0xde6   :  { %7190 = vmatprep.subr.bf16.mxu0 %v17910_v38  ;;  %v17920_v0 = vld [vmem:[#allocation42_spill] sm:$0xff]  ;;  %v17921_v38 = vld [vmem:[#allocation23_spill] sm:$0xff] }
 0xde8   :  { %5254 = vmatpush2.bf16.msra.mxu1 %v17911_v40  ;;  %7191 = vmatpush3.bf16.msra.mxu0 %v17912_v18  ;;  %v17922_v40 = vld [vmem:[#allocation43_spill] sm:$0xff]  ;;  %v17923_v18 = vld [vmem:[#allocation24_spill] sm:$0xff] }
 0xde9   :  { %5255 = vmatprep.subr.bf16.mxu1 %v17913_v25  ;;  %7192 = vmatprep.subr.bf16.mxu0 %v17914_v34  ;;  %v17924_v25 = vld [vmem:[#allocation44_spill] sm:$0xff]  ;;  %v17925_v34 = vld [vmem:[#allocation26_spill] sm:$0xff] }
 0xdec   :  { %5256 = vmatpush2.bf16.msra.mxu1 %v17915_v26  ;;  %7193 = vmatpush3.bf16.msra.mxu0 %v17916_v54  ;;  %v17926_v26 = vld [vmem:[#allocation46_spill] sm:$0xff] }
 0xded   :  { %5257 = vmatprep.subr.bf16.mxu1 %v17917_v55  ;;  %7194 = vmatprep.subr.bf16.mxu0 %v17918_v4  ;;  %v17927_v54 = vld [vmem:[#allocation86_spill] sm:$0xff]  ;;  %v17928_v55 = vld [vmem:[#allocation48_spill] sm:$0xff] }
 0xdee   :  { %v17929_v4 = vld [vmem:[#allocation88_spill] sm:$0xff] }
 0xdf0   :  { %5258 = vmatpush2.bf16.msra.mxu1 %v17919_v48  ;;  %7195 = vmatpush3.bf16.msra.mxu0 %v17920_v0  ;;  %v17930_v48 = vld [vmem:[#allocation84_spill] sm:$0xff]  ;;  %v17931_v0 = vld [vmem:[#allocation89_spill] sm:$0xff] }
 0xdf1   :  { %5259 = vmatprep.subr.bf16.mxu1 %v17921_v38  ;;  %7196 = vmatprep.subr.bf16.mxu0 %v17922_v40  ;;  %v17932_v38 = vld [vmem:[#allocation50_spill] sm:$0xff]  ;;  %v17933_v40 = vld [vmem:[#allocation47_spill] sm:$0xff] }
 0xdf4   :  { %5260 = vmatpush2.bf16.msra.mxu1 %v17923_v18  ;;  %7197 = vmatpush3.bf16.msra.mxu0 %v17924_v25  ;;  %v15204_v18 = vpack.c.bf16 %v17933_v40, %v17933_v40  ;;  %v17935_v25 = vld [vmem:[#allocation52_spill] sm:$0xff] }
 0xdf5   :  { %5261 = vmatprep.subr.bf16.mxu1 %v17925_v34  ;;  %7198 = vmatprep.subr.bf16.mxu0 %v17926_v26  ;;  %v17936_v26 = vld [vmem:[#allocation82_spill] sm:$0xff]  ;;  %v17940_v40 = vld [vmem:[#allocation96_spill] sm:$0xff] }
 0xdf6   :  { %17934 = vst [vmem:[#allocation91_spill] sm:$0xff] %v15204_v18 }
 0xdf8   :  { %5262 = vmatpush2.bf16.msra.mxu1 %v17927_v54  ;;  %7199 = vmatpush3.bf16.msra.mxu0 %v17928_v55  ;;  %v17937_v55 = vld [vmem:[#allocation58_spill] sm:$0xff]  ;;  %v17951_v54 = vld [vmem:[#allocation69_spill] sm:$0xff] }
 0xdf9   :  { %5263 = vmatprep.subr.bf16.mxu1 %v17929_v4  ;;  %7200 = vmatprep.subr.bf16.mxu0 %v17930_v48  ;;  %v17938_v48 = vld [vmem:[#allocation93_spill] sm:$0xff]  ;;  %v17946_v4 = vld [vmem:[#allocation2_spill] sm:$0xff] }
 0xdfc   :  { %5264 = vmatpush2.bf16.msra.mxu1 %v17931_v0  ;;  %7201 = vmatpush3.bf16.msra.mxu0 %v17932_v38  ;;  %v17939_v0 = vld [vmem:[#allocation60_spill] sm:$0xff]  ;;  %v17942_v38 = vld [vmem:[#allocation61_spill] sm:$0xff] }
 0xdfd   :  { %7202 = vmatprep.subr.bf16.mxu0 %v17935_v25  ;;  %7232 = vmatprep.subr.bf16.mxu1 %v14840_v60  ;;  %v17941_v25 = vld [vmem:[#allocation63_spill] sm:$0xff]  ;;  %v17943_v60 = vld [vmem:[#allocation64_spill] sm:$0xff] }
 0xdff   :  { %5266 = vmatmul.mubr.bf16.vlgmr.msra.gmra.mxu1 %v15204_v18 }
 0xe00   :  { %7203 = vmatpush3.bf16.msra.mxu0 %v17936_v26  ;;  %7233 = vmatpush3.bf16.msra.mxu1 %v17937_v55  ;;  %v17944_v26 = vld [vmem:[#allocation100_spill] sm:$0xff]  ;;  %v17945_v55 = vld [vmem:[#allocation65_spill] sm:$0xff] }
 0xe01   :  { %5386 = vmatprep.mubr.bf16.mxu1 %v15134_v2  ;;  %7210 = vmatprep.subr.bf16.mxu0 %v17938_v48  ;;  %v17947_v48 = vld [vmem:[#allocation66_spill] sm:$0xff] }
 0xe02   :  { %7234 = vmatprep.subr.bf16.mxu1 %v17939_v0  ;;  %v17948_v0 = vld [vmem:[#allocation49_spill] sm:$0xff] }
 0xe03   :  { %5307 = vmatmul.mubr.bf16.vlgmr.msra.gmra.mxu0 %v14120_v1  ;;  %v17949_v1 = vld [vmem:[#allocation67_spill] sm:$0xff] }
 0xe04   :  { %7211 = vmatpush3.bf16.msra.mxu0 %v17940_v40  ;;  %5346 = vmatprep.mubr.bf16.mxu0 %v14449_v30  ;;  %v17950_v40 = vld [vmem:[#allocation90_spill] sm:$0xff] }
 0xe05   :  { %7235 = vmatpush3.bf16.msra.mxu1 %v17941_v25  ;;  %7212 = vmatprep.subr.bf16.mxu0 %v17942_v38  ;;  %v17952_v25 = vld [vmem:[#allocation68_spill] sm:$0xff]  ;;  %v17953_v38 = vld [vmem:[#allocation70_spill] sm:$0xff] }
 0xe06   :  { %7236 = vmatprep.subr.bf16.mxu1 %v17943_v60  ;;  %v17954_v60 = vld [vmem:[#allocation80_spill] sm:$0xff] }
 0xe08   :  { %7213 = vmatpush3.bf16.msra.mxu0 %v17944_v26  ;;  %v17955_v26 = vld [vmem:[#allocation129_spill] sm:$0xff] }
 0xe09   :  { %7237 = vmatpush3.bf16.msra.mxu1 %v17945_v55  ;;  %7214 = vmatprep.subr.bf16.mxu0 %v17946_v4  ;;  %v17956_v4 = vld [vmem:[#allocation72_spill] sm:$0xff] }
 0xe0a   :  { %7238 = vmatprep.subr.bf16.mxu1 %v17947_v48  ;;  %v17957_v48 = vld [vmem:[#allocation130_spill] sm:$0xff] }
 0xe0c   :  { %7215 = vmatpush3.bf16.msra.mxu0 %v17948_v0 }
 0xe0d   :  { %7239 = vmatpush3.bf16.msra.mxu1 %v17949_v1  ;;  %7216 = vmatprep.subr.bf16.mxu0 %v17950_v40  ;;  %v15238_v40 = vld [vmem:[%s15774_s4 + $0x3e0] ss:$12 sps:$4 sm:$0xff]  }
 0xe0e   :  { %7240 = vmatprep.subr.bf16.mxu1 %v17951_v54  ;;  %17958 = vst [vmem:[#allocation5_spill] sm:$0xff] %v15238_v40 }
 0xe10   :  { %7217 = vmatpush3.bf16.msra.mxu0 %v17952_v25 }
 0xe11   :  { %7241 = vmatpush3.bf16.msra.mxu1 %v17953_v38  ;;  %7218 = vmatprep.subr.bf16.mxu0 %v17954_v60  ;;  %v15245_v60 = vld [vmem:[%s15774_s4 + $0x320] ss:$12 sps:$4 sm:$0xff]  }
 0xe12   :  { %7242 = vmatprep.subr.bf16.mxu1 %v14964_v29  ;;  %17959 = vst [vmem:[#allocation55_spill] sm:$0xff] %v15245_v60 }
 0xe14   :  { %7219 = vmatpush3.bf16.msra.mxu0 %v17955_v26  ;;  %v17961_v26 = vld [vmem:[#allocation73_spill] sm:$0xff] }
 0xe15   :  { %7243 = vmatpush3.bf16.msra.mxu1 %v17956_v4  ;;  %7220 = vmatprep.subr.bf16.mxu0 %v17957_v48  ;;  %v15252_v48 = vld [vmem:[%s15774_s4 + $0x3c8] ss:$12 sps:$4 sm:$0xff]   ;;  %v17966_v4 = vld [vmem:[#allocation77_spill] sm:$0xff] }
 0xe16   :  { %7244 = vmatprep.subr.bf16.mxu1 %v15238_v40  ;;  %17960 = vst [vmem:[#allocation111_spill] sm:$0xff] %v15252_v48  ;;  %v17963_v40 = vld [vmem:[#allocation74_spill] sm:$0xff] }
 0xe18   :  { %7221 = vmatpush3.bf16.msra.mxu0 %v14982_v56  ;;  %v15259_v56 = vld [vmem:[%s15774_s4 + $0x308] ss:$12 sps:$4 sm:$0xff]  }
 0xe19   :  { %7245 = vmatpush3.bf16.msra.mxu1 %v15245_v60  ;;  %7222 = vmatprep.subr.bf16.mxu0 %v14989_v63  ;;  %17962 = vst [vmem:[#allocation112_spill] sm:$0xff] %v15259_v56  ;;  %v17964_v60 = vmov 0.0   ;;  %v17965_v63 = vld [vmem:[#allocation76_spill] sm:$0xff] }
 0xe1a   :  { %7246 = vmatprep.subr.bf16.mxu1 %v15252_v48  ;;  %v15291_v48 = vld [vmem:[%s15775_s6 + $0x88] sm:$0xff]  }
 0xe1b   :  { %17973 = vst [vmem:[#allocation133_spill] sm:$0xff] %v15291_v48 }
 0xe1c   :  { %7223 = vmatpush3.bf16.msra.mxu0 %v17961_v26  ;;  %v15270_v26 = vld [vmem:[%s15775_s6 + $0x98] sm:$0xff]  }
 0xe1d   :  { %7247 = vmatpush3.bf16.msra.mxu1 %v15259_v56  ;;  %7224 = vmatprep.subr.bf16.mxu0 %v17963_v40  ;;  %17967 = vst [vmem:[#allocation131_spill] sm:$0xff] %v15270_v26  ;;  %v17968_v40 = vld [vmem:[#allocation78_spill] sm:$0xff]  ;;  %v17969_v56 = vld [vmem:[#allocation79_spill] sm:$0xff] }
 0xe1e   :  { %7479 = vmatprep.subr.bf16.mxu1 %v17964_v60 }
 0xe20   :  { %5387 = vmatmul.mubr.bf16.vlgmr.msra.gmra.mxu1 %v15204_v18  ;;  %7225 = vmatpush3.bf16.msra.mxu0 %v17965_v63  ;;  %v17971_v63 = vld [vmem:[#allocation99_spill] sm:$0xff] }
 0xe21   :  { %7254 = vmatprep.subr.bf16.mxu0 %v17966_v4  ;;  %7480 = vmatpush3.bf16.msra.mxu1 %v15270_v26  ;;  %v15282_v4 = vld [vmem:[%s15775_s6 + $0x90] sm:$0xff]   ;;  %v17972_v26 = vld [vmem:[#allocation85_spill] sm:$0xff] }
 0xe22   :  { %7481 = vmatprep.subr.bf16.mxu1 %v17964_v60  ;;  %7487 = vmatprep.mubr.msk.bf16.mxu1 %vm8755_vm1, %v17964_v60  ;;  %17970 = vst [vmem:[#allocation132_spill] sm:$0xff] %v15282_v4 }
 0xe23   :  { %5347 = vmatmul.mubr.bf16.vlgmr.msra.gmra.mxu0 %v14829_v31 }
 0xe24   :  { %7255 = vmatpush3.bf16.msra.mxu0 %v17968_v40  ;;  %v15299_v40 = vld [vmem:[%s15775_s6 + $0x60] sm:$0xff]  }
 0xe25   :  { %7256 = vmatprep.subr.bf16.mxu0 %v17969_v56  ;;  %7482 = vmatpush3.bf16.msra.mxu1 %v15282_v4  ;;  %v17974_v56 = vld [vmem:[#allocation87_spill] sm:$0xff]  ;;  %17975 = vst [vmem:[#allocation134_spill] sm:$0xff] %v15299_v40  ;;  %v17987_v4 = vld [vmem:[#allocation92_spill] sm:$0xff] }
 0xe26   :  { %7483 = vmatprep.subr.bf16.mxu1 %v17964_v60 }
 0xe28   :  { %7257 = vmatpush3.bf16.msra.mxu0 %v17971_v63  ;;  %v17977_v63 = vld [vmem:[#allocation6_spill] sm:$0xff] }
 0xe29   :  { %7258 = vmatprep.subr.bf16.mxu0 %v17972_v26  ;;  %7484 = vmatpush3.bf16.msra.mxu1 %v15291_v48  ;;  %v15305_v26 = vld [vmem:[%s15775_s6 + $0x80] sm:$0xff]  }
 0xe2a   :  { %7485 = vmatprep.subr.bf16.mxu1 %v17964_v60  ;;  %17976 = vst [vmem:[#allocation57_spill] sm:$0xff] %v15305_v26  ;;  %v15360_v48 = vld [vmem:[%s15775_s6] sm:$0xff]  }
 0xe2b   :  { %17986 = vst [vmem:[#allocation3_spill] sm:$0xff] %v15360_v48 }
 0xe2c   :  { %7259 = vmatpush3.bf16.msra.mxu0 %v17974_v56  ;;  %v15312_v56 = vld [vmem:[%s15775_s6 + $0x20] sm:$0xff]  }
 0xe2d   :  { %7260 = vmatprep.subr.bf16.mxu0 %v15299_v40  ;;  %7486 = vmatpush3.bf16.msra.mxu1 %v15305_v26  ;;  %17978 = vst [vmem:[#allocation114_spill] sm:$0xff] %v15312_v56  ;;  %v15318_v40 = vld [vmem:[%s15775_s6 + $0x58] sm:$0xff]  }
 0xe2e   :  { %5525 = vmatprep.subr.bf16.mxu1 %v17977_v63  ;;  %17979 = vst [vmem:[#allocation45_spill] sm:$0xff] %v15318_v40  ;;  %v15324_v26 = vld [vmem:[%s15775_s6 + $0x18] sm:$0xff]   ;;  %v15330_v63 = vld [vmem:[%s15775_s6 + $0x50] sm:$0xff]  }
 0xe2f   :  { %17980 = vst [vmem:[#allocation83_spill] sm:$0xff] %v15324_v26  ;;  %17981 = vst [vmem:[#allocation59_spill] sm:$0xff] %v15330_v63 }
 0xe30   :  { %7261 = vmatpush3.bf16.msra.mxu0 %v15312_v56  ;;  %v15336_v56 = vld [vmem:[%s15775_s6 + $0x10] sm:$0xff]  }
 0xe31   :  { %7262 = vmatprep.subr.bf16.mxu0 %v15318_v40  ;;  %17982 = vst [vmem:[#allocation12_spill] sm:$0xff] %v15336_v56  ;;  %v15342_v40 = vld [vmem:[%s15775_s6 + $0x48] sm:$0xff]  }
 0xe32   :  { %17983 = vst [vmem:[#allocation116_spill] sm:$0xff] %v15342_v40 }
 0xe34   :  { %7263 = vmatpush3.bf16.msra.mxu0 %v15324_v26  ;;  %v15348_v26 = vld [vmem:[%s15775_s6 + $0x8] sm:$0xff]  }
 0xe35   :  { %7264 = vmatprep.subr.bf16.mxu0 %v15330_v63  ;;  %17984 = vst [vmem:[#allocation107_spill] sm:$0xff] %v15348_v26  ;;  %v15354_v63 = vld [vmem:[%s15775_s6 + $0x40] sm:$0xff]  }
 0xe36   :  { %17985 = vst [vmem:[#allocation117_spill] sm:$0xff] %v15354_v63 }
 0xe38   :  { %7265 = vmatpush3.bf16.msra.mxu0 %v15336_v56 }
 0xe39   :  { %7266 = vmatprep.subr.bf16.mxu0 %v15342_v40 }
 0xe3c   :  { %7267 = vmatpush3.bf16.msra.mxu0 %v15348_v26 }
 0xe3d   :  { %7268 = vmatprep.subr.bf16.mxu0 %v15354_v63 }
 0xe3f   :  { %v7177_v56 = vpop.f32.mrf.mxu1 }
 0xe40   :  { %7269 = vmatpush3.bf16.msra.mxu0 %v15360_v48 }
 0xe41   :  { %v7178_v40 = vpop.f32.mrf.mxu1  ;;  %5484 = vmatprep.subr.bf16.mxu0 %v17987_v4 }
 0xe42   :  { %v7179_v60 = vadd.f32 %v7178_v40, %v7177_v56 }
 0xe43   :  { %v7180_v26 = vpop.f32.mrf.mxu1 }
 0xe45   :  { %v7181_v25 = vpop.f32.mrf.mxu1 }
 0xe63   :  { %v5144_v29 = vpop.f32.mrf.mxu0 }
 0xe64   :  { %v15364_v38 = vadd.f32 %v7179_v60, %v5144_v29 }
 0xe65   :  { %v7477_v0 = vpop.f32.mrf.mxu0 }
 0xe66   :  { %17988 = vst [vmem:[#allocation47_spill] sm:$0xff] %v15364_v38 }
 0xe67   :  { %v5147_v54 = vpop.f32.mrf.mxu0 }
 0xe69   :  { %v7478_v63 = vpop.f32.mrf.mxu0 }
 0xe7f   :  { %v5185_v1 = vpop.f32.mrf.mxu1 }
 0xe80   :  { %v5186_v17 = vadd.f32 %v5185_v1, %v13950_v52 }
 0xe81   :  { %v5187_v55 = vpop.f32.mrf.mxu1 }
 0xe82   :  { %v5188_v56 = vadd.f32 %v5187_v55, %v13954_v16 }
 0xe83   :  { %v5189_v34 = vpop.f32.mrf.mxu1 }
 0xe85   :  { %v5190_v18 = vpop.f32.mrf.mxu1 }
 0xea3   :  { %v5226_v19 = vpop.f32.mrf.mxu0 }
 0xea4   :  { %v5227_v4 = vadd.f32 %v5226_v19, %v5186_v17 }
 0xea5   :  { %v5228_v31 = vpop.f32.mrf.mxu0 }
 0xea6   :  { %v5229_v26 = vadd.f32 %v5228_v31, %v5188_v56 }
 0xea7   :  { %v5230_v47 = vpop.f32.mrf.mxu0 }
 0xea9   :  { %v5231_v48 = vpop.f32.mrf.mxu0 }
 0xebf   :  { %v5267_v25 = vpop.f32.mrf.mxu1 }
 0xec0   :  { %v5268_v60 = vadd.f32 %v5267_v25, %v5227_v4  ;;  %v18018_v25 = vld [vmem:[#allocation10_spill] sm:$0xff] }
 0xec1   :  { %v5269_v29 = vpop.f32.mrf.mxu1 }
 0xec2   :  { %v5270_v0 = vadd.f32 %v5269_v29, %v5229_v26  ;;  %8199 = vtanh.f32 %v5268_v60  ;;  %v18019_v26 = vld [vmem:[#allocation28_spill] sm:$0xff]  ;;  %v18020_v60 = vld [vmem:[#allocation103_spill] sm:$0xff]  ;;  %v18021_v29 = vld [vmem:[#allocation29_spill] sm:$0xff] }
 0xec3   :  { %v5271_v54 = vpop.f32.mrf.mxu1  ;;  %v7204_v40 = vpop.f32.mrf.mxu0 }
 0xec4   :  { %8201 = vtanh.f32 %v5270_v0  ;;  %v18022_v0 = vld [vmem:[#allocation104_spill] sm:$0xff]  ;;  %v18023_v54 = vld [vmem:[#allocation30_spill] sm:$0xff] }
 0xec5   :  { %v5272_v34 = vpop.f32.mrf.mxu1  ;;  %v7205_v18 = vpop.f32.mrf.mxu0 }
 0xec6   :  { %v7206_v17 = vadd.f32 %v7205_v18, %v7204_v40  ;;  %v18024_v40 = vld [vmem:[#allocation11_spill] sm:$0xff]  ;;  %v18026_v18 = vld [vmem:[#allocation106_spill] sm:$0xff] }
 0xec7   :  { %v7207_v63 = vpop.f32.mrf.mxu0  ;;  %v18025_v34 = vld [vmem:[#allocation31_spill] sm:$0xff] }
 0xec8   :  { %v18027_v63 = vld [vmem:[#allocation32_spill] sm:$0xff] }
 0xec9   :  { %v7208_v38 = vpop.f32.mrf.mxu0 }
 0xecf   :  { %v8200_v47 = vpop.eup %8199 }
 0xed0   :  { %v5397_v1 = vpack.c.bf16 %v8200_v47, %v8200_v47  ;;  %v18028_v47 = vld [vmem:[#allocation15_spill] sm:$0xff] }
 0xed1   :  { %v8202_v48 = vpop.eup %8201 }
 0xed2   :  { %v5398_v3 = vpack.c.bf16 %v8202_v48, %v8202_v48  ;;  %v18029_v48 = vld [vmem:[#allocation109_spill] sm:$0xff] }
 0xed4   :  { %5435 = vmatprep.mubr.bf16.mxu0 %v5398_v3 }
 0xed5   :  { %5436 = vmatmul.mubr.bf16.vlgmr.msra.gmra.mxu0 %v5397_v1  ;;  %v18030_v1 = vld [vmem:[#allocation16_spill] sm:$0xff] }
 0xed6   :  { %5485 = vmatpush1.bf16.msra.mxu0 %v14165_v39  ;;  %5516 = vmatprep.mubr.bf16.mxu0 %v14449_v30 }
 0xed7   :  { %5486 = vmatprep.subr.bf16.mxu0 %v14172_v7  ;;  %v5309_v7 = vadd.f32 %v7206_v17, %v17738_v8  ;;  %v18032_v17 = vld [vmem:[#allocation110_spill] sm:$0xff] }
 0xeda   :  { %5487 = vmatpush1.bf16.msra.mxu0 %v14178_v23 }
 0xedb   :  { %5488 = vmatprep.subr.bf16.mxu0 %v14184_v10 }
 0xede   :  { %5489 = vmatpush1.bf16.msra.mxu0 %v14190_v28 }
 0xedf   :  { %5490 = vmatprep.subr.bf16.mxu0 %v14196_v49 }
 0xee0   :  { %v7248_v31 = vpop.f32.mrf.mxu1 }
 0xee2   :  { %v7249_v38 = vpop.f32.mrf.mxu1  ;;  %5491 = vmatpush1.bf16.msra.mxu0 %v14202_v61 }
 0xee3   :  { %v7226_v3 = vpop.f32.mrf.mxu0  ;;  %5492 = vmatprep.subr.bf16.mxu0 %v14208_v44  ;;  %v7250_v28 = vadd.f32 %v7249_v38, %v7248_v31  ;;  %v18031_v31 = vld [vmem:[#allocation33_spill] sm:$0xff]  ;;  %v18033_v38 = vld [vmem:[#allocation34_spill] sm:$0xff] }
 0xee4   :  { %v7251_v39 = vpop.f32.mrf.mxu1 }
 0xee5   :  { %v7227_v19 = vpop.f32.mrf.mxu0  ;;  %v18035_v39 = vld [vmem:[#allocation35_spill] sm:$0xff] }
 0xee6   :  { %v7228_v55 = vadd.f32 %v7227_v19, %v7226_v3  ;;  %v7252_v23 = vpop.f32.mrf.mxu1  ;;  %5493 = vmatpush1.bf16.msra.mxu0 %v14214_v20  ;;  %v17989_v20 = vld [vmem:[#allocation53_spill] sm:$0xff]  ;;  %v18036_v19 = vld [vmem:[#allocation18_spill] sm:$0xff] }
 0xee7   :  { %v7229_v10 = vpop.f32.mrf.mxu0  ;;  %5494 = vmatprep.subr.bf16.mxu0 %v14220_v5  ;;  %v17990_v5 = vld [vmem:[#allocation105_spill] sm:$0xff] }
 0xee8   :  { %v5349_v49 = vadd.f32 %v7228_v55, %v5309_v7  ;;  %v18034_v3 = vld [vmem:[#allocation17_spill] sm:$0xff]  ;;  %v18037_v7 = vld [vmem:[#allocation91_spill] sm:$0xff]  ;;  %v18038_v55 = vld [vmem:[#allocation36_spill] sm:$0xff] }
 0xee9   :  { %v7230_v56 = vpop.f32.mrf.mxu0  ;;  %v18039_v23 = vld [vmem:[#allocation81_spill] sm:$0xff] }
 0xeea   :  { %v5389_v4 = vadd.f32 %v7250_v28, %v5349_v49  ;;  %5495 = vmatpush1.bf16.msra.mxu0 %v14226_v12  ;;  %v17991_v12 = vld [vmem:[#allocation4_spill] sm:$0xff]  ;;  %v18040_v10 = vld [vmem:[#allocation37_spill] sm:$0xff]  ;;  %v18041_v28 = vld [vmem:[#allocation19_spill] sm:$0xff] }
 0xeeb   :  { %5496 = vmatprep.subr.bf16.mxu0 %v14232_v22  ;;  %v17992_v22 = vld [vmem:[#allocation123_spill] sm:$0xff]  ;;  %v18042_v49 = vld [vmem:[#allocation38_spill] sm:$0xff]  ;;  %v18043_v56 = vld [vmem:[#allocation20_spill] sm:$0xff] }
 0xeec   :  { %8203 = vtanh.f32 %v5389_v4  ;;  %v18044_v4 = vld [vmem:[#allocation39_spill] sm:$0xff] }
 0xeee   :  { %5497 = vmatpush1.bf16.msra.mxu0 %v14238_v42  ;;  %v17993_v42 = vld [vmem:[#allocation75_spill] sm:$0xff] }
 0xeef   :  { %5498 = vmatprep.subr.bf16.mxu0 %v14244_v62  ;;  %v17994_v62 = vld [vmem:[#allocation124_spill] sm:$0xff] }
 0xef2   :  { %5499 = vmatpush1.bf16.msra.mxu0 %v14250_v46  ;;  %v17995_v46 = vld [vmem:[#allocation101_spill] sm:$0xff] }
 0xef3   :  { %5500 = vmatprep.subr.bf16.mxu0 %v14256_v32  ;;  %v15418_v32 = vpack.c.bf16 %v17995_v46, %v17995_v46  ;;  %v18054_v46 = vld [vmem:[#allocation44_spill] sm:$0xff] }
 0xef6   :  { %5501 = vmatpush2.bf16.msra.mxu0 %v14262_v59  ;;  %v17996_v59 = vld [vmem:[#allocation54_spill] sm:$0xff] }
 0xef7   :  { %5502 = vmatprep.subr.bf16.mxu0 %v14276_v6  ;;  %v17998_v6 = vld [vmem:[#allocation125_spill] sm:$0xff] }
 0xef9   :  { %v8204_v61 = vpop.eup %8203 }
 0xefa   :  { %v5399_v44 = vpack.c.bf16 %v8204_v61, %v8204_v61  ;;  %5503 = vmatpush2.bf16.msra.mxu0 %v14288_v41  ;;  %v18000_v41 = vld [vmem:[#allocation126_spill] sm:$0xff]  ;;  %v18045_v61 = vld [vmem:[#allocation21_spill] sm:$0xff] }
 0xefb   :  { %5504 = vmatprep.subr.bf16.mxu0 %v14300_v27  ;;  %v18002_v27 = vld [vmem:[#allocation127_spill] sm:$0xff] }
 0xefc   :  { %7488 = vmatmul.mubr.msk.bf16.vlgmr.msra.gmra.mxu1 %vm4400_vm2, %v5399_v44  ;;  %v18046_v44 = vld [vmem:[#allocation40_spill] sm:$0xff] }
 0xefd   :  { %5526 = vmatpush1.bf16.msra.mxu1 %v14269_v50  ;;  %5557 = vmatprep.mubr.bf16.mxu1 %v15134_v2  ;;  %v17997_v50 = vld [vmem:[#allocation13_spill] sm:$0xff] }
 0xefe   :  { %5505 = vmatpush2.bf16.msra.mxu0 %v14312_v13  ;;  %5527 = vmatprep.subr.bf16.mxu1 %v14282_v51  ;;  %v17999_v51 = vld [vmem:[#allocation108_spill] sm:$0xff] }
 0xeff   :  { %5506 = vmatprep.subr.bf16.mxu0 %v14324_v53  ;;  %v18004_v13 = vld [vmem:[#allocation128_spill] sm:$0xff]  ;;  %v18006_v53 = vld [vmem:[#allocation95_spill] sm:$0xff] }
 0xf01   :  { %5528 = vmatpush1.bf16.msra.mxu1 %v14294_v9  ;;  %v18001_v9 = vld [vmem:[#allocation62_spill] sm:$0xff] }
 0xf02   :  { %5507 = vmatpush2.bf16.msra.mxu0 %v14336_v11  ;;  %5529 = vmatprep.subr.bf16.mxu1 %v14306_v21  ;;  %v18003_v21 = vld [vmem:[#allocation8_spill] sm:$0xff]  ;;  %v18008_v11 = vld [vmem:[#allocation97_spill] sm:$0xff] }
 0xf03   :  { %5508 = vmatprep.subr.bf16.mxu0 %v14348_v15  ;;  %v18010_v15 = vld [vmem:[#allocation98_spill] sm:$0xff] }
 0xf05   :  { %5530 = vmatpush1.bf16.msra.mxu1 %v14318_v24  ;;  %v18005_v24 = vld [vmem:[#allocation115_spill] sm:$0xff] }
 0xf06   :  { %5509 = vmatpush2.bf16.msra.mxu0 %v14360_v37  ;;  %5531 = vmatprep.subr.bf16.mxu1 %v14330_v45  ;;  %v18007_v45 = vld [vmem:[#allocation118_spill] sm:$0xff]  ;;  %v18011_v37 = vld [vmem:[#allocation120_spill] sm:$0xff] }
 0xf07   :  { %5510 = vmatprep.subr.bf16.mxu0 %v17856_v35  ;;  %v18012_v35 = vld [vmem:[#allocation7_spill] sm:$0xff] }
 0xf09   :  { %5532 = vmatpush1.bf16.msra.mxu1 %v14342_v57  ;;  %v18009_v57 = vld [vmem:[#allocation119_spill] sm:$0xff] }
 0xf0a   :  { %5511 = vmatpush2.bf16.msra.mxu0 %v17858_v36  ;;  %5533 = vmatprep.subr.bf16.mxu1 %v17857_v58  ;;  %v18013_v58 = vld [vmem:[#allocation121_spill] sm:$0xff] }
 0xf0b   :  { %5512 = vmatprep.subr.bf16.mxu0 %v17860_v33  ;;  %v18014_v36 = vld [vmem:[#allocation9_spill] sm:$0xff]  ;;  %v18016_v33 = vld [vmem:[#allocation102_spill] sm:$0xff] }
 0xf0d   :  { %5534 = vmatpush1.bf16.msra.mxu1 %v17859_v43  ;;  %v18015_v43 = vld [vmem:[#allocation122_spill] sm:$0xff] }
 0xf0e   :  { %5513 = vmatpush2.bf16.msra.mxu0 %v17862_v14  ;;  %5535 = vmatprep.subr.bf16.mxu1 %v17989_v20  ;;  %v18017_v14 = vld [vmem:[#allocation27_spill] sm:$0xff]  ;;  %v18047_v20 = vld [vmem:[#allocation22_spill] sm:$0xff] }
 0xf0f   :  { %5514 = vmatprep.subr.bf16.mxu0 %v17990_v5  ;;  %v18048_v5 = vld [vmem:[#allocation41_spill] sm:$0xff] }
 0xf11   :  { %5536 = vmatpush1.bf16.msra.mxu1 %v17991_v12  ;;  %v18050_v12 = vld [vmem:[#allocation42_spill] sm:$0xff] }
 0xf12   :  { %5515 = vmatpush2.bf16.msra.mxu0 %v17992_v22  ;;  %5537 = vmatprep.subr.bf16.mxu1 %v17993_v42  ;;  %v18051_v22 = vld [vmem:[#allocation24_spill] sm:$0xff]  ;;  %v18052_v42 = vld [vmem:[#allocation43_spill] sm:$0xff] }
 0xf13   :  { %5566 = vmatprep.subr.bf16.mxu0 %v17994_v62  ;;  %v18053_v62 = vld [vmem:[#allocation26_spill] sm:$0xff] }
 0xf15   :  { %5517 = vmatmul.mubr.bf16.vlgmr.msra.gmra.mxu0 %v17996_v59  ;;  %5538 = vmatpush1.bf16.msra.mxu1 %v17997_v50  ;;  %v18055_v50 = vld [vmem:[#allocation86_spill] sm:$0xff] }
 0xf16   :  { %5567 = vmatpush1.bf16.msra.mxu0 %v17998_v6  ;;  %5598 = vmatprep.mubr.bf16.mxu0 %v15418_v32  ;;  %v18056_v6 = vld [vmem:[#allocation46_spill] sm:$0xff] }
 0xf17   :  { %5539 = vmatprep.subr.bf16.mxu1 %v17999_v51  ;;  %5568 = vmatprep.subr.bf16.mxu0 %v18000_v41  ;;  %v18057_v51 = vld [vmem:[#allocation88_spill] sm:$0xff] }
 0xf18   :  { %v18058_v41 = vld [vmem:[#allocation48_spill] sm:$0xff] }
 0xf19   :  { %5540 = vmatpush1.bf16.msra.mxu1 %v18001_v9  ;;  %v18059_v9 = vld [vmem:[#allocation89_spill] sm:$0xff] }
 0xf1a   :  { %5569 = vmatpush1.bf16.msra.mxu0 %v18002_v27  ;;  %5541 = vmatprep.subr.bf16.mxu1 %v18003_v21  ;;  %v18060_v27 = vld [vmem:[#allocation84_spill] sm:$0xff]  ;;  %v18061_v21 = vld [vmem:[#allocation113_spill] sm:$0xff] }
 0xf1b   :  { %5570 = vmatprep.subr.bf16.mxu0 %v18004_v13  ;;  %v3012_v13 = vpack.c.bf16 %v18061_v21, %v18061_v21  ;;  %v18117_v21 = vld [vmem:[#allocation3_spill] sm:$0xff] }
 0xf1d   :  { %5542 = vmatpush2.bf16.msra.mxu1 %v18005_v24  ;;  %v18062_v24 = vld [vmem:[#allocation56_spill] sm:$0xff] }
 0xf1e   :  { %5571 = vmatpush1.bf16.msra.mxu0 %v18006_v53  ;;  %5543 = vmatprep.subr.bf16.mxu1 %v18007_v45  ;;  %v18063_v53 = vld [vmem:[#allocation50_spill] sm:$0xff] }
 0xf1f   :  { %5572 = vmatprep.subr.bf16.mxu0 %v18008_v11  ;;  %v18064_v45 = vld [vmem:[#allocation58_spill] sm:$0xff]  ;;  %v18065_v11 = vld [vmem:[#allocation52_spill] sm:$0xff] }
 0xf21   :  { %5544 = vmatpush2.bf16.msra.mxu1 %v18009_v57  ;;  %v18066_v57 = vld [vmem:[#allocation60_spill] sm:$0xff] }
 0xf22   :  { %5573 = vmatpush1.bf16.msra.mxu0 %v18010_v15  ;;  %5545 = vmatprep.subr.bf16.mxu1 %v18011_v37  ;;  %v18067_v15 = vld [vmem:[#allocation82_spill] sm:$0xff]  ;;  %v18068_v37 = vld [vmem:[#allocation63_spill] sm:$0xff] }
 0xf23   :  { %5574 = vmatprep.subr.bf16.mxu0 %v18012_v35  ;;  %v18069_v35 = vld [vmem:[#allocation93_spill] sm:$0xff] }
 0xf25   :  { %5546 = vmatpush2.bf16.msra.mxu1 %v18013_v58  ;;  %v18070_v58 = vld [vmem:[#allocation64_spill] sm:$0xff] }
 0xf26   :  { %5575 = vmatpush1.bf16.msra.mxu0 %v18014_v36  ;;  %5547 = vmatprep.subr.bf16.mxu1 %v18015_v43  ;;  %v18071_v36 = vld [vmem:[#allocation96_spill] sm:$0xff]  ;;  %v18072_v43 = vld [vmem:[#allocation65_spill] sm:$0xff] }
 0xf27   :  { %5576 = vmatprep.subr.bf16.mxu0 %v18016_v33  ;;  %v18074_v33 = vld [vmem:[#allocation66_spill] sm:$0xff] }
 0xf29   :  { %5548 = vmatpush2.bf16.msra.mxu1 %v18017_v14  ;;  %v18075_v14 = vld [vmem:[#allocation100_spill] sm:$0xff] }
 0xf2a   :  { %5577 = vmatpush1.bf16.msra.mxu0 %v18018_v25  ;;  %5549 = vmatprep.subr.bf16.mxu1 %v18019_v26  ;;  %v18076_v25 = vld [vmem:[#allocation67_spill] sm:$0xff]  ;;  %v18077_v26 = vld [vmem:[#allocation2_spill] sm:$0xff] }
 0xf2b   :  { %5578 = vmatprep.subr.bf16.mxu0 %v18020_v60  ;;  %v18078_v60 = vld [vmem:[#allocation69_spill] sm:$0xff] }
 0xf2d   :  { %5550 = vmatpush2.bf16.msra.mxu1 %v18021_v29  ;;  %v18079_v29 = vld [vmem:[#allocation49_spill] sm:$0xff] }
 0xf2e   :  { %5579 = vmatpush1.bf16.msra.mxu0 %v18022_v0  ;;  %5551 = vmatprep.subr.bf16.mxu1 %v18023_v54  ;;  %v18081_v0 = vld [vmem:[#allocation90_spill] sm:$0xff]  ;;  %v18083_v54 = vld [vmem:[#allocation68_spill] sm:$0xff] }
 0xf2f   :  { %5580 = vmatprep.subr.bf16.mxu0 %v18024_v40  ;;  %v18084_v40 = vld [vmem:[#allocation72_spill] sm:$0xff] }
 0xf31   :  { %5552 = vmatpush2.bf16.msra.mxu1 %v18025_v34  ;;  %v18085_v34 = vld [vmem:[#allocation80_spill] sm:$0xff] }
 0xf32   :  { %5581 = vmatpush1.bf16.msra.mxu0 %v18026_v18  ;;  %5553 = vmatprep.subr.bf16.mxu1 %v18027_v63  ;;  %v18086_v18 = vld [vmem:[#allocation5_spill] sm:$0xff] }
 0xf33   :  { %5582 = vmatprep.subr.bf16.mxu0 %v18028_v47  ;;  %v18087_v63 = vld [vmem:[#allocation129_spill] sm:$0xff]  ;;  %v18088_v47 = vld [vmem:[#allocation55_spill] sm:$0xff] }
 0xf35   :  { %5554 = vmatpush2.bf16.msra.mxu1 %v18029_v48  ;;  %v18089_v48 = vld [vmem:[#allocation130_spill] sm:$0xff] }
 0xf36   :  { %5583 = vmatpush2.bf16.msra.mxu0 %v18030_v1  ;;  %5555 = vmatprep.subr.bf16.mxu1 %v18031_v31  ;;  %v18090_v1 = vld [vmem:[#allocation111_spill] sm:$0xff]  ;;  %v18091_v31 = vld [vmem:[#allocation25_spill] sm:$0xff] }
 0xf37   :  { %5584 = vmatprep.subr.bf16.mxu0 %v18032_v17  ;;  %v18092_v17 = vld [vmem:[#allocation112_spill] sm:$0xff] }
 0xf39   :  { %5556 = vmatpush2.bf16.msra.mxu1 %v18033_v38  ;;  %v18093_v38 = vld [vmem:[#allocation14_spill] sm:$0xff] }
 0xf3a   :  { %5585 = vmatpush2.bf16.msra.mxu0 %v18034_v3  ;;  %7281 = vmatprep.subr.bf16.mxu1 %v18035_v39  ;;  %v18094_v3 = vmov 0.0   ;;  %v18095_v39 = vld [vmem:[#allocation73_spill] sm:$0xff] }
 0xf3b   :  { %5586 = vmatprep.subr.bf16.mxu0 %v18036_v19  ;;  %v18096_v19 = vld [vmem:[#allocation74_spill] sm:$0xff] }
 0xf3c   :  { %5558 = vmatmul.mubr.bf16.vlgmr.msra.gmra.mxu1 %v18037_v7 }
 0xf3d   :  { %7282 = vmatpush3.bf16.msra.mxu1 %v18038_v55  ;;  %5639 = vmatprep.mubr.bf16.mxu1 %v14449_v30  ;;  %v18049_v30 = vld [vmem:[#allocation23_spill] sm:$0xff] }
 0xf3e   :  { %5587 = vmatpush2.bf16.msra.mxu0 %v18039_v23  ;;  %7283 = vmatprep.subr.bf16.mxu1 %v18040_v10  ;;  %v18097_v55 = vld [vmem:[#allocation131_spill] sm:$0xff]  ;;  %v18098_v23 = vld [vmem:[#allocation76_spill] sm:$0xff]  ;;  %v18099_v10 = vld [vmem:[#allocation77_spill] sm:$0xff] }
 0xf3f   :  { %5588 = vmatprep.subr.bf16.mxu0 %v18041_v28  ;;  %v18100_v28 = vld [vmem:[#allocation132_spill] sm:$0xff] }
 0xf41   :  { %7284 = vmatpush3.bf16.msra.mxu1 %v18042_v49  ;;  %v18101_v49 = vld [vmem:[#allocation78_spill] sm:$0xff] }
 0xf42   :  { %5589 = vmatpush2.bf16.msra.mxu0 %v18043_v56  ;;  %7285 = vmatprep.subr.bf16.mxu1 %v18044_v4  ;;  %v18102_v56 = vld [vmem:[#allocation79_spill] sm:$0xff]  ;;  %v18103_v4 = vld [vmem:[#allocation133_spill] sm:$0xff] }
 0xf43   :  { %5590 = vmatprep.subr.bf16.mxu0 %v18045_v61  ;;  %v18104_v61 = vld [vmem:[#allocation99_spill] sm:$0xff] }
 0xf45   :  { %7286 = vmatpush3.bf16.msra.mxu1 %v18046_v44  ;;  %v18105_v44 = vld [vmem:[#allocation85_spill] sm:$0xff] }
 0xf46   :  { %5591 = vmatpush2.bf16.msra.mxu0 %v18047_v20  ;;  %7287 = vmatprep.subr.bf16.mxu1 %v18048_v5  ;;  %v18106_v20 = vld [vmem:[#allocation57_spill] sm:$0xff]  ;;  %v18107_v5 = vld [vmem:[#allocation87_spill] sm:$0xff] }
 0xf47   :  { %5592 = vmatprep.subr.bf16.mxu0 %v18049_v30  ;;  %v18108_v30 = vld [vmem:[#allocation134_spill] sm:$0xff] }
 0xf49   :  { %7288 = vmatpush3.bf16.msra.mxu1 %v18050_v12  ;;  %v18109_v12 = vld [vmem:[#allocation114_spill] sm:$0xff] }
 0xf4a   :  { %5593 = vmatpush2.bf16.msra.mxu0 %v18051_v22  ;;  %7289 = vmatprep.subr.bf16.mxu1 %v18052_v42  ;;  %v18111_v22 = vld [vmem:[#allocation83_spill] sm:$0xff] }
 0xf4b   :  { %5594 = vmatprep.subr.bf16.mxu0 %v18053_v62  ;;  %v18112_v42 = vld [vmem:[#allocation59_spill] sm:$0xff]  ;;  %v18113_v62 = vld [vmem:[#allocation12_spill] sm:$0xff] }
 0xf4d   :  { %7290 = vmatpush3.bf16.msra.mxu1 %v18054_v46  ;;  %v18114_v46 = vld [vmem:[#allocation116_spill] sm:$0xff] }
 0xf4e   :  { %5595 = vmatpush2.bf16.msra.mxu0 %v18055_v50  ;;  %7291 = vmatprep.subr.bf16.mxu1 %v18056_v6  ;;  %v18115_v6 = vld [vmem:[#allocation107_spill] sm:$0xff] }
 0xf4f   :  { %5596 = vmatprep.subr.bf16.mxu0 %v18057_v51  ;;  %v18116_v51 = vld [vmem:[#allocation117_spill] sm:$0xff] }
 0xf51   :  { %7292 = vmatpush3.bf16.msra.mxu1 %v18058_v41 }
 0xf52   :  { %5597 = vmatpush2.bf16.msra.mxu0 %v18059_v9  ;;  %7293 = vmatprep.subr.bf16.mxu1 %v18060_v27 }
 0xf53   :  { %7325 = vmatprep.subr.bf16.mxu0 %v18062_v24  ;;  %v8043_v24 = vld [vmem:[%s15777_s7 + $0x78] sm:$0xff]  }
 0xf55   :  { %5599 = vmatmul.mubr.bf16.vlgmr.msra.gmra.mxu0 %v3012_v13  ;;  %7294 = vmatpush3.bf16.msra.mxu1 %v18063_v53 }
 0xf56   :  { %7326 = vmatpush3.bf16.msra.mxu0 %v18064_v45  ;;  %5719 = vmatprep.mubr.bf16.mxu0 %v15418_v32  ;;  %v18073_v32 = vld [vmem:[#allocation61_spill] sm:$0xff] }
 0xf57   :  { %7295 = vmatprep.subr.bf16.mxu1 %v18065_v11  ;;  %7327 = vmatprep.subr.bf16.mxu0 %v18066_v57 }
 0xf59   :  { %7296 = vmatpush3.bf16.msra.mxu1 %v18067_v15 }
 0xf5a   :  { %7328 = vmatpush3.bf16.msra.mxu0 %v18068_v37  ;;  %7303 = vmatprep.subr.bf16.mxu1 %v18069_v35  ;;  %v8059_v37 = vld [vmem:[%s15777_s7 + $0xf8] sm:$0xff]  }
 0xf5b   :  { %7329 = vmatprep.subr.bf16.mxu0 %v18070_v58 }
 0xf5c   :  { %5640 = vmatmul.mubr.bf16.vlgmr.msra.gmra.mxu1 %v17996_v59  ;;  %v18080_v59 = vld [vmem:[#allocation70_spill] sm:$0xff] }
 0xf5d   :  { %7304 = vmatpush3.bf16.msra.mxu1 %v18071_v36  ;;  %5679 = vmatprep.mubr.bf16.mxu1 %v15134_v2  ;;  %v18082_v2 = vld [vmem:[#allocation71_spill] sm:$0xff] }
 0xf5e   :  { %7330 = vmatpush3.bf16.msra.mxu0 %v18072_v43  ;;  %7305 = vmatprep.subr.bf16.mxu1 %v18073_v32 }
 0xf5f   :  { %7331 = vmatprep.subr.bf16.mxu0 %v18074_v33 }
 0xf61   :  { %7306 = vmatpush3.bf16.msra.mxu1 %v18075_v14 }
 0xf62   :  { %7332 = vmatpush3.bf16.msra.mxu0 %v18076_v25  ;;  %7307 = vmatprep.subr.bf16.mxu1 %v18077_v26 }
 0xf63   :  { %7333 = vmatprep.subr.bf16.mxu0 %v18078_v60 }
 0xf65   :  { %7308 = vmatpush3.bf16.msra.mxu1 %v18079_v29 }
 0xf66   :  { %7334 = vmatpush3.bf16.msra.mxu0 %v18080_v59  ;;  %7309 = vmatprep.subr.bf16.mxu1 %v18081_v0 }
 0xf67   :  { %7335 = vmatprep.subr.bf16.mxu0 %v18082_v2 }
 0xf69   :  { %7310 = vmatpush3.bf16.msra.mxu1 %v18083_v54 }
 0xf6a   :  { %7336 = vmatpush3.bf16.msra.mxu0 %v18084_v40  ;;  %7311 = vmatprep.subr.bf16.mxu1 %v18085_v34 }
 0xf6b   :  { %7337 = vmatprep.subr.bf16.mxu0 %v18086_v18 }
 0xf6d   :  { %7312 = vmatpush3.bf16.msra.mxu1 %v18087_v63 }
 0xf6e   :  { %7338 = vmatpush3.bf16.msra.mxu0 %v18088_v47  ;;  %7313 = vmatprep.subr.bf16.mxu1 %v18089_v48 }
 0xf6f   :  { %7339 = vmatprep.subr.bf16.mxu0 %v18090_v1 }
 0xf71   :  { %7314 = vmatpush3.bf16.msra.mxu1 %v18091_v31 }
 0xf72   :  { %7340 = vmatpush3.bf16.msra.mxu0 %v18092_v17  ;;  %7315 = vmatprep.subr.bf16.mxu1 %v18093_v38 }
 0xf73   :  { %7491 = vmatprep.subr.bf16.mxu0 %v18094_v3 }
 0xf75   :  { %7316 = vmatpush3.bf16.msra.mxu1 %v18095_v39  ;;  %5720 = vmatmul.mubr.bf16.vlgmr.msra.gmra.mxu0 %v3012_v13  ;;  %v8045_v39 = vld [vmem:[%s15777_s7 + $0x70] sm:$0xff]  }
 0xf76   :  { %7317 = vmatprep.subr.bf16.mxu1 %v18096_v19  ;;  %7492 = vmatpush3.bf16.msra.mxu0 %v18097_v55  ;;  %v18118_v19 = vld [vmem:[#allocation94_spill] sm:$0xff] }
 0xf77   :  { %7493 = vmatprep.subr.bf16.mxu0 %v18094_v3  ;;  %7499 = vmatprep.mubr.msk.bf16.mxu0 %vm8755_vm1, %v18094_v3  ;;  %v4817_v55 = vpack.c.bf16 %v18118_v19, %v18118_v19 }
 0xf79   :  { %7318 = vmatpush3.bf16.msra.mxu1 %v18098_v23  ;;  %v8046_v23 = vld [vmem:[%s15777_s7 + $0x30] sm:$0xff]  }
 0xf7a   :  { %7347 = vmatprep.subr.bf16.mxu1 %v18099_v10  ;;  %7494 = vmatpush3.bf16.msra.mxu0 %v18100_v28  ;;  %v8047_v10 = vld [vmem:[%s15777_s7 + $0x68] sm:$0xff]  }
 0xf7b   :  { %7495 = vmatprep.subr.bf16.mxu0 %v18094_v3  ;;  %v8048_v28 = vld [vmem:[%s15777_s7 + $0x28] sm:$0xff]  }
 0xf7c   :  { %5680 = vmatmul.mubr.bf16.vlgmr.msra.gmra.mxu1 %v18037_v7  ;;  %v18110_v7 = vld [vmem:[#allocation45_spill] sm:$0xff] }
 0xf7d   :  { %7348 = vmatpush3.bf16.msra.mxu1 %v18101_v49  ;;  %v8049_v49 = vld [vmem:[%s15777_s7 + $0x60] sm:$0xff]  }
 0xf7e   :  { %7349 = vmatprep.subr.bf16.mxu1 %v18102_v56  ;;  %7496 = vmatpush3.bf16.msra.mxu0 %v18103_v4  ;;  %v8050_v56 = vld [vmem:[%s15777_s7 + $0x20] sm:$0xff]  }
 0xf7f   :  { %7497 = vmatprep.subr.bf16.mxu0 %v18094_v3 }
 0xf81   :  { %7350 = vmatpush3.bf16.msra.mxu1 %v18104_v61  ;;  %v8051_v61 = vld [vmem:[%s15777_s7 + $0x58] sm:$0xff]  }
 0xf82   :  { %7351 = vmatprep.subr.bf16.mxu1 %v18105_v44  ;;  %7498 = vmatpush3.bf16.msra.mxu0 %v18106_v20  ;;  %v8052_v20 = vld [vmem:[%s15777_s7 + $0x18] sm:$0xff]  }
 0xf83   :  { %7396 = vmatprep.subr.bf16.mxu0 %v8059_v37 }
 0xf85   :  { %7352 = vmatpush3.bf16.msra.mxu1 %v18107_v5 }
 0xf86   :  { %7353 = vmatprep.subr.bf16.mxu1 %v18108_v30  ;;  %v8053_v30 = vld [vmem:[%s15777_s7 + $0x50] sm:$0xff]  }
 0xf89   :  { %7354 = vmatpush3.bf16.msra.mxu1 %v18109_v12 }
 0xf8a   :  { %7355 = vmatprep.subr.bf16.mxu1 %v18110_v7 }
 0xf8d   :  { %7356 = vmatpush3.bf16.msra.mxu1 %v18111_v22 }
 0xf8e   :  { %7357 = vmatprep.subr.bf16.mxu1 %v18112_v42  ;;  %v8054_v42 = vld [vmem:[%s15777_s7 + $0x10] sm:$0xff]  }
 0xf91   :  { %7358 = vmatpush3.bf16.msra.mxu1 %v18113_v62  ;;  %v8055_v62 = vld [vmem:[%s15777_s7 + $0x48] sm:$0xff]  }
 0xf92   :  { %7359 = vmatprep.subr.bf16.mxu1 %v18114_v46 }
 0xf95   :  { %v7270_v50 = vpop.f32.mrf.mxu0  ;;  %7360 = vmatpush3.bf16.msra.mxu1 %v18115_v6 }
 0xf96   :  { %7361 = vmatprep.subr.bf16.mxu1 %v18116_v51 }
 0xf97   :  { %v7271_v41 = vpop.f32.mrf.mxu0 }
 0xf98   :  { %v7272_v9 = vadd.f32 %v7271_v41, %v7270_v50  ;;  %v8056_v41 = vld [vmem:[%s15777_s7 + $0x8] sm:$0xff]  }
 0xf99   :  { %v7273_v27 = vpop.f32.mrf.mxu0  ;;  %7362 = vmatpush3.bf16.msra.mxu1 %v18117_v21  ;;  %v8057_v21 = vld [vmem:[%s15777_s7 + $0x40] sm:$0xff]  }
 0xf9a   :  { %7374 = vmatprep.subr.bf16.mxu1 %v8043_v24 }
 0xf9b   :  { %v7274_v13 = vpop.f32.mrf.mxu0 }
 0xfbc   :  { %v5477_v53 = vpop.f32.mrf.mxu1 }
 0xfbd   :  { %v15557_v45 = vadd.f32 %v7272_v9, %v5477_v53  ;;  %v18119_v53 = vld [vmem:[#allocation51_spill] sm:$0xff] }
 0xfbe   :  { %v7489_v11 = vpop.f32.mrf.mxu1 }
 0xfbf   :  { %v4484_v11 = vpack.c.bf16 %v18119_v53, %v18119_v53  ;;  %v8091_v53 = vld [vmem:[%s15780_s11 + $0x28] ss:$0 sps:$4 sm:$0x33]  }
 0xfc0   :  { %v5480_v57 = vpop.f32.mrf.mxu1 }
 0xfc2   :  { %v7490_v15 = vpop.f32.mrf.mxu1 }
 0xfc3   :  { %v8060_v15 = vld [vmem:[%s15777_s7 + $0xb8] sm:$0xff]  }
 0xfd5   :  { %v5518_v35 = vpop.f32.mrf.mxu0 }
 0xfd6   :  { %v5519_v26 = vadd.f32 %v5518_v35, %v13950_v52  ;;  %v8061_v35 = vld [vmem:[%s15777_s7 + $0xf0] sm:$0xff]  }
 0xfd7   :  { %v5520_v58 = vpop.f32.mrf.mxu0 }
 0xfd8   :  { %v5521_v60 = vadd.f32 %v5520_v58, %v13954_v16  ;;  %v8044_v16 = vld [vmem:[%s15777_s7 + $0x38] sm:$0xff]   ;;  %v5483_v58 = vpack.c.bf16 %v15557_v45, %v15557_v45  ;;  %v8065_v45 = vld [vmem:[%s15777_s7 + $0xe0] sm:$0xff]  }
 0xfd9   :  { %v5522_v36 = vpop.f32.mrf.mxu0 }
 0xfda   :  { %v8062_v36 = vld [vmem:[%s15777_s7 + $0xb0] sm:$0xff]  }
 0xfdb   :  { %v5523_v43 = vpop.f32.mrf.mxu0 }
 0xfdc   :  { %v8063_v43 = vld [vmem:[%s15777_s7 + $0xe8] sm:$0xff]  }
 0xffc   :  { %v5559_v32 = vpop.f32.mrf.mxu1 }
 0xffd   :  { %v5560_v29 = vadd.f32 %v5559_v32, %v5519_v26  ;;  %v8064_v32 = vld [vmem:[%s15777_s7 + $0xa8] sm:$0xff]   ;;  %v8069_v26 = vld [vmem:[%s15777_s7 + $0xd0] sm:$0xff]  }
 0xffe   :  { %v5561_v33 = vpop.f32.mrf.mxu1 }
 0xfff   :  { %v5562_v0 = vadd.f32 %v5561_v33, %v5521_v60  ;;  %v8066_v33 = vld [vmem:[%s15777_s7 + $0xa0] sm:$0xff]   ;;  %v8070_v60 = vld [vmem:[%s15777_s7 + $0x90] sm:$0xff]  }
0x1000   :  { %v5563_v14 = vpop.f32.mrf.mxu1 }
0x1001   :  { %v8067_v14 = vld [vmem:[%s15777_s7 + $0xd8] sm:$0xff]  }
0x1002   :  { %v5564_v25 = vpop.f32.mrf.mxu1 }
0x1003   :  { %v8068_v25 = vld [vmem:[%s15777_s7 + $0x98] sm:$0xff]  }
0x1015   :  { %v5600_v59 = vpop.f32.mrf.mxu0 }
0x1016   :  { %v5601_v2 = vadd.f32 %v5600_v59, %v5560_v29  ;;  %v8071_v29 = vld [vmem:[%s15777_s7 + $0xc8] sm:$0xff]  }
0x1017   :  { %v5602_v54 = vpop.f32.mrf.mxu0  ;;  %v8072_v59 = vld [vmem:[%s15777_s7 + $0x88] sm:$0xff]  }
0x1018   :  { %v5603_v40 = vadd.f32 %v5602_v54, %v5562_v0  ;;  %8205 = vtanh.f32 %v5601_v2  ;;  %v8073_v0 = vld [vmem:[%s15777_s7 + $0xc0] sm:$0xff]   ;;  %v8075_v54 = vld [vmem:[%s15777_s7 + $0x138] sm:$0xff]  }
0x1019   :  { %v5604_v34 = vpop.f32.mrf.mxu0  ;;  %v8074_v2 = vld [vmem:[%s15777_s7 + $0x80] sm:$0xff]  }
0x101a   :  { %8207 = vtanh.f32 %v5603_v40  ;;  %v18120_v40 = vld [vmem:[#allocation47_spill] sm:$0xff] }
0x101b   :  { %v5605_v18 = vpop.f32.mrf.mxu0  ;;  %v5150_v34 = vpack.c.bf16 %v18120_v40, %v18120_v40 }
0x101c   :  { %v7297_v63 = vpop.f32.mrf.mxu1  ;;  %v8076_v18 = vld [vmem:[%s15777_s7 + $0x130] sm:$0xff]  }
0x101e   :  { %v7298_v47 = vpop.f32.mrf.mxu1 }
0x101f   :  { %v7299_v12 = vadd.f32 %v7298_v47, %v7297_v63  ;;  %v8077_v63 = vld [vmem:[%s15777_s7 + $0x128] sm:$0xff]   ;;  %v8078_v47 = vld [vmem:[%s15777_s7 + $0x120] sm:$0xff]  }
0x1020   :  { %v7300_v48 = vpop.f32.mrf.mxu1 }
0x1021   :  { %v5642_v50 = vadd.f32 %v7299_v12, %v17738_v8  ;;  %v8058_v8 = vld [vmem:[%s15777_s7] sm:$0xff]   ;;  %v8079_v48 = vld [vmem:[%s15777_s7 + $0x118] sm:$0xff]  }
0x1022   :  { %v7301_v1 = vpop.f32.mrf.mxu1 }
0x1023   :  { %v8080_v1 = vld [vmem:[%s15777_s7 + $0x110] sm:$0xff]  }
0x1025   :  { %v8206_v31 = vpop.eup %8205 }
0x1026   :  { %v5730_v52 = vpack.c.bf16 %v8206_v31, %v8206_v31  ;;  %v8081_v31 = vld [vmem:[%s15777_s7 + $0x108] sm:$0xff]  }
0x1027   :  { %v8208_v17 = vpop.eup %8207 }
0x1028   :  { %v5731_v38 = vpack.c.bf16 %v8208_v17, %v8208_v17  ;;  %v8082_v17 = vld [vmem:[%s15777_s7 + $0x100] sm:$0xff]  }
0x102a   :  { %5768 = vmatprep.mubr.bf16.mxu1 %v5731_v38  ;;  %v8083_v38 = vld [vmem:[%s15778_s9 + $0x38] ss:$0 sps:$4 sm:$0xff]  }
0x102b   :  { %5769 = vmatmul.mubr.bf16.vlgmr.msra.gmra.mxu1 %v5730_v52  ;;  %v8084_v52 = vld [vmem:[%s15778_s9 + $0x30] sm:$0xff]  }
0x102c   :  { %7375 = vmatpush3.bf16.msra.mxu1 %v8044_v16  ;;  %6176 = vmatprep.mubr.bf16.mxu1 %v4817_v55  ;;  %v6339_v16 = vsel %vm6337_vm3, %v8083_v38, 0 }
0x102d   :  { %7376 = vmatprep.subr.bf16.mxu1 %v8045_v39  ;;  %v8085_v39 = vld [vmem:[%s15778_s9 + $0x28] sm:$0xff]  }
0x1030   :  { %7377 = vmatpush3.bf16.msra.mxu1 %v8046_v23 }
0x1031   :  { %7378 = vmatprep.subr.bf16.mxu1 %v8047_v10 }
0x1034   :  { %7379 = vmatpush3.bf16.msra.mxu1 %v8048_v28 }
0x1035   :  { %v7341_v4 = vpop.f32.mrf.mxu0  ;;  %7380 = vmatprep.subr.bf16.mxu1 %v8049_v49 }
0x1037   :  { %v7342_v44 = vpop.f32.mrf.mxu0 }
0x1038   :  { %7381 = vmatpush3.bf16.msra.mxu1 %v8050_v56  ;;  %v7343_v9 = vadd.f32 %v7342_v44, %v7341_v4 }
0x1039   :  { %v7344_v5 = vpop.f32.mrf.mxu0  ;;  %7382 = vmatprep.subr.bf16.mxu1 %v8051_v61 }
0x103b   :  { %v7345_v7 = vpop.f32.mrf.mxu0 }
0x103c   :  { %7383 = vmatpush3.bf16.msra.mxu1 %v8052_v20  ;;  %v7319_v22 = vpop.f32.mrf.mxu1 }
0x103d   :  { %7384 = vmatprep.subr.bf16.mxu1 %v8053_v30 }
0x103e   :  { %v7320_v46 = vpop.f32.mrf.mxu1 }
0x103f   :  { %v7321_v6 = vadd.f32 %v7320_v46, %v7319_v22 }
0x1040   :  { %7385 = vmatpush3.bf16.msra.mxu1 %v8054_v42  ;;  %v7322_v51 = vpop.f32.mrf.mxu1  ;;  %v6850_v42 = vld [vmem:[%s15779_s8] ss:$0 sm:$0xff] }
0x1041   :  { %v5682_v27 = vadd.f32 %v7321_v6, %v5642_v50  ;;  %7386 = vmatprep.subr.bf16.mxu1 %v8055_v62 }
0x1042   :  { %v7323_v13 = vpop.f32.mrf.mxu1 }
0x1043   :  { %v5722_v24 = vadd.f32 %v7343_v9, %v5682_v27  ;;  %v8086_v27 = vld [vmem:[%s15778_s9 + $0x20] sm:$0xff]   ;;  %v8088_v13 = vld [vmem:[%s15778_s9 + $0x10] sm:$0xff]  }
0x1044   :  { %7387 = vmatpush3.bf16.msra.mxu1 %v8056_v41 }
0x1045   :  { %8209 = vtanh.f32 %v5722_v24  ;;  %7388 = vmatprep.subr.bf16.mxu1 %v8057_v21  ;;  %v8087_v21 = vld [vmem:[%s15778_s9 + $0x18] sm:$0xff]   ;;  %v8089_v24 = vld [vmem:[%s15778_s9 + $0x8] sm:$0xff]  }
0x1048   :  { %7389 = vmatpush3.bf16.msra.mxu1 %v8058_v8  ;;  %v8090_v8 = vld [vmem:[%s15778_s9] sm:$0xff]  }
0x1049   :  { %7503 = vmatprep.subr.bf16.mxu1 %v18094_v3 }
0x104b   :  { %6177 = vmatmul.mubr.bf16.vlgmr.msra.gmra.mxu1 %v4484_v11  ;;  %v6440_v11 = vsel %vm6438_vm4, %v8091_v53, 0 }
0x104c   :  { %7519 = vmatprep.mubr.msk.bf16.mxu1 %vm8755_vm1, %v18094_v3  ;;  %7504 = vmatpush3.bf16.msra.mxu1 %v8075_v54 }
0x104d   :  { %7505 = vmatprep.subr.bf16.mxu1 %v18094_v3 }
0x1050   :  { %7506 = vmatpush3.bf16.msra.mxu1 %v8076_v18 }
0x1051   :  { %7507 = vmatprep.subr.bf16.mxu1 %v18094_v3 }
0x1052   :  { %v8210_v57 = vpop.eup %8209 }
0x1053   :  { %v5732_v37 = vpack.c.bf16 %v8210_v57, %v8210_v57 }
0x1054   :  { %7508 = vmatpush3.bf16.msra.mxu1 %v8077_v63 }
0x1055   :  { %7500 = vmatmul.mubr.msk.bf16.vlgmr.msra.gmra.mxu0 %vm4400_vm2, %v5732_v37  ;;  %7509 = vmatprep.subr.bf16.mxu1 %v18094_v3 }
0x1056   :  { %7397 = vmatpush3.bf16.msra.mxu0 %v8060_v15  ;;  %6216 = vmatprep.mubr.bf16.mxu0 %v5483_v58 }
0x1057   :  { %7398 = vmatprep.subr.bf16.mxu0 %v8061_v35 }
0x1058   :  { %7510 = vmatpush3.bf16.msra.mxu1 %v8078_v47 }
0x1059   :  { %7511 = vmatprep.subr.bf16.mxu1 %v18094_v3 }
0x105a   :  { %7399 = vmatpush3.bf16.msra.mxu0 %v8062_v36 }
0x105b   :  { %7400 = vmatprep.subr.bf16.mxu0 %v8063_v43 }
0x105c   :  { %7512 = vmatpush3.bf16.msra.mxu1 %v8079_v48 }
0x105d   :  { %7513 = vmatprep.subr.bf16.mxu1 %v18094_v3 }
0x105e   :  { %7401 = vmatpush3.bf16.msra.mxu0 %v8064_v32  ;;  %v8092_v32 = vld [vmem:[%s15780_s11 + $0x20] sm:$0xff]  }
0x105f   :  { %7402 = vmatprep.subr.bf16.mxu0 %v8065_v45  ;;  %v8093_v45 = vld [vmem:[%s15780_s11 + $0x18] sm:$0xff]  }
0x1060   :  { %7514 = vmatpush3.bf16.msra.mxu1 %v8080_v1 }
0x1061   :  { %7515 = vmatprep.subr.bf16.mxu1 %v18094_v3 }
0x1062   :  { %7403 = vmatpush3.bf16.msra.mxu0 %v8066_v33  ;;  %v8094_v33 = vld [vmem:[%s15780_s11 + $0x10] sm:$0xff]  }
0x1063   :  { %7404 = vmatprep.subr.bf16.mxu0 %v8067_v14  ;;  %v8095_v14 = vld [vmem:[%s15780_s11 + $0x8] sm:$0xff]  }
0x1064   :  { %7516 = vmatpush3.bf16.msra.mxu1 %v8081_v31 }
0x1065   :  { %7517 = vmatprep.subr.bf16.mxu1 %v18094_v3 }
0x1066   :  { %7405 = vmatpush3.bf16.msra.mxu0 %v8068_v25  ;;  %v8096_v25 = vld [vmem:[%s15780_s11] sm:$0xff]  }
0x1067   :  { %7406 = vmatprep.subr.bf16.mxu0 %v8069_v26  ;;  %v6891_v26 = vld [vmem:[%s15781_s10] ss:$0 sm:$0xff] }
0x1068   :  { %7518 = vmatpush3.bf16.msra.mxu1 %v8082_v17 }
0x1069   :  { %7543 = vmatprep.subr.bf16.mxu1 %v18094_v3 }
0x106a   :  { %7407 = vmatpush3.bf16.msra.mxu0 %v8070_v60 }
0x106b   :  { %7408 = vmatprep.subr.bf16.mxu0 %v8071_v29 }
0x106e   :  { %7409 = vmatpush3.bf16.msra.mxu0 %v8072_v59 }
0x106f   :  { %7410 = vmatprep.subr.bf16.mxu0 %v8073_v0 }
0x1072   :  { %7411 = vmatpush3.bf16.msra.mxu0 %v8074_v2 }
0x1073   :  { %7523 = vmatprep.subr.bf16.mxu0 %v18094_v3 }
0x1075   :  { %6217 = vmatmul.mubr.bf16.vlgmr.msra.gmra.mxu0 %v5150_v34 }
0x1076   :  { %7539 = vmatprep.mubr.msk.bf16.mxu0 %vm8755_vm1, %v18094_v3  ;;  %7524 = vmatpush3.bf16.msra.mxu0 %v6339_v16 }
0x1077   :  { %7525 = vmatprep.subr.bf16.mxu0 %v18094_v3 }
0x107a   :  { %7526 = vmatpush3.bf16.msra.mxu0 %v8084_v52 }
0x107b   :  { %7527 = vmatprep.subr.bf16.mxu0 %v18094_v3 }
0x107e   :  { %7528 = vmatpush3.bf16.msra.mxu0 %v8085_v39 }
0x107f   :  { %7529 = vmatprep.subr.bf16.mxu0 %v18094_v3 }
0x1082   :  { %7530 = vmatpush3.bf16.msra.mxu0 %v8086_v27 }
0x1083   :  { %7531 = vmatprep.subr.bf16.mxu0 %v18094_v3 }
0x1086   :  { %7532 = vmatpush3.bf16.msra.mxu0 %v8087_v21 }
0x1087   :  { %7533 = vmatprep.subr.bf16.mxu0 %v18094_v3 }
0x108a   :  { %7534 = vmatpush3.bf16.msra.mxu0 %v8088_v13 }
0x108b   :  { %7535 = vmatprep.subr.bf16.mxu0 %v18094_v3 }
0x108e   :  { %7536 = vmatpush3.bf16.msra.mxu0 %v8089_v24 }
0x108f   :  { %7537 = vmatprep.subr.bf16.mxu0 %v18094_v3 }
0x1092   :  { %7538 = vmatpush3.bf16.msra.mxu0 %v8090_v8 }
0x10eb   :  { %v7363_v19 = vpop.f32.mrf.mxu1 }
0x10ed   :  { %v7364_v55 = vpop.f32.mrf.mxu1 }
0x10ee   :  { %v7365_v44 = vadd.f32 %v7364_v55, %v7363_v19 }
0x10ef   :  { %v7366_v23 = vpop.f32.mrf.mxu1 }
0x10f1   :  { %v7367_v10 = vpop.f32.mrf.mxu1 }
0x110b   :  { %v7390_v28 = vpop.f32.mrf.mxu1 }
0x110d   :  { %v7391_v49 = vpop.f32.mrf.mxu1 }
0x110e   :  { %v7392_v56 = vadd.f32 %v7391_v49, %v7390_v28 }
0x110f   :  { %v7393_v4 = vpop.f32.mrf.mxu1 }
0x1110   :  { %v6179_v50 = vadd.f32 %v7392_v56, %v6850_v42 }
0x1111   :  { %v7394_v61 = vpop.f32.mrf.mxu1 }
0x1115   :  { %v5810_v20 = vpop.f32.mrf.mxu0 }
0x1116   :  { %v5811_v5 = vadd.f32 %v7365_v44, %v5810_v20 }
0x1117   :  { %v7501_v30 = vpop.f32.mrf.mxu0 }
0x1118   :  { %v5816_v12 = vpack.c.bf16 %v5811_v5, %v5811_v5 }
0x1119   :  { %v5813_v7 = vpop.f32.mrf.mxu0 }
0x111a   :  { %7520 = vmatmul.mubr.bf16.vlgmr.msra.gmra.mxu1 %v5816_v12 }
0x111b   :  { %v7502_v22 = vpop.f32.mrf.mxu0  ;;  %7555 = vmatprep.mubr.msk.bf16.mxu1 %vm8755_vm1, %v18094_v3  ;;  %7544 = vmatpush3.bf16.msra.mxu1 %v6440_v11 }
0x111c   :  { %7545 = vmatprep.subr.bf16.mxu1 %v18094_v3 }
0x111f   :  { %7546 = vmatpush3.bf16.msra.mxu1 %v8092_v32 }
0x1120   :  { %7547 = vmatprep.subr.bf16.mxu1 %v18094_v3 }
0x1123   :  { %7548 = vmatpush3.bf16.msra.mxu1 %v8093_v45 }
0x1124   :  { %7549 = vmatprep.subr.bf16.mxu1 %v18094_v3 }
0x1127   :  { %7550 = vmatpush3.bf16.msra.mxu1 %v8094_v33 }
0x1128   :  { %7551 = vmatprep.subr.bf16.mxu1 %v18094_v3 }
0x112b   :  { %7552 = vmatpush3.bf16.msra.mxu1 %v8095_v14 }
0x112c   :  { %7553 = vmatprep.subr.bf16.mxu1 %v18094_v3  ;;  %v6901_v3 = vld [vmem:[%s15782_s12] ss:$0 sm:$0xff] }
0x112f   :  { %7554 = vmatpush3.bf16.msra.mxu1 %v8096_v25 }
0x1135   :  { %v7412_v62 = vpop.f32.mrf.mxu0 }
0x1137   :  { %v7413_v46 = vpop.f32.mrf.mxu0 }
0x1138   :  { %v7414_v6 = vadd.f32 %v7413_v46, %v7412_v62 }
0x1139   :  { %v7415_v51 = vpop.f32.mrf.mxu0 }
0x113a   :  { %v6219_v41 = vadd.f32 %v7414_v6, %v6179_v50 }
0x113b   :  { %v7416_v9 = vpop.f32.mrf.mxu0 }
0x11da   :  { %v6258_v57 = vpop.f32.mrf.mxu1 }
0x11db   :  { %v6259_v15 = vadd.f32 %v6258_v57, %v6219_v41 }
0x11dc   :  { %v7521_v37 = vpop.f32.mrf.mxu1 }
0x11dd   :  { %8211 = vtanh.f32 %v6259_v15 }
0x11de   :  { %v6261_v35 = vpop.f32.mrf.mxu1 }
0x11e0   :  { %v7522_v58 = vpop.f32.mrf.mxu1 }
0x11ea   :  { %v8212_v36 = vpop.eup %8211 }
0x11eb   :  { %v6265_v43 = vpack.c.bf16 %v8212_v36, %v8212_v36 }
0x11ed   :  { %7540 = vmatmul.mubr.msk.bf16.vlgmr.msra.gmra.mxu0 %vm6333_vm5, %v6265_v43 }
0x12ad   :  { %v6375_v60 = vpop.f32.mrf.mxu0 }
0x12ae   :  { %v6376_v29 = vadd.f32 %v6891_v26, %v6375_v60 }
0x12af   :  { %v7541_v59 = vpop.f32.mrf.mxu0 }
0x12b0   :  { %8213 = vtanh.f32 %v6376_v29 }
0x12b1   :  { %v6378_v0 = vpop.f32.mrf.mxu0 }
0x12b3   :  { %v7542_v2 = vpop.f32.mrf.mxu0 }
0x12bd   :  { %v8214_v54 = vpop.eup %8213 }
0x12be   :  { %v6382_v40 = vpack.c.bf16 %v8214_v54, %v8214_v54 }
0x12c0   :  { %7556 = vmatmul.mubr.msk.bf16.vlgmr.msra.gmra.mxu1 %vm6434_vm6, %v6382_v40 }
0x1380   :  { %v6476_v34 = vpop.f32.mrf.mxu1 }
0x1381   :  { %v6477_v18 = vadd.f32 %v6901_v3, %v6476_v34 }
0x1382   :  { %v7557_v63 = vpop.f32.mrf.mxu1 }
0x1383   :  { %6482 = vst [vmem:[%s15783_s13] sm:$0xff] %v6477_v18 }
0x1384   :  { %v6479_v47 = vpop.f32.mrf.mxu1 }
0x1386   :  { %v7558_v48 = vpop.f32.mrf.mxu1 }

</bundles_post_ra>
